<compile_context>
chip_gen: v5e
topology: v5e:2x2
jax: 0.10.0
libtpu: 0.0.40
codegen_flags: <defaults>
</compile_context>

<pallas_src>
import jax
import jax.numpy as jnp
from jax.experimental import pallas as pl
from jax.experimental.pallas import tpu as pltpu


def _pick_b_tile(B):
    # <=256: 128 lanes (full-rate on v5e; gives nt>=2 on v7x when 128<B<=256
    # and avoids padding tiny batches to 256 lanes of dead work).
    # >256: 256 lanes fills the 2x256x256 MXU N dim on v6e/v7x.
    return 128 if B <= 256 else 256


def net_kernel(x_ref, w1_ref, b1_ref, w2_ref, b2_ref, wfc_ref, bfc_ref,
               out_ref, p1_ref, p2_ref):
    B = x_ref.shape[2]

    w1 = w1_ref[...]                                       # [192, 160] bf16
    w2 = w2_ref[...]                                       # [128, 480] bf16
    # Hoisted bias lane-broadcasts (JAX does not CSE broadcast_in_dim).
    b1 = jnp.broadcast_to(b1_ref[...], (192, B))           # f32
    b2 = jnp.broadcast_to(b2_ref[...], (128, B))           # f32

    # conv1 (banded matmul per output row) + bias + relu + 2x2 max-pool.
    # Pooled rows land in one contiguous bf16 slab p1_ref [12*96, B].
    for yp in range(12):
        halves = []
        for s in range(2):
            yo = 2 * yp + s
            rhs = x_ref[0, 32 * yo:32 * yo + 160, :]        # [160, B] bf16, contiguous
            r = jnp.dot(w1, rhs, preferred_element_type=jnp.float32)  # [192, B] f32
            halves.append(jnp.maximum(r + b1, 0.0))
        m = jnp.maximum(halves[0], halves[1])               # pool over rows
        p1_ref[96 * yp:96 * (yp + 1), :] = jnp.maximum(     # pool over cols
            m[0:96], m[96:192]).astype(jnp.bfloat16)        # -> [96, B]

    # conv2 + bias + relu + 2x2 max-pool -> bf16 slab p2_ref [4*64, B].
    for yp in range(4):
        halves = []
        for s in range(2):
            y2 = 2 * yp + s
            rhs = p1_ref[96 * y2:96 * y2 + 480, :]          # [480, B] bf16, contiguous
            r = jnp.dot(w2, rhs, preferred_element_type=jnp.float32)  # [128, B] f32
            halves.append(jnp.maximum(r + b2, 0.0))
        m = jnp.maximum(halves[0], halves[1])
        p2_ref[64 * yp:64 * (yp + 1), :] = jnp.maximum(
            m[0:64], m[64:128]).astype(jnp.bfloat16)        # -> [64, B]

    # dropout(p=0.5) is identity in eval mode.
    logits = (jnp.dot(wfc_ref[...], p2_ref[...],
                      preferred_element_type=jnp.float32)
              + bfc_ref[...])                               # [10, B] f32

    # argmax over classes (first maximal index), classes on the sublane axis.
    ids = jax.lax.broadcasted_iota(jnp.int32, logits.shape, 0)
    mx = jnp.max(logits, axis=0, keepdims=True)
    pred = jnp.min(jnp.where(logits == mx, ids, jnp.int32(10)),
                   axis=0, keepdims=True)                   # [1, B] int32
    out_ref[0] = pred
    # TODO(synk): training-mode branch (log_softmax) not implemented; this
    # kernel reproduces the eval-mode forward (argmax -> uint8).


def _prep_weights(params):
    """Pre-permute / band the PyTorch weights in plain JAX (glue)."""
    w1, b1, w2, b2, wfc, bfc = params

    # conv1 -> banded [192, 160]: rows = (parity, out_ch, out_col//2),
    #                             cols = (dy, in_col in [0,32))
    p = jnp.arange(2).reshape(2, 1, 1, 1, 1)
    co = jnp.arange(8).reshape(1, 8, 1, 1, 1)
    xh = jnp.arange(12).reshape(1, 1, 12, 1, 1)
    dy = jnp.arange(5).reshape(1, 1, 1, 5, 1)
    xi = jnp.arange(32).reshape(1, 1, 1, 1, 32)
    dx = xi - (2 * xh + p)
    w1n = (w1.reshape(8, 5, 5) / 255.0).astype(jnp.float32)   # fold /255 into conv1
    wbig1 = jnp.where((dx >= 0) & (dx <= 4),
                      w1n[co, dy, jnp.clip(dx, 0, 4)], 0.0).reshape(192, 160)
    b1c = jnp.broadcast_to(b1.reshape(1, 8, 1), (2, 8, 12)).reshape(192, 1)

    # conv2 -> banded [128, 480]: rows = (parity, out_ch, out_col//2),
    #                             cols = (dy, in_ch, in_col in [0,12))
    p = jnp.arange(2).reshape(2, 1, 1, 1, 1, 1)
    co2 = jnp.arange(16).reshape(1, 16, 1, 1, 1, 1)
    x2h = jnp.arange(4).reshape(1, 1, 4, 1, 1, 1)
    dy = jnp.arange(5).reshape(1, 1, 1, 5, 1, 1)
    ci = jnp.arange(8).reshape(1, 1, 1, 1, 8, 1)
    xi2 = jnp.arange(12).reshape(1, 1, 1, 1, 1, 12)
    dx = xi2 - (2 * x2h + p)
    wbig2 = jnp.where((dx >= 0) & (dx <= 4),
                      w2[co2, ci, dy, jnp.clip(dx, 0, 4)], 0.0)
    wbig2 = wbig2.reshape(128, 480).astype(jnp.float32)
    b2c = jnp.broadcast_to(b2.reshape(1, 16, 1), (2, 16, 4)).reshape(128, 1)

    # fc -> [10, 256] permuted to the kernel's (row, out_ch, col) flatten order
    # (torch flatten order is (out_ch, row, col)).
    wfc2 = jnp.transpose(wfc.reshape(10, 16, 4, 4), (0, 2, 1, 3)).reshape(10, 256)

    # bf16 operands for the MXU; biases stay f32 for the VPU epilogues.
    return (wbig1.astype(jnp.bfloat16), b1c.astype(jnp.float32),
            wbig2.astype(jnp.bfloat16), b2c.astype(jnp.float32),
            wfc2.astype(jnp.bfloat16), bfc.reshape(10, 1).astype(jnp.float32))


def net_forward(x_u8, params):
    B = x_u8.shape[0]
    bt = _pick_b_tile(B)
    nt = -(-B // bt)
    Bp = nt * bt

    # Batch-minor layout shuffle done in uint8 (1 byte/pixel); image width
    # padded 28->32 (padded columns only ever hit zero weight entries);
    # bf16 cast last (0..255 is exact in bf16; halves the kernel's input DMA).
    x = x_u8.reshape(B, 28, 28)
    x = jnp.pad(x, ((0, Bp - B), (0, 0), (0, 4)))
    x = jnp.transpose(x, (1, 2, 0)).reshape(28, 32, nt, bt).transpose(2, 0, 1, 3)
    x = x.reshape(nt, 896, bt).astype(jnp.bfloat16)

    wbig1, b1c, wbig2, b2c, wfc2, bfcc = _prep_weights(params)

    out = pl.pallas_call(
        net_kernel,
        out_shape=jax.ShapeDtypeStruct((nt, 1, bt), jnp.int32),
        grid_spec=pltpu.PrefetchScalarGridSpec(
            num_scalar_prefetch=0,
            grid=(nt,),
            in_specs=[
                pl.BlockSpec((1, 896, bt), lambda i: (i, 0, 0)),
                pl.BlockSpec((192, 160), lambda i: (0, 0)),
                pl.BlockSpec((192, 1), lambda i: (0, 0)),
                pl.BlockSpec((128, 480), lambda i: (0, 0)),
                pl.BlockSpec((128, 1), lambda i: (0, 0)),
                pl.BlockSpec((10, 256), lambda i: (0, 0)),
                pl.BlockSpec((10, 1), lambda i: (0, 0)),
            ],
            out_specs=pl.BlockSpec((1, 1, bt), lambda i: (i, 0, 0)),
            scratch_shapes=[pltpu.VMEM((1152, bt), jnp.bfloat16),   # conv1 pooled
                            pltpu.VMEM((256, bt), jnp.bfloat16)],   # conv2 pooled
        ),
        compiler_params=pltpu.CompilerParams(
            dimension_semantics=("parallel",)),
    )(x, wbig1, b1c, wbig2, b2c, wfc2, bfcc)

    return out.reshape(Bp)[:B].astype(jnp.uint8)          # eval output: uint8 class id


def init_params(key):
    ks = jax.random.split(key, 6)
    w1 = jax.random.normal(ks[0], (8, 1, 5, 5), jnp.float32) * 0.2
    b1 = jax.random.normal(ks[1], (8,), jnp.float32) * 0.1
    w2 = jax.random.normal(ks[2], (16, 8, 5, 5), jnp.float32) * 0.1
    b2 = jax.random.normal(ks[3], (16,), jnp.float32) * 0.1
    wfc = jax.random.normal(ks[4], (10, 256), jnp.float32) * 0.05
    bfc = jax.random.normal(ks[5], (10,), jnp.float32) * 0.05
    return (w1, b1, w2, b2, wfc, bfc)


if __name__ == "__main__":
    key = jax.random.PRNGKey(0)
    kx, kp = jax.random.split(key)
    # uint8 MNIST-like input, NCHW, batch=2 (28x28 fixed by fc in_features=256)
    x = jax.random.randint(kx, (2, 1, 28, 28), 0, 256,
                           dtype=jnp.int32).astype(jnp.uint8)
    params = init_params(kp)
    y = net_forward(x, params)
    jax.block_until_ready(y)
    print("KERNEL_OK")
</pallas_src>

<mosaic_0001>
module attributes {stable_mosaic.version = 11 : i64} {
  func.func @net_kernel(%arg0: i32, %arg1: memref<1x896x128xbf16, #tpu.memory_space<vmem>>, %arg2: memref<192x160xbf16, #tpu.memory_space<vmem>>, %arg3: memref<192x1xf32, #tpu.memory_space<vmem>>, %arg4: memref<128x480xbf16, #tpu.memory_space<vmem>>, %arg5: memref<128x1xf32, #tpu.memory_space<vmem>>, %arg6: memref<10x256xbf16, #tpu.memory_space<vmem>>, %arg7: memref<10x1xf32, #tpu.memory_space<vmem>>, %arg8: memref<1x1x128xi32, #tpu.memory_space<vmem>>, %arg9: memref<1152x128xbf16, #tpu.memory_space<vmem>>, %arg10: memref<256x128xbf16, #tpu.memory_space<vmem>>) attributes {dimension_semantics = [#tpu.dimension_semantics<parallel>], iteration_bounds = array<i64: 1>, scalar_prefetch = 0 : i64, scratch_operands = 2 : i64, tpu.core_type = #tpu.core_type<tc>, window_params = [{transform_indices = @transform_0, window_bounds = array<i64: 1, 896, 128>}, {pipeline_mode = #tpu.pipeline_mode<synchronous>, transform_indices = @transform_1, window_bounds = array<i64: 192, 160>}, {pipeline_mode = #tpu.pipeline_mode<synchronous>, transform_indices = @transform_2, window_bounds = array<i64: 192, 1>}, {pipeline_mode = #tpu.pipeline_mode<synchronous>, transform_indices = @transform_3, window_bounds = array<i64: 128, 480>}, {pipeline_mode = #tpu.pipeline_mode<synchronous>, transform_indices = @transform_4, window_bounds = array<i64: 128, 1>}, {pipeline_mode = #tpu.pipeline_mode<synchronous>, transform_indices = @transform_5, window_bounds = array<i64: 10, 256>}, {pipeline_mode = #tpu.pipeline_mode<synchronous>, transform_indices = @transform_6, window_bounds = array<i64: 10, 1>}, {transform_indices = @transform_7, window_bounds = array<i64: 1, 1, 128>}]} {
    %c0 = arith.constant 0 : index
    %c0_0 = arith.constant 0 : index
    %0 = vector.load %arg2[%c0, %c0_0] : memref<192x160xbf16, #tpu.memory_space<vmem>>, vector<192x160xbf16>
    %c0_1 = arith.constant 0 : index
    %c0_2 = arith.constant 0 : index
    %1 = vector.load %arg4[%c0_1, %c0_2] : memref<128x480xbf16, #tpu.memory_space<vmem>>, vector<128x480xbf16>
    %c0_3 = arith.constant 0 : index
    %c0_4 = arith.constant 0 : index
    %2 = vector.load %arg3[%c0_3, %c0_4] : memref<192x1xf32, #tpu.memory_space<vmem>>, vector<192x1xf32>
    %3 = vector.shape_cast %2 : vector<192x1xf32> to vector<192x1xf32>
    %4 = vector.broadcast %3 : vector<192x1xf32> to vector<192x128xf32>
    %c0_5 = arith.constant 0 : index
    %c0_6 = arith.constant 0 : index
    %5 = vector.load %arg5[%c0_5, %c0_6] : memref<128x1xf32, #tpu.memory_space<vmem>>, vector<128x1xf32>
    %6 = vector.shape_cast %5 : vector<128x1xf32> to vector<128x1xf32>
    %7 = vector.broadcast %6 : vector<128x1xf32> to vector<128x128xf32>
    %c0_7 = arith.constant 0 : index
    %c0_8 = arith.constant 0 : index
    %c0_9 = arith.constant 0 : index
    %8 = vector.load %arg1[%c0_7, %c0_8, %c0_9] : memref<1x896x128xbf16, #tpu.memory_space<vmem>>, vector<1x160x128xbf16>
    %9 = vector.shape_cast %8 : vector<1x160x128xbf16> to vector<160x128xbf16>
    %cst = arith.constant dense<0.000000e+00> : vector<192x128xf32>
    %10 = tpu.matmul %0, %9, %cst {dimension_numbers = #tpu.dot_dimension_numbers<[1], [0], [0], [1], [0, 0, 1, 1], [], []>} : vector<192x160xbf16>, vector<160x128xbf16>, vector<192x128xf32> -> vector<192x128xf32>
    %11 = arith.addf %10, %4 : vector<192x128xf32>
    %cst_10 = arith.constant 0.000000e+00 : f32
    %12 = vector.broadcast %cst_10 : f32 to vector<192x128xf32>
    %13 = arith.maximumf %11, %12 : vector<192x128xf32>
    %c0_11 = arith.constant 0 : index
    %c32 = arith.constant 32 : index
    %c0_12 = arith.constant 0 : index
    %14 = vector.load %arg1[%c0_11, %c32, %c0_12] : memref<1x896x128xbf16, #tpu.memory_space<vmem>>, vector<1x160x128xbf16>
    %15 = vector.shape_cast %14 : vector<1x160x128xbf16> to vector<160x128xbf16>
    %cst_13 = arith.constant dense<0.000000e+00> : vector<192x128xf32>
    %16 = tpu.matmul %0, %15, %cst_13 {dimension_numbers = #tpu.dot_dimension_numbers<[1], [0], [0], [1], [0, 0, 1, 1], [], []>} : vector<192x160xbf16>, vector<160x128xbf16>, vector<192x128xf32> -> vector<192x128xf32>
    %17 = arith.addf %16, %4 : vector<192x128xf32>
    %cst_14 = arith.constant 0.000000e+00 : f32
    %18 = vector.broadcast %cst_14 : f32 to vector<192x128xf32>
    %19 = arith.maximumf %17, %18 : vector<192x128xf32>
    %20 = arith.maximumf %13, %19 : vector<192x128xf32>
    %21 = vector.extract_strided_slice %20 {offsets = [0, 0], sizes = [96, 128], strides = [1, 1]} : vector<192x128xf32> to vector<96x128xf32>
    %22 = vector.extract_strided_slice %20 {offsets = [96, 0], sizes = [96, 128], strides = [1, 1]} : vector<192x128xf32> to vector<96x128xf32>
    %23 = arith.maximumf %21, %22 : vector<96x128xf32>
    %24 = arith.truncf %23 : vector<96x128xf32> to vector<96x128xbf16>
    %c0_15 = arith.constant 0 : index
    %c0_16 = arith.constant 0 : index
    %25 = vector.load %arg9[%c0_15, %c0_16] : memref<1152x128xbf16, #tpu.memory_space<vmem>>, vector<96x128xbf16>
    tpu.vector_store %arg9[%c0_15, %c0_16], %24 {strides = array<i32>} : memref<1152x128xbf16, #tpu.memory_space<vmem>>, vector<96x128xbf16>,
    %c0_17 = arith.constant 0 : index
    %c64 = arith.constant 64 : index
    %c0_18 = arith.constant 0 : index
    %26 = vector.load %arg1[%c0_17, %c64, %c0_18] : memref<1x896x128xbf16, #tpu.memory_space<vmem>>, vector<1x160x128xbf16>
    %27 = vector.shape_cast %26 : vector<1x160x128xbf16> to vector<160x128xbf16>
    %cst_19 = arith.constant dense<0.000000e+00> : vector<192x128xf32>
    %28 = tpu.matmul %0, %27, %cst_19 {dimension_numbers = #tpu.dot_dimension_numbers<[1], [0], [0], [1], [0, 0, 1, 1], [], []>} : vector<192x160xbf16>, vector<160x128xbf16>, vector<192x128xf32> -> vector<192x128xf32>
    %29 = arith.addf %28, %4 : vector<192x128xf32>
    %cst_20 = arith.constant 0.000000e+00 : f32
    %30 = vector.broadcast %cst_20 : f32 to vector<192x128xf32>
    %31 = arith.maximumf %29, %30 : vector<192x128xf32>
    %c0_21 = arith.constant 0 : index
    %c96 = arith.constant 96 : index
    %c0_22 = arith.constant 0 : index
    %32 = vector.load %arg1[%c0_21, %c96, %c0_22] : memref<1x896x128xbf16, #tpu.memory_space<vmem>>, vector<1x160x128xbf16>
    %33 = vector.shape_cast %32 : vector<1x160x128xbf16> to vector<160x128xbf16>
    %cst_23 = arith.constant dense<0.000000e+00> : vector<192x128xf32>
    %34 = tpu.matmul %0, %33, %cst_23 {dimension_numbers = #tpu.dot_dimension_numbers<[1], [0], [0], [1], [0, 0, 1, 1], [], []>} : vector<192x160xbf16>, vector<160x128xbf16>, vector<192x128xf32> -> vector<192x128xf32>
    %35 = arith.addf %34, %4 : vector<192x128xf32>
    %cst_24 = arith.constant 0.000000e+00 : f32
    %36 = vector.broadcast %cst_24 : f32 to vector<192x128xf32>
    %37 = arith.maximumf %35, %36 : vector<192x128xf32>
    %38 = arith.maximumf %31, %37 : vector<192x128xf32>
    %39 = vector.extract_strided_slice %38 {offsets = [0, 0], sizes = [96, 128], strides = [1, 1]} : vector<192x128xf32> to vector<96x128xf32>
    %40 = vector.extract_strided_slice %38 {offsets = [96, 0], sizes = [96, 128], strides = [1, 1]} : vector<192x128xf32> to vector<96x128xf32>
    %41 = arith.maximumf %39, %40 : vector<96x128xf32>
    %42 = arith.truncf %41 : vector<96x128xf32> to vector<96x128xbf16>
    %c96_25 = arith.constant 96 : index
    %c0_26 = arith.constant 0 : index
    %43 = vector.load %arg9[%c96_25, %c0_26] : memref<1152x128xbf16, #tpu.memory_space<vmem>>, vector<96x128xbf16>
    tpu.vector_store %arg9[%c96_25, %c0_26], %42 {strides = array<i32>} : memref<1152x128xbf16, #tpu.memory_space<vmem>>, vector<96x128xbf16>,
    %c0_27 = arith.constant 0 : index
    %c128 = arith.constant 128 : index
    %c0_28 = arith.constant 0 : index
    %44 = vector.load %arg1[%c0_27, %c128, %c0_28] : memref<1x896x128xbf16, #tpu.memory_space<vmem>>, vector<1x160x128xbf16>
    %45 = vector.shape_cast %44 : vector<1x160x128xbf16> to vector<160x128xbf16>
    %cst_29 = arith.constant dense<0.000000e+00> : vector<192x128xf32>
    %46 = tpu.matmul %0, %45, %cst_29 {dimension_numbers = #tpu.dot_dimension_numbers<[1], [0], [0], [1], [0, 0, 1, 1], [], []>} : vector<192x160xbf16>, vector<160x128xbf16>, vector<192x128xf32> -> vector<192x128xf32>
    %47 = arith.addf %46, %4 : vector<192x128xf32>
    %cst_30 = arith.constant 0.000000e+00 : f32
    %48 = vector.broadcast %cst_30 : f32 to vector<192x128xf32>
    %49 = arith.maximumf %47, %48 : vector<192x128xf32>
    %c0_31 = arith.constant 0 : index
    %c160 = arith.constant 160 : index
    %c0_32 = arith.constant 0 : index
    %50 = vector.load %arg1[%c0_31, %c160, %c0_32] : memref<1x896x128xbf16, #tpu.memory_space<vmem>>, vector<1x160x128xbf16>
    %51 = vector.shape_cast %50 : vector<1x160x128xbf16> to vector<160x128xbf16>
    %cst_33 = arith.constant dense<0.000000e+00> : vector<192x128xf32>
    %52 = tpu.matmul %0, %51, %cst_33 {dimension_numbers = #tpu.dot_dimension_numbers<[1], [0], [0], [1], [0, 0, 1, 1], [], []>} : vector<192x160xbf16>, vector<160x128xbf16>, vector<192x128xf32> -> vector<192x128xf32>
    %53 = arith.addf %52, %4 : vector<192x128xf32>
    %cst_34 = arith.constant 0.000000e+00 : f32
    %54 = vector.broadcast %cst_34 : f32 to vector<192x128xf32>
    %55 = arith.maximumf %53, %54 : vector<192x128xf32>
    %56 = arith.maximumf %49, %55 : vector<192x128xf32>
    %57 = vector.extract_strided_slice %56 {offsets = [0, 0], sizes = [96, 128], strides = [1, 1]} : vector<192x128xf32> to vector<96x128xf32>
    %58 = vector.extract_strided_slice %56 {offsets = [96, 0], sizes = [96, 128], strides = [1, 1]} : vector<192x128xf32> to vector<96x128xf32>
    %59 = arith.maximumf %57, %58 : vector<96x128xf32>
    %60 = arith.truncf %59 : vector<96x128xf32> to vector<96x128xbf16>
    %c192 = arith.constant 192 : index
    %c0_35 = arith.constant 0 : index
    %61 = vector.load %arg9[%c192, %c0_35] : memref<1152x128xbf16, #tpu.memory_space<vmem>>, vector<96x128xbf16>
    tpu.vector_store %arg9[%c192, %c0_35], %60 {strides = array<i32>} : memref<1152x128xbf16, #tpu.memory_space<vmem>>, vector<96x128xbf16>,
    %c0_36 = arith.constant 0 : index
    %c192_37 = arith.constant 192 : index
    %c0_38 = arith.constant 0 : index
    %62 = vector.load %arg1[%c0_36, %c192_37, %c0_38] : memref<1x896x128xbf16, #tpu.memory_space<vmem>>, vector<1x160x128xbf16>
    %63 = vector.shape_cast %62 : vector<1x160x128xbf16> to vector<160x128xbf16>
    %cst_39 = arith.constant dense<0.000000e+00> : vector<192x128xf32>
    %64 = tpu.matmul %0, %63, %cst_39 {dimension_numbers = #tpu.dot_dimension_numbers<[1], [0], [0], [1], [0, 0, 1, 1], [], []>} : vector<192x160xbf16>, vector<160x128xbf16>, vector<192x128xf32> -> vector<192x128xf32>
    %65 = arith.addf %64, %4 : vector<192x128xf32>
    %cst_40 = arith.constant 0.000000e+00 : f32
    %66 = vector.broadcast %cst_40 : f32 to vector<192x128xf32>
    %67 = arith.maximumf %65, %66 : vector<192x128xf32>
    %c0_41 = arith.constant 0 : index
    %c224 = arith.constant 224 : index
    %c0_42 = arith.constant 0 : index
    %68 = vector.load %arg1[%c0_41, %c224, %c0_42] : memref<1x896x128xbf16, #tpu.memory_space<vmem>>, vector<1x160x128xbf16>
    %69 = vector.shape_cast %68 : vector<1x160x128xbf16> to vector<160x128xbf16>
    %cst_43 = arith.constant dense<0.000000e+00> : vector<192x128xf32>
    %70 = tpu.matmul %0, %69, %cst_43 {dimension_numbers = #tpu.dot_dimension_numbers<[1], [0], [0], [1], [0, 0, 1, 1], [], []>} : vector<192x160xbf16>, vector<160x128xbf16>, vector<192x128xf32> -> vector<192x128xf32>
    %71 = arith.addf %70, %4 : vector<192x128xf32>
    %cst_44 = arith.constant 0.000000e+00 : f32
    %72 = vector.broadcast %cst_44 : f32 to vector<192x128xf32>
    %73 = arith.maximumf %71, %72 : vector<192x128xf32>
    %74 = arith.maximumf %67, %73 : vector<192x128xf32>
    %75 = vector.extract_strided_slice %74 {offsets = [0, 0], sizes = [96, 128], strides = [1, 1]} : vector<192x128xf32> to vector<96x128xf32>
    %76 = vector.extract_strided_slice %74 {offsets = [96, 0], sizes = [96, 128], strides = [1, 1]} : vector<192x128xf32> to vector<96x128xf32>
    %77 = arith.maximumf %75, %76 : vector<96x128xf32>
    %78 = arith.truncf %77 : vector<96x128xf32> to vector<96x128xbf16>
    %c288 = arith.constant 288 : index
    %c0_45 = arith.constant 0 : index
    %79 = vector.load %arg9[%c288, %c0_45] : memref<1152x128xbf16, #tpu.memory_space<vmem>>, vector<96x128xbf16>
    tpu.vector_store %arg9[%c288, %c0_45], %78 {strides = array<i32>} : memref<1152x128xbf16, #tpu.memory_space<vmem>>, vector<96x128xbf16>,
    %c0_46 = arith.constant 0 : index
    %c256 = arith.constant 256 : index
    %c0_47 = arith.constant 0 : index
    %80 = vector.load %arg1[%c0_46, %c256, %c0_47] : memref<1x896x128xbf16, #tpu.memory_space<vmem>>, vector<1x160x128xbf16>
    %81 = vector.shape_cast %80 : vector<1x160x128xbf16> to vector<160x128xbf16>
    %cst_48 = arith.constant dense<0.000000e+00> : vector<192x128xf32>
    %82 = tpu.matmul %0, %81, %cst_48 {dimension_numbers = #tpu.dot_dimension_numbers<[1], [0], [0], [1], [0, 0, 1, 1], [], []>} : vector<192x160xbf16>, vector<160x128xbf16>, vector<192x128xf32> -> vector<192x128xf32>
    %83 = arith.addf %82, %4 : vector<192x128xf32>
    %cst_49 = arith.constant 0.000000e+00 : f32
    %84 = vector.broadcast %cst_49 : f32 to vector<192x128xf32>
    %85 = arith.maximumf %83, %84 : vector<192x128xf32>
    %c0_50 = arith.constant 0 : index
    %c288_51 = arith.constant 288 : index
    %c0_52 = arith.constant 0 : index
    %86 = vector.load %arg1[%c0_50, %c288_51, %c0_52] : memref<1x896x128xbf16, #tpu.memory_space<vmem>>, vector<1x160x128xbf16>
    %87 = vector.shape_cast %86 : vector<1x160x128xbf16> to vector<160x128xbf16>
    %cst_53 = arith.constant dense<0.000000e+00> : vector<192x128xf32>
    %88 = tpu.matmul %0, %87, %cst_53 {dimension_numbers = #tpu.dot_dimension_numbers<[1], [0], [0], [1], [0, 0, 1, 1], [], []>} : vector<192x160xbf16>, vector<160x128xbf16>, vector<192x128xf32> -> vector<192x128xf32>
    %89 = arith.addf %88, %4 : vector<192x128xf32>
    %cst_54 = arith.constant 0.000000e+00 : f32
    %90 = vector.broadcast %cst_54 : f32 to vector<192x128xf32>
    %91 = arith.maximumf %89, %90 : vector<192x128xf32>
    %92 = arith.maximumf %85, %91 : vector<192x128xf32>
    %93 = vector.extract_strided_slice %92 {offsets = [0, 0], sizes = [96, 128], strides = [1, 1]} : vector<192x128xf32> to vector<96x128xf32>
    %94 = vector.extract_strided_slice %92 {offsets = [96, 0], sizes = [96, 128], strides = [1, 1]} : vector<192x128xf32> to vector<96x128xf32>
    %95 = arith.maximumf %93, %94 : vector<96x128xf32>
    %96 = arith.truncf %95 : vector<96x128xf32> to vector<96x128xbf16>
    %c384 = arith.constant 384 : index
    %c0_55 = arith.constant 0 : index
    %97 = vector.load %arg9[%c384, %c0_55] : memref<1152x128xbf16, #tpu.memory_space<vmem>>, vector<96x128xbf16>
    tpu.vector_store %arg9[%c384, %c0_55], %96 {strides = array<i32>} : memref<1152x128xbf16, #tpu.memory_space<vmem>>, vector<96x128xbf16>,
    %c0_56 = arith.constant 0 : index
    %c320 = arith.constant 320 : index
    %c0_57 = arith.constant 0 : index
    %98 = vector.load %arg1[%c0_56, %c320, %c0_57] : memref<1x896x128xbf16, #tpu.memory_space<vmem>>, vector<1x160x128xbf16>
    %99 = vector.shape_cast %98 : vector<1x160x128xbf16> to vector<160x128xbf16>
    %cst_58 = arith.constant dense<0.000000e+00> : vector<192x128xf32>
    %100 = tpu.matmul %0, %99, %cst_58 {dimension_numbers = #tpu.dot_dimension_numbers<[1], [0], [0], [1], [0, 0, 1, 1], [], []>} : vector<192x160xbf16>, vector<160x128xbf16>, vector<192x128xf32> -> vector<192x128xf32>
    %101 = arith.addf %100, %4 : vector<192x128xf32>
    %cst_59 = arith.constant 0.000000e+00 : f32
    %102 = vector.broadcast %cst_59 : f32 to vector<192x128xf32>
    %103 = arith.maximumf %101, %102 : vector<192x128xf32>
    %c0_60 = arith.constant 0 : index
    %c352 = arith.constant 352 : index
    %c0_61 = arith.constant 0 : index
    %104 = vector.load %arg1[%c0_60, %c352, %c0_61] : memref<1x896x128xbf16, #tpu.memory_space<vmem>>, vector<1x160x128xbf16>
    %105 = vector.shape_cast %104 : vector<1x160x128xbf16> to vector<160x128xbf16>
    %cst_62 = arith.constant dense<0.000000e+00> : vector<192x128xf32>
    %106 = tpu.matmul %0, %105, %cst_62 {dimension_numbers = #tpu.dot_dimension_numbers<[1], [0], [0], [1], [0, 0, 1, 1], [], []>} : vector<192x160xbf16>, vector<160x128xbf16>, vector<192x128xf32> -> vector<192x128xf32>
    %107 = arith.addf %106, %4 : vector<192x128xf32>
    %cst_63 = arith.constant 0.000000e+00 : f32
    %108 = vector.broadcast %cst_63 : f32 to vector<192x128xf32>
    %109 = arith.maximumf %107, %108 : vector<192x128xf32>
    %110 = arith.maximumf %103, %109 : vector<192x128xf32>
    %111 = vector.extract_strided_slice %110 {offsets = [0, 0], sizes = [96, 128], strides = [1, 1]} : vector<192x128xf32> to vector<96x128xf32>
    %112 = vector.extract_strided_slice %110 {offsets = [96, 0], sizes = [96, 128], strides = [1, 1]} : vector<192x128xf32> to vector<96x128xf32>
    %113 = arith.maximumf %111, %112 : vector<96x128xf32>
    %114 = arith.truncf %113 : vector<96x128xf32> to vector<96x128xbf16>
    %c480 = arith.constant 480 : index
    %c0_64 = arith.constant 0 : index
    %115 = vector.load %arg9[%c480, %c0_64] : memref<1152x128xbf16, #tpu.memory_space<vmem>>, vector<96x128xbf16>
    tpu.vector_store %arg9[%c480, %c0_64], %114 {strides = array<i32>} : memref<1152x128xbf16, #tpu.memory_space<vmem>>, vector<96x128xbf16>,
    %c0_65 = arith.constant 0 : index
    %c384_66 = arith.constant 384 : index
    %c0_67 = arith.constant 0 : index
    %116 = vector.load %arg1[%c0_65, %c384_66, %c0_67] : memref<1x896x128xbf16, #tpu.memory_space<vmem>>, vector<1x160x128xbf16>
    %117 = vector.shape_cast %116 : vector<1x160x128xbf16> to vector<160x128xbf16>
    %cst_68 = arith.constant dense<0.000000e+00> : vector<192x128xf32>
    %118 = tpu.matmul %0, %117, %cst_68 {dimension_numbers = #tpu.dot_dimension_numbers<[1], [0], [0], [1], [0, 0, 1, 1], [], []>} : vector<192x160xbf16>, vector<160x128xbf16>, vector<192x128xf32> -> vector<192x128xf32>
    %119 = arith.addf %118, %4 : vector<192x128xf32>
    %cst_69 = arith.constant 0.000000e+00 : f32
    %120 = vector.broadcast %cst_69 : f32 to vector<192x128xf32>
    %121 = arith.maximumf %119, %120 : vector<192x128xf32>
    %c0_70 = arith.constant 0 : index
    %c416 = arith.constant 416 : index
    %c0_71 = arith.constant 0 : index
    %122 = vector.load %arg1[%c0_70, %c416, %c0_71] : memref<1x896x128xbf16, #tpu.memory_space<vmem>>, vector<1x160x128xbf16>
    %123 = vector.shape_cast %122 : vector<1x160x128xbf16> to vector<160x128xbf16>
    %cst_72 = arith.constant dense<0.000000e+00> : vector<192x128xf32>
    %124 = tpu.matmul %0, %123, %cst_72 {dimension_numbers = #tpu.dot_dimension_numbers<[1], [0], [0], [1], [0, 0, 1, 1], [], []>} : vector<192x160xbf16>, vector<160x128xbf16>, vector<192x128xf32> -> vector<192x128xf32>
    %125 = arith.addf %124, %4 : vector<192x128xf32>
    %cst_73 = arith.constant 0.000000e+00 : f32
    %126 = vector.broadcast %cst_73 : f32 to vector<192x128xf32>
    %127 = arith.maximumf %125, %126 : vector<192x128xf32>
    %128 = arith.maximumf %121, %127 : vector<192x128xf32>
    %129 = vector.extract_strided_slice %128 {offsets = [0, 0], sizes = [96, 128], strides = [1, 1]} : vector<192x128xf32> to vector<96x128xf32>
    %130 = vector.extract_strided_slice %128 {offsets = [96, 0], sizes = [96, 128], strides = [1, 1]} : vector<192x128xf32> to vector<96x128xf32>
    %131 = arith.maximumf %129, %130 : vector<96x128xf32>
    %132 = arith.truncf %131 : vector<96x128xf32> to vector<96x128xbf16>
    %c576 = arith.constant 576 : index
    %c0_74 = arith.constant 0 : index
    %133 = vector.load %arg9[%c576, %c0_74] : memref<1152x128xbf16, #tpu.memory_space<vmem>>, vector<96x128xbf16>
    tpu.vector_store %arg9[%c576, %c0_74], %132 {strides = array<i32>} : memref<1152x128xbf16, #tpu.memory_space<vmem>>, vector<96x128xbf16>,
    %c0_75 = arith.constant 0 : index
    %c448 = arith.constant 448 : index
    %c0_76 = arith.constant 0 : index
    %134 = vector.load %arg1[%c0_75, %c448, %c0_76] : memref<1x896x128xbf16, #tpu.memory_space<vmem>>, vector<1x160x128xbf16>
    %135 = vector.shape_cast %134 : vector<1x160x128xbf16> to vector<160x128xbf16>
    %cst_77 = arith.constant dense<0.000000e+00> : vector<192x128xf32>
    %136 = tpu.matmul %0, %135, %cst_77 {dimension_numbers = #tpu.dot_dimension_numbers<[1], [0], [0], [1], [0, 0, 1, 1], [], []>} : vector<192x160xbf16>, vector<160x128xbf16>, vector<192x128xf32> -> vector<192x128xf32>
    %137 = arith.addf %136, %4 : vector<192x128xf32>
    %cst_78 = arith.constant 0.000000e+00 : f32
    %138 = vector.broadcast %cst_78 : f32 to vector<192x128xf32>
    %139 = arith.maximumf %137, %138 : vector<192x128xf32>
    %c0_79 = arith.constant 0 : index
    %c480_80 = arith.constant 480 : index
    %c0_81 = arith.constant 0 : index
    %140 = vector.load %arg1[%c0_79, %c480_80, %c0_81] : memref<1x896x128xbf16, #tpu.memory_space<vmem>>, vector<1x160x128xbf16>
    %141 = vector.shape_cast %140 : vector<1x160x128xbf16> to vector<160x128xbf16>
    %cst_82 = arith.constant dense<0.000000e+00> : vector<192x128xf32>
    %142 = tpu.matmul %0, %141, %cst_82 {dimension_numbers = #tpu.dot_dimension_numbers<[1], [0], [0], [1], [0, 0, 1, 1], [], []>} : vector<192x160xbf16>, vector<160x128xbf16>, vector<192x128xf32> -> vector<192x128xf32>
    %143 = arith.addf %142, %4 : vector<192x128xf32>
    %cst_83 = arith.constant 0.000000e+00 : f32
    %144 = vector.broadcast %cst_83 : f32 to vector<192x128xf32>
    %145 = arith.maximumf %143, %144 : vector<192x128xf32>
    %146 = arith.maximumf %139, %145 : vector<192x128xf32>
    %147 = vector.extract_strided_slice %146 {offsets = [0, 0], sizes = [96, 128], strides = [1, 1]} : vector<192x128xf32> to vector<96x128xf32>
    %148 = vector.extract_strided_slice %146 {offsets = [96, 0], sizes = [96, 128], strides = [1, 1]} : vector<192x128xf32> to vector<96x128xf32>
    %149 = arith.maximumf %147, %148 : vector<96x128xf32>
    %150 = arith.truncf %149 : vector<96x128xf32> to vector<96x128xbf16>
    %c672 = arith.constant 672 : index
    %c0_84 = arith.constant 0 : index
    %151 = vector.load %arg9[%c672, %c0_84] : memref<1152x128xbf16, #tpu.memory_space<vmem>>, vector<96x128xbf16>
    tpu.vector_store %arg9[%c672, %c0_84], %150 {strides = array<i32>} : memref<1152x128xbf16, #tpu.memory_space<vmem>>, vector<96x128xbf16>,
    %c0_85 = arith.constant 0 : index
    %c512 = arith.constant 512 : index
    %c0_86 = arith.constant 0 : index
    %152 = vector.load %arg1[%c0_85, %c512, %c0_86] : memref<1x896x128xbf16, #tpu.memory_space<vmem>>, vector<1x160x128xbf16>
    %153 = vector.shape_cast %152 : vector<1x160x128xbf16> to vector<160x128xbf16>
    %cst_87 = arith.constant dense<0.000000e+00> : vector<192x128xf32>
    %154 = tpu.matmul %0, %153, %cst_87 {dimension_numbers = #tpu.dot_dimension_numbers<[1], [0], [0], [1], [0, 0, 1, 1], [], []>} : vector<192x160xbf16>, vector<160x128xbf16>, vector<192x128xf32> -> vector<192x128xf32>
    %155 = arith.addf %154, %4 : vector<192x128xf32>
    %cst_88 = arith.constant 0.000000e+00 : f32
    %156 = vector.broadcast %cst_88 : f32 to vector<192x128xf32>
    %157 = arith.maximumf %155, %156 : vector<192x128xf32>
    %c0_89 = arith.constant 0 : index
    %c544 = arith.constant 544 : index
    %c0_90 = arith.constant 0 : index
    %158 = vector.load %arg1[%c0_89, %c544, %c0_90] : memref<1x896x128xbf16, #tpu.memory_space<vmem>>, vector<1x160x128xbf16>
    %159 = vector.shape_cast %158 : vector<1x160x128xbf16> to vector<160x128xbf16>
    %cst_91 = arith.constant dense<0.000000e+00> : vector<192x128xf32>
    %160 = tpu.matmul %0, %159, %cst_91 {dimension_numbers = #tpu.dot_dimension_numbers<[1], [0], [0], [1], [0, 0, 1, 1], [], []>} : vector<192x160xbf16>, vector<160x128xbf16>, vector<192x128xf32> -> vector<192x128xf32>
    %161 = arith.addf %160, %4 : vector<192x128xf32>
    %cst_92 = arith.constant 0.000000e+00 : f32
    %162 = vector.broadcast %cst_92 : f32 to vector<192x128xf32>
    %163 = arith.maximumf %161, %162 : vector<192x128xf32>
    %164 = arith.maximumf %157, %163 : vector<192x128xf32>
    %165 = vector.extract_strided_slice %164 {offsets = [0, 0], sizes = [96, 128], strides = [1, 1]} : vector<192x128xf32> to vector<96x128xf32>
    %166 = vector.extract_strided_slice %164 {offsets = [96, 0], sizes = [96, 128], strides = [1, 1]} : vector<192x128xf32> to vector<96x128xf32>
    %167 = arith.maximumf %165, %166 : vector<96x128xf32>
    %168 = arith.truncf %167 : vector<96x128xf32> to vector<96x128xbf16>
    %c768 = arith.constant 768 : index
    %c0_93 = arith.constant 0 : index
    %169 = vector.load %arg9[%c768, %c0_93] : memref<1152x128xbf16, #tpu.memory_space<vmem>>, vector<96x128xbf16>
    tpu.vector_store %arg9[%c768, %c0_93], %168 {strides = array<i32>} : memref<1152x128xbf16, #tpu.memory_space<vmem>>, vector<96x128xbf16>,
    %c0_94 = arith.constant 0 : index
    %c576_95 = arith.constant 576 : index
    %c0_96 = arith.constant 0 : index
    %170 = vector.load %arg1[%c0_94, %c576_95, %c0_96] : memref<1x896x128xbf16, #tpu.memory_space<vmem>>, vector<1x160x128xbf16>
    %171 = vector.shape_cast %170 : vector<1x160x128xbf16> to vector<160x128xbf16>
    %cst_97 = arith.constant dense<0.000000e+00> : vector<192x128xf32>
    %172 = tpu.matmul %0, %171, %cst_97 {dimension_numbers = #tpu.dot_dimension_numbers<[1], [0], [0], [1], [0, 0, 1, 1], [], []>} : vector<192x160xbf16>, vector<160x128xbf16>, vector<192x128xf32> -> vector<192x128xf32>
    %173 = arith.addf %172, %4 : vector<192x128xf32>
    %cst_98 = arith.constant 0.000000e+00 : f32
    %174 = vector.broadcast %cst_98 : f32 to vector<192x128xf32>
    %175 = arith.maximumf %173, %174 : vector<192x128xf32>
    %c0_99 = arith.constant 0 : index
    %c608 = arith.constant 608 : index
    %c0_100 = arith.constant 0 : index
    %176 = vector.load %arg1[%c0_99, %c608, %c0_100] : memref<1x896x128xbf16, #tpu.memory_space<vmem>>, vector<1x160x128xbf16>
    %177 = vector.shape_cast %176 : vector<1x160x128xbf16> to vector<160x128xbf16>
    %cst_101 = arith.constant dense<0.000000e+00> : vector<192x128xf32>
    %178 = tpu.matmul %0, %177, %cst_101 {dimension_numbers = #tpu.dot_dimension_numbers<[1], [0], [0], [1], [0, 0, 1, 1], [], []>} : vector<192x160xbf16>, vector<160x128xbf16>, vector<192x128xf32> -> vector<192x128xf32>
    %179 = arith.addf %178, %4 : vector<192x128xf32>
    %cst_102 = arith.constant 0.000000e+00 : f32
    %180 = vector.broadcast %cst_102 : f32 to vector<192x128xf32>
    %181 = arith.maximumf %179, %180 : vector<192x128xf32>
    %182 = arith.maximumf %175, %181 : vector<192x128xf32>
    %183 = vector.extract_strided_slice %182 {offsets = [0, 0], sizes = [96, 128], strides = [1, 1]} : vector<192x128xf32> to vector<96x128xf32>
    %184 = vector.extract_strided_slice %182 {offsets = [96, 0], sizes = [96, 128], strides = [1, 1]} : vector<192x128xf32> to vector<96x128xf32>
    %185 = arith.maximumf %183, %184 : vector<96x128xf32>
    %186 = arith.truncf %185 : vector<96x128xf32> to vector<96x128xbf16>
    %c864 = arith.constant 864 : index
    %c0_103 = arith.constant 0 : index
    %187 = vector.load %arg9[%c864, %c0_103] : memref<1152x128xbf16, #tpu.memory_space<vmem>>, vector<96x128xbf16>
    tpu.vector_store %arg9[%c864, %c0_103], %186 {strides = array<i32>} : memref<1152x128xbf16, #tpu.memory_space<vmem>>, vector<96x128xbf16>,
    %c0_104 = arith.constant 0 : index
    %c640 = arith.constant 640 : index
    %c0_105 = arith.constant 0 : index
    %188 = vector.load %arg1[%c0_104, %c640, %c0_105] : memref<1x896x128xbf16, #tpu.memory_space<vmem>>, vector<1x160x128xbf16>
    %189 = vector.shape_cast %188 : vector<1x160x128xbf16> to vector<160x128xbf16>
    %cst_106 = arith.constant dense<0.000000e+00> : vector<192x128xf32>
    %190 = tpu.matmul %0, %189, %cst_106 {dimension_numbers = #tpu.dot_dimension_numbers<[1], [0], [0], [1], [0, 0, 1, 1], [], []>} : vector<192x160xbf16>, vector<160x128xbf16>, vector<192x128xf32> -> vector<192x128xf32>
    %191 = arith.addf %190, %4 : vector<192x128xf32>
    %cst_107 = arith.constant 0.000000e+00 : f32
    %192 = vector.broadcast %cst_107 : f32 to vector<192x128xf32>
    %193 = arith.maximumf %191, %192 : vector<192x128xf32>
    %c0_108 = arith.constant 0 : index
    %c672_109 = arith.constant 672 : index
    %c0_110 = arith.constant 0 : index
    %194 = vector.load %arg1[%c0_108, %c672_109, %c0_110] : memref<1x896x128xbf16, #tpu.memory_space<vmem>>, vector<1x160x128xbf16>
    %195 = vector.shape_cast %194 : vector<1x160x128xbf16> to vector<160x128xbf16>
    %cst_111 = arith.constant dense<0.000000e+00> : vector<192x128xf32>
    %196 = tpu.matmul %0, %195, %cst_111 {dimension_numbers = #tpu.dot_dimension_numbers<[1], [0], [0], [1], [0, 0, 1, 1], [], []>} : vector<192x160xbf16>, vector<160x128xbf16>, vector<192x128xf32> -> vector<192x128xf32>
    %197 = arith.addf %196, %4 : vector<192x128xf32>
    %cst_112 = arith.constant 0.000000e+00 : f32
    %198 = vector.broadcast %cst_112 : f32 to vector<192x128xf32>
    %199 = arith.maximumf %197, %198 : vector<192x128xf32>
    %200 = arith.maximumf %193, %199 : vector<192x128xf32>
    %201 = vector.extract_strided_slice %200 {offsets = [0, 0], sizes = [96, 128], strides = [1, 1]} : vector<192x128xf32> to vector<96x128xf32>
    %202 = vector.extract_strided_slice %200 {offsets = [96, 0], sizes = [96, 128], strides = [1, 1]} : vector<192x128xf32> to vector<96x128xf32>
    %203 = arith.maximumf %201, %202 : vector<96x128xf32>
    %204 = arith.truncf %203 : vector<96x128xf32> to vector<96x128xbf16>
    %c960 = arith.constant 960 : index
    %c0_113 = arith.constant 0 : index
    %205 = vector.load %arg9[%c960, %c0_113] : memref<1152x128xbf16, #tpu.memory_space<vmem>>, vector<96x128xbf16>
    tpu.vector_store %arg9[%c960, %c0_113], %204 {strides = array<i32>} : memref<1152x128xbf16, #tpu.memory_space<vmem>>, vector<96x128xbf16>,
    %c0_114 = arith.constant 0 : index
    %c704 = arith.constant 704 : index
    %c0_115 = arith.constant 0 : index
    %206 = vector.load %arg1[%c0_114, %c704, %c0_115] : memref<1x896x128xbf16, #tpu.memory_space<vmem>>, vector<1x160x128xbf16>
    %207 = vector.shape_cast %206 : vector<1x160x128xbf16> to vector<160x128xbf16>
    %cst_116 = arith.constant dense<0.000000e+00> : vector<192x128xf32>
    %208 = tpu.matmul %0, %207, %cst_116 {dimension_numbers = #tpu.dot_dimension_numbers<[1], [0], [0], [1], [0, 0, 1, 1], [], []>} : vector<192x160xbf16>, vector<160x128xbf16>, vector<192x128xf32> -> vector<192x128xf32>
    %209 = arith.addf %208, %4 : vector<192x128xf32>
    %cst_117 = arith.constant 0.000000e+00 : f32
    %210 = vector.broadcast %cst_117 : f32 to vector<192x128xf32>
    %211 = arith.maximumf %209, %210 : vector<192x128xf32>
    %c0_118 = arith.constant 0 : index
    %c736 = arith.constant 736 : index
    %c0_119 = arith.constant 0 : index
    %212 = vector.load %arg1[%c0_118, %c736, %c0_119] : memref<1x896x128xbf16, #tpu.memory_space<vmem>>, vector<1x160x128xbf16>
    %213 = vector.shape_cast %212 : vector<1x160x128xbf16> to vector<160x128xbf16>
    %cst_120 = arith.constant dense<0.000000e+00> : vector<192x128xf32>
    %214 = tpu.matmul %0, %213, %cst_120 {dimension_numbers = #tpu.dot_dimension_numbers<[1], [0], [0], [1], [0, 0, 1, 1], [], []>} : vector<192x160xbf16>, vector<160x128xbf16>, vector<192x128xf32> -> vector<192x128xf32>
    %215 = arith.addf %214, %4 : vector<192x128xf32>
    %cst_121 = arith.constant 0.000000e+00 : f32
    %216 = vector.broadcast %cst_121 : f32 to vector<192x128xf32>
    %217 = arith.maximumf %215, %216 : vector<192x128xf32>
    %218 = arith.maximumf %211, %217 : vector<192x128xf32>
    %219 = vector.extract_strided_slice %218 {offsets = [0, 0], sizes = [96, 128], strides = [1, 1]} : vector<192x128xf32> to vector<96x128xf32>
    %220 = vector.extract_strided_slice %218 {offsets = [96, 0], sizes = [96, 128], strides = [1, 1]} : vector<192x128xf32> to vector<96x128xf32>
    %221 = arith.maximumf %219, %220 : vector<96x128xf32>
    %222 = arith.truncf %221 : vector<96x128xf32> to vector<96x128xbf16>
    %c1056 = arith.constant 1056 : index
    %c0_122 = arith.constant 0 : index
    %223 = vector.load %arg9[%c1056, %c0_122] : memref<1152x128xbf16, #tpu.memory_space<vmem>>, vector<96x128xbf16>
    tpu.vector_store %arg9[%c1056, %c0_122], %222 {strides = array<i32>} : memref<1152x128xbf16, #tpu.memory_space<vmem>>, vector<96x128xbf16>,
    %c0_123 = arith.constant 0 : index
    %c0_124 = arith.constant 0 : index
    %224 = vector.load %arg9[%c0_123, %c0_124] : memref<1152x128xbf16, #tpu.memory_space<vmem>>, vector<480x128xbf16>
    %cst_125 = arith.constant dense<0.000000e+00> : vector<128x128xf32>
    %225 = tpu.matmul %1, %224, %cst_125 {dimension_numbers = #tpu.dot_dimension_numbers<[1], [0], [0], [1], [0, 0, 1, 1], [], []>} : vector<128x480xbf16>, vector<480x128xbf16>, vector<128x128xf32> -> vector<128x128xf32>
    %226 = arith.addf %225, %7 : vector<128x128xf32>
    %cst_126 = arith.constant 0.000000e+00 : f32
    %227 = vector.broadcast %cst_126 : f32 to vector<128x128xf32>
    %228 = arith.maximumf %226, %227 : vector<128x128xf32>
    %c96_127 = arith.constant 96 : index
    %c0_128 = arith.constant 0 : index
    %229 = vector.load %arg9[%c96_127, %c0_128] : memref<1152x128xbf16, #tpu.memory_space<vmem>>, vector<480x128xbf16>
    %cst_129 = arith.constant dense<0.000000e+00> : vector<128x128xf32>
    %230 = tpu.matmul %1, %229, %cst_129 {dimension_numbers = #tpu.dot_dimension_numbers<[1], [0], [0], [1], [0, 0, 1, 1], [], []>} : vector<128x480xbf16>, vector<480x128xbf16>, vector<128x128xf32> -> vector<128x128xf32>
    %231 = arith.addf %230, %7 : vector<128x128xf32>
    %cst_130 = arith.constant 0.000000e+00 : f32
    %232 = vector.broadcast %cst_130 : f32 to vector<128x128xf32>
    %233 = arith.maximumf %231, %232 : vector<128x128xf32>
    %234 = arith.maximumf %228, %233 : vector<128x128xf32>
    %235 = vector.extract_strided_slice %234 {offsets = [0, 0], sizes = [64, 128], strides = [1, 1]} : vector<128x128xf32> to vector<64x128xf32>
    %236 = vector.extract_strided_slice %234 {offsets = [64, 0], sizes = [64, 128], strides = [1, 1]} : vector<128x128xf32> to vector<64x128xf32>
    %237 = arith.maximumf %235, %236 : vector<64x128xf32>
    %238 = arith.truncf %237 : vector<64x128xf32> to vector<64x128xbf16>
    %c0_131 = arith.constant 0 : index
    %c0_132 = arith.constant 0 : index
    %239 = vector.load %arg10[%c0_131, %c0_132] : memref<256x128xbf16, #tpu.memory_space<vmem>>, vector<64x128xbf16>
    tpu.vector_store %arg10[%c0_131, %c0_132], %238 {strides = array<i32>} : memref<256x128xbf16, #tpu.memory_space<vmem>>, vector<64x128xbf16>,
    %c192_133 = arith.constant 192 : index
    %c0_134 = arith.constant 0 : index
    %240 = vector.load %arg9[%c192_133, %c0_134] : memref<1152x128xbf16, #tpu.memory_space<vmem>>, vector<480x128xbf16>
    %cst_135 = arith.constant dense<0.000000e+00> : vector<128x128xf32>
    %241 = tpu.matmul %1, %240, %cst_135 {dimension_numbers = #tpu.dot_dimension_numbers<[1], [0], [0], [1], [0, 0, 1, 1], [], []>} : vector<128x480xbf16>, vector<480x128xbf16>, vector<128x128xf32> -> vector<128x128xf32>
    %242 = arith.addf %241, %7 : vector<128x128xf32>
    %cst_136 = arith.constant 0.000000e+00 : f32
    %243 = vector.broadcast %cst_136 : f32 to vector<128x128xf32>
    %244 = arith.maximumf %242, %243 : vector<128x128xf32>
    %c288_137 = arith.constant 288 : index
    %c0_138 = arith.constant 0 : index
    %245 = vector.load %arg9[%c288_137, %c0_138] : memref<1152x128xbf16, #tpu.memory_space<vmem>>, vector<480x128xbf16>
    %cst_139 = arith.constant dense<0.000000e+00> : vector<128x128xf32>
    %246 = tpu.matmul %1, %245, %cst_139 {dimension_numbers = #tpu.dot_dimension_numbers<[1], [0], [0], [1], [0, 0, 1, 1], [], []>} : vector<128x480xbf16>, vector<480x128xbf16>, vector<128x128xf32> -> vector<128x128xf32>
    %247 = arith.addf %246, %7 : vector<128x128xf32>
    %cst_140 = arith.constant 0.000000e+00 : f32
    %248 = vector.broadcast %cst_140 : f32 to vector<128x128xf32>
    %249 = arith.maximumf %247, %248 : vector<128x128xf32>
    %250 = arith.maximumf %244, %249 : vector<128x128xf32>
    %251 = vector.extract_strided_slice %250 {offsets = [0, 0], sizes = [64, 128], strides = [1, 1]} : vector<128x128xf32> to vector<64x128xf32>
    %252 = vector.extract_strided_slice %250 {offsets = [64, 0], sizes = [64, 128], strides = [1, 1]} : vector<128x128xf32> to vector<64x128xf32>
    %253 = arith.maximumf %251, %252 : vector<64x128xf32>
    %254 = arith.truncf %253 : vector<64x128xf32> to vector<64x128xbf16>
    %c64_141 = arith.constant 64 : index
    %c0_142 = arith.constant 0 : index
    %255 = vector.load %arg10[%c64_141, %c0_142] : memref<256x128xbf16, #tpu.memory_space<vmem>>, vector<64x128xbf16>
    tpu.vector_store %arg10[%c64_141, %c0_142], %254 {strides = array<i32>} : memref<256x128xbf16, #tpu.memory_space<vmem>>, vector<64x128xbf16>,
    %c384_143 = arith.constant 384 : index
    %c0_144 = arith.constant 0 : index
    %256 = vector.load %arg9[%c384_143, %c0_144] : memref<1152x128xbf16, #tpu.memory_space<vmem>>, vector<480x128xbf16>
    %cst_145 = arith.constant dense<0.000000e+00> : vector<128x128xf32>
    %257 = tpu.matmul %1, %256, %cst_145 {dimension_numbers = #tpu.dot_dimension_numbers<[1], [0], [0], [1], [0, 0, 1, 1], [], []>} : vector<128x480xbf16>, vector<480x128xbf16>, vector<128x128xf32> -> vector<128x128xf32>
    %258 = arith.addf %257, %7 : vector<128x128xf32>
    %cst_146 = arith.constant 0.000000e+00 : f32
    %259 = vector.broadcast %cst_146 : f32 to vector<128x128xf32>
    %260 = arith.maximumf %258, %259 : vector<128x128xf32>
    %c480_147 = arith.constant 480 : index
    %c0_148 = arith.constant 0 : index
    %261 = vector.load %arg9[%c480_147, %c0_148] : memref<1152x128xbf16, #tpu.memory_space<vmem>>, vector<480x128xbf16>
    %cst_149 = arith.constant dense<0.000000e+00> : vector<128x128xf32>
    %262 = tpu.matmul %1, %261, %cst_149 {dimension_numbers = #tpu.dot_dimension_numbers<[1], [0], [0], [1], [0, 0, 1, 1], [], []>} : vector<128x480xbf16>, vector<480x128xbf16>, vector<128x128xf32> -> vector<128x128xf32>
    %263 = arith.addf %262, %7 : vector<128x128xf32>
    %cst_150 = arith.constant 0.000000e+00 : f32
    %264 = vector.broadcast %cst_150 : f32 to vector<128x128xf32>
    %265 = arith.maximumf %263, %264 : vector<128x128xf32>
    %266 = arith.maximumf %260, %265 : vector<128x128xf32>
    %267 = vector.extract_strided_slice %266 {offsets = [0, 0], sizes = [64, 128], strides = [1, 1]} : vector<128x128xf32> to vector<64x128xf32>
    %268 = vector.extract_strided_slice %266 {offsets = [64, 0], sizes = [64, 128], strides = [1, 1]} : vector<128x128xf32> to vector<64x128xf32>
    %269 = arith.maximumf %267, %268 : vector<64x128xf32>
    %270 = arith.truncf %269 : vector<64x128xf32> to vector<64x128xbf16>
    %c128_151 = arith.constant 128 : index
    %c0_152 = arith.constant 0 : index
    %271 = vector.load %arg10[%c128_151, %c0_152] : memref<256x128xbf16, #tpu.memory_space<vmem>>, vector<64x128xbf16>
    tpu.vector_store %arg10[%c128_151, %c0_152], %270 {strides = array<i32>} : memref<256x128xbf16, #tpu.memory_space<vmem>>, vector<64x128xbf16>,
    %c576_153 = arith.constant 576 : index
    %c0_154 = arith.constant 0 : index
    %272 = vector.load %arg9[%c576_153, %c0_154] : memref<1152x128xbf16, #tpu.memory_space<vmem>>, vector<480x128xbf16>
    %cst_155 = arith.constant dense<0.000000e+00> : vector<128x128xf32>
    %273 = tpu.matmul %1, %272, %cst_155 {dimension_numbers = #tpu.dot_dimension_numbers<[1], [0], [0], [1], [0, 0, 1, 1], [], []>} : vector<128x480xbf16>, vector<480x128xbf16>, vector<128x128xf32> -> vector<128x128xf32>
    %274 = arith.addf %273, %7 : vector<128x128xf32>
    %cst_156 = arith.constant 0.000000e+00 : f32
    %275 = vector.broadcast %cst_156 : f32 to vector<128x128xf32>
    %276 = arith.maximumf %274, %275 : vector<128x128xf32>
    %c672_157 = arith.constant 672 : index
    %c0_158 = arith.constant 0 : index
    %277 = vector.load %arg9[%c672_157, %c0_158] : memref<1152x128xbf16, #tpu.memory_space<vmem>>, vector<480x128xbf16>
    %cst_159 = arith.constant dense<0.000000e+00> : vector<128x128xf32>
    %278 = tpu.matmul %1, %277, %cst_159 {dimension_numbers = #tpu.dot_dimension_numbers<[1], [0], [0], [1], [0, 0, 1, 1], [], []>} : vector<128x480xbf16>, vector<480x128xbf16>, vector<128x128xf32> -> vector<128x128xf32>
    %279 = arith.addf %278, %7 : vector<128x128xf32>
    %cst_160 = arith.constant 0.000000e+00 : f32
    %280 = vector.broadcast %cst_160 : f32 to vector<128x128xf32>
    %281 = arith.maximumf %279, %280 : vector<128x128xf32>
    %282 = arith.maximumf %276, %281 : vector<128x128xf32>
    %283 = vector.extract_strided_slice %282 {offsets = [0, 0], sizes = [64, 128], strides = [1, 1]} : vector<128x128xf32> to vector<64x128xf32>
    %284 = vector.extract_strided_slice %282 {offsets = [64, 0], sizes = [64, 128], strides = [1, 1]} : vector<128x128xf32> to vector<64x128xf32>
    %285 = arith.maximumf %283, %284 : vector<64x128xf32>
    %286 = arith.truncf %285 : vector<64x128xf32> to vector<64x128xbf16>
    %c192_161 = arith.constant 192 : index
    %c0_162 = arith.constant 0 : index
    %287 = vector.load %arg10[%c192_161, %c0_162] : memref<256x128xbf16, #tpu.memory_space<vmem>>, vector<64x128xbf16>
    tpu.vector_store %arg10[%c192_161, %c0_162], %286 {strides = array<i32>} : memref<256x128xbf16, #tpu.memory_space<vmem>>, vector<64x128xbf16>,
    %c0_163 = arith.constant 0 : index
    %c0_164 = arith.constant 0 : index
    %288 = vector.load %arg6[%c0_163, %c0_164] : memref<10x256xbf16, #tpu.memory_space<vmem>>, vector<10x256xbf16>
    %c0_165 = arith.constant 0 : index
    %c0_166 = arith.constant 0 : index
    %289 = vector.load %arg10[%c0_165, %c0_166] : memref<256x128xbf16, #tpu.memory_space<vmem>>, vector<256x128xbf16>
    %cst_167 = arith.constant dense<0.000000e+00> : vector<10x128xf32>
    %290 = tpu.matmul %288, %289, %cst_167 {dimension_numbers = #tpu.dot_dimension_numbers<[1], [0], [0], [1], [0, 0, 1, 1], [], []>} : vector<10x256xbf16>, vector<256x128xbf16>, vector<10x128xf32> -> vector<10x128xf32>
    %c0_168 = arith.constant 0 : index
    %c0_169 = arith.constant 0 : index
    %291 = vector.load %arg7[%c0_168, %c0_169] : memref<10x1xf32, #tpu.memory_space<vmem>>, vector<10x1xf32>
    %292 = vector.broadcast %291 : vector<10x1xf32> to vector<10x128xf32>
    %293 = arith.addf %290, %292 : vector<10x128xf32>
    %294 = tpu.iota {dimensions = array<i32: 0>} : vector<10x128xi32>
    %cst_170 = arith.constant dense<0xFF800000> : vector<128xf32>
    %295 = vector.multi_reduction <maximumf>, %293, %cst_170 [0] : vector<10x128xf32> to vector<128xf32>
    %296 = vector.shape_cast %295 : vector<128xf32> to vector<1x128xf32>
    %297 = vector.broadcast %296 : vector<1x128xf32> to vector<10x128xf32>
    %298 = arith.cmpf oeq, %293, %297 : vector<10x128xf32>
    %c10_i32 = arith.constant 10 : i32
    %299 = vector.broadcast %c10_i32 : i32 to vector<10x128xi32>
    %300 = arith.select %298, %294, %299 : vector<10x128xi1>, vector<10x128xi32>
    %cst_171 = arith.constant dense<2147483647> : vector<128xi32>
    %301 = vector.multi_reduction <minsi>, %300, %cst_171 [0] : vector<10x128xi32> to vector<128xi32>
    %302 = vector.shape_cast %301 : vector<128xi32> to vector<1x128xi32>
    %c0_172 = arith.constant 0 : index
    %c0_173 = arith.constant 0 : index
    %c0_174 = arith.constant 0 : index
    %303 = vector.load %arg8[%c0_172, %c0_173, %c0_174] : memref<1x1x128xi32, #tpu.memory_space<vmem>>, vector<1x1x128xi32>
    %304 = vector.shape_cast %303 : vector<1x1x128xi32> to vector<1x128xi32>
    %305 = vector.shape_cast %302 : vector<1x128xi32> to vector<1x1x128xi32>
    tpu.vector_store %arg8[%c0_172, %c0_173, %c0_174], %305 {strides = array<i32>} : memref<1x1x128xi32, #tpu.memory_space<vmem>>, vector<1x1x128xi32>,
    return
  }
  func.func @transform_0(%arg0: i32) -> (i32, i32, i32) {
    %c0_i32 = arith.constant 0 : i32
    %c0_i32_0 = arith.constant 0 : i32
    %c0_i32_1 = arith.constant 0 : i32
    return %arg0, %c0_i32, %c0_i32_0 : i32, i32, i32
  }
  func.func @transform_1(%arg0: i32) -> (i32, i32) {
    %c0_i32 = arith.constant 0 : i32
    %c0_i32_0 = arith.constant 0 : i32
    %c0_i32_1 = arith.constant 0 : i32
    return %c0_i32, %c0_i32_0 : i32, i32
  }
  func.func @transform_2(%arg0: i32) -> (i32, i32) {
    %c0_i32 = arith.constant 0 : i32
    %c0_i32_0 = arith.constant 0 : i32
    %c0_i32_1 = arith.constant 0 : i32
    return %c0_i32, %c0_i32_0 : i32, i32
  }
  func.func @transform_3(%arg0: i32) -> (i32, i32) {
    %c0_i32 = arith.constant 0 : i32
    %c0_i32_0 = arith.constant 0 : i32
    %c0_i32_1 = arith.constant 0 : i32
    return %c0_i32, %c0_i32_0 : i32, i32
  }
  func.func @transform_4(%arg0: i32) -> (i32, i32) {
    %c0_i32 = arith.constant 0 : i32
    %c0_i32_0 = arith.constant 0 : i32
    %c0_i32_1 = arith.constant 0 : i32
    return %c0_i32, %c0_i32_0 : i32, i32
  }
  func.func @transform_5(%arg0: i32) -> (i32, i32) {
    %c0_i32 = arith.constant 0 : i32
    %c0_i32_0 = arith.constant 0 : i32
    %c0_i32_1 = arith.constant 0 : i32
    return %c0_i32, %c0_i32_0 : i32, i32
  }
  func.func @transform_6(%arg0: i32) -> (i32, i32) {
    %c0_i32 = arith.constant 0 : i32
    %c0_i32_0 = arith.constant 0 : i32
    %c0_i32_1 = arith.constant 0 : i32
    return %c0_i32, %c0_i32_0 : i32, i32
  }
  func.func @transform_7(%arg0: i32) -> (i32, i32, i32) {
    %c0_i32 = arith.constant 0 : i32
    %c0_i32_0 = arith.constant 0 : i32
    %c0_i32_1 = arith.constant 0 : i32
    return %arg0, %c0_i32, %c0_i32_0 : i32, i32, i32
  }
}

</mosaic_0001>

<bundles_post_ra>
// kernel: tpu_custom_call.1
= control target key start
LH: loop header
LB: loop body
LE: loop exit
PB: predicated region body
PF: predicated region fallthrough
CT: control target
= control target key end

     0   :  { %v14854_v4 = vmov 0   ;;  %vm512_vm0 = vcmask 261120   ;;  %s19351_s0 = inlined_call_operand.vmem [shape: bf16[1,896,128], index: 0, kind: input, shape index: {}]   ;;  %s19352_s1 = inlined_call_operand.vmem [shape: bf16[192,160], index: 1, kind: input, shape index: {}]   ;;  %s19353_s2 = inlined_call_operand.vmem [shape: f32[192,1], index: 2, kind: input, shape index: {}]   ;;  %s19354_s3 = inlined_call_operand.vmem [shape: bf16[128,480], index: 3, kind: input, shape index: {}]   ;;  %s19355_s4 = inlined_call_operand.vmem [shape: f32[128,1], index: 4, kind: input, shape index: {}]   ;;  %s19356_s5 = inlined_call_operand.vmem [shape: bf16[10,256], index: 5, kind: input, shape index: {}]   ;;  %s19357_s6 = inlined_call_operand.vmem [shape: f32[10,1], index: 6, kind: input, shape index: {}]   ;;  %s19358_s7 = inlined_call_operand.hbm [shape: s32[1,1,128], index: 7, kind: output, shape index: {}]  }
   0x1   :  { %v13806_v0 = vld [vmem:[%s19351_s0 + $0x38] sm:$0xff]  ;;  %v13808_v1 = vld [vmem:[%s19351_s0 + $0x48] sm:$0xff]  ;;  %14825 = vset.pattern.permute.xlu0 %v14854_v4  ;;  %14826 = vset.pattern.permute.xlu1 %v14854_v4  ;;  %v13805_v5 = vld [vmem:[%s19351_s0 + $0x30] sm:$0xff] }
   0x2   :  { %v13816_v2 = vld [vmem:[%s19351_s0 + $0x48] sm:$0xff]  ;;  %v13818_v3 = vld [vmem:[%s19351_s0 + $0x58] sm:$0xff]  ;;  %549 = vmatpush.bf16.msra.mxu0 %v13806_v0  ;;  %624 = vmatpush.bf16.msra.mxu1 %v13808_v1  ;;  %v13807_v6 = vld [vmem:[%s19351_s0 + $0x40] sm:$0xff] }
   0x3   :  { %v13743_v7 = vld [vmem:[%s19352_s1 + $0x4] sm:$0xf]  ;;  %791 = vmatpush.bf16.msra.mxu2 %v13816_v2  ;;  %866 = vmatpush.bf16.msra.mxu3 %v13818_v3  ;;  %v13817_v9 = vld [vmem:[%s19351_s0 + $0x50] sm:$0xff]  ;;  %v11179_v10 = vld [vmem:[%s19352_s1 + $0x8] sm:$0xf0] }
   0x4   :  { %v13815_v8 = vld [vmem:[%s19351_s0 + $0x40] sm:$0xff]  ;;  %v90_v11 = vld [vmem:[%s19353_s2 + $0x30] sm:$0xff]  ;;  %14827 = vset.pattern.permute.xlu2 %v14854_v4  ;;  %v14929_v12 = vor.u32 %v13743_v7, %v11179_v10  ;;  %v13804_v14 = vld [vmem:[%s19351_s0 + $0x28] sm:$0xff] }
   0x5   :  { %140 = vperm.xlu0 %14825, %v90_v11   ;;  %v102_v13 = vld [vmem:[%s19353_s2 + $0x90] sm:$0xff]  ;;  %v13814_v15 = vld [vmem:[%s19351_s0 + $0x38] sm:$0xff]  ;;  %v13803_v16 = vld [vmem:[%s19351_s0 + $0x20] sm:$0xff] }
   0x6   :  { %19696 = vst [vmem:[#allocation7_spill] sm:$0xff] %v14929_v12  ;;  %550 = vmatpush.bf16.msra.mxu0 %v13805_v5  ;;  %625 = vmatpush.bf16.msra.mxu1 %v13807_v6  ;;  %v91_v17 = vld [vmem:[%s19353_s2 + $0x38] sm:$0xff]  ;;  %v13813_v18 = vld [vmem:[%s19351_s0 + $0x30] sm:$0xff] }
   0x7   :  { %792 = vmatpush.bf16.msra.mxu2 %v13815_v8  ;;  %867 = vmatpush.bf16.msra.mxu3 %v13817_v9  ;;  %v103_v19 = vld [vmem:[%s19353_s2 + $0x98] sm:$0xff] }
   0x8   :  { %200 = vperm.xlu1 %14826, %v102_v13  }
   0x9   :  { %11311 = vmatmul.msk.bf16.vlgmr.msra.gmra.mxu1 %vm512_vm0, %v14929_v12 }
   0xa   :  { %11363 = vmatmul.msk.bf16.vlgmr.msra.gmra.mxu3 %vm512_vm0, %v14929_v12  ;;  %551 = vmatpush.bf16.msra.mxu0 %v13804_v14 }
   0xb   :  { %793 = vmatpush.bf16.msra.mxu2 %v13814_v15 }
   0xd   :  { %145 = vperm.xlu0 %14825, %v91_v17  }
   0xe   :  { %12 = vsyncpa [#allocation5], 0  ;;  %552 = vmatpush.bf16.msra.mxu0 %v13803_v16  ;;  %v13802_v20 = vld [vmem:[%s19351_s0 + $0x18] sm:$0xff]  ;;  %v13812_v21 = vld [vmem:[%s19351_s0 + $0x28] sm:$0xff]  ;;  %vm7389_vm1 = vcmask 785408   ;;  %vm11133_vm2 = vcmask 1041408  }
   0xf   :  { %794 = vmatpush.bf16.msra.mxu2 %v13813_v18  ;;  %v13801_v22 = vld [vmem:[%s19351_s0 + $0x10] sm:$0xff]  ;;  %v11187_v24 = vld [vmem:[%s19352_s1 + $0x18] sm:$0xf0]  ;;  %v88_v25 = vld [vmem:[%s19353_s2 + $0x20] sm:$0xff] }
  0x10   :  { %205 = vperm.xlu1 %14826, %v103_v19   ;;  %v13745_v23 = vld [vmem:[%s19352_s1 + $0x14] sm:$0xf]  ;;  %v13811_v26 = vld [vmem:[%s19351_s0 + $0x20] sm:$0xff]  ;;  %v89_v28 = vld [vmem:[%s19353_s2 + $0x28] sm:$0xff] }
  0x11   :  { %v14977_v27 = vor.u32 %v13745_v23, %v11187_v24  ;;  %v13800_v29 = vld [vmem:[%s19351_s0 + $0x8] sm:$0xff]  ;;  %v13810_v30 = vld [vmem:[%s19351_s0 + $0x18] sm:$0xff]  ;;  %v13799_v31 = vld [vmem:[%s19351_s0] sm:$0xff] }
  0x12   :  { %553 = vmatpush.bf16.msra.mxu0 %v13802_v20  ;;  %v11177_v32 = vld [vmem:[%s19352_s1] sm:$0xf]  ;;  %v13744_v33 = vld [vmem:[%s19352_s1 + $0x4] sm:$0xf0]  ;;  %v99_v34 = vld [vmem:[%s19353_s2 + $0x78] sm:$0xff] }
  0x13   :  { %795 = vmatpush.bf16.msra.mxu2 %v13812_v21  ;;  %19697 = vst [vmem:[#allocation8_spill] sm:$0xff] %v14977_v27  ;;  %v13809_v35 = vld [vmem:[%s19351_s0 + $0x10] sm:$0xff]  ;;  %v15007_v36 = vor.u32 %v13744_v33, %v11177_v32  ;;  %v100_v37 = vld [vmem:[%s19353_s2 + $0x80] sm:$0xff]  ;;  %v11195_v39 = vld [vmem:[%s19352_s1 + $0x28] sm:$0xf0] }
  0x14   :  { %v13747_v38 = vld [vmem:[%s19352_s1 + $0x24] sm:$0xf]  ;;  %v85_v42 = vld [vmem:[%s19353_s2 + $0x8] sm:$0xff]  ;;  %v11185_v43 = vld [vmem:[%s19352_s1 + $0x10] sm:$0xf] }
  0x15   :  { %130 = vperm.xlu0 %14825, %v88_v25   ;;  %19698 = vst [vmem:[#allocation9_spill] sm:$0xff] %v15007_v36  ;;  %v84_v40 = vld [vmem:[%s19353_s2] sm:$0xff]  ;;  %v15023_v41 = vor.u32 %v13747_v38, %v11195_v39  ;;  %v13746_v44 = vld [vmem:[%s19352_s1 + $0x14] sm:$0xf0]  ;;  %v13749_v46 = vld [vmem:[%s19352_s1 + $0x34] sm:$0xf] }
  0x16   :  { %554 = vmatpush.bf16.msra.mxu0 %v13801_v22  ;;  %v15038_v45 = vor.u32 %v13746_v44, %v11185_v43  ;;  %v11203_v47 = vld [vmem:[%s19352_s1 + $0x38] sm:$0xf0]  ;;  %v86_v48 = vld [vmem:[%s19353_s2 + $0x10] sm:$0xff]  ;;  %v11193_v50 = vld [vmem:[%s19352_s1 + $0x20] sm:$0xf] }
  0x17   :  { %796 = vmatpush.bf16.msra.mxu2 %v13811_v26  ;;  %19699 = vst [vmem:[#allocation10_spill] sm:$0xff] %v15023_v41  ;;  %120 = vperm.xlu2 %14827, %v86_v48   ;;  %v15051_v49 = vor.u32 %v13749_v46, %v11203_v47  ;;  %v13748_v51 = vld [vmem:[%s19352_s1 + $0x24] sm:$0xf0]  ;;  %v87_v52 = vld [vmem:[%s19353_s2 + $0x18] sm:$0xff]  ;;  %v13751_v54 = vld [vmem:[%s19352_s1 + $0x44] sm:$0xf] }
  0x18   :  { %135 = vperm.xlu1 %14826, %v89_v28   ;;  %19700 = vst [vmem:[#allocation11_spill] sm:$0xff] %v15038_v45  ;;  %v15066_v53 = vor.u32 %v13748_v51, %v11193_v50  ;;  %v11211_v55 = vld [vmem:[%s19352_s1 + $0x48] sm:$0xf0]  ;;  %v98_v56 = vld [vmem:[%s19353_s2 + $0x70] sm:$0xff]  ;;  %v95_v57 = vld [vmem:[%s19353_s2 + $0x58] sm:$0xff] }
  0x19   :  { %11312 = vmatmul.msk.bf16.gmra.mxu1 %vm512_vm0, %v14977_v27  ;;  %v15082_v58 = vor.u32 %v13751_v54, %v11211_v55  ;;  %v11201_v59 = vld [vmem:[%s19352_s1 + $0x30] sm:$0xf]  ;;  %v13750_v60 = vld [vmem:[%s19352_s1 + $0x34] sm:$0xf0]  ;;  %v101_v61 = vld [vmem:[%s19353_s2 + $0x88] sm:$0xff] }
  0x1a   :  { %11364 = vmatmul.msk.bf16.gmra.mxu3 %vm512_vm0, %v14977_v27  ;;  %555 = vmatpush.bf16.msra.mxu0 %v13800_v29  ;;  %19701 = vst [vmem:[#allocation12_spill] sm:$0xff] %v15066_v53  ;;  %v106_v62 = vld [vmem:[%s19353_s2 + $0xb0] sm:$0xff]  ;;  %v15100_v63 = vor.u32 %v13750_v60, %v11201_v59  ;;  %v11219_v1 = vld [vmem:[%s19352_s1 + $0x58] sm:$0xf0]  ;;  %v93_v3 = vld [vmem:[%s19353_s2 + $0x48] sm:$0xff] }
  0x1b   :  { %797 = vmatpush.bf16.msra.mxu2 %v13810_v30  ;;  %v13753_v0 = vld [vmem:[%s19352_s1 + $0x54] sm:$0xf]  ;;  %v11209_v5 = vld [vmem:[%s19352_s1 + $0x40] sm:$0xf]  ;;  %v13752_v6 = vld [vmem:[%s19352_s1 + $0x44] sm:$0xf0] }
  0x1c   :  { %v94_v2 = vld [vmem:[%s19353_s2 + $0x50] sm:$0xff]  ;;  %v15116_v4 = vor.u32 %v13753_v0, %v11219_v1  ;;  %v97_v7 = vld [vmem:[%s19353_s2 + $0x68] sm:$0xff]  ;;  %v15134_v9 = vor.u32 %v13752_v6, %v11209_v5  ;;  %v13755_v10 = vld [vmem:[%s19352_s1 + $0x64] sm:$0xf] }
  0x1d   :  { %185 = vperm.xlu0 %14825, %v99_v34   ;;  %v13828_v8 = vld [vmem:[%s19351_s0 + $0x68] sm:$0xff]  ;;  %v13826_v13 = vld [vmem:[%s19351_s0 + $0x58] sm:$0xff]  ;;  %v92_v15 = vld [vmem:[%s19353_s2 + $0x40] sm:$0xff] }
  0x1e   :  { %556 = vmatpush.bf16.msra.mxu0 %v13799_v31  ;;  %1168 = vmatpush.bf16.msrb.mxu3 %v13828_v8  ;;  %v11227_v11 = vld [vmem:[%s19352_s1 + $0x68] sm:$0xf0]  ;;  %v13838_v14 = vld [vmem:[%s19351_s0 + $0x78] sm:$0xff]  ;;  %v11217_v18 = vld [vmem:[%s19352_s1 + $0x50] sm:$0xf] }
  0x1f   :  { %798 = vmatpush.bf16.msra.mxu2 %v13809_v35  ;;  %125 = vperm.xlu2 %14827, %v87_v52   ;;  %v13836_v16 = vld [vmem:[%s19351_s0 + $0x68] sm:$0xff]  ;;  %v15156_v17 = vor.u32 %v13755_v10, %v11227_v11  ;;  %v13754_v19 = vld [vmem:[%s19352_s1 + $0x54] sm:$0xf0]  ;;  %v96_v20 = vld [vmem:[%s19353_s2 + $0x60] sm:$0xff] }
  0x20   :  { %190 = vperm.xlu1 %14826, %v100_v37   ;;  %1093 = vmatpush.bf16.msrb.mxu1 %v13826_v13  ;;  %v15171_v21 = vor.u32 %v13754_v19, %v11217_v18  ;;  %v13757_v22 = vld [vmem:[%s19352_s1 + $0x74] sm:$0xf]  ;;  %v11235_v23 = vld [vmem:[%s19352_s1 + $0x78] sm:$0xf0]  ;;  %v11225_v26 = vld [vmem:[%s19352_s1 + $0x60] sm:$0xf] }
  0x21   :  { %557 = vmatmul.bf16.vlgmr.msra.gmra.mxu0 %v15007_v36  ;;  %v15181_v24 = vor.u32 %v13757_v22, %v11235_v23  ;;  %v13756_v28 = vld [vmem:[%s19352_s1 + $0x64] sm:$0xf0]  ;;  %v13825_v29 = vld [vmem:[%s19351_s0 + $0x50] sm:$0xff]  ;;  %v13835_v32 = vld [vmem:[%s19351_s0 + $0x60] sm:$0xff] }
  0x22   :  { %799 = vmatmul.bf16.vlgmr.msra.gmra.mxu2 %v15007_v36  ;;  %1335 = vmatpush.bf16.msrb.mxu0 %v13836_v16  ;;  %v15200_v31 = vor.u32 %v13756_v28, %v11225_v26  ;;  %v13759_v34 = vld [vmem:[%s19352_s1 + $0x84] sm:$0xf]  ;;  %v11243_v35 = vld [vmem:[%s19352_s1 + $0x88] sm:$0xf0]  ;;  %v13758_v43 = vld [vmem:[%s19352_s1 + $0x74] sm:$0xf0] }
  0x23   :  { %1410 = vmatpush.bf16.msrb.mxu2 %v13838_v14  ;;  %v15215_v37 = vor.u32 %v13759_v34, %v11243_v35  ;;  %v13824_v50 = vld [vmem:[%s19351_s0 + $0x48] sm:$0xff]  ;;  %v13761_v52 = vld [vmem:[%s19352_s1 + $0x94] sm:$0xf]  ;;  %v11251_v54 = vld [vmem:[%s19352_s1 + $0x98] sm:$0xf0] }
  0x24   :  { %1094 = vmatpush.bf16.msrb.mxu1 %v13825_v29  ;;  %v13822_v60 = vld [vmem:[%s19351_s0 + $0x38] sm:$0xff]  ;;  %v13760_v0 = vld [vmem:[%s19352_s1 + $0x84] sm:$0xf0]  ;;  %v11259_v16 = vld [vmem:[%s19352_s1 + $0xa8] sm:$0xf0] }
  0x25   :  { %110 = vperm.xlu0 %14825, %v84_v40   ;;  %v13820_v14 = vld [vmem:[%s19351_s0 + $0x28] sm:$0xff]  ;;  %v107_v19 = vld [vmem:[%s19353_s2 + $0xb8] sm:$0xff]  ;;  %v13819_v26 = vld [vmem:[%s19351_s0 + $0x20] sm:$0xff] }
  0x26   :  { %1336 = vmatpush.bf16.msrb.mxu0 %v13835_v32  ;;  %v13827_v28 = vld [vmem:[%s19351_s0 + $0x60] sm:$0xff] }
  0x27   :  { %180 = vperm.xlu2 %14827, %v98_v56   ;;  %v15250_v56 = vor.u32 %v13761_v52, %v11251_v54  ;;  %1169 = vmatpush.bf16.msrb.mxu3 %v13827_v28  ;;  %v11249_v54 = vld [vmem:[%s19352_s1 + $0x90] sm:$0xf] }
  0x28   :  { %115 = vperm.xlu1 %14826, %v85_v42   ;;  %v11233_v42 = vld [vmem:[%s19352_s1 + $0x70] sm:$0xf]  ;;  %1095 = vmatpush.bf16.msrb.mxu1 %v13824_v50 }
  0x29   :  { %11313 = vmatmul.msk.bf16.gmra.mxu1 %vm512_vm0, %v15023_v41  ;;  %v15231_v46 = vor.u32 %v13758_v43, %v11233_v42 }
  0x2a   :  { %11365 = vmatmul.msk.bf16.gmra.mxu3 %vm512_vm0, %v15023_v41 }
  0x2d   :  { %165 = vperm.xlu0 %14825, %v95_v57   ;;  %v13823_v57 = vld [vmem:[%s19351_s0 + $0x40] sm:$0xff] }
  0x2e   :  { %1096 = vmatpush.bf16.msrb.mxu1 %v13823_v57  ;;  %v13762_v57 = vld [vmem:[%s19352_s1 + $0x94] sm:$0xf0] }
  0x2f   :  { %195 = vperm.xlu2 %14827, %v101_v61  }
  0x30   :  { %170 = vperm.xlu1 %14826, %v96_v20  }
  0x31   :  { %562 = vmatmul.bf16.gmra.mxu0 %v15038_v45 }
  0x32   :  { %804 = vmatmul.bf16.gmra.mxu2 %v15038_v45  ;;  %1097 = vmatpush.bf16.msrb.mxu1 %v13822_v60 }
  0x35   :  { %220 = vperm.xlu0 %14825, %v106_v62   ;;  %v11241_v62 = vld [vmem:[%s19352_s1 + $0x80] sm:$0xf] }
  0x36   :  { %v15279_v5 = vor.u32 %v13760_v0, %v11241_v62  ;;  %v15338_v0 = vor.u32 %v13762_v57, %v11249_v54 }
  0x37   :  { %160 = vperm.xlu2 %14827, %v94_v2   ;;  %v13834_v2 = vld [vmem:[%s19351_s0 + $0x58] sm:$0xff] }
  0x38   :  { %1337 = vmatpush.bf16.msrb.mxu0 %v13834_v2  ;;  %225 = vperm.xlu1 %14826, %v107_v19   ;;  %v13833_v2 = vld [vmem:[%s19351_s0 + $0x50] sm:$0xff] }
  0x39   :  { %11314 = vmatmul.msk.bf16.gmra.mxu1 %vm512_vm0, %v15051_v49 }
  0x3a   :  { %11366 = vmatmul.msk.bf16.gmra.mxu3 %vm512_vm0, %v15051_v49 }
  0x3c   :  { %1338 = vmatpush.bf16.msrb.mxu0 %v13833_v2 }
  0x3d   :  { %155 = vperm.xlu0 %14825, %v93_v3  }
  0x3f   :  { %175 = vperm.xlu2 %14827, %v97_v7   ;;  %v13821_v7 = vld [vmem:[%s19351_s0 + $0x30] sm:$0xff] }
  0x40   :  { %1098 = vmatpush.bf16.msrb.mxu1 %v13821_v7 }
  0x41   :  { %567 = vmatmul.bf16.gmra.mxu0 %v15066_v53 }
  0x42   :  { %809 = vmatmul.bf16.gmra.mxu2 %v15066_v53 }
  0x44   :  { %1099 = vmatpush.bf16.msrb.mxu1 %v13820_v14 }
  0x47   :  { %150 = vperm.xlu2 %14827, %v92_v15   ;;  %v13763_v15 = vld [vmem:[%s19352_s1 + $0xa4] sm:$0xf] }
  0x48   :  { %v15307_v23 = vor.u32 %v13763_v15, %v11259_v16  ;;  %1100 = vmatpush.bf16.msrb.mxu1 %v13819_v26  ;;  %v13832_v16 = vld [vmem:[%s19351_s0 + $0x48] sm:$0xff]  ;;  %v13765_v26 = vld [vmem:[%s19352_s1 + $0xb4] sm:$0xf] }
  0x49   :  { %11315 = vmatmul.msk.bf16.gmra.mxu1 %vm512_vm0, %v15082_v58  ;;  %1339 = vmatpush.bf16.msrb.mxu0 %v13832_v16 }
  0x4a   :  { %11367 = vmatmul.msk.bf16.gmra.mxu3 %vm512_vm0, %v15082_v58  ;;  %19706 = vst [vmem:[#allocation17_spill] sm:$0xff] %v15307_v23 }
  0x51   :  { %572 = vmatmul.bf16.gmra.mxu0 %v15100_v63 }
  0x52   :  { %814 = vmatmul.bf16.gmra.mxu2 %v15100_v63 }
  0x59   :  { %11316 = vmatmul.msk.bf16.gmra.mxu1 %vm512_vm0, %v15116_v4 }
  0x5a   :  { %11368 = vmatmul.msk.bf16.gmra.mxu3 %vm512_vm0, %v15116_v4 }
  0x61   :  { %577 = vmatmul.bf16.gmra.mxu0 %v15134_v9 }
  0x62   :  { %819 = vmatmul.bf16.gmra.mxu2 %v15134_v9 }
  0x69   :  { %11317 = vmatmul.msk.bf16.gmra.mxu1 %vm512_vm0, %v15156_v17 }
  0x6a   :  { %11369 = vmatmul.msk.bf16.gmra.mxu3 %vm512_vm0, %v15156_v17 }
  0x71   :  { %582 = vmatmul.bf16.gmra.mxu0 %v15171_v21  ;;  %v15281_v6 = vpop.permute.xlu2 %120 }
  0x72   :  { %824 = vmatmul.bf16.gmra.mxu2 %v15171_v21 }
  0x77   :  { %v15183_v25 = vpop.permute.xlu0 %140 }
  0x78   :  { %19702 = vst [vmem:[#allocation13_spill] sm:$0xff] %v15183_v25 }
  0x79   :  { %11318 = vmatmul.msk.bf16.gmra.mxu1 %vm512_vm0, %v15181_v24  ;;  %v15319_v42 = vpop.permute.xlu2 %125 }
  0x7a   :  { %11370 = vmatmul.msk.bf16.gmra.mxu3 %vm512_vm0, %v15181_v24  ;;  %v15198_v30 = vpop.permute.xlu1 %200  ;;  %19707 = vst [vmem:[#allocation18_spill] sm:$0xff] %v15319_v42 }
  0x7f   :  { %v15205_v33 = vpop.permute.xlu0 %145 }
  0x80   :  { %19703 = vst [vmem:[#allocation14_spill] sm:$0xff] %v15205_v33 }
  0x81   :  { %587 = vmatmul.bf16.gmra.mxu0 %v15200_v31  ;;  %v15358_v28 = vpop.permute.xlu2 %180 }
  0x82   :  { %829 = vmatmul.bf16.gmra.mxu2 %v15200_v31  ;;  %v15217_v39 = vpop.permute.xlu1 %205 }
  0x86   :  { %v627_v38 = vpop.f32.mrf.mxu1 }
  0x87   :  { %v15219_v40 = vpop.permute.xlu0 %130 }
  0x88   :  { %19704 = vst [vmem:[#allocation15_spill] sm:$0xff] %v15219_v40 }
  0x89   :  { %11319 = vmatmul.msk.bf16.gmra.mxu1 %vm512_vm0, %v15215_v37 }
  0x8a   :  { %11371 = vmatmul.msk.bf16.gmra.mxu3 %vm512_vm0, %v15215_v37  ;;  %v15233_v48 = vpop.permute.xlu1 %135 }
  0x8b   :  { %19705 = vst [vmem:[#allocation16_spill] sm:$0xff] %v15233_v48 }
  0x8d   :  { %v869_v44 = vpop.f32.mrf.mxu3 }
  0x8e   :  { %v629_v47 = vpop.f32.mrf.mxu1 }
  0x8f   :  { %v15240_v51 = vpop.permute.xlu0 %185 }
  0x91   :  { %592 = vmatmul.bf16.gmra.mxu0 %v15231_v46 }
  0x92   :  { %834 = vmatmul.bf16.gmra.mxu2 %v15231_v46  ;;  %v15264_v61 = vpop.permute.xlu1 %190 }
  0x95   :  { %v15248_v55 = vpop.f32.mrf.mxu3 }
  0x96   :  { %v15255_v59 = vpop.f32.mrf.mxu1 }
  0x97   :  { %v15272_v1 = vpop.permute.xlu0 %110 }
  0x99   :  { %11320 = vmatmul.msk.bf16.gmra.mxu1 %vm512_vm0, %v15250_v56 }
  0x9a   :  { %11372 = vmatmul.msk.bf16.gmra.mxu3 %vm512_vm0, %v15250_v56  ;;  %v15300_v18 = vpop.permute.xlu1 %115 }
  0x9d   :  { %v15277_v3 = vpop.f32.mrf.mxu3 }
  0x9e   :  { %v558_v8 = vpop.f32.mrf.mxu0  ;;  %v15286_v10 = vpop.f32.mrf.mxu1 }
  0x9f   :  { %v559_v11 = vadd.f32 %v558_v8, %v15272_v1 }
  0xa1   :  { %v628_v13 = vadd.f32 %v627_v38, %v559_v11  ;;  %597 = vmatmul.bf16.gmra.mxu0 %v15279_v5 }
  0xa2   :  { %839 = vmatmul.bf16.gmra.mxu2 %v15279_v5 }
  0xa3   :  { %v687_v50 = vmax.f32 %v628_v13, 0.0 }
  0xa5   :  { %v800_v20 = vpop.f32.mrf.mxu2  ;;  %v15305_v22 = vpop.f32.mrf.mxu3 }
  0xa6   :  { %v801_v29 = vadd.f32 %v800_v20, %v15272_v1  ;;  %v560_v32 = vpop.f32.mrf.mxu0  ;;  %v15316_v34 = vpop.f32.mrf.mxu1 }
  0xa7   :  { %v561_v35 = vadd.f32 %v560_v32, %v15300_v18 }
  0xa8   :  { %v870_v38 = vadd.f32 %v869_v44, %v801_v29 }
  0xa9   :  { %v630_v43 = vadd.f32 %v629_v47, %v561_v35  ;;  %11321 = vmatmul.msk.bf16.gmra.mxu1 %vm512_vm0, %v15307_v23  ;;  %v104_v47 = vld [vmem:[%s19353_s2 + $0xa0] sm:$0xff] }
  0xaa   :  { %v929_v52 = vmax.f32 %v870_v38, 0.0  ;;  %11373 = vmatmul.msk.bf16.gmra.mxu3 %vm512_vm0, %v15307_v23  ;;  %210 = vperm.xlu1 %14826, %v104_v47   ;;  %v13831_v38 = vld [vmem:[%s19351_s0 + $0x40] sm:$0xff] }
  0xab   :  { %v688_v19 = vmax.f32 %v630_v43, 0.0  ;;  %1340 = vmatpush.bf16.msrb.mxu0 %v13831_v38 }
  0xac   :  { %v15331_v44 = vmax.f32 %v687_v50, %v929_v52 }
  0xad   :  { %v802_v60 = vpop.f32.mrf.mxu2  ;;  %v15336_v62 = vpop.f32.mrf.mxu3 }
  0xae   :  { %v803_v7 = vadd.f32 %v802_v60, %v15300_v18  ;;  %v563_v8 = vpop.f32.mrf.mxu0  ;;  %v639_v11 = vpop.f32.mrf.mxu1  ;;  %v13830_v60 = vld [vmem:[%s19351_s0 + $0x38] sm:$0xff] }
  0xaf   :  { %v564_v13 = vadd.f32 %v563_v8, %v15281_v6  ;;  %v11257_v8 = vld [vmem:[%s19352_s1 + $0xa0] sm:$0xf]  ;;  %1341 = vmatpush.bf16.msrb.mxu0 %v13830_v60 }
  0xb0   :  { %v872_v14 = vadd.f32 %v15248_v55, %v803_v7  ;;  %v11267_v55 = vld [vmem:[%s19352_s1 + $0xb8] sm:$0xf0] }
  0xb1   :  { %v633_v15 = vadd.f32 %v15255_v59, %v564_v13  ;;  %602 = vmatmul.bf16.gmra.mxu0 %v15338_v0  ;;  %v15364_v35 = vor.u32 %v13765_v26, %v11267_v55  ;;  %v15388_v13 = vpop.permute.xlu2 %195 }
  0xb2   :  { %v930_v20 = vmax.f32 %v872_v14, 0.0  ;;  %844 = vmatmul.bf16.gmra.mxu2 %v15338_v0 }
  0xb3   :  { %19708 = vst [vmem:[#allocation19_spill] sm:$0xff] %v15364_v35  ;;  %v689_v2 = vmax.f32 %v633_v15, 0.0 }
  0xb4   :  { %v15360_v59 = vmax.f32 %v688_v19, %v930_v20  ;;  %v13829_v19 = vld [vmem:[%s19351_s0 + $0x30] sm:$0xff] }
  0xb5   :  { %v805_v29 = vpop.f32.mrf.mxu2  ;;  %v15362_v32 = vpop.f32.mrf.mxu3  ;;  %v13837_v20 = vld [vmem:[%s19351_s0 + $0x70] sm:$0xff]  ;;  %1342 = vmatpush.bf16.msrb.mxu0 %v13829_v19 }
  0xb6   :  { %v806_v43 = vadd.f32 %v805_v29, %v15281_v6  ;;  %v565_v50 = vpop.f32.mrf.mxu0  ;;  %v642_v52 = vpop.f32.mrf.mxu1  ;;  %1411 = vmatpush.bf16.msrb.mxu2 %v13837_v20 }
  0xb7   :  { %v566_v54 = vadd.f32 %v565_v50, %v15319_v42 }
  0xb8   :  { %v875_v57 = vadd.f32 %v15277_v3, %v806_v43  ;;  %v13764_v3 = vld [vmem:[%s19352_s1 + $0xa4] sm:$0xf0] }
  0xb9   :  { %v635_v47 = vadd.f32 %v15286_v10, %v566_v54  ;;  %11322 = vmatmul.msk.bf16.gmra.mxu1 %vm512_vm0, %v15364_v35  ;;  %v15390_v15 = vor.u32 %v13764_v3, %v11257_v8  ;;  %v15409_v20 = vpop.permute.xlu2 %160 }
  0xba   :  { %v931_v7 = vmax.f32 %v875_v57, 0.0  ;;  %11374 = vmatmul.msk.bf16.gmra.mxu3 %vm512_vm0, %v15364_v35  ;;  %19710 = vst [vmem:[#allocation21_spill] sm:$0xff] %v15409_v20 }
  0xbb   :  { %19709 = vst [vmem:[#allocation20_spill] sm:$0xff] %v15390_v15  ;;  %v690_v54 = vmax.f32 %v635_v47, 0.0 }
  0xbc   :  { %v15386_v10 = vmax.f32 %v689_v2, %v931_v7 }
  0xbd   :  { %v807_v14 = vpop.f32.mrf.mxu2  ;;  %v884_v16 = vpop.f32.mrf.mxu3 }
  0xbe   :  { %v808_v26 = vadd.f32 %v807_v14, %v15319_v42  ;;  %v568_v55 = vpop.f32.mrf.mxu0  ;;  %v644_v29 = vpop.f32.mrf.mxu1 }
  0xbf   :  { %v569_v38 = vadd.f32 %v568_v55, %v15219_v40  ;;  %v11265_v55 = vld [vmem:[%s19352_s1 + $0xb0] sm:$0xf] }
  0xc0   :  { %v877_v43 = vadd.f32 %v15305_v22, %v808_v26 }
  0xc1   :  { %v638_v50 = vadd.f32 %v15316_v34, %v569_v38  ;;  %607 = vmatmul.bf16.gmra.mxu0 %v15390_v15  ;;  %v13766_v38 = vld [vmem:[%s19352_s1 + $0xb4] sm:$0xf0] }
  0xc2   :  { %v932_v57 = vmax.f32 %v877_v43, 0.0  ;;  %849 = vmatmul.bf16.gmra.mxu2 %v15390_v15 }
  0xc3   :  { %v691_v47 = vmax.f32 %v638_v50, 0.0 }
  0xc4   :  { %v15404_v60 = vmax.f32 %v690_v54, %v932_v57  ;;  %v15425_v54 = vor.u32 %v13766_v38, %v11265_v55  ;;  %v15434_v55 = vpop.permute.xlu2 %175 }
  0xc5   :  { %v810_v2 = vpop.f32.mrf.mxu2  ;;  %v886_v7 = vpop.f32.mrf.mxu3 }
  0xc6   :  { %v811_v8 = vadd.f32 %v810_v2, %v15219_v40  ;;  %v570_v3 = vpop.f32.mrf.mxu0  ;;  %v647_v14 = vpop.f32.mrf.mxu1  ;;  %19711 = vst [vmem:[#allocation22_spill] sm:$0xff] %v15425_v54 }
  0xc7   :  { %v571_v19 = vadd.f32 %v570_v3, %v15233_v48 }
  0xc8   :  { %v880_v22 = vadd.f32 %v15336_v62, %v811_v8  ;;  %v105_v62 = vld [vmem:[%s19353_s2 + $0xa8] sm:$0xff] }
  0xc9   :  { %v640_v34 = vadd.f32 %v639_v11, %v571_v19  ;;  %1101 = vmatmul.bf16.vlgmr.msrb.gmra.mxu1 %v15007_v36  ;;  %215 = vperm.xlu2 %14827, %v105_v62  }
  0xca   :  { %v933_v26 = vmax.f32 %v880_v22, 0.0  ;;  %11415 = vmatmul.msk.bf16.vlgmr.msrb.gmra.mxu3 %vm512_vm0, %v14929_v12  ;;  %v15430_v22 = vpop.permute.xlu0 %165 }
  0xcb   :  { %19712 = vst [vmem:[#allocation23_spill] sm:$0xff] %v15430_v22 }
  0xcc   :  { %v15420_v43 = vmax.f32 %v691_v47, %v933_v26  ;;  %v692_v26 = vmax.f32 %v640_v34, 0.0 }
  0xcd   :  { %v812_v11 = vpop.f32.mrf.mxu2  ;;  %v889_v50 = vpop.f32.mrf.mxu3 }
  0xce   :  { %v813_v57 = vadd.f32 %v812_v11, %v15233_v48  ;;  %v573_v2 = vpop.f32.mrf.mxu0  ;;  %v649_v8 = vpop.f32.mrf.mxu1 }
  0xcf   :  { %v574_v3 = vadd.f32 %v573_v2, %v15183_v25 }
  0xd0   :  { %v882_v19 = vadd.f32 %v15362_v32, %v813_v57 }
  0xd1   :  { %v643_v47 = vadd.f32 %v642_v52, %v574_v3  ;;  %612 = vmatmul.bf16.gmra.mxu0 %v15425_v54 }
  0xd2   :  { %v934_v35 = vmax.f32 %v882_v19, 0.0  ;;  %854 = vmatmul.bf16.gmra.mxu2 %v15425_v54  ;;  %v15443_v19 = vpop.permute.xlu0 %220 }
  0xd3   :  { %v693_v34 = vmax.f32 %v643_v47, 0.0 }
  0xd4   :  { %v15436_v38 = vmax.f32 %v692_v26, %v934_v35  ;;  %v15447_v26 = vpop.permute.xlu2 %150 }
  0xd5   :  { %v815_v62 = vpop.f32.mrf.mxu2  ;;  %v891_v11 = vpop.f32.mrf.mxu3  ;;  %19713 = vst [vmem:[#allocation24_spill] sm:$0xff] %v15447_v26 }
  0xd6   :  { %v816_v48 = vadd.f32 %v815_v62, %v15183_v25  ;;  %v575_v2 = vpop.f32.mrf.mxu0  ;;  %v652_v23 = vpop.f32.mrf.mxu1 }
  0xd7   :  { %v576_v32 = vadd.f32 %v575_v2, %v15205_v33 }
  0xd8   :  { %v885_v57 = vadd.f32 %v884_v16, %v816_v48 }
  0xd9   :  { %v645_v52 = vadd.f32 %v644_v29, %v576_v32  ;;  %1106 = vmatmul.bf16.gmra.mxu1 %v15038_v45 }
  0xda   :  { %v935_v3 = vmax.f32 %v885_v57, 0.0  ;;  %11416 = vmatmul.msk.bf16.gmra.mxu3 %vm512_vm0, %v14977_v27 }
  0xdb   :  { %v694_v32 = vmax.f32 %v645_v52, 0.0 }
  0xdc   :  { %v15445_v35 = vmax.f32 %v693_v34, %v935_v3  ;;  %v15456_v3 = vpop.permute.xlu0 %155 }
  0xdd   :  { %v817_v62 = vpop.f32.mrf.mxu2  ;;  %v894_v25 = vpop.f32.mrf.mxu3  ;;  %19714 = vst [vmem:[#allocation25_spill] sm:$0xff] %v15456_v3 }
  0xde   :  { %v818_v54 = vadd.f32 %v817_v62, %v15205_v33  ;;  %v578_v2 = vpop.f32.mrf.mxu0  ;;  %v654_v48 = vpop.f32.mrf.mxu1 }
  0xdf   :  { %v579_v16 = vadd.f32 %v578_v2, %v15447_v26 }
  0xe0   :  { %v887_v29 = vadd.f32 %v886_v7, %v818_v54 }
  0xe1   :  { %v648_v47 = vadd.f32 %v647_v14, %v579_v16  ;;  %1343 = vmatmul.bf16.vlgmr.msrb.gmra.mxu0 %v15007_v36 }
  0xe2   :  { %v936_v57 = vmax.f32 %v887_v29, 0.0  ;;  %11467 = vmatmul.msk.bf16.vlgmr.msrb.gmra.mxu2 %vm512_vm0, %v14929_v12 }
  0xe3   :  { %v695_v52 = vmax.f32 %v648_v47, 0.0 }
  0xe4   :  { %v15454_v34 = vmax.f32 %v694_v32, %v936_v57 }
  0xe5   :  { %v820_v40 = vpop.f32.mrf.mxu2  ;;  %v896_v15 = vpop.f32.mrf.mxu3 }
  0xe6   :  { %v821_v62 = vadd.f32 %v820_v40, %v15447_v26  ;;  %v580_v33 = vpop.f32.mrf.mxu0  ;;  %v657_v42 = vpop.f32.mrf.mxu1 }
  0xe7   :  { %v581_v7 = vadd.f32 %v580_v33, %v15456_v3 }
  0xe8   :  { %v890_v14 = vadd.f32 %v889_v50, %v821_v62 }
  0xe9   :  { %v650_v54 = vadd.f32 %v649_v8, %v581_v7  ;;  %1111 = vmatmul.bf16.gmra.mxu1 %v15066_v53 }
  0xea   :  { %v937_v2 = vmax.f32 %v890_v14, 0.0  ;;  %11417 = vmatmul.msk.bf16.gmra.mxu3 %vm512_vm0, %v15023_v41 }
  0xeb   :  { %v696_v8 = vmax.f32 %v650_v54, 0.0 }
  0xec   :  { %v15463_v16 = vmax.f32 %v695_v52, %v937_v2 }
  0xed   :  { %v822_v29 = vpop.f32.mrf.mxu2  ;;  %v899_v32 = vpop.f32.mrf.mxu3 }
  0xee   :  { %v823_v57 = vadd.f32 %v822_v29, %v15456_v3  ;;  %v583_v40 = vpop.f32.mrf.mxu0  ;;  %v659_v12 = vpop.f32.mrf.mxu1 }
  0xef   :  { %v584_v26 = vadd.f32 %v583_v40, %v15409_v20 }
  0xf0   :  { %v892_v33 = vadd.f32 %v891_v11, %v823_v57 }
  0xf1   :  { %v653_v50 = vadd.f32 %v652_v23, %v584_v26  ;;  %1348 = vmatmul.bf16.gmra.mxu0 %v15038_v45 }
  0xf2   :  { %v938_v47 = vmax.f32 %v892_v33, 0.0  ;;  %11468 = vmatmul.msk.bf16.gmra.mxu2 %vm512_vm0, %v14977_v27 }
  0xf3   :  { %v697_v23 = vmax.f32 %v653_v50, 0.0  ;;  %v15485_v50 = vpop.permute.xlu1 %170 }
  0xf4   :  { %v15470_v62 = vmax.f32 %v696_v8, %v938_v47  ;;  %19715 = vst [vmem:[#allocation26_spill] sm:$0xff] %v15485_v50 }
  0xf5   :  { %v825_v7 = vpop.f32.mrf.mxu2  ;;  %v901_v14 = vpop.f32.mrf.mxu3 }
  0xf6   :  { %v826_v52 = vadd.f32 %v825_v7, %v15409_v20  ;;  %v585_v2 = vpop.f32.mrf.mxu0  ;;  %v662_v29 = vpop.f32.mrf.mxu1 }
  0xf7   :  { %v586_v3 = vadd.f32 %v585_v2, %v15430_v22 }
  0xf8   :  { %v895_v40 = vadd.f32 %v894_v25, %v826_v52 }
  0xf9   :  { %v655_v11 = vadd.f32 %v654_v48, %v586_v3  ;;  %1116 = vmatmul.bf16.gmra.mxu1 %v15100_v63 }
  0xfa   :  { %v939_v26 = vmax.f32 %v895_v40, 0.0  ;;  %11418 = vmatmul.msk.bf16.gmra.mxu3 %vm512_vm0, %v15051_v49 }
  0xfb   :  { %v698_v25 = vmax.f32 %v655_v11, 0.0 }
  0xfc   :  { %v15477_v54 = vmax.f32 %v697_v23, %v939_v26 }
  0xfd   :  { %v827_v57 = vpop.f32.mrf.mxu2  ;;  %v904_v33 = vpop.f32.mrf.mxu3 }
  0xfe   :  { %v828_v8 = vadd.f32 %v827_v57, %v15430_v22  ;;  %v588_v47 = vpop.f32.mrf.mxu0  ;;  %v664_v7 = vpop.f32.mrf.mxu1 }
 0x100   :  { %v897_v27 = vadd.f32 %v896_v15, %v828_v8  ;;  %v589_v15 = vadd.f32 %v588_v47, %v15485_v50 }
 0x101   :  { %1353 = vmatmul.bf16.gmra.mxu0 %v15066_v53 }
 0x102   :  { %v940_v48 = vmax.f32 %v897_v27, 0.0  ;;  %11469 = vmatmul.msk.bf16.gmra.mxu2 %vm512_vm0, %v15023_v41  ;;  %v658_v57 = vadd.f32 %v657_v42, %v589_v15 }
 0x104   :  { %v15483_v3 = vmax.f32 %v698_v25, %v940_v48  ;;  %v699_v20 = vmax.f32 %v658_v57, 0.0 }
 0x105   :  { %v830_v52 = vpop.f32.mrf.mxu2  ;;  %v906_v2 = vpop.f32.mrf.mxu3 }
 0x106   :  { %v831_v40 = vadd.f32 %v830_v52, %v15485_v50  ;;  %v590_v23 = vpop.f32.mrf.mxu0  ;;  %v15488_v26 = vpop.f32.mrf.mxu1 }
 0x107   :  { %v591_v27 = vadd.f32 %v590_v23, %v15434_v55 }
 0x108   :  { %v900_v11 = vadd.f32 %v899_v32, %v831_v40 }
 0x109   :  { %1121 = vmatmul.bf16.gmra.mxu1 %v15134_v9  ;;  %v660_v41 = vadd.f32 %v659_v12, %v591_v27 }
 0x10a   :  { %11419 = vmatmul.msk.bf16.gmra.mxu3 %vm512_vm0, %v15082_v58  ;;  %v941_v48 = vmax.f32 %v900_v11, 0.0 }
 0x10b   :  { %v700_v40 = vmax.f32 %v660_v41, 0.0 }
 0x10c   :  { %v965_v32 = vmax.f32 %v699_v20, %v941_v48 }
 0x10d   :  { %v832_v8 = vpop.f32.mrf.mxu2  ;;  %v909_v25 = vpop.f32.mrf.mxu3 }
 0x10e   :  { %v833_v52 = vadd.f32 %v832_v8, %v15434_v55  ;;  %v593_v53 = vpop.f32.mrf.mxu0  ;;  %v15496_v22 = vpop.f32.mrf.mxu1  ;;  %v977_v12 = vmax.f32 %v15331_v44, %v965_v32 }
 0x10f   :  { %v594_v20 = vadd.f32 %v593_v53, %v15358_v28 }
 0x110   :  { %v902_v47 = vadd.f32 %v901_v14, %v833_v52 }
 0x111   :  { %1358 = vmatmul.bf16.gmra.mxu0 %v15100_v63  ;;  %v663_v44 = vadd.f32 %v662_v29, %v594_v20 }
 0x112   :  { %v942_v23 = vmax.f32 %v902_v47, 0.0  ;;  %11470 = vmatmul.msk.bf16.gmra.mxu2 %vm512_vm0, %v15051_v49 }
 0x113   :  { %v701_v53 = vmax.f32 %v663_v44, 0.0 }
 0x114   :  { %v966_v42 = vmax.f32 %v700_v40, %v942_v23 }
 0x115   :  { %v835_v15 = vpop.f32.mrf.mxu2  ;;  %v911_v50 = vpop.f32.mrf.mxu3 }
 0x116   :  { %v978_v11 = vmax.f32 %v15360_v59, %v966_v42  ;;  %v836_v27 = vadd.f32 %v835_v15, %v15358_v28  ;;  %v595_v8 = vpop.f32.mrf.mxu0  ;;  %v15504_v57 = vpop.f32.mrf.mxu1 }
 0x117   :  { %v596_v48 = vadd.f32 %v595_v8, %v15240_v51 }
 0x118   :  { %v14300_v14 = vpack.c.bf16 %v978_v11, %v977_v12  ;;  %v905_v41 = vadd.f32 %v904_v33, %v836_v27 }
 0x119   :  { %1126 = vmatmul.bf16.gmra.mxu1 %v15171_v21  ;;  %v665_v32 = vadd.f32 %v664_v7, %v596_v48 }
 0x11a   :  { %14301 = vst [vmem:[#allocation2 + $0xc8] sm:$0xff] %v14300_v14   ;;  %11420 = vmatmul.msk.bf16.gmra.mxu3 %vm512_vm0, %v15116_v4  ;;  %v943_v47 = vmax.f32 %v905_v41, 0.0 }
 0x11b   :  { %v702_v12 = vmax.f32 %v665_v32, 0.0  ;;  %v13858_v32 = vld [vmem:[%s19351_s0 + $0x98] sm:$0xff] }
 0x11c   :  { %v967_v33 = vmax.f32 %v701_v53, %v943_v47  ;;  %1954 = vmatpush.bf16.msra.mxu2 %v13858_v32 }
 0x11d   :  { %v837_v52 = vpop.f32.mrf.mxu2  ;;  %v15511_v59 = vpop.f32.mrf.mxu3 }
 0x11e   :  { %v838_v40 = vadd.f32 %v837_v52, %v15240_v51  ;;  %v598_v23 = vpop.f32.mrf.mxu0  ;;  %v15514_v42 = vpop.f32.mrf.mxu1  ;;  %v979_v7 = vmax.f32 %v15386_v10, %v967_v33  ;;  %v13848_v10 = vld [vmem:[%s19351_s0 + $0x88] sm:$0xff] }
 0x11f   :  { %v599_v44 = vadd.f32 %v598_v23, %v15264_v61  ;;  %1712 = vmatpush.bf16.msra.mxu3 %v13848_v10 }
 0x120   :  { %v907_v15 = vadd.f32 %v906_v2, %v838_v40 }
 0x121   :  { %1363 = vmatmul.bf16.gmra.mxu0 %v15134_v9  ;;  %v668_v40 = vadd.f32 %v15488_v26, %v599_v44 }
 0x122   :  { %v944_v11 = vmax.f32 %v907_v15, 0.0  ;;  %11471 = vmatmul.msk.bf16.gmra.mxu2 %vm512_vm0, %v15082_v58 }
 0x124   :  { %v968_v29 = vmax.f32 %v702_v12, %v944_v11 }
 0x125   :  { %v840_v27 = vpop.f32.mrf.mxu2  ;;  %v916_v8 = vpop.f32.mrf.mxu3 }
 0x126   :  { %v980_v14 = vmax.f32 %v15404_v60, %v968_v29  ;;  %v841_v20 = vadd.f32 %v840_v27, %v15264_v61  ;;  %v600_v41 = vpop.f32.mrf.mxu0  ;;  %v15522_v48 = vpop.f32.mrf.mxu1  ;;  %v13846_v60 = vld [vmem:[%s19351_s0 + $0x78] sm:$0xff]  ;;  %v13856_v29 = vld [vmem:[%s19351_s0 + $0x88] sm:$0xff]  ;;  %v703_v27 = vmax.f32 %v668_v40, 0.0 }
 0x127   :  { %v601_v47 = vadd.f32 %v600_v41, %v15388_v13  ;;  %1637 = vmatpush.bf16.msra.mxu1 %v13846_v60  ;;  %1879 = vmatpush.bf16.msra.mxu0 %v13856_v29 }
 0x128   :  { %v14305_v2 = vpack.c.bf16 %v980_v14, %v979_v7  ;;  %v910_v52 = vadd.f32 %v909_v25, %v841_v20 }
 0x129   :  { %1131 = vmatmul.bf16.gmra.mxu1 %v15200_v31  ;;  %v670_v15 = vadd.f32 %v15496_v22, %v601_v47 }
 0x12a   :  { %14737 = vst [vmem:[#allocation2 + $0x8] sm:$0xff] %v14305_v2   ;;  %11421 = vmatmul.msk.bf16.gmra.mxu3 %vm512_vm0, %v15156_v17  ;;  %v945_v53 = vmax.f32 %v910_v52, 0.0 }
 0x12b   :  { %v704_v14 = vmax.f32 %v670_v15, 0.0 }
 0x12c   :  { %v969_v7 = vmax.f32 %v703_v27, %v945_v53 }
 0x12d   :  { %v842_v25 = vpop.f32.mrf.mxu2  ;;  %v15539_v23 = vpop.f32.mrf.mxu3 }
 0x12e   :  { %v843_v33 = vadd.f32 %v842_v25, %v15388_v13  ;;  %v603_v12 = vpop.f32.mrf.mxu0  ;;  %v15543_v11 = vpop.f32.mrf.mxu1  ;;  %v981_v44 = vmax.f32 %v15420_v43, %v969_v7 }
 0x12f   :  { %v604_v32 = vadd.f32 %v603_v12, %v15198_v30  ;;  %v15559_v25 = vpop.permute.xlu1 %225 }
 0x130   :  { %v912_v26 = vadd.f32 %v911_v50, %v843_v33 }
 0x131   :  { %1368 = vmatmul.bf16.gmra.mxu0 %v15171_v21  ;;  %v673_v43 = vadd.f32 %v15504_v57, %v604_v32 }
 0x132   :  { %v946_v20 = vmax.f32 %v912_v26, 0.0  ;;  %11472 = vmatmul.msk.bf16.gmra.mxu2 %vm512_vm0, %v15116_v4 }
 0x133   :  { %v705_v7 = vmax.f32 %v673_v43, 0.0 }
 0x134   :  { %v970_v22 = vmax.f32 %v704_v14, %v946_v20 }
 0x135   :  { %v845_v41 = vpop.f32.mrf.mxu2  ;;  %v921_v2 = vpop.f32.mrf.mxu3 }
 0x136   :  { %v982_v52 = vmax.f32 %v15436_v38, %v970_v22  ;;  %v846_v47 = vadd.f32 %v845_v41, %v15198_v30  ;;  %v605_v10 = vpop.f32.mrf.mxu0  ;;  %v15554_v50 = vpop.f32.mrf.mxu1 }
 0x137   :  { %v606_v53 = vadd.f32 %v605_v10, %v15217_v39  ;;  %v15577_v41 = vpop.permute.xlu1 %210 }
 0x138   :  { %v14310_v60 = vpack.c.bf16 %v982_v52, %v981_v44  ;;  %v915_v40 = vadd.f32 %v15511_v59, %v846_v47  ;;  %v13845_v59 = vld [vmem:[%s19351_s0 + $0x70] sm:$0xff] }
 0x139   :  { %1136 = vmatmul.bf16.gmra.mxu1 %v15231_v46  ;;  %v675_v12 = vadd.f32 %v15514_v42, %v606_v53 }
 0x13a   :  { %14738 = vst [vmem:[#allocation2 + $0x40] sm:$0xff] %v14310_v60   ;;  %11422 = vmatmul.msk.bf16.gmra.mxu3 %vm512_vm0, %v15181_v24  ;;  %v947_v33 = vmax.f32 %v915_v40, 0.0  ;;  %1638 = vmatpush.bf16.msra.mxu1 %v13845_v59  ;;  %v15584_v40 = vpop.permute.xlu2 %215 }
 0x13b   :  { %v706_v20 = vmax.f32 %v675_v12, 0.0 }
 0x13c   :  { %v971_v57 = vmax.f32 %v705_v7, %v947_v33 }
 0x13d   :  { %v847_v38 = vpop.f32.mrf.mxu2  ;;  %v15565_v15 = vpop.f32.mrf.mxu3 }
 0x13e   :  { %v848_v29 = vadd.f32 %v847_v38, %v15217_v39  ;;  %v608_v27 = vpop.f32.mrf.mxu0  ;;  %v15569_v26 = vpop.f32.mrf.mxu1  ;;  %v983_v47 = vmax.f32 %v15445_v35, %v971_v57 }
 0x13f   :  { %v609_v43 = vadd.f32 %v608_v27, %v15577_v41 }
 0x140   :  { %v917_v14 = vadd.f32 %v916_v8, %v848_v29 }
 0x141   :  { %1373 = vmatmul.bf16.gmra.mxu0 %v15200_v31  ;;  %v678_v12 = vadd.f32 %v15522_v48, %v609_v43  ;;  %v13844_v48 = vld [vmem:[%s19351_s0 + $0x68] sm:$0xff] }
 0x142   :  { %v948_v22 = vmax.f32 %v917_v14, 0.0  ;;  %11473 = vmatmul.msk.bf16.gmra.mxu2 %vm512_vm0, %v15156_v17  ;;  %1639 = vmatpush.bf16.msra.mxu1 %v13844_v48 }
 0x144   :  { %v972_v42 = vmax.f32 %v706_v20, %v948_v22  ;;  %v707_v22 = vmax.f32 %v678_v12, 0.0 }
 0x145   :  { %v850_v44 = vpop.f32.mrf.mxu2  ;;  %v15579_v52 = vpop.f32.mrf.mxu3 }
 0x146   :  { %v984_v10 = vmax.f32 %v15454_v34, %v972_v42  ;;  %v851_v8 = vadd.f32 %v850_v44, %v15577_v41  ;;  %v610_v60 = vpop.f32.mrf.mxu0  ;;  %v1102_v32 = vpop.f32.mrf.mxu1  ;;  %v13855_v34 = vld [vmem:[%s19351_s0 + $0x80] sm:$0xff] }
 0x147   :  { %v611_v33 = vadd.f32 %v610_v60, %v15584_v40  ;;  %v1103_v35 = vadd.f32 %v1102_v32, %v15272_v1  ;;  %1880 = vmatpush.bf16.msra.mxu0 %v13855_v34 }
 0x148   :  { %v14315_v53 = vpack.c.bf16 %v984_v10, %v983_v47  ;;  %v920_v38 = vadd.f32 %v15539_v23, %v851_v8 }
 0x149   :  { %1141 = vmatmul.bf16.gmra.mxu1 %v15279_v5  ;;  %v680_v7 = vadd.f32 %v15543_v11, %v611_v33 }
 0x14a   :  { %14739 = vst [vmem:[#allocation2 + $0x28] sm:$0xff] %v14315_v53   ;;  %11423 = vmatmul.msk.bf16.gmra.mxu3 %vm512_vm0, %v15215_v37  ;;  %v949_v59 = vmax.f32 %v920_v38, 0.0 }
 0x14b   :  { %v708_v47 = vmax.f32 %v680_v7, 0.0  ;;  %v13854_v7 = vld [vmem:[%s19351_s0 + $0x78] sm:$0xff] }
 0x14c   :  { %v973_v44 = vmax.f32 %v707_v22, %v949_v59  ;;  %1881 = vmatpush.bf16.msra.mxu0 %v13854_v7 }
 0x14d   :  { %v852_v29 = vpop.f32.mrf.mxu2  ;;  %v1171_v27 = vpop.f32.mrf.mxu3 }
 0x14e   :  { %v853_v23 = vadd.f32 %v852_v29, %v15584_v40  ;;  %v15599_v14 = vadd.f32 %v1171_v27, %v1103_v35  ;;  %v613_v57 = vpop.f32.mrf.mxu0  ;;  %v1104_v20 = vpop.f32.mrf.mxu1  ;;  %v985_v53 = vmax.f32 %v15463_v16, %v973_v44  ;;  %v13842_v16 = vld [vmem:[%s19351_s0 + $0x58] sm:$0xff] }
 0x14f   :  { %v1105_v8 = vadd.f32 %v1104_v20, %v15300_v18  ;;  %v614_v29 = vadd.f32 %v613_v57, %v15443_v19 }
 0x150   :  { %v922_v42 = vadd.f32 %v921_v2, %v853_v23  ;;  %v13843_v2 = vld [vmem:[%s19351_s0 + $0x60] sm:$0xff] }
 0x151   :  { %1378 = vmatmul.bf16.gmra.mxu0 %v15231_v46  ;;  %1640 = vmatpush.bf16.msra.mxu1 %v13843_v2  ;;  %v683_v23 = vadd.f32 %v15554_v50, %v614_v29  ;;  %v19716_v2 = vld [vmem:[#allocation18_spill] sm:$0xff] }
 0x152   :  { %v950_v10 = vmax.f32 %v922_v42, 0.0  ;;  %11474 = vmatmul.msk.bf16.gmra.mxu2 %vm512_vm0, %v15181_v24 }
 0x154   :  { %v974_v11 = vmax.f32 %v708_v47, %v950_v10 }
 0x155   :  { %v855_v60 = vpop.f32.mrf.mxu2  ;;  %v1173_v32 = vpop.f32.mrf.mxu3  ;;  %1641 = vmatpush.bf16.msra.mxu1 %v13842_v16 }
 0x156   :  { %v986_v43 = vmax.f32 %v15470_v62, %v974_v11  ;;  %v856_v38 = vadd.f32 %v855_v60, %v15443_v19  ;;  %v15614_v33 = vadd.f32 %v1173_v32, %v1105_v8  ;;  %v615_v35 = vpop.f32.mrf.mxu0  ;;  %v1107_v34 = vpop.f32.mrf.mxu1  ;;  %v709_v8 = vmax.f32 %v683_v23, 0.0 }
 0x157   :  { %v616_v27 = vadd.f32 %v615_v35, %v15559_v25  ;;  %v1108_v59 = vadd.f32 %v1107_v34, %v15281_v6  ;;  %v13839_v34 = vld [vmem:[%s19351_s0 + $0x40] sm:$0xff]  ;;  %v1231_v23 = vmax.f32 %v15599_v14, 0.0  ;;  %v13853_v14 = vld [vmem:[%s19351_s0 + $0x70] sm:$0xff] }
 0x158   :  { %v14320_v12 = vpack.c.bf16 %v986_v43, %v985_v53  ;;  %v925_v62 = vadd.f32 %v15565_v15, %v856_v38  ;;  %v13841_v15 = vld [vmem:[%s19351_s0 + $0x50] sm:$0xff]  ;;  %1882 = vmatpush.bf16.msra.mxu0 %v13853_v14 }
 0x159   :  { %1146 = vmatmul.bf16.gmra.mxu1 %v15338_v0  ;;  %v685_v57 = vadd.f32 %v15569_v26, %v616_v27  ;;  %v13840_v26 = vld [vmem:[%s19351_s0 + $0x48] sm:$0xff] }
 0x15a   :  { %14740 = vst [vmem:[#allocation2 + $0xe8] sm:$0xff] %v14320_v12   ;;  %11424 = vmatmul.msk.bf16.gmra.mxu3 %vm512_vm0, %v15250_v56  ;;  %v951_v42 = vmax.f32 %v925_v62, 0.0  ;;  %1642 = vmatpush.bf16.msra.mxu1 %v13841_v15  ;;  %v13847_v12 = vld [vmem:[%s19351_s0 + $0x80] sm:$0xff] }
 0x15b   :  { %v710_v11 = vmax.f32 %v685_v57, 0.0  ;;  %1713 = vmatpush.bf16.msra.mxu3 %v13847_v12 }
 0x15c   :  { %v975_v60 = vmax.f32 %v709_v8, %v951_v42  ;;  %v19718_v42 = vld [vmem:[#allocation15_spill] sm:$0xff] }
 0x15d   :  { %v857_v20 = vpop.f32.mrf.mxu2  ;;  %v1176_v22 = vpop.f32.mrf.mxu3 }
 0x15e   :  { %v858_v48 = vadd.f32 %v857_v20, %v15559_v25  ;;  %v15635_v44 = vadd.f32 %v1176_v22, %v1108_v59  ;;  %v1109_v47 = vpop.f32.mrf.mxu1  ;;  %v1344_v10 = vpop.f32.mrf.mxu0  ;;  %1643 = vmatpush.bf16.msra.mxu1 %v13840_v26  ;;  %v987_v29 = vmax.f32 %v15477_v54, %v975_v60  ;;  %v19717_v22 = vld [vmem:[#allocation20_spill] sm:$0xff]  ;;  %v1232_v60 = vmax.f32 %v15614_v33, 0.0  ;;  %v13851_v33 = vld [vmem:[%s19351_s0 + $0x60] sm:$0xff] }
 0x15f   :  { %v1110_v53 = vadd.f32 %v1109_v47, %v19716_v2  ;;  %v1345_v43 = vadd.f32 %v1344_v10, %v15272_v1 }
 0x160   :  { %v927_v50 = vadd.f32 %v15579_v52, %v858_v48  ;;  %v19719_v48 = vld [vmem:[#allocation17_spill] sm:$0xff] }
 0x161   :  { %1383 = vmatmul.bf16.gmra.mxu0 %v15279_v5 }
 0x162   :  { %v952_v32 = vmax.f32 %v927_v50, 0.0  ;;  %11475 = vmatmul.msk.bf16.gmra.mxu2 %vm512_vm0, %v15215_v37  ;;  %1644 = vmatpush.bf16.msra.mxu1 %v13839_v34 }
 0x164   :  { %v976_v38 = vmax.f32 %v710_v11, %v952_v32 }
 0x165   :  { %v1178_v35 = vpop.f32.mrf.mxu3  ;;  %v1413_v52 = vpop.f32.mrf.mxu2 }
 0x166   :  { %v988_v27 = vmax.f32 %v15483_v3, %v976_v38  ;;  %v15654_v16 = vadd.f32 %v1178_v35, %v1110_v53  ;;  %v1414_v62 = vadd.f32 %v1413_v52, %v1345_v43  ;;  %v1112_v59 = vpop.f32.mrf.mxu1  ;;  %v1346_v7 = vpop.f32.mrf.mxu0  ;;  %v13852_v53 = vld [vmem:[%s19351_s0 + $0x68] sm:$0xff] }
 0x167   :  { %v1113_v54 = vadd.f32 %v1112_v59, %v19718_v42  ;;  %v1347_v3 = vadd.f32 %v1346_v7, %v15300_v18  ;;  %v19720_v38 = vld [vmem:[#allocation16_spill] sm:$0xff]  ;;  %1883 = vmatpush.bf16.msra.mxu0 %v13852_v53  ;;  %v1233_v7 = vmax.f32 %v15635_v44, 0.0 }
 0x168   :  { %v14325_v57 = vpack.c.bf16 %v988_v27, %v987_v29  ;;  %v1473_v20 = vmax.f32 %v1414_v62, 0.0  ;;  %v13849_v44 = vld [vmem:[%s19351_s0 + $0x50] sm:$0xff] }
 0x169   :  { %1151 = vmatmul.bf16.gmra.mxu1 %v19717_v22 }
 0x16a   :  { %14741 = vst [vmem:[#allocation2 + $0xf0] sm:$0xff] %v14325_v57   ;;  %v15658_v15 = vmax.f32 %v1231_v23, %v1473_v20  ;;  %11425 = vmatmul.msk.bf16.gmra.mxu3 %vm512_vm0, %v19719_v48  ;;  %v19721_v57 = vld [vmem:[#allocation22_spill] sm:$0xff] }
 0x16b   :  { %1884 = vmatpush.bf16.msra.mxu0 %v13851_v33  ;;  %v13850_v20 = vld [vmem:[%s19351_s0 + $0x58] sm:$0xff] }
 0x16c   :  { %v19724_v33 = vld [vmem:[#allocation14_spill] sm:$0xff] }
 0x16d   :  { %v1181_v47 = vpop.f32.mrf.mxu3  ;;  %v1415_v10 = vpop.f32.mrf.mxu2 }
 0x16e   :  { %v1182_v8 = vadd.f32 %v1181_v47, %v1113_v54  ;;  %v1416_v50 = vadd.f32 %v1415_v10, %v1347_v3  ;;  %v1114_v11 = vpop.f32.mrf.mxu1  ;;  %v1349_v26 = vpop.f32.mrf.mxu0  ;;  %v19722_v3 = vld [vmem:[#allocation13_spill] sm:$0xff]  ;;  %v19723_v10 = vld [vmem:[#allocation19_spill] sm:$0xff] }
 0x16f   :  { %v1115_v35 = vadd.f32 %v1114_v11, %v19720_v38  ;;  %v1350_v52 = vadd.f32 %v1349_v26, %v15281_v6  ;;  %1885 = vmatpush.bf16.msra.mxu0 %v13850_v20  ;;  %v13857_v26 = vld [vmem:[%s19351_s0 + $0x90] sm:$0xff] }
 0x170   :  { %v1474_v32 = vmax.f32 %v1416_v50, 0.0  ;;  %1955 = vmatpush.bf16.msra.mxu2 %v13857_v26 }
 0x171   :  { %1388 = vmatmul.bf16.gmra.mxu0 %v15338_v0 }
 0x172   :  { %v15672_v43 = vmax.f32 %v1232_v60, %v1474_v32  ;;  %11476 = vmatmul.msk.bf16.gmra.mxu2 %vm512_vm0, %v15250_v56 }
 0x173   :  { %1886 = vmatpush.bf16.msra.mxu0 %v13849_v44  ;;  %v19725_v44 = vld [vmem:[#allocation24_spill] sm:$0xff] }
 0x175   :  { %v1183_v34 = vpop.f32.mrf.mxu3  ;;  %v1418_v12 = vpop.f32.mrf.mxu2 }
 0x176   :  { %v1184_v29 = vadd.f32 %v1183_v34, %v1115_v35  ;;  %v1419_v27 = vadd.f32 %v1418_v12, %v1350_v52  ;;  %v1117_v62 = vpop.f32.mrf.mxu1  ;;  %v1351_v59 = vpop.f32.mrf.mxu0  ;;  %v1234_v52 = vmax.f32 %v15654_v16, 0.0 }
 0x177   :  { %v1118_v47 = vadd.f32 %v1117_v62, %v19722_v3  ;;  %v1352_v14 = vadd.f32 %v1351_v59, %v19716_v2 }
 0x178   :  { %v1475_v23 = vmax.f32 %v1419_v27, 0.0 }
 0x179   :  { %1156 = vmatmul.bf16.gmra.mxu1 %v19721_v57 }
 0x17a   :  { %v15686_v54 = vmax.f32 %v1233_v7, %v1475_v23  ;;  %11426 = vmatmul.msk.bf16.gmra.mxu3 %vm512_vm0, %v19723_v10 }
 0x17d   :  { %v1186_v50 = vpop.f32.mrf.mxu3  ;;  %v1420_v11 = vpop.f32.mrf.mxu2 }
 0x17e   :  { %v1187_v60 = vadd.f32 %v1186_v50, %v1118_v47  ;;  %v1421_v32 = vadd.f32 %v1420_v11, %v1352_v14  ;;  %v1119_v53 = vpop.f32.mrf.mxu1  ;;  %v1354_v35 = vpop.f32.mrf.mxu0  ;;  %v1235_v50 = vmax.f32 %v1182_v8, 0.0 }
 0x17f   :  { %v1120_v27 = vadd.f32 %v1119_v53, %v19724_v33  ;;  %v1355_v62 = vadd.f32 %v1354_v35, %v19718_v42 }
 0x180   :  { %v1476_v34 = vmax.f32 %v1421_v32, 0.0  ;;  %v19726_v32 = vld [vmem:[#allocation7_spill] sm:$0xff] }
 0x181   :  { %1393 = vmatmul.bf16.gmra.mxu0 %v19717_v22 }
 0x182   :  { %v15700_v12 = vmax.f32 %v1234_v52, %v1476_v34  ;;  %11477 = vmatmul.msk.bf16.gmra.mxu2 %vm512_vm0, %v19719_v48 }
 0x185   :  { %v1188_v59 = vpop.f32.mrf.mxu3  ;;  %v1423_v7 = vpop.f32.mrf.mxu2 }
 0x186   :  { %v1189_v23 = vadd.f32 %v1188_v59, %v1120_v27  ;;  %v1424_v20 = vadd.f32 %v1423_v7, %v1355_v62  ;;  %v1122_v47 = vpop.f32.mrf.mxu1  ;;  %v1356_v14 = vpop.f32.mrf.mxu0  ;;  %v1236_v7 = vmax.f32 %v1184_v29, 0.0 }
 0x187   :  { %v1123_v26 = vadd.f32 %v1122_v47, %v19725_v44  ;;  %v1357_v53 = vadd.f32 %v1356_v14, %v19720_v38 }
 0x188   :  { %v1477_v16 = vmax.f32 %v1424_v20, 0.0 }
 0x189   :  { %1645 = vmatmul.bf16.vlgmr.msra.gmra.mxu1 %v15007_v36 }
 0x18a   :  { %v15707_v11 = vmax.f32 %v1235_v50, %v1477_v16  ;;  %11519 = vmatmul.msk.bf16.vlgmr.msra.gmra.mxu3 %vm512_vm0, %v19726_v32  ;;  %v19727_v50 = vld [vmem:[#allocation25_spill] sm:$0xff] }
 0x18d   :  { %v1191_v35 = vpop.f32.mrf.mxu3  ;;  %v1425_v52 = vpop.f32.mrf.mxu2 }
 0x18e   :  { %v1192_v34 = vadd.f32 %v1191_v35, %v1123_v26  ;;  %v1426_v27 = vadd.f32 %v1425_v52, %v1357_v53  ;;  %v1124_v62 = vpop.f32.mrf.mxu1  ;;  %v1359_v59 = vpop.f32.mrf.mxu0  ;;  %v1237_v52 = vmax.f32 %v1187_v60, 0.0 }
 0x18f   :  { %v1125_v16 = vadd.f32 %v1124_v62, %v19727_v50  ;;  %v1360_v47 = vadd.f32 %v1359_v59, %v19722_v3  ;;  %v19729_v62 = vld [vmem:[#allocation8_spill] sm:$0xff] }
 0x190   :  { %v1478_v8 = vmax.f32 %v1426_v27, 0.0 }
 0x191   :  { %1398 = vmatmul.bf16.gmra.mxu0 %v19721_v57 }
 0x192   :  { %v15714_v20 = vmax.f32 %v1236_v7, %v1478_v8  ;;  %11478 = vmatmul.msk.bf16.gmra.mxu2 %vm512_vm0, %v19723_v10  ;;  %v19728_v7 = vld [vmem:[#allocation21_spill] sm:$0xff] }
 0x195   :  { %v1193_v14 = vpop.f32.mrf.mxu3  ;;  %v1428_v38 = vpop.f32.mrf.mxu2 }
 0x196   :  { %v1194_v48 = vadd.f32 %v1193_v14, %v1125_v16  ;;  %v1429_v26 = vadd.f32 %v1428_v38, %v1360_v47  ;;  %v1127_v53 = vpop.f32.mrf.mxu1  ;;  %v1361_v35 = vpop.f32.mrf.mxu0  ;;  %v1238_v14 = vmax.f32 %v1189_v23, 0.0 }
 0x197   :  { %v1128_v8 = vadd.f32 %v1127_v53, %v19728_v7  ;;  %v1362_v59 = vadd.f32 %v1361_v35, %v19724_v33 }
 0x198   :  { %v1479_v29 = vmax.f32 %v1429_v26, 0.0 }
 0x199   :  { %1650 = vmatmul.bf16.gmra.mxu1 %v15038_v45 }
 0x19a   :  { %v15721_v27 = vmax.f32 %v1237_v52, %v1479_v29  ;;  %11520 = vmatmul.msk.bf16.gmra.mxu3 %vm512_vm0, %v19729_v62  ;;  %v19730_v52 = vld [vmem:[#allocation23_spill] sm:$0xff] }
 0x19d   :  { %v1196_v10 = vpop.f32.mrf.mxu3  ;;  %v1430_v3 = vpop.f32.mrf.mxu2 }
 0x19e   :  { %v1197_v57 = vadd.f32 %v1196_v10, %v1128_v8  ;;  %v1431_v16 = vadd.f32 %v1430_v3, %v1362_v59  ;;  %v1129_v38 = vpop.f32.mrf.mxu1  ;;  %v1364_v47 = vpop.f32.mrf.mxu0  ;;  %v1239_v59 = vmax.f32 %v1192_v34, 0.0 }
 0x19f   :  { %v1130_v29 = vadd.f32 %v1129_v38, %v19730_v52  ;;  %v1365_v53 = vadd.f32 %v1364_v47, %v19725_v44 }
 0x1a0   :  { %v1480_v60 = vmax.f32 %v1431_v16, 0.0  ;;  %v19731_v16 = vld [vmem:[#allocation12_spill] sm:$0xff] }
 0x1a1   :  { %1887 = vmatmul.bf16.vlgmr.msra.gmra.mxu0 %v15007_v36 }
 0x1a2   :  { %v15728_v26 = vmax.f32 %v1238_v14, %v1480_v60  ;;  %11571 = vmatmul.msk.bf16.vlgmr.msra.gmra.mxu2 %vm512_vm0, %v19726_v32  ;;  %v19732_v14 = vld [vmem:[#allocation10_spill] sm:$0xff] }
 0x1a5   :  { %v1198_v35 = vpop.f32.mrf.mxu3  ;;  %v1433_v33 = vpop.f32.mrf.mxu2 }
 0x1a6   :  { %v1199_v42 = vadd.f32 %v1198_v35, %v1130_v29  ;;  %v1434_v10 = vadd.f32 %v1433_v33, %v1365_v53  ;;  %v1132_v3 = vpop.f32.mrf.mxu1  ;;  %v1366_v8 = vpop.f32.mrf.mxu0  ;;  %v1240_v29 = vmax.f32 %v1194_v48, 0.0 }
 0x1a7   :  { %v1367_v38 = vadd.f32 %v1366_v8, %v19727_v50  ;;  %v1241_v50 = vmax.f32 %v1197_v57, 0.0 }
 0x1a8   :  { %v1481_v23 = vmax.f32 %v1434_v10, 0.0 }
 0x1a9   :  { %1655 = vmatmul.bf16.gmra.mxu1 %v19731_v16 }
 0x1aa   :  { %v15735_v36 = vmax.f32 %v1239_v59, %v1481_v23  ;;  %11521 = vmatmul.msk.bf16.gmra.mxu3 %vm512_vm0, %v19732_v14 }
 0x1ad   :  { %v1201_v47 = vpop.f32.mrf.mxu3  ;;  %v1435_v60 = vpop.f32.mrf.mxu2 }
 0x1ae   :  { %v1436_v32 = vadd.f32 %v1435_v60, %v1367_v38  ;;  %v1134_v44 = vpop.f32.mrf.mxu1  ;;  %v1369_v22 = vpop.f32.mrf.mxu0 }
 0x1af   :  { %v1370_v53 = vadd.f32 %v1369_v22, %v19728_v7  ;;  %v1242_v7 = vmax.f32 %v1199_v42, 0.0 }
 0x1b0   :  { %v1482_v33 = vmax.f32 %v1436_v32, 0.0 }
 0x1b1   :  { %1892 = vmatmul.bf16.gmra.mxu0 %v15038_v45 }
 0x1b2   :  { %v15741_v34 = vmax.f32 %v1240_v29, %v1482_v33  ;;  %11572 = vmatmul.msk.bf16.gmra.mxu2 %vm512_vm0, %v19729_v62 }
 0x1b5   :  { %v1203_v35 = vpop.f32.mrf.mxu3  ;;  %v1438_v10 = vpop.f32.mrf.mxu2 }
 0x1b6   :  { %v1439_v59 = vadd.f32 %v1438_v10, %v1370_v53  ;;  %v1137_v8 = vpop.f32.mrf.mxu1  ;;  %v1371_v23 = vpop.f32.mrf.mxu0 }
 0x1b7   :  { %v1372_v32 = vadd.f32 %v1371_v23, %v19730_v52 }
 0x1b8   :  { %v1483_v38 = vmax.f32 %v1439_v59, 0.0 }
 0x1b9   :  { %1660 = vmatmul.bf16.gmra.mxu1 %v15100_v63 }
 0x1ba   :  { %v15747_v48 = vmax.f32 %v1241_v50, %v1483_v38  ;;  %11522 = vmatmul.msk.bf16.gmra.mxu3 %vm512_vm0, %v15051_v49  ;;  %v19735_v50 = vld [vmem:[#allocation26_spill] sm:$0xff] }
 0x1bb   :  { %v1133_v23 = vadd.f32 %v1132_v3, %v19735_v50 }
 0x1bc   :  { %19733 = vst [vmem:[#allocation27_spill] sm:$0xff] %v15747_v48 }
 0x1bd   :  { %v1206_v22 = vpop.f32.mrf.mxu3  ;;  %v1440_v60 = vpop.f32.mrf.mxu2  ;;  %v1202_v42 = vadd.f32 %v1201_v47, %v1133_v23 }
 0x1be   :  { %v1441_v29 = vadd.f32 %v1440_v60, %v1372_v32  ;;  %v1139_v33 = vpop.f32.mrf.mxu1  ;;  %v1374_v62 = vpop.f32.mrf.mxu0  ;;  %v1135_v32 = vadd.f32 %v1134_v44, %v15434_v55 }
 0x1bf   :  { %v1375_v10 = vadd.f32 %v1374_v62, %v19735_v50 }
 0x1c0   :  { %v1484_v53 = vmax.f32 %v1441_v29, 0.0 }
 0x1c1   :  { %1897 = vmatmul.bf16.gmra.mxu0 %v19731_v16  ;;  %v1243_v16 = vmax.f32 %v1202_v42, 0.0 }
 0x1c2   :  { %v15753_v57 = vmax.f32 %v1242_v7, %v1484_v53  ;;  %11573 = vmatmul.msk.bf16.gmra.mxu2 %vm512_vm0, %v19732_v14  ;;  %v1204_v7 = vadd.f32 %v1203_v35, %v1135_v32 }
 0x1c4   :  { %19734 = vst [vmem:[#allocation28_spill] sm:$0xff] %v15753_v57  ;;  %v1244_v48 = vmax.f32 %v1204_v7, 0.0 }
 0x1c5   :  { %v1208_v59 = vpop.f32.mrf.mxu3  ;;  %v1443_v38 = vpop.f32.mrf.mxu2 }
 0x1c6   :  { %v1142_v52 = vpop.f32.mrf.mxu1  ;;  %v1376_v45 = vpop.f32.mrf.mxu0  ;;  %v1444_v60 = vadd.f32 %v1443_v38, %v1375_v10 }
 0x1c7   :  { %v1377_v53 = vadd.f32 %v1376_v45, %v15434_v55 }
 0x1c8   :  { %v1485_v29 = vmax.f32 %v1444_v60, 0.0 }
 0x1c9   :  { %1665 = vmatmul.bf16.gmra.mxu1 %v15134_v9 }
 0x1ca   :  { %11523 = vmatmul.msk.bf16.gmra.mxu3 %vm512_vm0, %v15082_v58  ;;  %v1509_v2 = vmax.f32 %v1243_v16, %v1485_v29 }
 0x1cc   :  { %v1521_v47 = vmax.f32 %v15658_v15, %v1509_v2 }
 0x1cd   :  { %v1211_v62 = vpop.f32.mrf.mxu3  ;;  %v1445_v14 = vpop.f32.mrf.mxu2 }
 0x1ce   :  { %v1446_v57 = vadd.f32 %v1445_v14, %v1377_v53  ;;  %v1144_v3 = vpop.f32.mrf.mxu1  ;;  %v1379_v50 = vpop.f32.mrf.mxu0  ;;  %v1138_v14 = vadd.f32 %v1137_v8, %v15358_v28 }
 0x1cf   :  { %v1380_v45 = vadd.f32 %v1379_v50, %v15358_v28 }
 0x1d0   :  { %v1486_v44 = vmax.f32 %v1446_v57, 0.0  ;;  %v1140_v57 = vadd.f32 %v1139_v33, %v15240_v51  ;;  %v1207_v42 = vadd.f32 %v1206_v22, %v1138_v14 }
 0x1d1   :  { %1902 = vmatmul.bf16.gmra.mxu0 %v15100_v63 }
 0x1d2   :  { %v1510_v10 = vmax.f32 %v1244_v48, %v1486_v44  ;;  %11574 = vmatmul.msk.bf16.gmra.mxu2 %vm512_vm0, %v15051_v49  ;;  %v1209_v2 = vadd.f32 %v1208_v59, %v1140_v57  ;;  %v1245_v7 = vmax.f32 %v1207_v42, 0.0  ;;  %v1145_v42 = vadd.f32 %v1144_v3, %v15388_v13 }
 0x1d4   :  { %v1522_v35 = vmax.f32 %v15672_v43, %v1510_v10  ;;  %v1246_v33 = vmax.f32 %v1209_v2, 0.0 }
 0x1d5   :  { %v1213_v38 = vpop.f32.mrf.mxu3  ;;  %v1448_v23 = vpop.f32.mrf.mxu2 }
 0x1d6   :  { %v14330_v32 = vpack.c.bf16 %v1522_v35, %v1521_v47  ;;  %v15771_v60 = vpop.f32.mrf.mxu1  ;;  %v1381_v16 = vpop.f32.mrf.mxu0  ;;  %v1449_v48 = vadd.f32 %v1448_v23, %v1380_v45  ;;  %v1214_v3 = vadd.f32 %v1213_v38, %v1145_v42 }
 0x1d7   :  { %v1382_v43 = vadd.f32 %v1381_v16, %v15240_v51  ;;  %v1148_v42 = vadd.f32 %v15771_v60, %v15198_v30  ;;  %v13865_v60 = vld [vmem:[%s19351_s0 + $0x90] sm:$0xff] }
 0x1d8   :  { %14742 = vst [vmem:[#allocation2 + $0x70] sm:$0xff] %v14330_v32   ;;  %v1487_v15 = vmax.f32 %v1449_v48, 0.0  ;;  %v1143_v32 = vadd.f32 %v1142_v52, %v15264_v61  ;;  %v13878_v52 = vld [vmem:[%s19351_s0 + $0xb8] sm:$0xff] }
 0x1d9   :  { %1670 = vmatmul.bf16.gmra.mxu1 %v15171_v21  ;;  %2498 = vmatpush.bf16.msrb.mxu2 %v13878_v52 }
 0x1da   :  { %11524 = vmatmul.msk.bf16.gmra.mxu3 %vm512_vm0, %v15116_v4  ;;  %v1511_v10 = vmax.f32 %v1245_v7, %v1487_v15  ;;  %v1212_v15 = vadd.f32 %v1211_v62, %v1143_v32  ;;  %v13876_v7 = vld [vmem:[%s19351_s0 + $0xa8] sm:$0xff] }
 0x1db   :  { %2423 = vmatpush.bf16.msrb.mxu0 %v13876_v7 }
 0x1dc   :  { %v1523_v59 = vmax.f32 %v15686_v54, %v1511_v10  ;;  %v13868_v54 = vld [vmem:[%s19351_s0 + $0xa8] sm:$0xff] }
 0x1dd   :  { %v15778_v50 = vpop.f32.mrf.mxu3  ;;  %v1450_v8 = vpop.f32.mrf.mxu2  ;;  %2256 = vmatpush.bf16.msrb.mxu3 %v13868_v54 }
 0x1de   :  { %v1451_v29 = vadd.f32 %v1450_v8, %v1382_v43  ;;  %v1149_v53 = vpop.f32.mrf.mxu1  ;;  %v1384_v44 = vpop.f32.mrf.mxu0 }
 0x1df   :  { %v1385_v45 = vadd.f32 %v1384_v44, %v15264_v61  ;;  %v1150_v52 = vadd.f32 %v1149_v53, %v15217_v39 }
 0x1e0   :  { %v1488_v47 = vmax.f32 %v1451_v29, 0.0 }
 0x1e1   :  { %1907 = vmatmul.bf16.gmra.mxu0 %v15134_v9 }
 0x1e2   :  { %v1512_v22 = vmax.f32 %v1246_v33, %v1488_v47  ;;  %11575 = vmatmul.msk.bf16.gmra.mxu2 %vm512_vm0, %v15082_v58  ;;  %v1247_v33 = vmax.f32 %v1212_v15, 0.0 }
 0x1e4   :  { %v1524_v35 = vmax.f32 %v15700_v12, %v1512_v22  ;;  %v13866_v12 = vld [vmem:[%s19351_s0 + $0x98] sm:$0xff]  ;;  %v1248_v22 = vmax.f32 %v1214_v3, 0.0 }
 0x1e5   :  { %v1218_v23 = vpop.f32.mrf.mxu3  ;;  %v1453_v14 = vpop.f32.mrf.mxu2  ;;  %2181 = vmatpush.bf16.msrb.mxu1 %v13866_v12 }
 0x1e6   :  { %v14335_v16 = vpack.c.bf16 %v1524_v35, %v1523_v59  ;;  %v15787_v57 = vpop.f32.mrf.mxu1  ;;  %v1386_v48 = vpop.f32.mrf.mxu0  ;;  %v1454_v2 = vadd.f32 %v1453_v14, %v1385_v45 }
 0x1e7   :  { %v1387_v8 = vadd.f32 %v1386_v48, %v15388_v13 }
 0x1e8   :  { %14743 = vst [vmem:[#allocation2 + $0x120] sm:$0xff] %v14335_v16   ;;  %v1489_v43 = vmax.f32 %v1454_v2, 0.0 }
 0x1e9   :  { %1675 = vmatmul.bf16.gmra.mxu1 %v15200_v31 }
 0x1ea   :  { %11525 = vmatmul.msk.bf16.gmra.mxu3 %vm512_vm0, %v15156_v17  ;;  %v1513_v59 = vmax.f32 %v1247_v33, %v1489_v43  ;;  %2182 = vmatpush.bf16.msrb.mxu1 %v13865_v60 }
 0x1ec   :  { %v1525_v45 = vmax.f32 %v15707_v11, %v1513_v59  ;;  %v1217_v11 = vadd.f32 %v15778_v50, %v1148_v42 }
 0x1ed   :  { %v1221_v29 = vpop.f32.mrf.mxu3  ;;  %v1455_v44 = vpop.f32.mrf.mxu2 }
 0x1ee   :  { %v1456_v10 = vadd.f32 %v1455_v44, %v1387_v8  ;;  %v1154_v47 = vpop.f32.mrf.mxu1  ;;  %v1389_v62 = vpop.f32.mrf.mxu0  ;;  %v1249_v7 = vmax.f32 %v1217_v11, 0.0 }
 0x1ef   :  { %v1390_v32 = vadd.f32 %v1389_v62, %v15198_v30 }
 0x1f0   :  { %v1490_v35 = vmax.f32 %v1456_v10, 0.0 }
 0x1f1   :  { %1912 = vmatmul.bf16.gmra.mxu0 %v15171_v21 }
 0x1f2   :  { %v1514_v38 = vmax.f32 %v1248_v22, %v1490_v35  ;;  %11576 = vmatmul.msk.bf16.gmra.mxu2 %vm512_vm0, %v15116_v4 }
 0x1f4   :  { %v1526_v14 = vmax.f32 %v15714_v20, %v1514_v38  ;;  %v1219_v20 = vadd.f32 %v1218_v23, %v1150_v52 }
 0x1f5   :  { %v1223_v16 = vpop.f32.mrf.mxu3  ;;  %v1458_v48 = vpop.f32.mrf.mxu2 }
 0x1f6   :  { %v14340_v2 = vpack.c.bf16 %v1526_v14, %v1525_v45  ;;  %v15814_v54 = vpop.f32.mrf.mxu1  ;;  %v1391_v12 = vpop.f32.mrf.mxu0  ;;  %v1459_v15 = vadd.f32 %v1458_v48, %v1390_v32  ;;  %v1250_v50 = vmax.f32 %v1219_v20, 0.0  ;;  %v1153_v32 = vadd.f32 %v15787_v57, %v15577_v41 }
 0x1f7   :  { %v1392_v43 = vadd.f32 %v1391_v12, %v15217_v39  ;;  %v1155_v12 = vadd.f32 %v1154_v47, %v15584_v40 }
 0x1f8   :  { %14744 = vst [vmem:[#allocation2 + $0xd8] sm:$0xff] %v14340_v2   ;;  %v1491_v3 = vmax.f32 %v1459_v15, 0.0 }
 0x1f9   :  { %1680 = vmatmul.bf16.gmra.mxu1 %v15231_v46  ;;  %v1224_v57 = vadd.f32 %v1223_v16, %v1155_v12  ;;  %v13864_v16 = vld [vmem:[%s19351_s0 + $0x88] sm:$0xff] }
 0x1fa   :  { %11526 = vmatmul.msk.bf16.gmra.mxu3 %vm512_vm0, %v15181_v24  ;;  %v1515_v62 = vmax.f32 %v1249_v7, %v1491_v3  ;;  %2183 = vmatpush.bf16.msrb.mxu1 %v13864_v16 }
 0x1fc   :  { %v1527_v59 = vmax.f32 %v15721_v27, %v1515_v62  ;;  %v13875_v27 = vld [vmem:[%s19351_s0 + $0xa0] sm:$0xff] }
 0x1fd   :  { %v15825_v8 = vpop.f32.mrf.mxu3  ;;  %v1460_v53 = vpop.f32.mrf.mxu2  ;;  %2424 = vmatpush.bf16.msrb.mxu0 %v13875_v27  ;;  %v13862_v27 = vld [vmem:[%s19351_s0 + $0x78] sm:$0xff] }
 0x1fe   :  { %v1461_v44 = vadd.f32 %v1460_v53, %v1392_v43  ;;  %v1159_v33 = vpop.f32.mrf.mxu1  ;;  %v1394_v10 = vpop.f32.mrf.mxu0 }
 0x1ff   :  { %v1395_v38 = vadd.f32 %v1394_v10, %v15577_v41  ;;  %v1252_v10 = vmax.f32 %v1224_v57, 0.0 }
 0x200   :  { %v1492_v22 = vmax.f32 %v1461_v44, 0.0 }
 0x201   :  { %1917 = vmatmul.bf16.gmra.mxu0 %v15200_v31 }
 0x202   :  { %v1516_v23 = vmax.f32 %v1250_v50, %v1492_v22  ;;  %11577 = vmatmul.msk.bf16.gmra.mxu2 %vm512_vm0, %v15156_v17 }
 0x204   :  { %v1528_v35 = vmax.f32 %v15728_v26, %v1516_v23  ;;  %v1222_v26 = vadd.f32 %v1221_v29, %v1153_v32  ;;  %v13863_v32 = vld [vmem:[%s19351_s0 + $0x80] sm:$0xff] }
 0x205   :  { %v1228_v45 = vpop.f32.mrf.mxu3  ;;  %v1463_v14 = vpop.f32.mrf.mxu2  ;;  %2184 = vmatpush.bf16.msrb.mxu1 %v13863_v32 }
 0x206   :  { %v14345_v48 = vpack.c.bf16 %v1528_v35, %v1527_v59  ;;  %v1396_v42 = vpop.f32.mrf.mxu0  ;;  %v1646_v2 = vpop.f32.mrf.mxu1  ;;  %v1464_v52 = vadd.f32 %v1463_v14, %v1395_v38  ;;  %v1251_v43 = vmax.f32 %v1222_v26, 0.0 }
 0x207   :  { %v1647_v15 = vadd.f32 %v1646_v2, %v15272_v1  ;;  %v1397_v20 = vadd.f32 %v1396_v42, %v15584_v40 }
 0x208   :  { %14745 = vst [vmem:[#allocation2 + $0x18] sm:$0xff] %v14345_v48   ;;  %v1493_v11 = vmax.f32 %v1464_v52, 0.0  ;;  %v1158_v48 = vadd.f32 %v15814_v54, %v15443_v19 }
 0x209   :  { %1685 = vmatmul.bf16.gmra.mxu1 %v15279_v5 }
 0x20a   :  { %11527 = vmatmul.msk.bf16.gmra.mxu3 %vm512_vm0, %v15215_v37  ;;  %v1517_v29 = vmax.f32 %v1251_v43, %v1493_v11  ;;  %v1227_v26 = vadd.f32 %v15825_v8, %v1158_v48  ;;  %2185 = vmatpush.bf16.msrb.mxu1 %v13862_v27  ;;  %v13861_v8 = vld [vmem:[%s19351_s0 + $0x70] sm:$0xff] }
 0x20c   :  { %v1529_v23 = vmax.f32 %v15735_v36, %v1517_v29  ;;  %v1160_v36 = vadd.f32 %v1159_v33, %v15559_v25 }
 0x20d   :  { %v1465_v47 = vpop.f32.mrf.mxu2  ;;  %v1715_v3 = vpop.f32.mrf.mxu3 }
 0x20e   :  { %v1466_v60 = vadd.f32 %v1465_v47, %v1397_v20  ;;  %v15844_v53 = vadd.f32 %v1715_v3, %v1647_v15  ;;  %v1399_v7 = vpop.f32.mrf.mxu0  ;;  %v1648_v44 = vpop.f32.mrf.mxu1  ;;  %v13874_v15 = vld [vmem:[%s19351_s0 + $0x98] sm:$0xff]  ;;  %v1229_v33 = vadd.f32 %v1228_v45, %v1160_v36  ;;  %v1253_v3 = vmax.f32 %v1227_v26, 0.0  ;;  %2186 = vmatpush.bf16.msrb.mxu1 %v13861_v8 }
 0x20f   :  { %v1649_v22 = vadd.f32 %v1648_v44, %v15300_v18  ;;  %v1400_v35 = vadd.f32 %v1399_v7, %v15443_v19  ;;  %2425 = vmatpush.bf16.msrb.mxu0 %v13874_v15 }
 0x210   :  { %v1494_v50 = vmax.f32 %v1466_v60, 0.0 }
 0x211   :  { %1922 = vmatmul.bf16.gmra.mxu0 %v15231_v46 }
 0x212   :  { %v1518_v62 = vmax.f32 %v1252_v10, %v1494_v50  ;;  %11578 = vmatmul.msk.bf16.gmra.mxu2 %vm512_vm0, %v15181_v24  ;;  %v1254_v10 = vmax.f32 %v1229_v33, 0.0  ;;  %v13860_v50 = vld [vmem:[%s19351_s0 + $0x68] sm:$0xff] }
 0x213   :  { %2187 = vmatpush.bf16.msrb.mxu1 %v13860_v50  ;;  %v19739_v33 = vld [vmem:[#allocation20_spill] sm:$0xff] }
 0x214   :  { %v1530_v59 = vmax.f32 %v15741_v34, %v1518_v62  ;;  %v19736_v62 = vld [vmem:[#allocation18_spill] sm:$0xff] }
 0x215   :  { %v1468_v38 = vpop.f32.mrf.mxu2  ;;  %v1717_v14 = vpop.f32.mrf.mxu3 }
 0x216   :  { %v14350_v42 = vpack.c.bf16 %v1530_v59, %v1529_v23  ;;  %v15861_v2 = vadd.f32 %v1717_v14, %v1649_v22  ;;  %v1401_v12 = vpop.f32.mrf.mxu0  ;;  %v1651_v52 = vpop.f32.mrf.mxu1  ;;  %v1469_v34 = vadd.f32 %v1468_v38, %v1400_v35  ;;  %v19737_v59 = vld [vmem:[#allocation27_spill] sm:$0xff]  ;;  %v19738_v38 = vld [vmem:[#allocation28_spill] sm:$0xff] }
 0x217   :  { %v1652_v54 = vadd.f32 %v1651_v52, %v15281_v6  ;;  %v1402_v11 = vadd.f32 %v1401_v12, %v15559_v25  ;;  %v13867_v12 = vld [vmem:[%s19351_s0 + $0xa0] sm:$0xff] }
 0x218   :  { %14746 = vst [vmem:[#allocation2 + $0xb0] sm:$0xff] %v14350_v42   ;;  %v1495_v57 = vmax.f32 %v1469_v34, 0.0  ;;  %v13859_v42 = vld [vmem:[%s19351_s0 + $0x60] sm:$0xff]  ;;  %2257 = vmatpush.bf16.msrb.mxu3 %v13867_v12 }
 0x219   :  { %1690 = vmatmul.bf16.gmra.mxu1 %v15338_v0 }
 0x21a   :  { %11528 = vmatmul.msk.bf16.gmra.mxu3 %vm512_vm0, %v15250_v56  ;;  %v1519_v29 = vmax.f32 %v1253_v3, %v1495_v57  ;;  %2188 = vmatpush.bf16.msrb.mxu1 %v13859_v42 }
 0x21c   :  { %v1531_v35 = vmax.f32 %v19737_v59, %v1519_v29 }
 0x21d   :  { %v1470_v20 = vpop.f32.mrf.mxu2  ;;  %v1720_v47 = vpop.f32.mrf.mxu3 }
 0x21e   :  { %v1471_v43 = vadd.f32 %v1470_v20, %v1402_v11  ;;  %v15879_v60 = vadd.f32 %v1720_v47, %v1652_v54  ;;  %v1653_v7 = vpop.f32.mrf.mxu1  ;;  %v1888_v44 = vpop.f32.mrf.mxu0  ;;  %v1775_v54 = vmax.f32 %v15844_v53, 0.0  ;;  %v19740_v11 = vld [vmem:[#allocation15_spill] sm:$0xff]  ;;  %v19741_v47 = vld [vmem:[#allocation17_spill] sm:$0xff] }
 0x21f   :  { %v1654_v22 = vadd.f32 %v1653_v7, %v19736_v62  ;;  %v1889_v23 = vadd.f32 %v1888_v44, %v15272_v1  ;;  %v13873_v7 = vld [vmem:[%s19351_s0 + $0x90] sm:$0xff] }
 0x220   :  { %v1496_v45 = vmax.f32 %v1471_v43, 0.0  ;;  %2426 = vmatpush.bf16.msrb.mxu0 %v13873_v7 }
 0x221   :  { %1927 = vmatmul.bf16.gmra.mxu0 %v15279_v5 }
 0x222   :  { %v1520_v16 = vmax.f32 %v1254_v10, %v1496_v45  ;;  %11579 = vmatmul.msk.bf16.gmra.mxu2 %vm512_vm0, %v15215_v37  ;;  %v1776_v45 = vmax.f32 %v15861_v2, 0.0  ;;  %v13871_v2 = vld [vmem:[%s19351_s0 + $0x80] sm:$0xff] }
 0x224   :  { %v1532_v14 = vmax.f32 %v19738_v38, %v1520_v16  ;;  %v13872_v16 = vld [vmem:[%s19351_s0 + $0x88] sm:$0xff] }
 0x225   :  { %v1722_v32 = vpop.f32.mrf.mxu3  ;;  %v1957_v48 = vpop.f32.mrf.mxu2  ;;  %2427 = vmatpush.bf16.msrb.mxu0 %v13872_v16 }
 0x226   :  { %v14355_v52 = vpack.c.bf16 %v1532_v14, %v1531_v35  ;;  %v1723_v36 = vadd.f32 %v1722_v32, %v1654_v22  ;;  %v1958_v34 = vadd.f32 %v1957_v48, %v1889_v23  ;;  %v1656_v27 = vpop.f32.mrf.mxu1  ;;  %v1890_v26 = vpop.f32.mrf.mxu0  ;;  %v19742_v23 = vld [vmem:[#allocation16_spill] sm:$0xff] }
 0x227   :  { %v1657_v20 = vadd.f32 %v1656_v27, %v19740_v11  ;;  %v1891_v8 = vadd.f32 %v1890_v26, %v15300_v18  ;;  %v19743_v27 = vld [vmem:[#allocation22_spill] sm:$0xff] }
 0x228   :  { %14747 = vst [vmem:[#allocation2 + $0x158] sm:$0xff] %v14355_v52   ;;  %v2017_v15 = vmax.f32 %v1958_v34, 0.0  ;;  %v1777_v52 = vmax.f32 %v15879_v60, 0.0  ;;  %v13870_v26 = vld [vmem:[%s19351_s0 + $0x78] sm:$0xff]  ;;  %v13869_v60 = vld [vmem:[%s19351_s0 + $0x70] sm:$0xff]  ;;  %v1778_v16 = vmax.f32 %v1723_v36, 0.0 }
 0x229   :  { %1695 = vmatmul.bf16.gmra.mxu1 %v19739_v33  ;;  %2428 = vmatpush.bf16.msrb.mxu0 %v13871_v2 }
 0x22a   :  { %v15899_v57 = vmax.f32 %v1775_v54, %v2017_v15  ;;  %11529 = vmatmul.msk.bf16.gmra.mxu3 %vm512_vm0, %v19741_v47  ;;  %v19744_v15 = vld [vmem:[#allocation13_spill] sm:$0xff] }
 0x22d   :  { %v1725_v3 = vpop.f32.mrf.mxu3  ;;  %v1959_v43 = vpop.f32.mrf.mxu2  ;;  %2429 = vmatpush.bf16.msrb.mxu0 %v13870_v26 }
 0x22e   :  { %v1726_v53 = vadd.f32 %v1725_v3, %v1657_v20  ;;  %v1960_v44 = vadd.f32 %v1959_v43, %v1891_v8  ;;  %v1658_v10 = vpop.f32.mrf.mxu1  ;;  %v1893_v29 = vpop.f32.mrf.mxu0  ;;  %v19745_v8 = vld [vmem:[#allocation19_spill] sm:$0xff] }
 0x22f   :  { %v1659_v59 = vadd.f32 %v1658_v10, %v19742_v23  ;;  %v1894_v35 = vadd.f32 %v1893_v29, %v15281_v6 }
 0x230   :  { %v2018_v50 = vmax.f32 %v1960_v44, 0.0  ;;  %v13877_v44 = vld [vmem:[%s19351_s0 + $0xb0] sm:$0xff] }
 0x231   :  { %1932 = vmatmul.bf16.gmra.mxu0 %v15338_v0  ;;  %2499 = vmatpush.bf16.msrb.mxu2 %v13877_v44  ;;  %v19749_v44 = vld [vmem:[#allocation7_spill] sm:$0xff] }
 0x232   :  { %v15913_v22 = vmax.f32 %v1776_v45, %v2018_v50  ;;  %11580 = vmatmul.msk.bf16.gmra.mxu2 %vm512_vm0, %v15250_v56  ;;  %2430 = vmatpush.bf16.msrb.mxu0 %v13869_v60 }
 0x235   :  { %v1727_v38 = vpop.f32.mrf.mxu3  ;;  %v1962_v14 = vpop.f32.mrf.mxu2 }
 0x236   :  { %v1728_v32 = vadd.f32 %v1727_v38, %v1659_v59  ;;  %v1963_v48 = vadd.f32 %v1962_v14, %v1894_v35  ;;  %v1661_v42 = vpop.f32.mrf.mxu1  ;;  %v1895_v12 = vpop.f32.mrf.mxu0  ;;  %v19746_v38 = vld [vmem:[#allocation14_spill] sm:$0xff] }
 0x237   :  { %v1662_v20 = vadd.f32 %v1661_v42, %v19744_v15  ;;  %v1896_v3 = vadd.f32 %v1895_v12, %v19736_v62 }
 0x238   :  { %v2019_v34 = vmax.f32 %v1963_v48, 0.0 }
 0x239   :  { %1700 = vmatmul.bf16.gmra.mxu1 %v19743_v27 }
 0x23a   :  { %v15927_v54 = vmax.f32 %v1777_v52, %v2019_v34  ;;  %11530 = vmatmul.msk.bf16.gmra.mxu3 %vm512_vm0, %v19745_v8 }
 0x23d   :  { %v1730_v43 = vpop.f32.mrf.mxu3  ;;  %v1964_v7 = vpop.f32.mrf.mxu2 }
 0x23e   :  { %v1731_v10 = vadd.f32 %v1730_v43, %v1662_v20  ;;  %v1965_v29 = vadd.f32 %v1964_v7, %v1896_v3  ;;  %v1663_v45 = vpop.f32.mrf.mxu1  ;;  %v1898_v50 = vpop.f32.mrf.mxu0  ;;  %v1779_v20 = vmax.f32 %v1726_v53, 0.0  ;;  %v19747_v3 = vld [vmem:[#allocation9_spill] sm:$0xff]  ;;  %v19748_v7 = vld [vmem:[#allocation24_spill] sm:$0xff] }
 0x23f   :  { %v1664_v14 = vadd.f32 %v1663_v45, %v19746_v38  ;;  %v1899_v2 = vadd.f32 %v1898_v50, %v19740_v11 }
 0x240   :  { %v2020_v59 = vmax.f32 %v1965_v29, 0.0 }
 0x241   :  { %1937 = vmatmul.bf16.gmra.mxu0 %v19739_v33 }
 0x242   :  { %v15940_v35 = vmax.f32 %v1778_v16, %v2020_v59  ;;  %11581 = vmatmul.msk.bf16.gmra.mxu2 %vm512_vm0, %v19741_v47 }
 0x245   :  { %v1732_v48 = vpop.f32.mrf.mxu3  ;;  %v1967_v42 = vpop.f32.mrf.mxu2 }
 0x246   :  { %v1733_v12 = vadd.f32 %v1732_v48, %v1664_v14  ;;  %v1968_v52 = vadd.f32 %v1967_v42, %v1899_v2  ;;  %v1666_v34 = vpop.f32.mrf.mxu1  ;;  %v1900_v26 = vpop.f32.mrf.mxu0  ;;  %v1780_v48 = vmax.f32 %v1728_v32, 0.0 }
 0x247   :  { %v1667_v60 = vadd.f32 %v1666_v34, %v19748_v7  ;;  %v1901_v29 = vadd.f32 %v1900_v26, %v19742_v23 }
 0x248   :  { %v2021_v36 = vmax.f32 %v1968_v52, 0.0  ;;  %v19750_v52 = vld [vmem:[#allocation25_spill] sm:$0xff] }
 0x249   :  { %2189 = vmatmul.bf16.vlgmr.msrb.gmra.mxu1 %v19747_v3 }
 0x24a   :  { %v15947_v43 = vmax.f32 %v1779_v20, %v2021_v36  ;;  %11623 = vmatmul.msk.bf16.vlgmr.msrb.gmra.mxu3 %vm512_vm0, %v19749_v44 }
 0x24d   :  { %v1735_v45 = vpop.f32.mrf.mxu3  ;;  %v1969_v50 = vpop.f32.mrf.mxu2 }
 0x24e   :  { %v1736_v16 = vadd.f32 %v1735_v45, %v1667_v60  ;;  %v1970_v59 = vadd.f32 %v1969_v50, %v1901_v29  ;;  %v1668_v14 = vpop.f32.mrf.mxu1  ;;  %v1903_v2 = vpop.f32.mrf.mxu0  ;;  %v1781_v50 = vmax.f32 %v1731_v10, 0.0 }
 0x24f   :  { %v1669_v20 = vadd.f32 %v1668_v14, %v19750_v52  ;;  %v1904_v34 = vadd.f32 %v1903_v2, %v19744_v15  ;;  %v19753_v14 = vld [vmem:[#allocation8_spill] sm:$0xff] }
 0x250   :  { %v2022_v53 = vmax.f32 %v1970_v59, 0.0  ;;  %v19751_v59 = vld [vmem:[#allocation11_spill] sm:$0xff] }
 0x251   :  { %1942 = vmatmul.bf16.gmra.mxu0 %v19743_v27 }
 0x252   :  { %v15954_v42 = vmax.f32 %v1780_v48, %v2022_v53  ;;  %11582 = vmatmul.msk.bf16.gmra.mxu2 %vm512_vm0, %v19745_v8  ;;  %v19752_v48 = vld [vmem:[#allocation21_spill] sm:$0xff] }
 0x255   :  { %v1737_v26 = vpop.f32.mrf.mxu3  ;;  %v1972_v36 = vpop.f32.mrf.mxu2 }
 0x256   :  { %v1738_v23 = vadd.f32 %v1737_v26, %v1669_v20  ;;  %v1973_v60 = vadd.f32 %v1972_v36, %v1904_v34  ;;  %v1671_v29 = vpop.f32.mrf.mxu1  ;;  %v1905_v45 = vpop.f32.mrf.mxu0  ;;  %v1782_v36 = vmax.f32 %v1733_v12, 0.0 }
 0x257   :  { %v1672_v53 = vadd.f32 %v1671_v29, %v19752_v48  ;;  %v1906_v2 = vadd.f32 %v1905_v45, %v19746_v38 }
 0x258   :  { %v2023_v32 = vmax.f32 %v1973_v60, 0.0 }
 0x259   :  { %2194 = vmatmul.bf16.gmra.mxu1 %v19751_v59 }
 0x25a   :  { %v15961_v27 = vmax.f32 %v1781_v50, %v2023_v32  ;;  %11624 = vmatmul.msk.bf16.gmra.mxu3 %vm512_vm0, %v19753_v14  ;;  %v19754_v50 = vld [vmem:[#allocation23_spill] sm:$0xff] }
 0x25d   :  { %v1740_v8 = vpop.f32.mrf.mxu3  ;;  %v1974_v15 = vpop.f32.mrf.mxu2 }
 0x25e   :  { %v1741_v47 = vadd.f32 %v1740_v8, %v1672_v53  ;;  %v1975_v20 = vadd.f32 %v1974_v15, %v1906_v2  ;;  %v1673_v34 = vpop.f32.mrf.mxu1  ;;  %v1908_v26 = vpop.f32.mrf.mxu0  ;;  %v1783_v2 = vmax.f32 %v1736_v16, 0.0 }
 0x25f   :  { %v1674_v32 = vadd.f32 %v1673_v34, %v19754_v50  ;;  %v1909_v29 = vadd.f32 %v1908_v26, %v19748_v7 }
 0x260   :  { %v2024_v10 = vmax.f32 %v1975_v20, 0.0  ;;  %v19755_v20 = vld [vmem:[#allocation12_spill] sm:$0xff] }
 0x261   :  { %2431 = vmatmul.bf16.vlgmr.msrb.gmra.mxu0 %v19747_v3 }
 0x262   :  { %v15968_v60 = vmax.f32 %v1782_v36, %v2024_v10  ;;  %11675 = vmatmul.msk.bf16.vlgmr.msrb.gmra.mxu2 %vm512_vm0, %v19749_v44  ;;  %v19756_v36 = vld [vmem:[#allocation10_spill] sm:$0xff] }
 0x265   :  { %v1742_v45 = vpop.f32.mrf.mxu3  ;;  %v1977_v38 = vpop.f32.mrf.mxu2 }
 0x266   :  { %v1743_v11 = vadd.f32 %v1742_v45, %v1674_v32  ;;  %v1978_v8 = vadd.f32 %v1977_v38, %v1909_v29  ;;  %v1676_v15 = vpop.f32.mrf.mxu1  ;;  %v1910_v53 = vpop.f32.mrf.mxu0  ;;  %v1784_v32 = vmax.f32 %v1738_v23, 0.0 }
 0x267   :  { %v1911_v34 = vadd.f32 %v1910_v53, %v19750_v52  ;;  %v1785_v52 = vmax.f32 %v1741_v47, 0.0 }
 0x268   :  { %v2025_v12 = vmax.f32 %v1978_v8, 0.0 }
 0x269   :  { %2199 = vmatmul.bf16.gmra.mxu1 %v19755_v20 }
 0x26a   :  { %v15975_v3 = vmax.f32 %v1783_v2, %v2025_v12  ;;  %11625 = vmatmul.msk.bf16.gmra.mxu3 %vm512_vm0, %v19756_v36 }
 0x26d   :  { %v1745_v26 = vpop.f32.mrf.mxu3  ;;  %v1979_v10 = vpop.f32.mrf.mxu2 }
 0x26e   :  { %v1980_v44 = vadd.f32 %v1979_v10, %v1911_v34  ;;  %v1678_v7 = vpop.f32.mrf.mxu1  ;;  %v1913_v33 = vpop.f32.mrf.mxu0 }
 0x26f   :  { %v1914_v29 = vadd.f32 %v1913_v33, %v19752_v48  ;;  %v1786_v48 = vmax.f32 %v1743_v11, 0.0 }
 0x270   :  { %v2026_v38 = vmax.f32 %v1980_v44, 0.0 }
 0x271   :  { %2436 = vmatmul.bf16.gmra.mxu0 %v19751_v59 }
 0x272   :  { %v15981_v16 = vmax.f32 %v1784_v32, %v2026_v38  ;;  %11676 = vmatmul.msk.bf16.gmra.mxu2 %vm512_vm0, %v19753_v14 }
 0x275   :  { %v1747_v45 = vpop.f32.mrf.mxu3  ;;  %v1982_v8 = vpop.f32.mrf.mxu2 }
 0x276   :  { %v1983_v2 = vadd.f32 %v1982_v8, %v1914_v29  ;;  %v1681_v53 = vpop.f32.mrf.mxu1  ;;  %v1915_v12 = vpop.f32.mrf.mxu0 }
 0x277   :  { %v1916_v44 = vadd.f32 %v1915_v12, %v19754_v50 }
 0x278   :  { %v2027_v34 = vmax.f32 %v1983_v2, 0.0 }
 0x279   :  { %2204 = vmatmul.bf16.gmra.mxu1 %v15100_v63 }
 0x27a   :  { %v15987_v23 = vmax.f32 %v1785_v52, %v2027_v34  ;;  %11626 = vmatmul.msk.bf16.gmra.mxu3 %vm512_vm0, %v15051_v49  ;;  %v19759_v52 = vld [vmem:[#allocation26_spill] sm:$0xff] }
 0x27b   :  { %v1677_v12 = vadd.f32 %v1676_v15, %v19759_v52 }
 0x27c   :  { %19757 = vst [vmem:[#allocation27_spill] sm:$0xff] %v15987_v23 }
 0x27d   :  { %v1750_v33 = vpop.f32.mrf.mxu3  ;;  %v1984_v10 = vpop.f32.mrf.mxu2  ;;  %v1746_v11 = vadd.f32 %v1745_v26, %v1677_v12 }
 0x27e   :  { %v1985_v32 = vadd.f32 %v1984_v10, %v1916_v44  ;;  %v1683_v38 = vpop.f32.mrf.mxu1  ;;  %v1918_v14 = vpop.f32.mrf.mxu0  ;;  %v1679_v44 = vadd.f32 %v1678_v7, %v15434_v55 }
 0x27f   :  { %v1919_v8 = vadd.f32 %v1918_v14, %v19759_v52 }
 0x280   :  { %v2028_v29 = vmax.f32 %v1985_v32, 0.0 }
 0x281   :  { %2441 = vmatmul.bf16.gmra.mxu0 %v19755_v20  ;;  %v1787_v20 = vmax.f32 %v1746_v11, 0.0 }
 0x282   :  { %v15993_v47 = vmax.f32 %v1786_v48, %v2028_v29  ;;  %11677 = vmatmul.msk.bf16.gmra.mxu2 %vm512_vm0, %v19756_v36  ;;  %v1748_v48 = vadd.f32 %v1747_v45, %v1679_v44 }
 0x284   :  { %19758 = vst [vmem:[#allocation28_spill] sm:$0xff] %v15993_v47  ;;  %v1788_v23 = vmax.f32 %v1748_v48, 0.0 }
 0x285   :  { %v1752_v2 = vpop.f32.mrf.mxu3  ;;  %v1987_v34 = vpop.f32.mrf.mxu2 }
 0x286   :  { %v1686_v50 = vpop.f32.mrf.mxu1  ;;  %v1920_v59 = vpop.f32.mrf.mxu0  ;;  %v1988_v10 = vadd.f32 %v1987_v34, %v1919_v8 }
 0x287   :  { %v1921_v29 = vadd.f32 %v1920_v59, %v15434_v55 }
 0x288   :  { %v2029_v32 = vmax.f32 %v1988_v10, 0.0 }
 0x289   :  { %2209 = vmatmul.bf16.gmra.mxu1 %v15134_v9 }
 0x28a   :  { %11627 = vmatmul.msk.bf16.gmra.mxu3 %vm512_vm0, %v15082_v58  ;;  %v2053_v62 = vmax.f32 %v1787_v20, %v2029_v32 }
 0x28c   :  { %v2065_v26 = vmax.f32 %v15899_v57, %v2053_v62 }
 0x28d   :  { %v1755_v14 = vpop.f32.mrf.mxu3  ;;  %v1989_v36 = vpop.f32.mrf.mxu2 }
 0x28e   :  { %v1990_v47 = vadd.f32 %v1989_v36, %v1921_v29  ;;  %v1688_v15 = vpop.f32.mrf.mxu1  ;;  %v1923_v52 = vpop.f32.mrf.mxu0  ;;  %v1682_v36 = vadd.f32 %v1681_v53, %v15358_v28 }
 0x28f   :  { %v1924_v59 = vadd.f32 %v1923_v52, %v15358_v28 }
 0x290   :  { %v2030_v7 = vmax.f32 %v1990_v47, 0.0  ;;  %v1684_v47 = vadd.f32 %v1683_v38, %v15240_v51  ;;  %v1751_v11 = vadd.f32 %v1750_v33, %v1682_v36 }
 0x291   :  { %2446 = vmatmul.bf16.gmra.mxu0 %v15100_v63 }
 0x292   :  { %v2054_v8 = vmax.f32 %v1788_v23, %v2030_v7  ;;  %11678 = vmatmul.msk.bf16.gmra.mxu2 %vm512_vm0, %v15051_v49  ;;  %v1753_v62 = vadd.f32 %v1752_v2, %v1684_v47  ;;  %v1789_v48 = vmax.f32 %v1751_v11, 0.0  ;;  %v1689_v11 = vadd.f32 %v1688_v15, %v15388_v13 }
 0x294   :  { %v2066_v45 = vmax.f32 %v15913_v22, %v2054_v8  ;;  %v1790_v38 = vmax.f32 %v1753_v62, 0.0 }
 0x295   :  { %v1757_v34 = vpop.f32.mrf.mxu3  ;;  %v1992_v12 = vpop.f32.mrf.mxu2 }
 0x296   :  { %v14360_v44 = vpack.c.bf16 %v2066_v45, %v2065_v26  ;;  %v16011_v10 = vpop.f32.mrf.mxu1  ;;  %v1925_v20 = vpop.f32.mrf.mxu0  ;;  %v1993_v23 = vadd.f32 %v1992_v12, %v1924_v59  ;;  %v1758_v15 = vadd.f32 %v1757_v34, %v1689_v11 }
 0x297   :  { %v1926_v22 = vadd.f32 %v1925_v20, %v15240_v51  ;;  %v1692_v11 = vadd.f32 %v16011_v10, %v15198_v30  ;;  %v13885_v10 = vld [vmem:[%s19351_s0 + $0xb0] sm:$0xff] }
 0x298   :  { %14748 = vst [vmem:[#allocation2 + $0x108] sm:$0xff] %v14360_v44   ;;  %v2031_v57 = vmax.f32 %v1993_v23, 0.0  ;;  %v1687_v44 = vadd.f32 %v1686_v50, %v15264_v61  ;;  %v13898_v50 = vld [vmem:[%s19351_s0 + $0xd8] sm:$0xff] }
 0x299   :  { %2214 = vmatmul.bf16.gmra.mxu1 %v15171_v21  ;;  %3042 = vmatpush.bf16.msra.mxu2 %v13898_v50 }
 0x29a   :  { %11628 = vmatmul.msk.bf16.gmra.mxu3 %vm512_vm0, %v15116_v4  ;;  %v2055_v8 = vmax.f32 %v1789_v48, %v2031_v57  ;;  %v1756_v57 = vadd.f32 %v1755_v14, %v1687_v44  ;;  %v13896_v48 = vld [vmem:[%s19351_s0 + $0xc8] sm:$0xff] }
 0x29b   :  { %2967 = vmatpush.bf16.msra.mxu0 %v13896_v48 }
 0x29c   :  { %v2067_v2 = vmax.f32 %v15927_v54, %v2055_v8  ;;  %v13888_v54 = vld [vmem:[%s19351_s0 + $0xc8] sm:$0xff] }
 0x29d   :  { %v16018_v52 = vpop.f32.mrf.mxu3  ;;  %v1994_v53 = vpop.f32.mrf.mxu2  ;;  %2800 = vmatpush.bf16.msra.mxu3 %v13888_v54 }
 0x29e   :  { %v1995_v32 = vadd.f32 %v1994_v53, %v1926_v22  ;;  %v1693_v29 = vpop.f32.mrf.mxu1  ;;  %v1928_v7 = vpop.f32.mrf.mxu0 }
 0x29f   :  { %v1929_v59 = vadd.f32 %v1928_v7, %v15264_v61  ;;  %v1694_v50 = vadd.f32 %v1693_v29, %v15217_v39 }
 0x2a0   :  { %v2032_v26 = vmax.f32 %v1995_v32, 0.0 }
 0x2a1   :  { %2451 = vmatmul.bf16.gmra.mxu0 %v15134_v9 }
 0x2a2   :  { %v2056_v33 = vmax.f32 %v1790_v38, %v2032_v26  ;;  %11679 = vmatmul.msk.bf16.gmra.mxu2 %vm512_vm0, %v15082_v58  ;;  %v1791_v38 = vmax.f32 %v1756_v57, 0.0 }
 0x2a4   :  { %v2068_v45 = vmax.f32 %v15940_v35, %v2056_v33  ;;  %v13886_v35 = vld [vmem:[%s19351_s0 + $0xb8] sm:$0xff]  ;;  %v1792_v33 = vmax.f32 %v1758_v15, 0.0 }
 0x2a5   :  { %v1762_v12 = vpop.f32.mrf.mxu3  ;;  %v1997_v36 = vpop.f32.mrf.mxu2  ;;  %2725 = vmatpush.bf16.msra.mxu1 %v13886_v35 }
 0x2a6   :  { %v14365_v20 = vpack.c.bf16 %v2068_v45, %v2067_v2  ;;  %v16027_v47 = vpop.f32.mrf.mxu1  ;;  %v1930_v23 = vpop.f32.mrf.mxu0  ;;  %v1998_v62 = vadd.f32 %v1997_v36, %v1929_v59 }
 0x2a7   :  { %v1931_v53 = vadd.f32 %v1930_v23, %v15388_v13 }
 0x2a8   :  { %14749 = vst [vmem:[#allocation2 + $0x110] sm:$0xff] %v14365_v20   ;;  %v2033_v22 = vmax.f32 %v1998_v62, 0.0 }
 0x2a9   :  { %2219 = vmatmul.bf16.gmra.mxu1 %v15200_v31 }
 0x2aa   :  { %11629 = vmatmul.msk.bf16.gmra.mxu3 %vm512_vm0, %v15156_v17  ;;  %v2057_v2 = vmax.f32 %v1791_v38, %v2033_v22  ;;  %2726 = vmatpush.bf16.msra.mxu1 %v13885_v10 }
 0x2ac   :  { %v2069_v59 = vmax.f32 %v15947_v43, %v2057_v2  ;;  %v1761_v43 = vadd.f32 %v16018_v52, %v1692_v11 }
 0x2ad   :  { %v1765_v32 = vpop.f32.mrf.mxu3  ;;  %v1999_v7 = vpop.f32.mrf.mxu2 }
 0x2ae   :  { %v2000_v8 = vadd.f32 %v1999_v7, %v1931_v53  ;;  %v1698_v26 = vpop.f32.mrf.mxu1  ;;  %v1933_v14 = vpop.f32.mrf.mxu0  ;;  %v1793_v48 = vmax.f32 %v1761_v43, 0.0 }
 0x2af   :  { %v1934_v44 = vadd.f32 %v1933_v14, %v15198_v30 }
 0x2b0   :  { %v2034_v45 = vmax.f32 %v2000_v8, 0.0 }
 0x2b1   :  { %2456 = vmatmul.bf16.gmra.mxu0 %v15171_v21 }
 0x2b2   :  { %v2058_v34 = vmax.f32 %v1792_v33, %v2034_v45  ;;  %11680 = vmatmul.msk.bf16.gmra.mxu2 %vm512_vm0, %v15116_v4 }
 0x2b4   :  { %v2070_v36 = vmax.f32 %v15954_v42, %v2058_v34  ;;  %v1763_v42 = vadd.f32 %v1762_v12, %v1694_v50 }
 0x2b5   :  { %v1767_v20 = vpop.f32.mrf.mxu3  ;;  %v2002_v23 = vpop.f32.mrf.mxu2 }
 0x2b6   :  { %v14370_v62 = vpack.c.bf16 %v2070_v36, %v2069_v59  ;;  %v16054_v54 = vpop.f32.mrf.mxu1  ;;  %v1935_v35 = vpop.f32.mrf.mxu0  ;;  %v2003_v57 = vadd.f32 %v2002_v23, %v1934_v44  ;;  %v1794_v52 = vmax.f32 %v1763_v42, 0.0  ;;  %v1697_v44 = vadd.f32 %v16027_v47, %v15577_v41 }
 0x2b7   :  { %v1936_v22 = vadd.f32 %v1935_v35, %v15217_v39  ;;  %v1699_v35 = vadd.f32 %v1698_v26, %v15584_v40 }
 0x2b8   :  { %14750 = vst [vmem:[#allocation2 + $0x1f8] sm:$0xff] %v14370_v62   ;;  %v2035_v15 = vmax.f32 %v2003_v57, 0.0 }
 0x2b9   :  { %2224 = vmatmul.bf16.gmra.mxu1 %v15231_v46  ;;  %v1768_v47 = vadd.f32 %v1767_v20, %v1699_v35  ;;  %v13884_v20 = vld [vmem:[%s19351_s0 + $0xa8] sm:$0xff] }
 0x2ba   :  { %11630 = vmatmul.msk.bf16.gmra.mxu3 %vm512_vm0, %v15181_v24  ;;  %v2059_v14 = vmax.f32 %v1793_v48, %v2035_v15  ;;  %2727 = vmatpush.bf16.msra.mxu1 %v13884_v20 }
 0x2bc   :  { %v2071_v2 = vmax.f32 %v15961_v27, %v2059_v14  ;;  %v13895_v27 = vld [vmem:[%s19351_s0 + $0xc0] sm:$0xff] }
 0x2bd   :  { %v16065_v53 = vpop.f32.mrf.mxu3  ;;  %v2004_v29 = vpop.f32.mrf.mxu2  ;;  %2968 = vmatpush.bf16.msra.mxu0 %v13895_v27  ;;  %v13882_v27 = vld [vmem:[%s19351_s0 + $0x98] sm:$0xff] }
 0x2be   :  { %v2005_v7 = vadd.f32 %v2004_v29, %v1936_v22  ;;  %v1703_v38 = vpop.f32.mrf.mxu1  ;;  %v1938_v8 = vpop.f32.mrf.mxu0 }
 0x2bf   :  { %v1939_v34 = vadd.f32 %v1938_v8, %v15577_v41  ;;  %v1796_v8 = vmax.f32 %v1768_v47, 0.0 }
 0x2c0   :  { %v2036_v33 = vmax.f32 %v2005_v7, 0.0 }
 0x2c1   :  { %2461 = vmatmul.bf16.gmra.mxu0 %v15200_v31 }
 0x2c2   :  { %v2060_v12 = vmax.f32 %v1794_v52, %v2036_v33  ;;  %11681 = vmatmul.msk.bf16.gmra.mxu2 %vm512_vm0, %v15156_v17 }
 0x2c4   :  { %v2072_v45 = vmax.f32 %v15968_v60, %v2060_v12  ;;  %v1766_v60 = vadd.f32 %v1765_v32, %v1697_v44  ;;  %v13883_v44 = vld [vmem:[%s19351_s0 + $0xa0] sm:$0xff] }
 0x2c5   :  { %v1772_v59 = vpop.f32.mrf.mxu3  ;;  %v2007_v36 = vpop.f32.mrf.mxu2  ;;  %2728 = vmatpush.bf16.msra.mxu1 %v13883_v44 }
 0x2c6   :  { %v14375_v23 = vpack.c.bf16 %v2072_v45, %v2071_v2  ;;  %v1940_v11 = vpop.f32.mrf.mxu0  ;;  %v2190_v62 = vpop.f32.mrf.mxu1  ;;  %v2008_v50 = vadd.f32 %v2007_v36, %v1939_v34  ;;  %v1795_v22 = vmax.f32 %v1766_v60, 0.0 }
 0x2c7   :  { %v2191_v57 = vadd.f32 %v2190_v62, %v15272_v1  ;;  %v1941_v42 = vadd.f32 %v1940_v11, %v15584_v40 }
 0x2c8   :  { %14751 = vst [vmem:[#allocation2 + $0xb8] sm:$0xff] %v14375_v23   ;;  %v2037_v43 = vmax.f32 %v2008_v50, 0.0  ;;  %v1702_v23 = vadd.f32 %v16054_v54, %v15443_v19 }
 0x2c9   :  { %2229 = vmatmul.bf16.gmra.mxu1 %v15279_v5 }
 0x2ca   :  { %11631 = vmatmul.msk.bf16.gmra.mxu3 %vm512_vm0, %v15215_v37  ;;  %v2061_v32 = vmax.f32 %v1795_v22, %v2037_v43  ;;  %v1771_v60 = vadd.f32 %v16065_v53, %v1702_v23  ;;  %2729 = vmatpush.bf16.msra.mxu1 %v13882_v27  ;;  %v13881_v53 = vld [vmem:[%s19351_s0 + $0x90] sm:$0xff] }
 0x2cc   :  { %v2073_v12 = vmax.f32 %v15975_v3, %v2061_v32  ;;  %v1704_v3 = vadd.f32 %v1703_v38, %v15559_v25 }
 0x2cd   :  { %v2009_v26 = vpop.f32.mrf.mxu2  ;;  %v2259_v15 = vpop.f32.mrf.mxu3 }
 0x2ce   :  { %v2010_v10 = vadd.f32 %v2009_v26, %v1941_v42  ;;  %v16084_v29 = vadd.f32 %v2259_v15, %v2191_v57  ;;  %v1943_v48 = vpop.f32.mrf.mxu0  ;;  %v2192_v7 = vpop.f32.mrf.mxu1  ;;  %v13894_v57 = vld [vmem:[%s19351_s0 + $0xb8] sm:$0xff]  ;;  %v1773_v38 = vadd.f32 %v1772_v59, %v1704_v3  ;;  %v1797_v15 = vmax.f32 %v1771_v60, 0.0  ;;  %2730 = vmatpush.bf16.msra.mxu1 %v13881_v53 }
 0x2cf   :  { %v2193_v33 = vadd.f32 %v2192_v7, %v15300_v18  ;;  %v1944_v45 = vadd.f32 %v1943_v48, %v15443_v19  ;;  %2969 = vmatpush.bf16.msra.mxu0 %v13894_v57 }
 0x2d0   :  { %v2038_v52 = vmax.f32 %v2010_v10, 0.0 }
 0x2d1   :  { %2466 = vmatmul.bf16.gmra.mxu0 %v15231_v46 }
 0x2d2   :  { %v2062_v14 = vmax.f32 %v1796_v8, %v2038_v52  ;;  %11682 = vmatmul.msk.bf16.gmra.mxu2 %vm512_vm0, %v15181_v24  ;;  %v1798_v8 = vmax.f32 %v1773_v38, 0.0  ;;  %v13880_v52 = vld [vmem:[%s19351_s0 + $0x88] sm:$0xff] }
 0x2d3   :  { %2731 = vmatpush.bf16.msra.mxu1 %v13880_v52  ;;  %v19763_v38 = vld [vmem:[#allocation20_spill] sm:$0xff] }
 0x2d4   :  { %v2074_v2 = vmax.f32 %v15981_v16, %v2062_v14  ;;  %v19760_v14 = vld [vmem:[#allocation18_spill] sm:$0xff] }
 0x2d5   :  { %v2012_v34 = vpop.f32.mrf.mxu2  ;;  %v2261_v36 = vpop.f32.mrf.mxu3 }
 0x2d6   :  { %v14380_v11 = vpack.c.bf16 %v2074_v2, %v2073_v12  ;;  %v16101_v62 = vadd.f32 %v2261_v36, %v2193_v33  ;;  %v1945_v35 = vpop.f32.mrf.mxu0  ;;  %v2195_v50 = vpop.f32.mrf.mxu1  ;;  %v2013_v16 = vadd.f32 %v2012_v34, %v1944_v45  ;;  %v19761_v2 = vld [vmem:[#allocation27_spill] sm:$0xff]  ;;  %v19762_v34 = vld [vmem:[#allocation28_spill] sm:$0xff] }
 0x2d7   :  { %v2196_v54 = vadd.f32 %v2195_v50, %v15281_v6  ;;  %v1946_v43 = vadd.f32 %v1945_v35, %v15559_v25  ;;  %v13887_v35 = vld [vmem:[%s19351_s0 + $0xc0] sm:$0xff] }
 0x2d8   :  { %14752 = vst [vmem:[#allocation2 + $0x180] sm:$0xff] %v14380_v11   ;;  %v2039_v47 = vmax.f32 %v2013_v16, 0.0  ;;  %v13879_v11 = vld [vmem:[%s19351_s0 + $0x80] sm:$0xff]  ;;  %2801 = vmatpush.bf16.msra.mxu3 %v13887_v35 }
 0x2d9   :  { %2234 = vmatmul.bf16.gmra.mxu1 %v15338_v0 }
 0x2da   :  { %11632 = vmatmul.msk.bf16.gmra.mxu3 %vm512_vm0, %v15250_v56  ;;  %v2063_v32 = vmax.f32 %v1797_v15, %v2039_v47  ;;  %2732 = vmatpush.bf16.msra.mxu1 %v13879_v11 }
 0x2dc   :  { %v2075_v45 = vmax.f32 %v19761_v2, %v2063_v32 }
 0x2dd   :  { %v2014_v42 = vpop.f32.mrf.mxu2  ;;  %v2264_v26 = vpop.f32.mrf.mxu3 }
 0x2de   :  { %v2015_v22 = vadd.f32 %v2014_v42, %v1946_v43  ;;  %v16119_v10 = vadd.f32 %v2264_v26, %v2196_v54  ;;  %v2197_v48 = vpop.f32.mrf.mxu1  ;;  %v2432_v7 = vpop.f32.mrf.mxu0  ;;  %v2319_v54 = vmax.f32 %v16084_v29, 0.0  ;;  %v19764_v43 = vld [vmem:[#allocation15_spill] sm:$0xff]  ;;  %v19765_v26 = vld [vmem:[#allocation17_spill] sm:$0xff] }
 0x2df   :  { %v2198_v33 = vadd.f32 %v2197_v48, %v19760_v14  ;;  %v2433_v12 = vadd.f32 %v2432_v7, %v15272_v1  ;;  %v13893_v48 = vld [vmem:[%s19351_s0 + $0xb0] sm:$0xff] }
 0x2e0   :  { %v2040_v59 = vmax.f32 %v2015_v22, 0.0  ;;  %2970 = vmatpush.bf16.msra.mxu0 %v13893_v48 }
 0x2e1   :  { %2471 = vmatmul.bf16.gmra.mxu0 %v15279_v5 }
 0x2e2   :  { %v2064_v20 = vmax.f32 %v1798_v8, %v2040_v59  ;;  %11683 = vmatmul.msk.bf16.gmra.mxu2 %vm512_vm0, %v15215_v37  ;;  %v2320_v59 = vmax.f32 %v16101_v62, 0.0  ;;  %v13891_v62 = vld [vmem:[%s19351_s0 + $0xa0] sm:$0xff] }
 0x2e4   :  { %v2076_v36 = vmax.f32 %v19762_v34, %v2064_v20  ;;  %v13892_v20 = vld [vmem:[%s19351_s0 + $0xa8] sm:$0xff] }
 0x2e5   :  { %v2266_v44 = vpop.f32.mrf.mxu3  ;;  %v2501_v23 = vpop.f32.mrf.mxu2  ;;  %2971 = vmatpush.bf16.msra.mxu0 %v13892_v20 }
 0x2e6   :  { %v14385_v50 = vpack.c.bf16 %v2076_v36, %v2075_v45  ;;  %v2267_v3 = vadd.f32 %v2266_v44, %v2198_v33  ;;  %v2502_v16 = vadd.f32 %v2501_v23, %v2433_v12  ;;  %v2200_v27 = vpop.f32.mrf.mxu1  ;;  %v2434_v60 = vpop.f32.mrf.mxu0  ;;  %v19766_v12 = vld [vmem:[#allocation16_spill] sm:$0xff] }
 0x2e7   :  { %v2201_v42 = vadd.f32 %v2200_v27, %v19764_v43  ;;  %v2435_v53 = vadd.f32 %v2434_v60, %v15300_v18  ;;  %v19767_v27 = vld [vmem:[#allocation22_spill] sm:$0xff] }
 0x2e8   :  { %14753 = vst [vmem:[#allocation2 + $0x190] sm:$0xff] %v14385_v50   ;;  %v2561_v57 = vmax.f32 %v2502_v16, 0.0  ;;  %v2321_v50 = vmax.f32 %v16119_v10, 0.0  ;;  %v13890_v60 = vld [vmem:[%s19351_s0 + $0x98] sm:$0xff]  ;;  %v13889_v10 = vld [vmem:[%s19351_s0 + $0x90] sm:$0xff]  ;;  %v2322_v20 = vmax.f32 %v2267_v3, 0.0 }
 0x2e9   :  { %2239 = vmatmul.bf16.gmra.mxu1 %v19763_v38  ;;  %2972 = vmatpush.bf16.msra.mxu0 %v13891_v62 }
 0x2ea   :  { %v16139_v47 = vmax.f32 %v2319_v54, %v2561_v57  ;;  %11633 = vmatmul.msk.bf16.gmra.mxu3 %vm512_vm0, %v19765_v26  ;;  %v19768_v57 = vld [vmem:[#allocation13_spill] sm:$0xff] }
 0x2ed   :  { %v2269_v15 = vpop.f32.mrf.mxu3  ;;  %v2503_v22 = vpop.f32.mrf.mxu2  ;;  %2973 = vmatpush.bf16.msra.mxu0 %v13890_v60 }
 0x2ee   :  { %v2270_v29 = vadd.f32 %v2269_v15, %v2201_v42  ;;  %v2504_v7 = vadd.f32 %v2503_v22, %v2435_v53  ;;  %v2202_v8 = vpop.f32.mrf.mxu1  ;;  %v2437_v32 = vpop.f32.mrf.mxu0  ;;  %v19769_v53 = vld [vmem:[#allocation19_spill] sm:$0xff] }
 0x2ef   :  { %v2203_v2 = vadd.f32 %v2202_v8, %v19766_v12  ;;  %v2438_v45 = vadd.f32 %v2437_v32, %v15281_v6 }
 0x2f0   :  { %v2562_v52 = vmax.f32 %v2504_v7, 0.0  ;;  %v13897_v7 = vld [vmem:[%s19351_s0 + $0xd0] sm:$0xff] }
 0x2f1   :  { %2476 = vmatmul.bf16.gmra.mxu0 %v15338_v0  ;;  %3043 = vmatpush.bf16.msra.mxu2 %v13897_v7  ;;  %v19773_v7 = vld [vmem:[#allocation7_spill] sm:$0xff] }
 0x2f2   :  { %v16153_v33 = vmax.f32 %v2320_v59, %v2562_v52  ;;  %11684 = vmatmul.msk.bf16.gmra.mxu2 %vm512_vm0, %v15250_v56  ;;  %2974 = vmatpush.bf16.msra.mxu0 %v13889_v10 }
 0x2f5   :  { %v2271_v34 = vpop.f32.mrf.mxu3  ;;  %v2506_v36 = vpop.f32.mrf.mxu2 }
 0x2f6   :  { %v2272_v44 = vadd.f32 %v2271_v34, %v2203_v2  ;;  %v2507_v23 = vadd.f32 %v2506_v36, %v2438_v45  ;;  %v2205_v11 = vpop.f32.mrf.mxu1  ;;  %v2439_v35 = vpop.f32.mrf.mxu0  ;;  %v19770_v34 = vld [vmem:[#allocation14_spill] sm:$0xff] }
 0x2f7   :  { %v2206_v42 = vadd.f32 %v2205_v11, %v19768_v57  ;;  %v2440_v15 = vadd.f32 %v2439_v35, %v19760_v14 }
 0x2f8   :  { %v2563_v16 = vmax.f32 %v2507_v23, 0.0 }
 0x2f9   :  { %2244 = vmatmul.bf16.gmra.mxu1 %v19767_v27 }
 0x2fa   :  { %v16167_v54 = vmax.f32 %v2321_v50, %v2563_v16  ;;  %11634 = vmatmul.msk.bf16.gmra.mxu3 %vm512_vm0, %v19769_v53 }
 0x2fd   :  { %v2274_v22 = vpop.f32.mrf.mxu3  ;;  %v2508_v48 = vpop.f32.mrf.mxu2 }
 0x2fe   :  { %v2275_v8 = vadd.f32 %v2274_v22, %v2206_v42  ;;  %v2509_v32 = vadd.f32 %v2508_v48, %v2440_v15  ;;  %v2207_v59 = vpop.f32.mrf.mxu1  ;;  %v2442_v52 = vpop.f32.mrf.mxu0  ;;  %v2323_v42 = vmax.f32 %v2270_v29, 0.0  ;;  %v19771_v15 = vld [vmem:[#allocation9_spill] sm:$0xff]  ;;  %v19772_v48 = vld [vmem:[#allocation24_spill] sm:$0xff] }
 0x2ff   :  { %v2208_v36 = vadd.f32 %v2207_v59, %v19770_v34  ;;  %v2443_v62 = vadd.f32 %v2442_v52, %v19764_v43 }
 0x300   :  { %v2564_v2 = vmax.f32 %v2509_v32, 0.0 }
 0x301   :  { %2481 = vmatmul.bf16.gmra.mxu0 %v19763_v38 }
 0x302   :  { %v16180_v45 = vmax.f32 %v2322_v20, %v2564_v2  ;;  %11685 = vmatmul.msk.bf16.gmra.mxu2 %vm512_vm0, %v19765_v26 }
 0x305   :  { %v2276_v23 = vpop.f32.mrf.mxu3  ;;  %v2511_v11 = vpop.f32.mrf.mxu2 }
 0x306   :  { %v2277_v35 = vadd.f32 %v2276_v23, %v2208_v36  ;;  %v2512_v50 = vadd.f32 %v2511_v11, %v2443_v62  ;;  %v2210_v16 = vpop.f32.mrf.mxu1  ;;  %v2444_v60 = vpop.f32.mrf.mxu0  ;;  %v2324_v23 = vmax.f32 %v2272_v44, 0.0 }
 0x307   :  { %v2211_v10 = vadd.f32 %v2210_v16, %v19772_v48  ;;  %v2445_v32 = vadd.f32 %v2444_v60, %v19766_v12 }
 0x308   :  { %v2565_v3 = vmax.f32 %v2512_v50, 0.0  ;;  %v19774_v50 = vld [vmem:[#allocation25_spill] sm:$0xff] }
 0x309   :  { %2733 = vmatmul.bf16.vlgmr.msra.gmra.mxu1 %v19771_v15 }
 0x30a   :  { %v16187_v22 = vmax.f32 %v2323_v42, %v2565_v3  ;;  %11727 = vmatmul.msk.bf16.vlgmr.msra.gmra.mxu3 %vm512_vm0, %v19773_v7 }
 0x30d   :  { %v2279_v59 = vpop.f32.mrf.mxu3  ;;  %v2513_v52 = vpop.f32.mrf.mxu2 }
 0x30e   :  { %v2280_v20 = vadd.f32 %v2279_v59, %v2211_v10  ;;  %v2514_v2 = vadd.f32 %v2513_v52, %v2445_v32  ;;  %v2212_v36 = vpop.f32.mrf.mxu1  ;;  %v2447_v62 = vpop.f32.mrf.mxu0  ;;  %v2325_v52 = vmax.f32 %v2275_v8, 0.0 }
 0x30f   :  { %v2213_v42 = vadd.f32 %v2212_v36, %v19774_v50  ;;  %v2448_v16 = vadd.f32 %v2447_v62, %v19768_v57  ;;  %v19777_v36 = vld [vmem:[#allocation8_spill] sm:$0xff] }
 0x310   :  { %v2566_v29 = vmax.f32 %v2514_v2, 0.0  ;;  %v19775_v2 = vld [vmem:[#allocation11_spill] sm:$0xff] }
 0x311   :  { %2486 = vmatmul.bf16.gmra.mxu0 %v19767_v27 }
 0x312   :  { %v16194_v11 = vmax.f32 %v2324_v23, %v2566_v29  ;;  %11686 = vmatmul.msk.bf16.gmra.mxu2 %vm512_vm0, %v19769_v53  ;;  %v19776_v23 = vld [vmem:[#allocation21_spill] sm:$0xff] }
 0x315   :  { %v2281_v60 = vpop.f32.mrf.mxu3  ;;  %v2516_v3 = vpop.f32.mrf.mxu2 }
 0x316   :  { %v2282_v12 = vadd.f32 %v2281_v60, %v2213_v42  ;;  %v2517_v10 = vadd.f32 %v2516_v3, %v2448_v16  ;;  %v2215_v32 = vpop.f32.mrf.mxu1  ;;  %v2449_v59 = vpop.f32.mrf.mxu0  ;;  %v2326_v3 = vmax.f32 %v2277_v35, 0.0 }
 0x317   :  { %v2216_v29 = vadd.f32 %v2215_v32, %v19776_v23  ;;  %v2450_v62 = vadd.f32 %v2449_v59, %v19770_v34 }
 0x318   :  { %v2567_v44 = vmax.f32 %v2517_v10, 0.0 }
 0x319   :  { %2738 = vmatmul.bf16.gmra.mxu1 %v19775_v2 }
 0x31a   :  { %v16201_v27 = vmax.f32 %v2325_v52, %v2567_v44  ;;  %11728 = vmatmul.msk.bf16.gmra.mxu3 %vm512_vm0, %v19777_v36  ;;  %v19778_v52 = vld [vmem:[#allocation23_spill] sm:$0xff] }
 0x31d   :  { %v2284_v53 = vpop.f32.mrf.mxu3  ;;  %v2518_v57 = vpop.f32.mrf.mxu2 }
 0x31e   :  { %v2285_v26 = vadd.f32 %v2284_v53, %v2216_v29  ;;  %v2519_v42 = vadd.f32 %v2518_v57, %v2450_v62  ;;  %v2217_v16 = vpop.f32.mrf.mxu1  ;;  %v2452_v60 = vpop.f32.mrf.mxu0  ;;  %v2327_v62 = vmax.f32 %v2280_v20, 0.0 }
 0x31f   :  { %v2218_v44 = vadd.f32 %v2217_v16, %v19778_v52  ;;  %v2453_v32 = vadd.f32 %v2452_v60, %v19772_v48 }
 0x320   :  { %v2568_v8 = vmax.f32 %v2519_v42, 0.0  ;;  %v19779_v42 = vld [vmem:[#allocation12_spill] sm:$0xff] }
 0x321   :  { %2975 = vmatmul.bf16.vlgmr.msra.gmra.mxu0 %v19771_v15 }
 0x322   :  { %v16208_v10 = vmax.f32 %v2326_v3, %v2568_v8  ;;  %11779 = vmatmul.msk.bf16.vlgmr.msra.gmra.mxu2 %vm512_vm0, %v19773_v7  ;;  %v19780_v3 = vld [vmem:[#allocation10_spill] sm:$0xff] }
 0x325   :  { %v2286_v59 = vpop.f32.mrf.mxu3  ;;  %v2521_v34 = vpop.f32.mrf.mxu2 }
 0x326   :  { %v2287_v43 = vadd.f32 %v2286_v59, %v2218_v44  ;;  %v2522_v53 = vadd.f32 %v2521_v34, %v2453_v32  ;;  %v2220_v57 = vpop.f32.mrf.mxu1  ;;  %v2454_v29 = vpop.f32.mrf.mxu0  ;;  %v2328_v44 = vmax.f32 %v2282_v12, 0.0 }
 0x327   :  { %v2455_v16 = vadd.f32 %v2454_v29, %v19774_v50  ;;  %v2329_v50 = vmax.f32 %v2285_v26, 0.0 }
 0x328   :  { %v2569_v35 = vmax.f32 %v2522_v53, 0.0 }
 0x329   :  { %2743 = vmatmul.bf16.gmra.mxu1 %v19779_v42 }
 0x32a   :  { %v16215_v15 = vmax.f32 %v2327_v62, %v2569_v35  ;;  %11729 = vmatmul.msk.bf16.gmra.mxu3 %vm512_vm0, %v19780_v3 }
 0x32d   :  { %v2289_v60 = vpop.f32.mrf.mxu3  ;;  %v2523_v8 = vpop.f32.mrf.mxu2 }
 0x32e   :  { %v2524_v7 = vadd.f32 %v2523_v8, %v2455_v16  ;;  %v2222_v48 = vpop.f32.mrf.mxu1  ;;  %v2457_v38 = vpop.f32.mrf.mxu0 }
 0x32f   :  { %v2458_v32 = vadd.f32 %v2457_v38, %v19776_v23  ;;  %v2330_v23 = vmax.f32 %v2287_v43, 0.0 }
 0x330   :  { %v2570_v34 = vmax.f32 %v2524_v7, 0.0 }
 0x331   :  { %2980 = vmatmul.bf16.gmra.mxu0 %v19775_v2 }
 0x332   :  { %v16221_v20 = vmax.f32 %v2328_v44, %v2570_v34  ;;  %11780 = vmatmul.msk.bf16.gmra.mxu2 %vm512_vm0, %v19777_v36 }
 0x335   :  { %v2291_v59 = vpop.f32.mrf.mxu3  ;;  %v2526_v53 = vpop.f32.mrf.mxu2 }
 0x336   :  { %v2527_v62 = vadd.f32 %v2526_v53, %v2458_v32  ;;  %v2225_v29 = vpop.f32.mrf.mxu1  ;;  %v2459_v35 = vpop.f32.mrf.mxu0 }
 0x337   :  { %v2460_v7 = vadd.f32 %v2459_v35, %v19778_v52 }
 0x338   :  { %v2571_v16 = vmax.f32 %v2527_v62, 0.0 }
 0x339   :  { %2748 = vmatmul.bf16.gmra.mxu1 %v15100_v63 }
 0x33a   :  { %v16227_v12 = vmax.f32 %v2329_v50, %v2571_v16  ;;  %11730 = vmatmul.msk.bf16.gmra.mxu3 %vm512_vm0, %v15051_v49  ;;  %v19783_v50 = vld [vmem:[#allocation26_spill] sm:$0xff] }
 0x33b   :  { %v2221_v35 = vadd.f32 %v2220_v57, %v19783_v50 }
 0x33c   :  { %19781 = vst [vmem:[#allocation27_spill] sm:$0xff] %v16227_v12 }
 0x33d   :  { %v2294_v38 = vpop.f32.mrf.mxu3  ;;  %v2528_v8 = vpop.f32.mrf.mxu2  ;;  %v2290_v43 = vadd.f32 %v2289_v60, %v2221_v35 }
 0x33e   :  { %v2529_v44 = vadd.f32 %v2528_v8, %v2460_v7  ;;  %v2227_v34 = vpop.f32.mrf.mxu1  ;;  %v2462_v36 = vpop.f32.mrf.mxu0  ;;  %v2223_v7 = vadd.f32 %v2222_v48, %v15434_v55 }
 0x33f   :  { %v2463_v53 = vadd.f32 %v2462_v36, %v19783_v50 }
 0x340   :  { %v2572_v32 = vmax.f32 %v2529_v44, 0.0 }
 0x341   :  { %2985 = vmatmul.bf16.gmra.mxu0 %v19779_v42  ;;  %v2331_v42 = vmax.f32 %v2290_v43, 0.0 }
 0x342   :  { %v16233_v26 = vmax.f32 %v2330_v23, %v2572_v32  ;;  %11781 = vmatmul.msk.bf16.gmra.mxu2 %vm512_vm0, %v19780_v3  ;;  %v2292_v23 = vadd.f32 %v2291_v59, %v2223_v7 }
 0x344   :  { %19782 = vst [vmem:[#allocation28_spill] sm:$0xff] %v16233_v26  ;;  %v2332_v12 = vmax.f32 %v2292_v23, 0.0 }
 0x345   :  { %v2296_v62 = vpop.f32.mrf.mxu3  ;;  %v2531_v16 = vpop.f32.mrf.mxu2 }
 0x346   :  { %v2230_v52 = vpop.f32.mrf.mxu1  ;;  %v2464_v2 = vpop.f32.mrf.mxu0  ;;  %v2532_v8 = vadd.f32 %v2531_v16, %v2463_v53 }
 0x347   :  { %v2465_v32 = vadd.f32 %v2464_v2, %v15434_v55 }
 0x348   :  { %v2573_v44 = vmax.f32 %v2532_v8, 0.0 }
 0x349   :  { %2753 = vmatmul.bf16.gmra.mxu1 %v15134_v9 }
 0x34a   :  { %11731 = vmatmul.msk.bf16.gmra.mxu3 %vm512_vm0, %v15082_v58  ;;  %v2597_v14 = vmax.f32 %v2331_v42, %v2573_v44 }
 0x34c   :  { %v2609_v60 = vmax.f32 %v16139_v47, %v2597_v14 }
 0x34d   :  { %v2299_v36 = vpop.f32.mrf.mxu3  ;;  %v2533_v3 = vpop.f32.mrf.mxu2 }
 0x34e   :  { %v2534_v26 = vadd.f32 %v2533_v3, %v2465_v32  ;;  %v2232_v57 = vpop.f32.mrf.mxu1  ;;  %v2467_v50 = vpop.f32.mrf.mxu0  ;;  %v2226_v3 = vadd.f32 %v2225_v29, %v15358_v28 }
 0x34f   :  { %v2468_v2 = vadd.f32 %v2467_v50, %v15358_v28 }
 0x350   :  { %v2574_v48 = vmax.f32 %v2534_v26, 0.0  ;;  %v2228_v26 = vadd.f32 %v2227_v34, %v15240_v51  ;;  %v2295_v43 = vadd.f32 %v2294_v38, %v2226_v3 }
 0x351   :  { %2990 = vmatmul.bf16.gmra.mxu0 %v15100_v63 }
 0x352   :  { %v2598_v53 = vmax.f32 %v2332_v12, %v2574_v48  ;;  %11782 = vmatmul.msk.bf16.gmra.mxu2 %vm512_vm0, %v15051_v49  ;;  %v2297_v14 = vadd.f32 %v2296_v62, %v2228_v26  ;;  %v2333_v23 = vmax.f32 %v2295_v43, 0.0  ;;  %v2233_v43 = vadd.f32 %v2232_v57, %v15388_v13 }
 0x354   :  { %v2610_v59 = vmax.f32 %v16153_v33, %v2598_v53  ;;  %v2334_v34 = vmax.f32 %v2297_v14, 0.0 }
 0x355   :  { %v2301_v16 = vpop.f32.mrf.mxu3  ;;  %v2536_v35 = vpop.f32.mrf.mxu2 }
 0x356   :  { %v14390_v7 = vpack.c.bf16 %v2610_v59, %v2609_v60  ;;  %v16251_v8 = vpop.f32.mrf.mxu1  ;;  %v2469_v42 = vpop.f32.mrf.mxu0  ;;  %v2537_v12 = vadd.f32 %v2536_v35, %v2468_v2  ;;  %v2302_v57 = vadd.f32 %v2301_v16, %v2233_v43 }
 0x357   :  { %v2470_v33 = vadd.f32 %v2469_v42, %v15240_v51  ;;  %v2236_v43 = vadd.f32 %v16251_v8, %v15198_v30  ;;  %v13905_v8 = vld [vmem:[%s19351_s0 + $0xd0] sm:$0xff] }
 0x358   :  { %14754 = vst [vmem:[#allocation2 + $0x140] sm:$0xff] %v14390_v7   ;;  %v2575_v47 = vmax.f32 %v2537_v12, 0.0  ;;  %v2231_v7 = vadd.f32 %v2230_v52, %v15264_v61  ;;  %v13918_v52 = vld [vmem:[%s19351_s0 + $0xf8] sm:$0xff] }
 0x359   :  { %2758 = vmatmul.bf16.gmra.mxu1 %v15171_v21  ;;  %3586 = vmatpush.bf16.msrb.mxu2 %v13918_v52 }
 0x35a   :  { %11732 = vmatmul.msk.bf16.gmra.mxu3 %vm512_vm0, %v15116_v4  ;;  %v2599_v53 = vmax.f32 %v2333_v23, %v2575_v47  ;;  %v2300_v47 = vadd.f32 %v2299_v36, %v2231_v7  ;;  %v13916_v23 = vld [vmem:[%s19351_s0 + $0xe8] sm:$0xff] }
 0x35b   :  { %3511 = vmatpush.bf16.msrb.mxu0 %v13916_v23 }
 0x35c   :  { %v2611_v62 = vmax.f32 %v16167_v54, %v2599_v53  ;;  %v13908_v54 = vld [vmem:[%s19351_s0 + $0xe8] sm:$0xff] }
 0x35d   :  { %v16258_v50 = vpop.f32.mrf.mxu3  ;;  %v2538_v29 = vpop.f32.mrf.mxu2  ;;  %3344 = vmatpush.bf16.msrb.mxu3 %v13908_v54 }
 0x35e   :  { %v2539_v44 = vadd.f32 %v2538_v29, %v2470_v33  ;;  %v2237_v32 = vpop.f32.mrf.mxu1  ;;  %v2472_v48 = vpop.f32.mrf.mxu0 }
 0x35f   :  { %v2473_v2 = vadd.f32 %v2472_v48, %v15264_v61  ;;  %v2238_v52 = vadd.f32 %v2237_v32, %v15217_v39 }
 0x360   :  { %v2576_v60 = vmax.f32 %v2539_v44, 0.0 }
 0x361   :  { %2995 = vmatmul.bf16.gmra.mxu0 %v15134_v9 }
 0x362   :  { %v2600_v38 = vmax.f32 %v2334_v34, %v2576_v60  ;;  %11783 = vmatmul.msk.bf16.gmra.mxu2 %vm512_vm0, %v15082_v58  ;;  %v2335_v34 = vmax.f32 %v2300_v47, 0.0 }
 0x364   :  { %v2612_v59 = vmax.f32 %v16180_v45, %v2600_v38  ;;  %v13906_v45 = vld [vmem:[%s19351_s0 + $0xd8] sm:$0xff]  ;;  %v2336_v38 = vmax.f32 %v2302_v57, 0.0 }
 0x365   :  { %v2306_v35 = vpop.f32.mrf.mxu3  ;;  %v2541_v3 = vpop.f32.mrf.mxu2  ;;  %3269 = vmatpush.bf16.msrb.mxu1 %v13906_v45 }
 0x366   :  { %v14395_v42 = vpack.c.bf16 %v2612_v59, %v2611_v62  ;;  %v16267_v26 = vpop.f32.mrf.mxu1  ;;  %v2474_v12 = vpop.f32.mrf.mxu0  ;;  %v2542_v14 = vadd.f32 %v2541_v3, %v2473_v2 }
 0x367   :  { %v2475_v29 = vadd.f32 %v2474_v12, %v15388_v13 }
 0x368   :  { %14755 = vst [vmem:[#allocation2 + $0x1c0] sm:$0xff] %v14395_v42   ;;  %v2577_v33 = vmax.f32 %v2542_v14, 0.0 }
 0x369   :  { %2763 = vmatmul.bf16.gmra.mxu1 %v15200_v31 }
 0x36a   :  { %11733 = vmatmul.msk.bf16.gmra.mxu3 %vm512_vm0, %v15156_v17  ;;  %v2601_v62 = vmax.f32 %v2335_v34, %v2577_v33  ;;  %3270 = vmatpush.bf16.msrb.mxu1 %v13905_v8 }
 0x36c   :  { %v2613_v2 = vmax.f32 %v16187_v22, %v2601_v62  ;;  %v2305_v22 = vadd.f32 %v16258_v50, %v2236_v43 }
 0x36d   :  { %v2309_v44 = vpop.f32.mrf.mxu3  ;;  %v2543_v48 = vpop.f32.mrf.mxu2 }
 0x36e   :  { %v2544_v53 = vadd.f32 %v2543_v48, %v2475_v29  ;;  %v2242_v60 = vpop.f32.mrf.mxu1  ;;  %v2477_v36 = vpop.f32.mrf.mxu0  ;;  %v2337_v23 = vmax.f32 %v2305_v22, 0.0 }
 0x36f   :  { %v2478_v7 = vadd.f32 %v2477_v36, %v15198_v30 }
 0x370   :  { %v2578_v59 = vmax.f32 %v2544_v53, 0.0 }
 0x371   :  { %3000 = vmatmul.bf16.gmra.mxu0 %v15171_v21 }
 0x372   :  { %v2602_v16 = vmax.f32 %v2336_v38, %v2578_v59  ;;  %11784 = vmatmul.msk.bf16.gmra.mxu2 %vm512_vm0, %v15116_v4 }
 0x374   :  { %v2614_v3 = vmax.f32 %v16194_v11, %v2602_v16  ;;  %v2307_v11 = vadd.f32 %v2306_v35, %v2238_v52 }
 0x375   :  { %v2311_v42 = vpop.f32.mrf.mxu3  ;;  %v2546_v12 = vpop.f32.mrf.mxu2 }
 0x376   :  { %v14400_v14 = vpack.c.bf16 %v2614_v3, %v2613_v2  ;;  %v16294_v54 = vpop.f32.mrf.mxu1  ;;  %v2479_v45 = vpop.f32.mrf.mxu0  ;;  %v2547_v47 = vadd.f32 %v2546_v12, %v2478_v7  ;;  %v2338_v50 = vmax.f32 %v2307_v11, 0.0  ;;  %v2241_v7 = vadd.f32 %v16267_v26, %v15577_v41 }
 0x377   :  { %v2480_v33 = vadd.f32 %v2479_v45, %v15217_v39  ;;  %v2243_v45 = vadd.f32 %v2242_v60, %v15584_v40 }
 0x378   :  { %14756 = vst [vmem:[#allocation2 + $0xd0] sm:$0xff] %v14400_v14   ;;  %v2579_v57 = vmax.f32 %v2547_v47, 0.0 }
 0x379   :  { %2768 = vmatmul.bf16.gmra.mxu1 %v15231_v46  ;;  %v2312_v26 = vadd.f32 %v2311_v42, %v2243_v45  ;;  %v13904_v42 = vld [vmem:[%s19351_s0 + $0xc8] sm:$0xff] }
 0x37a   :  { %11734 = vmatmul.msk.bf16.gmra.mxu3 %vm512_vm0, %v15181_v24  ;;  %v2603_v36 = vmax.f32 %v2337_v23, %v2579_v57  ;;  %3271 = vmatpush.bf16.msrb.mxu1 %v13904_v42 }
 0x37c   :  { %v2615_v62 = vmax.f32 %v16201_v27, %v2603_v36  ;;  %v13915_v27 = vld [vmem:[%s19351_s0 + $0xe0] sm:$0xff] }
 0x37d   :  { %v16305_v29 = vpop.f32.mrf.mxu3  ;;  %v2548_v32 = vpop.f32.mrf.mxu2  ;;  %3512 = vmatpush.bf16.msrb.mxu0 %v13915_v27  ;;  %v13902_v27 = vld [vmem:[%s19351_s0 + $0xb8] sm:$0xff] }
 0x37e   :  { %v2549_v48 = vadd.f32 %v2548_v32, %v2480_v33  ;;  %v2247_v34 = vpop.f32.mrf.mxu1  ;;  %v2482_v53 = vpop.f32.mrf.mxu0 }
 0x37f   :  { %v2483_v16 = vadd.f32 %v2482_v53, %v15577_v41  ;;  %v2340_v53 = vmax.f32 %v2312_v26, 0.0 }
 0x380   :  { %v2580_v38 = vmax.f32 %v2549_v48, 0.0 }
 0x381   :  { %3005 = vmatmul.bf16.gmra.mxu0 %v15200_v31 }
 0x382   :  { %v2604_v35 = vmax.f32 %v2338_v50, %v2580_v38  ;;  %11785 = vmatmul.msk.bf16.gmra.mxu2 %vm512_vm0, %v15156_v17 }
 0x384   :  { %v2616_v59 = vmax.f32 %v16208_v10, %v2604_v35  ;;  %v2310_v10 = vadd.f32 %v2309_v44, %v2241_v7  ;;  %v13903_v7 = vld [vmem:[%s19351_s0 + $0xc0] sm:$0xff] }
 0x385   :  { %v2316_v2 = vpop.f32.mrf.mxu3  ;;  %v2551_v3 = vpop.f32.mrf.mxu2  ;;  %3272 = vmatpush.bf16.msrb.mxu1 %v13903_v7 }
 0x386   :  { %v14405_v12 = vpack.c.bf16 %v2616_v59, %v2615_v62  ;;  %v2484_v43 = vpop.f32.mrf.mxu0  ;;  %v2734_v14 = vpop.f32.mrf.mxu1  ;;  %v2552_v52 = vadd.f32 %v2551_v3, %v2483_v16  ;;  %v2339_v33 = vmax.f32 %v2310_v10, 0.0 }
 0x387   :  { %v2735_v47 = vadd.f32 %v2734_v14, %v15272_v1  ;;  %v2485_v11 = vadd.f32 %v2484_v43, %v15584_v40 }
 0x388   :  { %14757 = vst [vmem:[#allocation2 + $0x138] sm:$0xff] %v14405_v12   ;;  %v2581_v22 = vmax.f32 %v2552_v52, 0.0  ;;  %v2246_v12 = vadd.f32 %v16294_v54, %v15443_v19 }
 0x389   :  { %2773 = vmatmul.bf16.gmra.mxu1 %v15279_v5 }
 0x38a   :  { %11735 = vmatmul.msk.bf16.gmra.mxu3 %vm512_vm0, %v15215_v37  ;;  %v2605_v44 = vmax.f32 %v2339_v33, %v2581_v22  ;;  %v2315_v10 = vadd.f32 %v16305_v29, %v2246_v12  ;;  %3273 = vmatpush.bf16.msrb.mxu1 %v13902_v27  ;;  %v13901_v29 = vld [vmem:[%s19351_s0 + $0xb0] sm:$0xff] }
 0x38c   :  { %v2617_v35 = vmax.f32 %v16215_v15, %v2605_v44  ;;  %v2248_v15 = vadd.f32 %v2247_v34, %v15559_v25 }
 0x38d   :  { %v2553_v60 = vpop.f32.mrf.mxu2  ;;  %v2803_v57 = vpop.f32.mrf.mxu3 }
 0x38e   :  { %v2554_v8 = vadd.f32 %v2553_v60, %v2485_v11  ;;  %v16324_v32 = vadd.f32 %v2803_v57, %v2735_v47  ;;  %v2487_v23 = vpop.f32.mrf.mxu0  ;;  %v2736_v48 = vpop.f32.mrf.mxu1  ;;  %v13914_v47 = vld [vmem:[%s19351_s0 + $0xd8] sm:$0xff]  ;;  %v2317_v34 = vadd.f32 %v2316_v2, %v2248_v15  ;;  %v2341_v57 = vmax.f32 %v2315_v10, 0.0  ;;  %3274 = vmatpush.bf16.msrb.mxu1 %v13901_v29 }
 0x38f   :  { %v2737_v38 = vadd.f32 %v2736_v48, %v15300_v18  ;;  %v2488_v59 = vadd.f32 %v2487_v23, %v15443_v19  ;;  %3513 = vmatpush.bf16.msrb.mxu0 %v13914_v47 }
 0x390   :  { %v2582_v50 = vmax.f32 %v2554_v8, 0.0 }
 0x391   :  { %3010 = vmatmul.bf16.gmra.mxu0 %v15231_v46 }
 0x392   :  { %v2606_v36 = vmax.f32 %v2340_v53, %v2582_v50  ;;  %11786 = vmatmul.msk.bf16.gmra.mxu2 %vm512_vm0, %v15181_v24  ;;  %v2342_v53 = vmax.f32 %v2317_v34, 0.0  ;;  %v13900_v50 = vld [vmem:[%s19351_s0 + $0xa8] sm:$0xff] }
 0x393   :  { %3275 = vmatpush.bf16.msrb.mxu1 %v13900_v50  ;;  %v19787_v34 = vld [vmem:[#allocation20_spill] sm:$0xff] }
 0x394   :  { %v2618_v62 = vmax.f32 %v16221_v20, %v2606_v36  ;;  %v19784_v36 = vld [vmem:[#allocation18_spill] sm:$0xff] }
 0x395   :  { %v2556_v16 = vpop.f32.mrf.mxu2  ;;  %v2805_v3 = vpop.f32.mrf.mxu3 }
 0x396   :  { %v14410_v43 = vpack.c.bf16 %v2618_v62, %v2617_v35  ;;  %v16341_v14 = vadd.f32 %v2805_v3, %v2737_v38  ;;  %v2489_v45 = vpop.f32.mrf.mxu0  ;;  %v2739_v52 = vpop.f32.mrf.mxu1  ;;  %v2557_v20 = vadd.f32 %v2556_v16, %v2488_v59  ;;  %v19785_v62 = vld [vmem:[#allocation27_spill] sm:$0xff]  ;;  %v19786_v16 = vld [vmem:[#allocation28_spill] sm:$0xff] }
 0x397   :  { %v2740_v54 = vadd.f32 %v2739_v52, %v15281_v6  ;;  %v2490_v22 = vadd.f32 %v2489_v45, %v15559_v25  ;;  %v13907_v45 = vld [vmem:[%s19351_s0 + $0xe0] sm:$0xff] }
 0x398   :  { %14758 = vst [vmem:[#allocation2 + $0x60] sm:$0xff] %v14410_v43   ;;  %v2583_v26 = vmax.f32 %v2557_v20, 0.0  ;;  %v13899_v43 = vld [vmem:[%s19351_s0 + $0xa0] sm:$0xff]  ;;  %3345 = vmatpush.bf16.msrb.mxu3 %v13907_v45 }
 0x399   :  { %2778 = vmatmul.bf16.gmra.mxu1 %v15338_v0 }
 0x39a   :  { %11736 = vmatmul.msk.bf16.gmra.mxu3 %vm512_vm0, %v15250_v56  ;;  %v2607_v44 = vmax.f32 %v2341_v57, %v2583_v26  ;;  %3276 = vmatpush.bf16.msrb.mxu1 %v13899_v43 }
 0x39c   :  { %v2619_v59 = vmax.f32 %v19785_v62, %v2607_v44 }
 0x39d   :  { %v2558_v11 = vpop.f32.mrf.mxu2  ;;  %v2808_v60 = vpop.f32.mrf.mxu3 }
 0x39e   :  { %v2559_v33 = vadd.f32 %v2558_v11, %v2490_v22  ;;  %v16359_v8 = vadd.f32 %v2808_v60, %v2740_v54  ;;  %v2741_v23 = vpop.f32.mrf.mxu1  ;;  %v2976_v48 = vpop.f32.mrf.mxu0  ;;  %v2863_v54 = vmax.f32 %v16324_v32, 0.0  ;;  %v19788_v22 = vld [vmem:[#allocation15_spill] sm:$0xff]  ;;  %v19789_v60 = vld [vmem:[#allocation17_spill] sm:$0xff] }
 0x39f   :  { %v2742_v38 = vadd.f32 %v2741_v23, %v19784_v36  ;;  %v2977_v35 = vadd.f32 %v2976_v48, %v15272_v1  ;;  %v13913_v23 = vld [vmem:[%s19351_s0 + $0xd0] sm:$0xff] }
 0x3a0   :  { %v2584_v2 = vmax.f32 %v2559_v33, 0.0  ;;  %3514 = vmatpush.bf16.msrb.mxu0 %v13913_v23 }
 0x3a1   :  { %3015 = vmatmul.bf16.gmra.mxu0 %v15279_v5 }
 0x3a2   :  { %v2608_v42 = vmax.f32 %v2342_v53, %v2584_v2  ;;  %11787 = vmatmul.msk.bf16.gmra.mxu2 %vm512_vm0, %v15215_v37  ;;  %v2864_v2 = vmax.f32 %v16341_v14, 0.0  ;;  %v13911_v14 = vld [vmem:[%s19351_s0 + $0xc0] sm:$0xff] }
 0x3a4   :  { %v2620_v3 = vmax.f32 %v19786_v16, %v2608_v42  ;;  %v13912_v42 = vld [vmem:[%s19351_s0 + $0xc8] sm:$0xff] }
 0x3a5   :  { %v2810_v7 = vpop.f32.mrf.mxu3  ;;  %v3045_v12 = vpop.f32.mrf.mxu2  ;;  %3515 = vmatpush.bf16.msrb.mxu0 %v13912_v42 }
 0x3a6   :  { %v14415_v52 = vpack.c.bf16 %v2620_v3, %v2619_v59  ;;  %v2811_v15 = vadd.f32 %v2810_v7, %v2742_v38  ;;  %v3046_v20 = vadd.f32 %v3045_v12, %v2977_v35  ;;  %v2744_v27 = vpop.f32.mrf.mxu1  ;;  %v2978_v10 = vpop.f32.mrf.mxu0  ;;  %v19790_v35 = vld [vmem:[#allocation16_spill] sm:$0xff] }
 0x3a7   :  { %v2745_v11 = vadd.f32 %v2744_v27, %v19788_v22  ;;  %v2979_v29 = vadd.f32 %v2978_v10, %v15300_v18  ;;  %v19791_v27 = vld [vmem:[#allocation22_spill] sm:$0xff] }
 0x3a8   :  { %14759 = vst [vmem:[#allocation2 + $0x1b8] sm:$0xff] %v14415_v52   ;;  %v3105_v47 = vmax.f32 %v3046_v20, 0.0  ;;  %v2865_v52 = vmax.f32 %v16359_v8, 0.0  ;;  %v13910_v10 = vld [vmem:[%s19351_s0 + $0xb8] sm:$0xff]  ;;  %v13909_v8 = vld [vmem:[%s19351_s0 + $0xb0] sm:$0xff]  ;;  %v2866_v42 = vmax.f32 %v2811_v15, 0.0 }
 0x3a9   :  { %2783 = vmatmul.bf16.gmra.mxu1 %v19787_v34  ;;  %3516 = vmatpush.bf16.msrb.mxu0 %v13911_v14 }
 0x3aa   :  { %v16379_v26 = vmax.f32 %v2863_v54, %v3105_v47  ;;  %11737 = vmatmul.msk.bf16.gmra.mxu3 %vm512_vm0, %v19789_v60  ;;  %v19792_v47 = vld [vmem:[#allocation13_spill] sm:$0xff] }
 0x3ad   :  { %v2813_v57 = vpop.f32.mrf.mxu3  ;;  %v3047_v33 = vpop.f32.mrf.mxu2  ;;  %3517 = vmatpush.bf16.msrb.mxu0 %v13910_v10 }
 0x3ae   :  { %v2814_v32 = vadd.f32 %v2813_v57, %v2745_v11  ;;  %v3048_v48 = vadd.f32 %v3047_v33, %v2979_v29  ;;  %v2746_v53 = vpop.f32.mrf.mxu1  ;;  %v2981_v44 = vpop.f32.mrf.mxu0  ;;  %v19793_v29 = vld [vmem:[#allocation19_spill] sm:$0xff] }
 0x3af   :  { %v2747_v62 = vadd.f32 %v2746_v53, %v19790_v35  ;;  %v2982_v59 = vadd.f32 %v2981_v44, %v15281_v6 }
 0x3b0   :  { %v3106_v50 = vmax.f32 %v3048_v48, 0.0  ;;  %v13917_v48 = vld [vmem:[%s19351_s0 + $0xf0] sm:$0xff] }
 0x3b1   :  { %3020 = vmatmul.bf16.gmra.mxu0 %v15338_v0  ;;  %3587 = vmatpush.bf16.msrb.mxu2 %v13917_v48  ;;  %v19797_v48 = vld [vmem:[#allocation7_spill] sm:$0xff] }
 0x3b2   :  { %v16393_v38 = vmax.f32 %v2864_v2, %v3106_v50  ;;  %11788 = vmatmul.msk.bf16.gmra.mxu2 %vm512_vm0, %v15250_v56  ;;  %3518 = vmatpush.bf16.msrb.mxu0 %v13909_v8 }
 0x3b5   :  { %v2815_v16 = vpop.f32.mrf.mxu3  ;;  %v3050_v3 = vpop.f32.mrf.mxu2 }
 0x3b6   :  { %v2816_v7 = vadd.f32 %v2815_v16, %v2747_v62  ;;  %v3051_v12 = vadd.f32 %v3050_v3, %v2982_v59  ;;  %v2749_v43 = vpop.f32.mrf.mxu1  ;;  %v2983_v45 = vpop.f32.mrf.mxu0  ;;  %v19794_v16 = vld [vmem:[#allocation14_spill] sm:$0xff] }
 0x3b7   :  { %v2750_v11 = vadd.f32 %v2749_v43, %v19792_v47  ;;  %v2984_v57 = vadd.f32 %v2983_v45, %v19784_v36 }
 0x3b8   :  { %v3107_v20 = vmax.f32 %v3051_v12, 0.0 }
 0x3b9   :  { %2788 = vmatmul.bf16.gmra.mxu1 %v19791_v27 }
 0x3ba   :  { %v16407_v54 = vmax.f32 %v2865_v52, %v3107_v20  ;;  %11738 = vmatmul.msk.bf16.gmra.mxu3 %vm512_vm0, %v19793_v29 }
 0x3bd   :  { %v2818_v33 = vpop.f32.mrf.mxu3  ;;  %v3052_v23 = vpop.f32.mrf.mxu2 }
 0x3be   :  { %v2819_v53 = vadd.f32 %v2818_v33, %v2750_v11  ;;  %v3053_v44 = vadd.f32 %v3052_v23, %v2984_v57  ;;  %v2751_v2 = vpop.f32.mrf.mxu1  ;;  %v2986_v50 = vpop.f32.mrf.mxu0  ;;  %v2867_v11 = vmax.f32 %v2814_v32, 0.0  ;;  %v19795_v57 = vld [vmem:[#allocation9_spill] sm:$0xff]  ;;  %v19796_v23 = vld [vmem:[#allocation24_spill] sm:$0xff] }
 0x3bf   :  { %v2752_v3 = vadd.f32 %v2751_v2, %v19794_v16  ;;  %v2987_v14 = vadd.f32 %v2986_v50, %v19788_v22 }
 0x3c0   :  { %v3108_v62 = vmax.f32 %v3053_v44, 0.0 }
 0x3c1   :  { %3025 = vmatmul.bf16.gmra.mxu0 %v19787_v34 }
 0x3c2   :  { %v16420_v59 = vmax.f32 %v2866_v42, %v3108_v62  ;;  %11789 = vmatmul.msk.bf16.gmra.mxu2 %vm512_vm0, %v19789_v60 }
 0x3c5   :  { %v2820_v12 = vpop.f32.mrf.mxu3  ;;  %v3055_v43 = vpop.f32.mrf.mxu2 }
 0x3c6   :  { %v2821_v45 = vadd.f32 %v2820_v12, %v2752_v3  ;;  %v3056_v52 = vadd.f32 %v3055_v43, %v2987_v14  ;;  %v2754_v20 = vpop.f32.mrf.mxu1  ;;  %v2988_v10 = vpop.f32.mrf.mxu0  ;;  %v2868_v12 = vmax.f32 %v2816_v7, 0.0 }
 0x3c7   :  { %v2755_v8 = vadd.f32 %v2754_v20, %v19796_v23  ;;  %v2989_v44 = vadd.f32 %v2988_v10, %v19790_v35 }
 0x3c8   :  { %v3109_v15 = vmax.f32 %v3056_v52, 0.0  ;;  %v19798_v52 = vld [vmem:[#allocation25_spill] sm:$0xff] }
 0x3c9   :  { %3277 = vmatmul.bf16.vlgmr.msrb.gmra.mxu1 %v19795_v57 }
 0x3ca   :  { %v16427_v33 = vmax.f32 %v2867_v11, %v3109_v15  ;;  %11831 = vmatmul.msk.bf16.vlgmr.msrb.gmra.mxu3 %vm512_vm0, %v19797_v48 }
 0x3cd   :  { %v2823_v2 = vpop.f32.mrf.mxu3  ;;  %v3057_v50 = vpop.f32.mrf.mxu2 }
 0x3ce   :  { %v2824_v42 = vadd.f32 %v2823_v2, %v2755_v8  ;;  %v3058_v62 = vadd.f32 %v3057_v50, %v2989_v44  ;;  %v2756_v3 = vpop.f32.mrf.mxu1  ;;  %v2991_v14 = vpop.f32.mrf.mxu0  ;;  %v2869_v50 = vmax.f32 %v2819_v53, 0.0 }
 0x3cf   :  { %v2757_v11 = vadd.f32 %v2756_v3, %v19798_v52  ;;  %v2992_v20 = vadd.f32 %v2991_v14, %v19792_v47  ;;  %v19801_v3 = vld [vmem:[#allocation8_spill] sm:$0xff] }
 0x3d0   :  { %v3110_v32 = vmax.f32 %v3058_v62, 0.0  ;;  %v19799_v62 = vld [vmem:[#allocation11_spill] sm:$0xff] }
 0x3d1   :  { %3030 = vmatmul.bf16.gmra.mxu0 %v19791_v27 }
 0x3d2   :  { %v16434_v43 = vmax.f32 %v2868_v12, %v3110_v32  ;;  %11790 = vmatmul.msk.bf16.gmra.mxu2 %vm512_vm0, %v19793_v29  ;;  %v19800_v12 = vld [vmem:[#allocation21_spill] sm:$0xff] }
 0x3d5   :  { %v2825_v10 = vpop.f32.mrf.mxu3  ;;  %v3060_v15 = vpop.f32.mrf.mxu2 }
 0x3d6   :  { %v2826_v35 = vadd.f32 %v2825_v10, %v2757_v11  ;;  %v3061_v8 = vadd.f32 %v3060_v15, %v2992_v20  ;;  %v2759_v44 = vpop.f32.mrf.mxu1  ;;  %v2993_v2 = vpop.f32.mrf.mxu0  ;;  %v2870_v15 = vmax.f32 %v2821_v45, 0.0 }
 0x3d7   :  { %v2760_v32 = vadd.f32 %v2759_v44, %v19800_v12  ;;  %v2994_v14 = vadd.f32 %v2993_v2, %v19794_v16 }
 0x3d8   :  { %v3111_v7 = vmax.f32 %v3061_v8, 0.0 }
 0x3d9   :  { %3282 = vmatmul.bf16.gmra.mxu1 %v19799_v62 }
 0x3da   :  { %v16441_v27 = vmax.f32 %v2869_v50, %v3111_v7  ;;  %11832 = vmatmul.msk.bf16.gmra.mxu3 %vm512_vm0, %v19801_v3  ;;  %v19802_v50 = vld [vmem:[#allocation23_spill] sm:$0xff] }
 0x3dd   :  { %v2828_v29 = vpop.f32.mrf.mxu3  ;;  %v3062_v47 = vpop.f32.mrf.mxu2 }
 0x3de   :  { %v2829_v60 = vadd.f32 %v2828_v29, %v2760_v32  ;;  %v3063_v11 = vadd.f32 %v3062_v47, %v2994_v14  ;;  %v2761_v20 = vpop.f32.mrf.mxu1  ;;  %v2996_v10 = vpop.f32.mrf.mxu0  ;;  %v2871_v14 = vmax.f32 %v2824_v42, 0.0 }
 0x3df   :  { %v2762_v7 = vadd.f32 %v2761_v20, %v19802_v50  ;;  %v2997_v44 = vadd.f32 %v2996_v10, %v19796_v23 }
 0x3e0   :  { %v3112_v53 = vmax.f32 %v3063_v11, 0.0  ;;  %v19803_v11 = vld [vmem:[#allocation12_spill] sm:$0xff] }
 0x3e1   :  { %3519 = vmatmul.bf16.vlgmr.msrb.gmra.mxu0 %v19795_v57 }
 0x3e2   :  { %v16448_v8 = vmax.f32 %v2870_v15, %v3112_v53  ;;  %11883 = vmatmul.msk.bf16.vlgmr.msrb.gmra.mxu2 %vm512_vm0, %v19797_v48  ;;  %v19804_v15 = vld [vmem:[#allocation10_spill] sm:$0xff] }
 0x3e5   :  { %v2830_v2 = vpop.f32.mrf.mxu3  ;;  %v3065_v16 = vpop.f32.mrf.mxu2 }
 0x3e6   :  { %v2831_v22 = vadd.f32 %v2830_v2, %v2762_v7  ;;  %v3066_v29 = vadd.f32 %v3065_v16, %v2997_v44  ;;  %v2764_v47 = vpop.f32.mrf.mxu1  ;;  %v2998_v32 = vpop.f32.mrf.mxu0  ;;  %v2872_v7 = vmax.f32 %v2826_v35, 0.0 }
 0x3e7   :  { %v2999_v20 = vadd.f32 %v2998_v32, %v19798_v52  ;;  %v2873_v52 = vmax.f32 %v2829_v60, 0.0 }
 0x3e8   :  { %v3113_v45 = vmax.f32 %v3066_v29, 0.0 }
 0x3e9   :  { %3287 = vmatmul.bf16.gmra.mxu1 %v19803_v11 }
 0x3ea   :  { %v16455_v57 = vmax.f32 %v2871_v14, %v3113_v45  ;;  %11833 = vmatmul.msk.bf16.gmra.mxu3 %vm512_vm0, %v19804_v15 }
 0x3ed   :  { %v2833_v10 = vpop.f32.mrf.mxu3  ;;  %v3067_v53 = vpop.f32.mrf.mxu2 }
 0x3ee   :  { %v3068_v48 = vadd.f32 %v3067_v53, %v2999_v20  ;;  %v2766_v23 = vpop.f32.mrf.mxu1  ;;  %v3001_v34 = vpop.f32.mrf.mxu0 }
 0x3ef   :  { %v3002_v44 = vadd.f32 %v3001_v34, %v19800_v12  ;;  %v2874_v12 = vmax.f32 %v2831_v22, 0.0 }
 0x3f0   :  { %v3114_v16 = vmax.f32 %v3068_v48, 0.0 }
 0x3f1   :  { %3524 = vmatmul.bf16.gmra.mxu0 %v19799_v62 }
 0x3f2   :  { %v16461_v42 = vmax.f32 %v2872_v7, %v3114_v16  ;;  %11884 = vmatmul.msk.bf16.gmra.mxu2 %vm512_vm0, %v19801_v3 }
 0x3f5   :  { %v2835_v2 = vpop.f32.mrf.mxu3  ;;  %v3070_v29 = vpop.f32.mrf.mxu2 }
 0x3f6   :  { %v3071_v14 = vadd.f32 %v3070_v29, %v3002_v44  ;;  %v2769_v32 = vpop.f32.mrf.mxu1  ;;  %v3003_v45 = vpop.f32.mrf.mxu0 }
 0x3f7   :  { %v3004_v48 = vadd.f32 %v3003_v45, %v19802_v50 }
 0x3f8   :  { %v3115_v20 = vmax.f32 %v3071_v14, 0.0 }
 0x3f9   :  { %3292 = vmatmul.bf16.gmra.mxu1 %v15100_v63 }
 0x3fa   :  { %v16467_v35 = vmax.f32 %v2873_v52, %v3115_v20  ;;  %11834 = vmatmul.msk.bf16.gmra.mxu3 %vm512_vm0, %v15051_v49  ;;  %v19807_v52 = vld [vmem:[#allocation26_spill] sm:$0xff] }
 0x3fb   :  { %v2765_v45 = vadd.f32 %v2764_v47, %v19807_v52 }
 0x3fc   :  { %19805 = vst [vmem:[#allocation27_spill] sm:$0xff] %v16467_v35 }
 0x3fd   :  { %v2838_v34 = vpop.f32.mrf.mxu3  ;;  %v3072_v53 = vpop.f32.mrf.mxu2  ;;  %v2834_v22 = vadd.f32 %v2833_v10, %v2765_v45 }
 0x3fe   :  { %v3073_v7 = vadd.f32 %v3072_v53, %v3004_v48  ;;  %v2771_v16 = vpop.f32.mrf.mxu1  ;;  %v3006_v3 = vpop.f32.mrf.mxu0  ;;  %v2767_v48 = vadd.f32 %v2766_v23, %v15434_v55 }
 0x3ff   :  { %v3007_v29 = vadd.f32 %v3006_v3, %v19807_v52 }
 0x400   :  { %v3116_v44 = vmax.f32 %v3073_v7, 0.0 }
 0x401   :  { %3529 = vmatmul.bf16.gmra.mxu0 %v19803_v11  ;;  %v2875_v11 = vmax.f32 %v2834_v22, 0.0 }
 0x402   :  { %v16473_v60 = vmax.f32 %v2874_v12, %v3116_v44  ;;  %11885 = vmatmul.msk.bf16.gmra.mxu2 %vm512_vm0, %v19804_v15  ;;  %v2836_v12 = vadd.f32 %v2835_v2, %v2767_v48 }
 0x404   :  { %19806 = vst [vmem:[#allocation28_spill] sm:$0xff] %v16473_v60  ;;  %v2876_v35 = vmax.f32 %v2836_v12, 0.0 }
 0x405   :  { %v2840_v14 = vpop.f32.mrf.mxu3  ;;  %v3075_v20 = vpop.f32.mrf.mxu2 }
 0x406   :  { %v2774_v50 = vpop.f32.mrf.mxu1  ;;  %v3008_v62 = vpop.f32.mrf.mxu0  ;;  %v3076_v53 = vadd.f32 %v3075_v20, %v3007_v29 }
 0x407   :  { %v3009_v44 = vadd.f32 %v3008_v62, %v15434_v55 }
 0x408   :  { %v3117_v7 = vmax.f32 %v3076_v53, 0.0 }
 0x409   :  { %3297 = vmatmul.bf16.gmra.mxu1 %v15134_v9 }
 0x40a   :  { %11835 = vmatmul.msk.bf16.gmra.mxu3 %vm512_vm0, %v15082_v58  ;;  %v3141_v36 = vmax.f32 %v2875_v11, %v3117_v7 }
 0x40c   :  { %v3153_v10 = vmax.f32 %v16379_v26, %v3141_v36 }
 0x40d   :  { %v2843_v3 = vpop.f32.mrf.mxu3  ;;  %v3077_v15 = vpop.f32.mrf.mxu2 }
 0x40e   :  { %v3078_v60 = vadd.f32 %v3077_v15, %v3009_v44  ;;  %v2776_v47 = vpop.f32.mrf.mxu1  ;;  %v3011_v52 = vpop.f32.mrf.mxu0  ;;  %v2770_v15 = vadd.f32 %v2769_v32, %v15358_v28 }
 0x40f   :  { %v3012_v62 = vadd.f32 %v3011_v52, %v15358_v28 }
 0x410   :  { %v3118_v23 = vmax.f32 %v3078_v60, 0.0  ;;  %v2772_v60 = vadd.f32 %v2771_v16, %v15240_v51  ;;  %v2839_v22 = vadd.f32 %v2838_v34, %v2770_v15 }
 0x411   :  { %3534 = vmatmul.bf16.gmra.mxu0 %v15100_v63 }
 0x412   :  { %v3142_v29 = vmax.f32 %v2876_v35, %v3118_v23  ;;  %11886 = vmatmul.msk.bf16.gmra.mxu2 %vm512_vm0, %v15051_v49  ;;  %v2841_v36 = vadd.f32 %v2840_v14, %v2772_v60  ;;  %v2877_v12 = vmax.f32 %v2839_v22, 0.0  ;;  %v2777_v22 = vadd.f32 %v2776_v47, %v15388_v13 }
 0x414   :  { %v3154_v2 = vmax.f32 %v16393_v38, %v3142_v29  ;;  %v2878_v16 = vmax.f32 %v2841_v36, 0.0 }
 0x415   :  { %v2845_v20 = vpop.f32.mrf.mxu3  ;;  %v3080_v45 = vpop.f32.mrf.mxu2 }
 0x416   :  { %v14420_v48 = vpack.c.bf16 %v3154_v2, %v3153_v10  ;;  %v16491_v53 = vpop.f32.mrf.mxu1  ;;  %v3013_v11 = vpop.f32.mrf.mxu0  ;;  %v3081_v35 = vadd.f32 %v3080_v45, %v3012_v62  ;;  %v2846_v47 = vadd.f32 %v2845_v20, %v2777_v22 }
 0x417   :  { %v3014_v38 = vadd.f32 %v3013_v11, %v15240_v51  ;;  %v2780_v22 = vadd.f32 %v16491_v53, %v15198_v30  ;;  %v13925_v53 = vld [vmem:[%s19351_s0 + $0xf0] sm:$0xff] }
 0x418   :  { %14760 = vst [vmem:[#allocation2 + $0x88] sm:$0xff] %v14420_v48   ;;  %v3119_v26 = vmax.f32 %v3081_v35, 0.0  ;;  %v2775_v48 = vadd.f32 %v2774_v50, %v15264_v61  ;;  %v13938_v50 = vld [vmem:[%s19351_s0 + $0x118] sm:$0xff] }
 0x419   :  { %3302 = vmatmul.bf16.gmra.mxu1 %v15171_v21  ;;  %4130 = vmatpush.bf16.msra.mxu2 %v13938_v50 }
 0x41a   :  { %11836 = vmatmul.msk.bf16.gmra.mxu3 %vm512_vm0, %v15116_v4  ;;  %v3143_v29 = vmax.f32 %v2877_v12, %v3119_v26  ;;  %v2844_v26 = vadd.f32 %v2843_v3, %v2775_v48  ;;  %v13936_v12 = vld [vmem:[%s19351_s0 + $0x108] sm:$0xff] }
 0x41b   :  { %4055 = vmatpush.bf16.msra.mxu0 %v13936_v12 }
 0x41c   :  { %v3155_v14 = vmax.f32 %v16407_v54, %v3143_v29  ;;  %v13928_v54 = vld [vmem:[%s19351_s0 + $0x108] sm:$0xff] }
 0x41d   :  { %v16498_v52 = vpop.f32.mrf.mxu3  ;;  %v3082_v32 = vpop.f32.mrf.mxu2  ;;  %3888 = vmatpush.bf16.msra.mxu3 %v13928_v54 }
 0x41e   :  { %v3083_v7 = vadd.f32 %v3082_v32, %v3014_v38  ;;  %v2781_v44 = vpop.f32.mrf.mxu1  ;;  %v3016_v23 = vpop.f32.mrf.mxu0 }
 0x41f   :  { %v3017_v62 = vadd.f32 %v3016_v23, %v15264_v61  ;;  %v2782_v50 = vadd.f32 %v2781_v44, %v15217_v39 }
 0x420   :  { %v3120_v10 = vmax.f32 %v3083_v7, 0.0 }
 0x421   :  { %3539 = vmatmul.bf16.gmra.mxu0 %v15134_v9 }
 0x422   :  { %v3144_v34 = vmax.f32 %v2878_v16, %v3120_v10  ;;  %11887 = vmatmul.msk.bf16.gmra.mxu2 %vm512_vm0, %v15082_v58  ;;  %v2879_v16 = vmax.f32 %v2844_v26, 0.0 }
 0x424   :  { %v3156_v2 = vmax.f32 %v16420_v59, %v3144_v34  ;;  %v13926_v59 = vld [vmem:[%s19351_s0 + $0xf8] sm:$0xff]  ;;  %v2880_v34 = vmax.f32 %v2846_v47, 0.0 }
 0x425   :  { %v2850_v45 = vpop.f32.mrf.mxu3  ;;  %v3085_v15 = vpop.f32.mrf.mxu2  ;;  %3813 = vmatpush.bf16.msra.mxu1 %v13926_v59 }
 0x426   :  { %v14425_v11 = vpack.c.bf16 %v3156_v2, %v3155_v14  ;;  %v16507_v60 = vpop.f32.mrf.mxu1  ;;  %v3018_v35 = vpop.f32.mrf.mxu0  ;;  %v3086_v36 = vadd.f32 %v3085_v15, %v3017_v62 }
 0x427   :  { %v3019_v32 = vadd.f32 %v3018_v35, %v15388_v13 }
 0x428   :  { %14761 = vst [vmem:[#allocation2] sm:$0xff] %v14425_v11   ;;  %v3121_v38 = vmax.f32 %v3086_v36, 0.0 }
 0x429   :  { %3307 = vmatmul.bf16.gmra.mxu1 %v15200_v31 }
 0x42a   :  { %11837 = vmatmul.msk.bf16.gmra.mxu3 %vm512_vm0, %v15156_v17  ;;  %v3145_v14 = vmax.f32 %v2879_v16, %v3121_v38  ;;  %3814 = vmatpush.bf16.msra.mxu1 %v13925_v53 }
 0x42c   :  { %v3157_v62 = vmax.f32 %v16427_v33, %v3145_v14  ;;  %v2849_v33 = vadd.f32 %v16498_v52, %v2780_v22 }
 0x42d   :  { %v2853_v7 = vpop.f32.mrf.mxu3  ;;  %v3087_v23 = vpop.f32.mrf.mxu2 }
 0x42e   :  { %v3088_v29 = vadd.f32 %v3087_v23, %v3019_v32  ;;  %v2786_v10 = vpop.f32.mrf.mxu1  ;;  %v3021_v3 = vpop.f32.mrf.mxu0  ;;  %v2881_v12 = vmax.f32 %v2849_v33, 0.0 }
 0x42f   :  { %v3022_v48 = vadd.f32 %v3021_v3, %v15198_v30 }
 0x430   :  { %v3122_v2 = vmax.f32 %v3088_v29, 0.0 }
 0x431   :  { %3544 = vmatmul.bf16.gmra.mxu0 %v15171_v21 }
 0x432   :  { %v3146_v20 = vmax.f32 %v2880_v34, %v3122_v2  ;;  %11888 = vmatmul.msk.bf16.gmra.mxu2 %vm512_vm0, %v15116_v4 }
 0x434   :  { %v3158_v15 = vmax.f32 %v16434_v43, %v3146_v20  ;;  %v2851_v43 = vadd.f32 %v2850_v45, %v2782_v50 }
 0x435   :  { %v2855_v11 = vpop.f32.mrf.mxu3  ;;  %v3090_v35 = vpop.f32.mrf.mxu2 }
 0x436   :  { %v14430_v36 = vpack.c.bf16 %v3158_v15, %v3157_v62  ;;  %v16534_v54 = vpop.f32.mrf.mxu1  ;;  %v3023_v59 = vpop.f32.mrf.mxu0  ;;  %v3091_v26 = vadd.f32 %v3090_v35, %v3022_v48  ;;  %v2882_v52 = vmax.f32 %v2851_v43, 0.0  ;;  %v2785_v48 = vadd.f32 %v16507_v60, %v15577_v41 }
 0x437   :  { %v3024_v38 = vadd.f32 %v3023_v59, %v15217_v39  ;;  %v2787_v59 = vadd.f32 %v2786_v10, %v15584_v40 }
 0x438   :  { %14762 = vst [vmem:[#allocation2 + $0x188] sm:$0xff] %v14430_v36   ;;  %v3123_v47 = vmax.f32 %v3091_v26, 0.0 }
 0x439   :  { %3312 = vmatmul.bf16.gmra.mxu1 %v15231_v46  ;;  %v2856_v60 = vadd.f32 %v2855_v11, %v2787_v59  ;;  %v13924_v11 = vld [vmem:[%s19351_s0 + $0xe8] sm:$0xff] }
 0x43a   :  { %11838 = vmatmul.msk.bf16.gmra.mxu3 %vm512_vm0, %v15181_v24  ;;  %v3147_v3 = vmax.f32 %v2881_v12, %v3123_v47  ;;  %3815 = vmatpush.bf16.msra.mxu1 %v13924_v11 }
 0x43c   :  { %v3159_v14 = vmax.f32 %v16441_v27, %v3147_v3  ;;  %v13935_v27 = vld [vmem:[%s19351_s0 + $0x100] sm:$0xff] }
 0x43d   :  { %v16545_v32 = vpop.f32.mrf.mxu3  ;;  %v3092_v44 = vpop.f32.mrf.mxu2  ;;  %4056 = vmatpush.bf16.msra.mxu0 %v13935_v27  ;;  %v13922_v27 = vld [vmem:[%s19351_s0 + $0xd8] sm:$0xff] }
 0x43e   :  { %v3093_v23 = vadd.f32 %v3092_v44, %v3024_v38  ;;  %v2791_v16 = vpop.f32.mrf.mxu1  ;;  %v3026_v29 = vpop.f32.mrf.mxu0 }
 0x43f   :  { %v3027_v20 = vadd.f32 %v3026_v29, %v15577_v41  ;;  %v2884_v29 = vmax.f32 %v2856_v60, 0.0 }
 0x440   :  { %v3124_v34 = vmax.f32 %v3093_v23, 0.0 }
 0x441   :  { %3549 = vmatmul.bf16.gmra.mxu0 %v15200_v31 }
 0x442   :  { %v3148_v45 = vmax.f32 %v2882_v52, %v3124_v34  ;;  %11889 = vmatmul.msk.bf16.gmra.mxu2 %vm512_vm0, %v15156_v17 }
 0x444   :  { %v3160_v2 = vmax.f32 %v16448_v8, %v3148_v45  ;;  %v2854_v8 = vadd.f32 %v2853_v7, %v2785_v48  ;;  %v13923_v48 = vld [vmem:[%s19351_s0 + $0xe0] sm:$0xff] }
 0x445   :  { %v2860_v62 = vpop.f32.mrf.mxu3  ;;  %v3095_v15 = vpop.f32.mrf.mxu2  ;;  %3816 = vmatpush.bf16.msra.mxu1 %v13923_v48 }
 0x446   :  { %v14435_v35 = vpack.c.bf16 %v3160_v2, %v3159_v14  ;;  %v3028_v22 = vpop.f32.mrf.mxu0  ;;  %v3278_v36 = vpop.f32.mrf.mxu1  ;;  %v3096_v50 = vadd.f32 %v3095_v15, %v3027_v20  ;;  %v2883_v38 = vmax.f32 %v2854_v8, 0.0 }
 0x447   :  { %v3279_v26 = vadd.f32 %v3278_v36, %v15272_v1  ;;  %v3029_v43 = vadd.f32 %v3028_v22, %v15584_v40 }
 0x448   :  { %14763 = vst [vmem:[#allocation2 + $0x38] sm:$0xff] %v14435_v35   ;;  %v3125_v33 = vmax.f32 %v3096_v50, 0.0  ;;  %v2790_v35 = vadd.f32 %v16534_v54, %v15443_v19 }
 0x449   :  { %3317 = vmatmul.bf16.gmra.mxu1 %v15279_v5 }
 0x44a   :  { %11839 = vmatmul.msk.bf16.gmra.mxu3 %vm512_vm0, %v15215_v37  ;;  %v3149_v7 = vmax.f32 %v2883_v38, %v3125_v33  ;;  %v2859_v8 = vadd.f32 %v16545_v32, %v2790_v35  ;;  %3817 = vmatpush.bf16.msra.mxu1 %v13922_v27  ;;  %v13921_v32 = vld [vmem:[%s19351_s0 + $0xd0] sm:$0xff] }
 0x44c   :  { %v3161_v45 = vmax.f32 %v16455_v57, %v3149_v7  ;;  %v2792_v57 = vadd.f32 %v2791_v16, %v15559_v25 }
 0x44d   :  { %v3097_v10 = vpop.f32.mrf.mxu2  ;;  %v3347_v47 = vpop.f32.mrf.mxu3 }
 0x44e   :  { %v3098_v53 = vadd.f32 %v3097_v10, %v3029_v43  ;;  %v16564_v44 = vadd.f32 %v3347_v47, %v3279_v26  ;;  %v3031_v12 = vpop.f32.mrf.mxu0  ;;  %v3280_v23 = vpop.f32.mrf.mxu1  ;;  %v13934_v26 = vld [vmem:[%s19351_s0 + $0xf8] sm:$0xff]  ;;  %v2861_v16 = vadd.f32 %v2860_v62, %v2792_v57  ;;  %v2885_v47 = vmax.f32 %v2859_v8, 0.0  ;;  %3818 = vmatpush.bf16.msra.mxu1 %v13921_v32 }
 0x44f   :  { %v3281_v34 = vadd.f32 %v3280_v23, %v15300_v18  ;;  %v3032_v2 = vadd.f32 %v3031_v12, %v15443_v19  ;;  %4057 = vmatpush.bf16.msra.mxu0 %v13934_v26 }
 0x450   :  { %v3126_v52 = vmax.f32 %v3098_v53, 0.0 }
 0x451   :  { %3554 = vmatmul.bf16.gmra.mxu0 %v15231_v46 }
 0x452   :  { %v3150_v3 = vmax.f32 %v2884_v29, %v3126_v52  ;;  %11890 = vmatmul.msk.bf16.gmra.mxu2 %vm512_vm0, %v15181_v24  ;;  %v2886_v29 = vmax.f32 %v2861_v16, 0.0  ;;  %v13920_v52 = vld [vmem:[%s19351_s0 + $0xc8] sm:$0xff] }
 0x453   :  { %3819 = vmatpush.bf16.msra.mxu1 %v13920_v52  ;;  %v19811_v16 = vld [vmem:[#allocation20_spill] sm:$0xff] }
 0x454   :  { %v3162_v14 = vmax.f32 %v16461_v42, %v3150_v3  ;;  %v19808_v3 = vld [vmem:[#allocation18_spill] sm:$0xff] }
 0x455   :  { %v3100_v20 = vpop.f32.mrf.mxu2  ;;  %v3349_v15 = vpop.f32.mrf.mxu3 }
 0x456   :  { %v14440_v22 = vpack.c.bf16 %v3162_v14, %v3161_v45  ;;  %v16581_v36 = vadd.f32 %v3349_v15, %v3281_v34  ;;  %v3033_v59 = vpop.f32.mrf.mxu0  ;;  %v3283_v50 = vpop.f32.mrf.mxu1  ;;  %v3101_v42 = vadd.f32 %v3100_v20, %v3032_v2  ;;  %v19809_v14 = vld [vmem:[#allocation27_spill] sm:$0xff]  ;;  %v19810_v20 = vld [vmem:[#allocation28_spill] sm:$0xff] }
 0x457   :  { %v3284_v54 = vadd.f32 %v3283_v50, %v15281_v6  ;;  %v3034_v33 = vadd.f32 %v3033_v59, %v15559_v25  ;;  %v13927_v59 = vld [vmem:[%s19351_s0 + $0x100] sm:$0xff] }
 0x458   :  { %14764 = vst [vmem:[#allocation2 + $0x1a8] sm:$0xff] %v14440_v22   ;;  %v3127_v60 = vmax.f32 %v3101_v42, 0.0  ;;  %v13919_v22 = vld [vmem:[%s19351_s0 + $0xc0] sm:$0xff]  ;;  %3889 = vmatpush.bf16.msra.mxu3 %v13927_v59 }
 0x459   :  { %3322 = vmatmul.bf16.gmra.mxu1 %v15338_v0 }
 0x45a   :  { %11840 = vmatmul.msk.bf16.gmra.mxu3 %vm512_vm0, %v15250_v56  ;;  %v3151_v7 = vmax.f32 %v2885_v47, %v3127_v60  ;;  %3820 = vmatpush.bf16.msra.mxu1 %v13919_v22 }
 0x45c   :  { %v3163_v2 = vmax.f32 %v19809_v14, %v3151_v7 }
 0x45d   :  { %v3102_v43 = vpop.f32.mrf.mxu2  ;;  %v3352_v10 = vpop.f32.mrf.mxu3 }
 0x45e   :  { %v3103_v38 = vadd.f32 %v3102_v43, %v3034_v33  ;;  %v16599_v53 = vadd.f32 %v3352_v10, %v3284_v54  ;;  %v3285_v12 = vpop.f32.mrf.mxu1  ;;  %v3520_v23 = vpop.f32.mrf.mxu0  ;;  %v3407_v54 = vmax.f32 %v16564_v44, 0.0  ;;  %v19812_v33 = vld [vmem:[#allocation15_spill] sm:$0xff]  ;;  %v19813_v10 = vld [vmem:[#allocation17_spill] sm:$0xff] }
 0x45f   :  { %v3286_v34 = vadd.f32 %v3285_v12, %v19808_v3  ;;  %v3521_v45 = vadd.f32 %v3520_v23, %v15272_v1  ;;  %v13933_v12 = vld [vmem:[%s19351_s0 + $0xf0] sm:$0xff] }
 0x460   :  { %v3128_v62 = vmax.f32 %v3103_v38, 0.0  ;;  %4058 = vmatpush.bf16.msra.mxu0 %v13933_v12 }
 0x461   :  { %3559 = vmatmul.bf16.gmra.mxu0 %v15279_v5 }
 0x462   :  { %v3152_v11 = vmax.f32 %v2886_v29, %v3128_v62  ;;  %11891 = vmatmul.msk.bf16.gmra.mxu2 %vm512_vm0, %v15215_v37  ;;  %v3408_v62 = vmax.f32 %v16581_v36, 0.0  ;;  %v13931_v36 = vld [vmem:[%s19351_s0 + $0xe0] sm:$0xff] }
 0x464   :  { %v3164_v15 = vmax.f32 %v19810_v20, %v3152_v11  ;;  %v13932_v11 = vld [vmem:[%s19351_s0 + $0xe8] sm:$0xff] }
 0x465   :  { %v3354_v48 = vpop.f32.mrf.mxu3  ;;  %v3589_v35 = vpop.f32.mrf.mxu2  ;;  %4059 = vmatpush.bf16.msra.mxu0 %v13932_v11 }
 0x466   :  { %v14445_v50 = vpack.c.bf16 %v3164_v15, %v3163_v2  ;;  %v3355_v57 = vadd.f32 %v3354_v48, %v3286_v34  ;;  %v3590_v42 = vadd.f32 %v3589_v35, %v3521_v45  ;;  %v3288_v27 = vpop.f32.mrf.mxu1  ;;  %v3522_v8 = vpop.f32.mrf.mxu0  ;;  %v19814_v45 = vld [vmem:[#allocation16_spill] sm:$0xff] }
 0x467   :  { %v3289_v43 = vadd.f32 %v3288_v27, %v19812_v33  ;;  %v3523_v32 = vadd.f32 %v3522_v8, %v15300_v18  ;;  %v19815_v27 = vld [vmem:[#allocation22_spill] sm:$0xff] }
 0x468   :  { %14765 = vst [vmem:[#allocation2 + $0x220] sm:$0xff] %v14445_v50   ;;  %v3649_v26 = vmax.f32 %v3590_v42, 0.0  ;;  %v3409_v50 = vmax.f32 %v16599_v53, 0.0  ;;  %v13930_v8 = vld [vmem:[%s19351_s0 + $0xd8] sm:$0xff]  ;;  %v13929_v53 = vld [vmem:[%s19351_s0 + $0xd0] sm:$0xff]  ;;  %v3410_v11 = vmax.f32 %v3355_v57, 0.0 }
 0x469   :  { %3327 = vmatmul.bf16.gmra.mxu1 %v19811_v16  ;;  %4060 = vmatpush.bf16.msra.mxu0 %v13931_v36 }
 0x46a   :  { %v16619_v60 = vmax.f32 %v3407_v54, %v3649_v26  ;;  %11841 = vmatmul.msk.bf16.gmra.mxu3 %vm512_vm0, %v19813_v10  ;;  %v19816_v26 = vld [vmem:[#allocation13_spill] sm:$0xff] }
 0x46d   :  { %v3357_v47 = vpop.f32.mrf.mxu3  ;;  %v3591_v38 = vpop.f32.mrf.mxu2  ;;  %4061 = vmatpush.bf16.msra.mxu0 %v13930_v8 }
 0x46e   :  { %v3358_v44 = vadd.f32 %v3357_v47, %v3289_v43  ;;  %v3592_v23 = vadd.f32 %v3591_v38, %v3523_v32  ;;  %v3290_v29 = vpop.f32.mrf.mxu1  ;;  %v3525_v7 = vpop.f32.mrf.mxu0  ;;  %v19817_v32 = vld [vmem:[#allocation19_spill] sm:$0xff] }
 0x46f   :  { %v3291_v14 = vadd.f32 %v3290_v29, %v19814_v45  ;;  %v3526_v2 = vadd.f32 %v3525_v7, %v15281_v6 }
 0x470   :  { %v3650_v52 = vmax.f32 %v3592_v23, 0.0  ;;  %v13937_v23 = vld [vmem:[%s19351_s0 + $0x110] sm:$0xff] }
 0x471   :  { %3564 = vmatmul.bf16.gmra.mxu0 %v15338_v0  ;;  %4131 = vmatpush.bf16.msra.mxu2 %v13937_v23  ;;  %v19821_v23 = vld [vmem:[#allocation7_spill] sm:$0xff] }
 0x472   :  { %v16633_v34 = vmax.f32 %v3408_v62, %v3650_v52  ;;  %11892 = vmatmul.msk.bf16.gmra.mxu2 %vm512_vm0, %v15250_v56  ;;  %4062 = vmatpush.bf16.msra.mxu0 %v13929_v53 }
 0x475   :  { %v3359_v20 = vpop.f32.mrf.mxu3  ;;  %v3594_v15 = vpop.f32.mrf.mxu2 }
 0x476   :  { %v3360_v48 = vadd.f32 %v3359_v20, %v3291_v14  ;;  %v3595_v35 = vadd.f32 %v3594_v15, %v3526_v2  ;;  %v3293_v22 = vpop.f32.mrf.mxu1  ;;  %v3527_v59 = vpop.f32.mrf.mxu0  ;;  %v19818_v20 = vld [vmem:[#allocation14_spill] sm:$0xff] }
 0x477   :  { %v3294_v43 = vadd.f32 %v3293_v22, %v19816_v26  ;;  %v3528_v47 = vadd.f32 %v3527_v59, %v19808_v3 }
 0x478   :  { %v3651_v42 = vmax.f32 %v3595_v35, 0.0 }
 0x479   :  { %3332 = vmatmul.bf16.gmra.mxu1 %v19815_v27 }
 0x47a   :  { %v16647_v54 = vmax.f32 %v3409_v50, %v3651_v42  ;;  %11842 = vmatmul.msk.bf16.gmra.mxu3 %vm512_vm0, %v19817_v32 }
 0x47d   :  { %v3362_v38 = vpop.f32.mrf.mxu3  ;;  %v3596_v12 = vpop.f32.mrf.mxu2 }
 0x47e   :  { %v3363_v29 = vadd.f32 %v3362_v38, %v3294_v43  ;;  %v3597_v7 = vadd.f32 %v3596_v12, %v3528_v47  ;;  %v3295_v62 = vpop.f32.mrf.mxu1  ;;  %v3530_v52 = vpop.f32.mrf.mxu0  ;;  %v3411_v43 = vmax.f32 %v3358_v44, 0.0  ;;  %v19819_v47 = vld [vmem:[#allocation9_spill] sm:$0xff]  ;;  %v19820_v12 = vld [vmem:[#allocation24_spill] sm:$0xff] }
 0x47f   :  { %v3296_v15 = vadd.f32 %v3295_v62, %v19818_v20  ;;  %v3531_v36 = vadd.f32 %v3530_v52, %v19812_v33 }
 0x480   :  { %v3652_v14 = vmax.f32 %v3597_v7, 0.0 }
 0x481   :  { %3569 = vmatmul.bf16.gmra.mxu0 %v19811_v16 }
 0x482   :  { %v16660_v2 = vmax.f32 %v3410_v11, %v3652_v14  ;;  %11893 = vmatmul.msk.bf16.gmra.mxu2 %vm512_vm0, %v19813_v10 }
 0x485   :  { %v3364_v35 = vpop.f32.mrf.mxu3  ;;  %v3599_v22 = vpop.f32.mrf.mxu2 }
 0x486   :  { %v3365_v59 = vadd.f32 %v3364_v35, %v3296_v15  ;;  %v3600_v50 = vadd.f32 %v3599_v22, %v3531_v36  ;;  %v3298_v42 = vpop.f32.mrf.mxu1  ;;  %v3532_v8 = vpop.f32.mrf.mxu0  ;;  %v3412_v35 = vmax.f32 %v3360_v48, 0.0 }
 0x487   :  { %v3299_v53 = vadd.f32 %v3298_v42, %v19820_v12  ;;  %v3533_v7 = vadd.f32 %v3532_v8, %v19814_v45 }
 0x488   :  { %v3653_v57 = vmax.f32 %v3600_v50, 0.0  ;;  %v19822_v50 = vld [vmem:[#allocation25_spill] sm:$0xff] }
 0x489   :  { %3821 = vmatmul.bf16.vlgmr.msra.gmra.mxu1 %v19819_v47 }
 0x48a   :  { %v16667_v38 = vmax.f32 %v3411_v43, %v3653_v57  ;;  %11935 = vmatmul.msk.bf16.vlgmr.msra.gmra.mxu3 %vm512_vm0, %v19821_v23 }
 0x48d   :  { %v3367_v62 = vpop.f32.mrf.mxu3  ;;  %v3601_v52 = vpop.f32.mrf.mxu2 }
 0x48e   :  { %v3368_v11 = vadd.f32 %v3367_v62, %v3299_v53  ;;  %v3602_v14 = vadd.f32 %v3601_v52, %v3533_v7  ;;  %v3300_v15 = vpop.f32.mrf.mxu1  ;;  %v3535_v36 = vpop.f32.mrf.mxu0  ;;  %v3413_v52 = vmax.f32 %v3363_v29, 0.0 }
 0x48f   :  { %v3301_v43 = vadd.f32 %v3300_v15, %v19822_v50  ;;  %v3536_v42 = vadd.f32 %v3535_v36, %v19816_v26  ;;  %v19825_v15 = vld [vmem:[#allocation8_spill] sm:$0xff] }
 0x490   :  { %v3654_v44 = vmax.f32 %v3602_v14, 0.0  ;;  %v19823_v14 = vld [vmem:[#allocation11_spill] sm:$0xff] }
 0x491   :  { %3574 = vmatmul.bf16.gmra.mxu0 %v19815_v27 }
 0x492   :  { %v16674_v22 = vmax.f32 %v3412_v35, %v3654_v44  ;;  %11894 = vmatmul.msk.bf16.gmra.mxu2 %vm512_vm0, %v19817_v32  ;;  %v19824_v35 = vld [vmem:[#allocation21_spill] sm:$0xff] }
 0x495   :  { %v3369_v8 = vpop.f32.mrf.mxu3  ;;  %v3604_v57 = vpop.f32.mrf.mxu2 }
 0x496   :  { %v3370_v45 = vadd.f32 %v3369_v8, %v3301_v43  ;;  %v3605_v53 = vadd.f32 %v3604_v57, %v3536_v42  ;;  %v3303_v7 = vpop.f32.mrf.mxu1  ;;  %v3537_v62 = vpop.f32.mrf.mxu0  ;;  %v3414_v57 = vmax.f32 %v3365_v59, 0.0 }
 0x497   :  { %v3304_v44 = vadd.f32 %v3303_v7, %v19824_v35  ;;  %v3538_v36 = vadd.f32 %v3537_v62, %v19818_v20 }
 0x498   :  { %v3655_v48 = vmax.f32 %v3605_v53, 0.0 }
 0x499   :  { %3826 = vmatmul.bf16.gmra.mxu1 %v19823_v14 }
 0x49a   :  { %v16681_v27 = vmax.f32 %v3413_v52, %v3655_v48  ;;  %11936 = vmatmul.msk.bf16.gmra.mxu3 %vm512_vm0, %v19825_v15  ;;  %v19826_v52 = vld [vmem:[#allocation23_spill] sm:$0xff] }
 0x49d   :  { %v3372_v32 = vpop.f32.mrf.mxu3  ;;  %v3606_v26 = vpop.f32.mrf.mxu2 }
 0x49e   :  { %v3373_v10 = vadd.f32 %v3372_v32, %v3304_v44  ;;  %v3607_v43 = vadd.f32 %v3606_v26, %v3538_v36  ;;  %v3305_v42 = vpop.f32.mrf.mxu1  ;;  %v3540_v8 = vpop.f32.mrf.mxu0  ;;  %v3415_v36 = vmax.f32 %v3368_v11, 0.0 }
 0x49f   :  { %v3306_v48 = vadd.f32 %v3305_v42, %v19826_v52  ;;  %v3541_v7 = vadd.f32 %v3540_v8, %v19820_v12 }
 0x4a0   :  { %v3656_v29 = vmax.f32 %v3607_v43, 0.0  ;;  %v19827_v43 = vld [vmem:[#allocation12_spill] sm:$0xff] }
 0x4a1   :  { %4063 = vmatmul.bf16.vlgmr.msra.gmra.mxu0 %v19819_v47 }
 0x4a2   :  { %v16688_v53 = vmax.f32 %v3414_v57, %v3656_v29  ;;  %11987 = vmatmul.msk.bf16.vlgmr.msra.gmra.mxu2 %vm512_vm0, %v19821_v23  ;;  %v19828_v57 = vld [vmem:[#allocation10_spill] sm:$0xff] }
 0x4a5   :  { %v3374_v62 = vpop.f32.mrf.mxu3  ;;  %v3609_v20 = vpop.f32.mrf.mxu2 }
 0x4a6   :  { %v3375_v33 = vadd.f32 %v3374_v62, %v3306_v48  ;;  %v3610_v32 = vadd.f32 %v3609_v20, %v3541_v7  ;;  %v3308_v26 = vpop.f32.mrf.mxu1  ;;  %v3542_v44 = vpop.f32.mrf.mxu0  ;;  %v3416_v48 = vmax.f32 %v3370_v45, 0.0 }
 0x4a7   :  { %v3543_v42 = vadd.f32 %v3542_v44, %v19822_v50  ;;  %v3417_v50 = vmax.f32 %v3373_v10, 0.0 }
 0x4a8   :  { %v3657_v59 = vmax.f32 %v3610_v32, 0.0 }
 0x4a9   :  { %3831 = vmatmul.bf16.gmra.mxu1 %v19827_v43 }
 0x4aa   :  { %v16695_v47 = vmax.f32 %v3415_v36, %v3657_v59  ;;  %11937 = vmatmul.msk.bf16.gmra.mxu3 %vm512_vm0, %v19828_v57 }
 0x4ad   :  { %v3377_v8 = vpop.f32.mrf.mxu3  ;;  %v3611_v29 = vpop.f32.mrf.mxu2 }
 0x4ae   :  { %v3612_v23 = vadd.f32 %v3611_v29, %v3543_v42  ;;  %v3310_v12 = vpop.f32.mrf.mxu1  ;;  %v3545_v16 = vpop.f32.mrf.mxu0 }
 0x4af   :  { %v3546_v7 = vadd.f32 %v3545_v16, %v19824_v35  ;;  %v3418_v35 = vmax.f32 %v3375_v33, 0.0 }
 0x4b0   :  { %v3658_v20 = vmax.f32 %v3612_v23, 0.0 }
 0x4b1   :  { %4068 = vmatmul.bf16.gmra.mxu0 %v19823_v14 }
 0x4b2   :  { %v16701_v11 = vmax.f32 %v3416_v48, %v3658_v20  ;;  %11988 = vmatmul.msk.bf16.gmra.mxu2 %vm512_vm0, %v19825_v15 }
 0x4b5   :  { %v3379_v62 = vpop.f32.mrf.mxu3  ;;  %v3614_v32 = vpop.f32.mrf.mxu2 }
 0x4b6   :  { %v3615_v36 = vadd.f32 %v3614_v32, %v3546_v7  ;;  %v3313_v44 = vpop.f32.mrf.mxu1  ;;  %v3547_v59 = vpop.f32.mrf.mxu0 }
 0x4b7   :  { %v3548_v23 = vadd.f32 %v3547_v59, %v19826_v52 }
 0x4b8   :  { %v3659_v42 = vmax.f32 %v3615_v36, 0.0 }
 0x4b9   :  { %3836 = vmatmul.bf16.gmra.mxu1 %v15100_v63 }
 0x4ba   :  { %v16707_v45 = vmax.f32 %v3417_v50, %v3659_v42  ;;  %11938 = vmatmul.msk.bf16.gmra.mxu3 %vm512_vm0, %v15051_v49  ;;  %v19831_v50 = vld [vmem:[#allocation26_spill] sm:$0xff] }
 0x4bb   :  { %v3309_v59 = vadd.f32 %v3308_v26, %v19831_v50 }
 0x4bc   :  { %19829 = vst [vmem:[#allocation27_spill] sm:$0xff] %v16707_v45 }
 0x4bd   :  { %v3382_v16 = vpop.f32.mrf.mxu3  ;;  %v3616_v29 = vpop.f32.mrf.mxu2  ;;  %v3378_v33 = vadd.f32 %v3377_v8, %v3309_v59 }
 0x4be   :  { %v3617_v48 = vadd.f32 %v3616_v29, %v3548_v23  ;;  %v3315_v20 = vpop.f32.mrf.mxu1  ;;  %v3550_v15 = vpop.f32.mrf.mxu0  ;;  %v3311_v23 = vadd.f32 %v3310_v12, %v15434_v55 }
 0x4bf   :  { %v3551_v32 = vadd.f32 %v3550_v15, %v19831_v50 }
 0x4c0   :  { %v3660_v7 = vmax.f32 %v3617_v48, 0.0 }
 0x4c1   :  { %4073 = vmatmul.bf16.gmra.mxu0 %v19827_v43  ;;  %v3419_v43 = vmax.f32 %v3378_v33, 0.0 }
 0x4c2   :  { %v16713_v10 = vmax.f32 %v3418_v35, %v3660_v7  ;;  %11989 = vmatmul.msk.bf16.gmra.mxu2 %vm512_vm0, %v19828_v57  ;;  %v3380_v35 = vadd.f32 %v3379_v62, %v3311_v23 }
 0x4c4   :  { %19830 = vst [vmem:[#allocation28_spill] sm:$0xff] %v16713_v10  ;;  %v3420_v45 = vmax.f32 %v3380_v35, 0.0 }
 0x4c5   :  { %v3384_v36 = vpop.f32.mrf.mxu3  ;;  %v3619_v42 = vpop.f32.mrf.mxu2 }
 0x4c6   :  { %v3318_v52 = vpop.f32.mrf.mxu1  ;;  %v3552_v14 = vpop.f32.mrf.mxu0  ;;  %v3620_v29 = vadd.f32 %v3619_v42, %v3551_v32 }
 0x4c7   :  { %v3553_v7 = vadd.f32 %v3552_v14, %v15434_v55 }
 0x4c8   :  { %v3661_v48 = vmax.f32 %v3620_v29, 0.0 }
 0x4c9   :  { %3841 = vmatmul.bf16.gmra.mxu1 %v15134_v9 }
 0x4ca   :  { %11939 = vmatmul.msk.bf16.gmra.mxu3 %vm512_vm0, %v15082_v58  ;;  %v3685_v3 = vmax.f32 %v3419_v43, %v3661_v48 }
 0x4cc   :  { %v3697_v8 = vmax.f32 %v16619_v60, %v3685_v3 }
 0x4cd   :  { %v3387_v15 = vpop.f32.mrf.mxu3  ;;  %v3621_v57 = vpop.f32.mrf.mxu2 }
 0x4ce   :  { %v3622_v10 = vadd.f32 %v3621_v57, %v3553_v7  ;;  %v3320_v26 = vpop.f32.mrf.mxu1  ;;  %v3555_v50 = vpop.f32.mrf.mxu0  ;;  %v3314_v57 = vadd.f32 %v3313_v44, %v15358_v28 }
 0x4cf   :  { %v3556_v14 = vadd.f32 %v3555_v50, %v15358_v28 }
 0x4d0   :  { %v3662_v12 = vmax.f32 %v3622_v10, 0.0  ;;  %v3316_v10 = vadd.f32 %v3315_v20, %v15240_v51  ;;  %v3383_v33 = vadd.f32 %v3382_v16, %v3314_v57 }
 0x4d1   :  { %4078 = vmatmul.bf16.gmra.mxu0 %v15100_v63 }
 0x4d2   :  { %v3686_v32 = vmax.f32 %v3420_v45, %v3662_v12  ;;  %11990 = vmatmul.msk.bf16.gmra.mxu2 %vm512_vm0, %v15051_v49  ;;  %v3385_v3 = vadd.f32 %v3384_v36, %v3316_v10  ;;  %v3421_v35 = vmax.f32 %v3383_v33, 0.0  ;;  %v3321_v33 = vadd.f32 %v3320_v26, %v15388_v13 }
 0x4d4   :  { %v3698_v62 = vmax.f32 %v16633_v34, %v3686_v32  ;;  %v3422_v20 = vmax.f32 %v3385_v3, 0.0 }
 0x4d5   :  { %v3389_v42 = vpop.f32.mrf.mxu3  ;;  %v3624_v59 = vpop.f32.mrf.mxu2 }
 0x4d6   :  { %v14450_v23 = vpack.c.bf16 %v3698_v62, %v3697_v8  ;;  %v16731_v29 = vpop.f32.mrf.mxu1  ;;  %v3557_v43 = vpop.f32.mrf.mxu0  ;;  %v3625_v45 = vadd.f32 %v3624_v59, %v3556_v14  ;;  %v3390_v26 = vadd.f32 %v3389_v42, %v3321_v33 }
 0x4d7   :  { %v3558_v34 = vadd.f32 %v3557_v43, %v15240_v51  ;;  %v3324_v33 = vadd.f32 %v16731_v29, %v15198_v30  ;;  %v13945_v29 = vld [vmem:[%s19351_s0 + $0x110] sm:$0xff] }
 0x4d8   :  { %14766 = vst [vmem:[#allocation2 + $0x1e8] sm:$0xff] %v14450_v23   ;;  %v3663_v60 = vmax.f32 %v3625_v45, 0.0  ;;  %v3319_v23 = vadd.f32 %v3318_v52, %v15264_v61  ;;  %v13958_v52 = vld [vmem:[%s19351_s0 + $0x138] sm:$0xff] }
 0x4d9   :  { %3846 = vmatmul.bf16.gmra.mxu1 %v15171_v21  ;;  %4674 = vmatpush.bf16.msrb.mxu2 %v13958_v52 }
 0x4da   :  { %11940 = vmatmul.msk.bf16.gmra.mxu3 %vm512_vm0, %v15116_v4  ;;  %v3687_v32 = vmax.f32 %v3421_v35, %v3663_v60  ;;  %v3388_v60 = vadd.f32 %v3387_v15, %v3319_v23  ;;  %v13956_v35 = vld [vmem:[%s19351_s0 + $0x128] sm:$0xff] }
 0x4db   :  { %4599 = vmatpush.bf16.msrb.mxu0 %v13956_v35 }
 0x4dc   :  { %v3699_v36 = vmax.f32 %v16647_v54, %v3687_v32  ;;  %v13948_v54 = vld [vmem:[%s19351_s0 + $0x128] sm:$0xff] }
 0x4dd   :  { %v16738_v50 = vpop.f32.mrf.mxu3  ;;  %v3626_v44 = vpop.f32.mrf.mxu2  ;;  %4432 = vmatpush.bf16.msrb.mxu3 %v13948_v54 }
 0x4de   :  { %v3627_v48 = vadd.f32 %v3626_v44, %v3558_v34  ;;  %v3325_v7 = vpop.f32.mrf.mxu1  ;;  %v3560_v12 = vpop.f32.mrf.mxu0 }
 0x4df   :  { %v3561_v14 = vadd.f32 %v3560_v12, %v15264_v61  ;;  %v3326_v52 = vadd.f32 %v3325_v7, %v15217_v39 }
 0x4e0   :  { %v3664_v8 = vmax.f32 %v3627_v48, 0.0 }
 0x4e1   :  { %4083 = vmatmul.bf16.gmra.mxu0 %v15134_v9 }
 0x4e2   :  { %v3688_v16 = vmax.f32 %v3422_v20, %v3664_v8  ;;  %11991 = vmatmul.msk.bf16.gmra.mxu2 %vm512_vm0, %v15082_v58  ;;  %v3423_v20 = vmax.f32 %v3388_v60, 0.0 }
 0x4e4   :  { %v3700_v62 = vmax.f32 %v16660_v2, %v3688_v16  ;;  %v13946_v2 = vld [vmem:[%s19351_s0 + $0x118] sm:$0xff]  ;;  %v3424_v16 = vmax.f32 %v3390_v26, 0.0 }
 0x4e5   :  { %v3394_v59 = vpop.f32.mrf.mxu3  ;;  %v3629_v57 = vpop.f32.mrf.mxu2  ;;  %4357 = vmatpush.bf16.msrb.mxu1 %v13946_v2 }
 0x4e6   :  { %v14455_v43 = vpack.c.bf16 %v3700_v62, %v3699_v36  ;;  %v16747_v10 = vpop.f32.mrf.mxu1  ;;  %v3562_v45 = vpop.f32.mrf.mxu0  ;;  %v3630_v3 = vadd.f32 %v3629_v57, %v3561_v14 }
 0x4e7   :  { %v3563_v44 = vadd.f32 %v3562_v45, %v15388_v13 }
 0x4e8   :  { %14767 = vst [vmem:[#allocation2 + $0x1c8] sm:$0xff] %v14455_v43   ;;  %v3665_v34 = vmax.f32 %v3630_v3, 0.0 }
 0x4e9   :  { %3851 = vmatmul.bf16.gmra.mxu1 %v15200_v31 }
 0x4ea   :  { %11941 = vmatmul.msk.bf16.gmra.mxu3 %vm512_vm0, %v15156_v17  ;;  %v3689_v36 = vmax.f32 %v3423_v20, %v3665_v34  ;;  %4358 = vmatpush.bf16.msrb.mxu1 %v13945_v29 }
 0x4ec   :  { %v3701_v14 = vmax.f32 %v16667_v38, %v3689_v36  ;;  %v3393_v38 = vadd.f32 %v16738_v50, %v3324_v33 }
 0x4ed   :  { %v3397_v48 = vpop.f32.mrf.mxu3  ;;  %v3631_v12 = vpop.f32.mrf.mxu2 }
 0x4ee   :  { %v3632_v32 = vadd.f32 %v3631_v12, %v3563_v44  ;;  %v3330_v8 = vpop.f32.mrf.mxu1  ;;  %v3565_v15 = vpop.f32.mrf.mxu0  ;;  %v3425_v35 = vmax.f32 %v3393_v38, 0.0 }
 0x4ef   :  { %v3566_v23 = vadd.f32 %v3565_v15, %v15198_v30 }
 0x4f0   :  { %v3666_v62 = vmax.f32 %v3632_v32, 0.0 }
 0x4f1   :  { %4088 = vmatmul.bf16.gmra.mxu0 %v15171_v21 }
 0x4f2   :  { %v3690_v42 = vmax.f32 %v3424_v16, %v3666_v62  ;;  %11992 = vmatmul.msk.bf16.gmra.mxu2 %vm512_vm0, %v15116_v4 }
 0x4f4   :  { %v3702_v57 = vmax.f32 %v16674_v22, %v3690_v42  ;;  %v3395_v22 = vadd.f32 %v3394_v59, %v3326_v52 }
 0x4f5   :  { %v3399_v43 = vpop.f32.mrf.mxu3  ;;  %v3634_v45 = vpop.f32.mrf.mxu2 }
 0x4f6   :  { %v14460_v3 = vpack.c.bf16 %v3702_v57, %v3701_v14  ;;  %v16774_v54 = vpop.f32.mrf.mxu1  ;;  %v3567_v2 = vpop.f32.mrf.mxu0  ;;  %v3635_v60 = vadd.f32 %v3634_v45, %v3566_v23  ;;  %v3426_v50 = vmax.f32 %v3395_v22, 0.0  ;;  %v3329_v23 = vadd.f32 %v16747_v10, %v15577_v41 }
 0x4f7   :  { %v3568_v34 = vadd.f32 %v3567_v2, %v15217_v39  ;;  %v3331_v2 = vadd.f32 %v3330_v8, %v15584_v40 }
 0x4f8   :  { %14768 = vst [vmem:[#allocation2 + $0x80] sm:$0xff] %v14460_v3   ;;  %v3667_v26 = vmax.f32 %v3635_v60, 0.0 }
 0x4f9   :  { %3856 = vmatmul.bf16.gmra.mxu1 %v15231_v46  ;;  %v3400_v10 = vadd.f32 %v3399_v43, %v3331_v2  ;;  %v13944_v43 = vld [vmem:[%s19351_s0 + $0x108] sm:$0xff] }
 0x4fa   :  { %11942 = vmatmul.msk.bf16.gmra.mxu3 %vm512_vm0, %v15181_v24  ;;  %v3691_v15 = vmax.f32 %v3425_v35, %v3667_v26  ;;  %4359 = vmatpush.bf16.msrb.mxu1 %v13944_v43 }
 0x4fc   :  { %v3703_v36 = vmax.f32 %v16681_v27, %v3691_v15  ;;  %v13955_v27 = vld [vmem:[%s19351_s0 + $0x120] sm:$0xff] }
 0x4fd   :  { %v16785_v44 = vpop.f32.mrf.mxu3  ;;  %v3636_v7 = vpop.f32.mrf.mxu2  ;;  %4600 = vmatpush.bf16.msrb.mxu0 %v13955_v27  ;;  %v13942_v27 = vld [vmem:[%s19351_s0 + $0xf8] sm:$0xff] }
 0x4fe   :  { %v3637_v12 = vadd.f32 %v3636_v7, %v3568_v34  ;;  %v3335_v20 = vpop.f32.mrf.mxu1  ;;  %v3570_v32 = vpop.f32.mrf.mxu0 }
 0x4ff   :  { %v3571_v42 = vadd.f32 %v3570_v32, %v15577_v41  ;;  %v3428_v32 = vmax.f32 %v3400_v10, 0.0 }
 0x500   :  { %v3668_v16 = vmax.f32 %v3637_v12, 0.0 }
 0x501   :  { %4093 = vmatmul.bf16.gmra.mxu0 %v15200_v31 }
 0x502   :  { %v3692_v59 = vmax.f32 %v3426_v50, %v3668_v16  ;;  %11993 = vmatmul.msk.bf16.gmra.mxu2 %vm512_vm0, %v15156_v17 }
 0x504   :  { %v3704_v62 = vmax.f32 %v16688_v53, %v3692_v59  ;;  %v3398_v53 = vadd.f32 %v3397_v48, %v3329_v23  ;;  %v13943_v23 = vld [vmem:[%s19351_s0 + $0x100] sm:$0xff] }
 0x505   :  { %v3404_v14 = vpop.f32.mrf.mxu3  ;;  %v3639_v57 = vpop.f32.mrf.mxu2  ;;  %4360 = vmatpush.bf16.msrb.mxu1 %v13943_v23 }
 0x506   :  { %v14465_v45 = vpack.c.bf16 %v3704_v62, %v3703_v36  ;;  %v3572_v33 = vpop.f32.mrf.mxu0  ;;  %v3822_v3 = vpop.f32.mrf.mxu1  ;;  %v3640_v52 = vadd.f32 %v3639_v57, %v3571_v42  ;;  %v3427_v34 = vmax.f32 %v3398_v53, 0.0 }
 0x507   :  { %v3823_v60 = vadd.f32 %v3822_v3, %v15272_v1  ;;  %v3573_v22 = vadd.f32 %v3572_v33, %v15584_v40 }
 0x508   :  { %14769 = vst [vmem:[#allocation2 + $0xf8] sm:$0xff] %v14465_v45   ;;  %v3669_v38 = vmax.f32 %v3640_v52, 0.0  ;;  %v3334_v45 = vadd.f32 %v16774_v54, %v15443_v19 }
 0x509   :  { %3861 = vmatmul.bf16.gmra.mxu1 %v15279_v5 }
 0x50a   :  { %11943 = vmatmul.msk.bf16.gmra.mxu3 %vm512_vm0, %v15215_v37  ;;  %v3693_v48 = vmax.f32 %v3427_v34, %v3669_v38  ;;  %v3403_v53 = vadd.f32 %v16785_v44, %v3334_v45  ;;  %4361 = vmatpush.bf16.msrb.mxu1 %v13942_v27  ;;  %v13941_v44 = vld [vmem:[%s19351_s0 + $0xf0] sm:$0xff] }
 0x50c   :  { %v3705_v59 = vmax.f32 %v16695_v47, %v3693_v48  ;;  %v3336_v47 = vadd.f32 %v3335_v20, %v15559_v25 }
 0x50d   :  { %v3641_v8 = vpop.f32.mrf.mxu2  ;;  %v3891_v26 = vpop.f32.mrf.mxu3 }
 0x50e   :  { %v3642_v29 = vadd.f32 %v3641_v8, %v3573_v22  ;;  %v16804_v7 = vadd.f32 %v3891_v26, %v3823_v60  ;;  %v3575_v35 = vpop.f32.mrf.mxu0  ;;  %v3824_v12 = vpop.f32.mrf.mxu1  ;;  %v13954_v60 = vld [vmem:[%s19351_s0 + $0x118] sm:$0xff]  ;;  %v3405_v20 = vadd.f32 %v3404_v14, %v3336_v47  ;;  %v3429_v26 = vmax.f32 %v3403_v53, 0.0  ;;  %4362 = vmatpush.bf16.msrb.mxu1 %v13941_v44 }
 0x50f   :  { %v3825_v16 = vadd.f32 %v3824_v12, %v15300_v18  ;;  %v3576_v62 = vadd.f32 %v3575_v35, %v15443_v19  ;;  %4601 = vmatpush.bf16.msrb.mxu0 %v13954_v60 }
 0x510   :  { %v3670_v50 = vmax.f32 %v3642_v29, 0.0 }
 0x511   :  { %4098 = vmatmul.bf16.gmra.mxu0 %v15231_v46 }
 0x512   :  { %v3694_v15 = vmax.f32 %v3428_v32, %v3670_v50  ;;  %11994 = vmatmul.msk.bf16.gmra.mxu2 %vm512_vm0, %v15181_v24  ;;  %v3430_v32 = vmax.f32 %v3405_v20, 0.0  ;;  %v13940_v50 = vld [vmem:[%s19351_s0 + $0xe8] sm:$0xff] }
 0x513   :  { %4363 = vmatpush.bf16.msrb.mxu1 %v13940_v50  ;;  %v19835_v20 = vld [vmem:[#allocation20_spill] sm:$0xff] }
 0x514   :  { %v3706_v36 = vmax.f32 %v16701_v11, %v3694_v15  ;;  %v19832_v15 = vld [vmem:[#allocation18_spill] sm:$0xff] }
 0x515   :  { %v3644_v42 = vpop.f32.mrf.mxu2  ;;  %v3893_v57 = vpop.f32.mrf.mxu3 }
 0x516   :  { %v14470_v33 = vpack.c.bf16 %v3706_v36, %v3705_v59  ;;  %v16821_v3 = vadd.f32 %v3893_v57, %v3825_v16  ;;  %v3577_v2 = vpop.f32.mrf.mxu0  ;;  %v3827_v52 = vpop.f32.mrf.mxu1  ;;  %v3645_v11 = vadd.f32 %v3644_v42, %v3576_v62  ;;  %v19833_v36 = vld [vmem:[#allocation27_spill] sm:$0xff]  ;;  %v19834_v42 = vld [vmem:[#allocation28_spill] sm:$0xff] }
 0x517   :  { %v3828_v54 = vadd.f32 %v3827_v52, %v15281_v6  ;;  %v3578_v38 = vadd.f32 %v3577_v2, %v15559_v25  ;;  %v13947_v2 = vld [vmem:[%s19351_s0 + $0x120] sm:$0xff] }
 0x518   :  { %14770 = vst [vmem:[#allocation2 + $0x78] sm:$0xff] %v14470_v33   ;;  %v3671_v10 = vmax.f32 %v3645_v11, 0.0  ;;  %v13939_v33 = vld [vmem:[%s19351_s0 + $0xe0] sm:$0xff]  ;;  %4433 = vmatpush.bf16.msrb.mxu3 %v13947_v2 }
 0x519   :  { %3866 = vmatmul.bf16.gmra.mxu1 %v15338_v0 }
 0x51a   :  { %11944 = vmatmul.msk.bf16.gmra.mxu3 %vm512_vm0, %v15250_v56  ;;  %v3695_v48 = vmax.f32 %v3429_v26, %v3671_v10  ;;  %4364 = vmatpush.bf16.msrb.mxu1 %v13939_v33 }
 0x51c   :  { %v3707_v62 = vmax.f32 %v19833_v36, %v3695_v48 }
 0x51d   :  { %v3646_v22 = vpop.f32.mrf.mxu2  ;;  %v3896_v8 = vpop.f32.mrf.mxu3 }
 0x51e   :  { %v3647_v34 = vadd.f32 %v3646_v22, %v3578_v38  ;;  %v16839_v29 = vadd.f32 %v3896_v8, %v3828_v54  ;;  %v3829_v35 = vpop.f32.mrf.mxu1  ;;  %v4064_v12 = vpop.f32.mrf.mxu0  ;;  %v3951_v54 = vmax.f32 %v16804_v7, 0.0  ;;  %v19836_v38 = vld [vmem:[#allocation15_spill] sm:$0xff]  ;;  %v19837_v8 = vld [vmem:[#allocation17_spill] sm:$0xff] }
 0x51f   :  { %v3830_v16 = vadd.f32 %v3829_v35, %v19832_v15  ;;  %v4065_v59 = vadd.f32 %v4064_v12, %v15272_v1  ;;  %v13953_v35 = vld [vmem:[%s19351_s0 + $0x110] sm:$0xff] }
 0x520   :  { %v3672_v14 = vmax.f32 %v3647_v34, 0.0  ;;  %4602 = vmatpush.bf16.msrb.mxu0 %v13953_v35 }
 0x521   :  { %4103 = vmatmul.bf16.gmra.mxu0 %v15279_v5 }
 0x522   :  { %v3696_v43 = vmax.f32 %v3430_v32, %v3672_v14  ;;  %11995 = vmatmul.msk.bf16.gmra.mxu2 %vm512_vm0, %v15215_v37  ;;  %v3952_v14 = vmax.f32 %v16821_v3, 0.0  ;;  %v13951_v3 = vld [vmem:[%s19351_s0 + $0x100] sm:$0xff] }
 0x524   :  { %v3708_v57 = vmax.f32 %v19834_v42, %v3696_v43  ;;  %v13952_v43 = vld [vmem:[%s19351_s0 + $0x108] sm:$0xff] }
 0x525   :  { %v3898_v23 = vpop.f32.mrf.mxu3  ;;  %v4133_v45 = vpop.f32.mrf.mxu2  ;;  %4603 = vmatpush.bf16.msrb.mxu0 %v13952_v43 }
 0x526   :  { %v14475_v52 = vpack.c.bf16 %v3708_v57, %v3707_v62  ;;  %v3899_v47 = vadd.f32 %v3898_v23, %v3830_v16  ;;  %v4134_v11 = vadd.f32 %v4133_v45, %v4065_v59  ;;  %v3832_v27 = vpop.f32.mrf.mxu1  ;;  %v4066_v53 = vpop.f32.mrf.mxu0  ;;  %v19838_v59 = vld [vmem:[#allocation16_spill] sm:$0xff] }
 0x527   :  { %v3833_v22 = vadd.f32 %v3832_v27, %v19836_v38  ;;  %v4067_v44 = vadd.f32 %v4066_v53, %v15300_v18  ;;  %v19839_v27 = vld [vmem:[#allocation22_spill] sm:$0xff] }
 0x528   :  { %14771 = vst [vmem:[#allocation2 + $0x170] sm:$0xff] %v14475_v52   ;;  %v4193_v60 = vmax.f32 %v4134_v11, 0.0  ;;  %v3953_v52 = vmax.f32 %v16839_v29, 0.0  ;;  %v13950_v53 = vld [vmem:[%s19351_s0 + $0xf8] sm:$0xff]  ;;  %v13949_v29 = vld [vmem:[%s19351_s0 + $0xf0] sm:$0xff]  ;;  %v3954_v43 = vmax.f32 %v3899_v47, 0.0 }
 0x529   :  { %3871 = vmatmul.bf16.gmra.mxu1 %v19835_v20  ;;  %4604 = vmatpush.bf16.msrb.mxu0 %v13951_v3 }
 0x52a   :  { %v16859_v10 = vmax.f32 %v3951_v54, %v4193_v60  ;;  %11945 = vmatmul.msk.bf16.gmra.mxu3 %vm512_vm0, %v19837_v8  ;;  %v19840_v60 = vld [vmem:[#allocation13_spill] sm:$0xff] }
 0x52d   :  { %v3901_v26 = vpop.f32.mrf.mxu3  ;;  %v4135_v34 = vpop.f32.mrf.mxu2  ;;  %4605 = vmatpush.bf16.msrb.mxu0 %v13950_v53 }
 0x52e   :  { %v3902_v7 = vadd.f32 %v3901_v26, %v3833_v22  ;;  %v4136_v12 = vadd.f32 %v4135_v34, %v4067_v44  ;;  %v3834_v32 = vpop.f32.mrf.mxu1  ;;  %v4069_v48 = vpop.f32.mrf.mxu0  ;;  %v19841_v44 = vld [vmem:[#allocation19_spill] sm:$0xff] }
 0x52f   :  { %v3835_v36 = vadd.f32 %v3834_v32, %v19838_v59  ;;  %v4070_v62 = vadd.f32 %v4069_v48, %v15281_v6 }
 0x530   :  { %v4194_v50 = vmax.f32 %v4136_v12, 0.0  ;;  %v13957_v12 = vld [vmem:[%s19351_s0 + $0x130] sm:$0xff] }
 0x531   :  { %4108 = vmatmul.bf16.gmra.mxu0 %v15338_v0  ;;  %4675 = vmatpush.bf16.msrb.mxu2 %v13957_v12  ;;  %v19845_v12 = vld [vmem:[#allocation7_spill] sm:$0xff] }
 0x532   :  { %v16873_v16 = vmax.f32 %v3952_v14, %v4194_v50  ;;  %11996 = vmatmul.msk.bf16.gmra.mxu2 %vm512_vm0, %v15250_v56  ;;  %4606 = vmatpush.bf16.msrb.mxu0 %v13949_v29 }
 0x535   :  { %v3903_v42 = vpop.f32.mrf.mxu3  ;;  %v4138_v57 = vpop.f32.mrf.mxu2 }
 0x536   :  { %v3904_v23 = vadd.f32 %v3903_v42, %v3835_v36  ;;  %v4139_v45 = vadd.f32 %v4138_v57, %v4070_v62  ;;  %v3837_v33 = vpop.f32.mrf.mxu1  ;;  %v4071_v2 = vpop.f32.mrf.mxu0  ;;  %v19842_v42 = vld [vmem:[#allocation14_spill] sm:$0xff] }
 0x537   :  { %v3838_v22 = vadd.f32 %v3837_v33, %v19840_v60  ;;  %v4072_v26 = vadd.f32 %v4071_v2, %v19832_v15 }
 0x538   :  { %v4195_v11 = vmax.f32 %v4139_v45, 0.0 }
 0x539   :  { %3876 = vmatmul.bf16.gmra.mxu1 %v19839_v27 }
 0x53a   :  { %v16887_v54 = vmax.f32 %v3953_v52, %v4195_v11  ;;  %11946 = vmatmul.msk.bf16.gmra.mxu3 %vm512_vm0, %v19841_v44 }
 0x53d   :  { %v3906_v34 = vpop.f32.mrf.mxu3  ;;  %v4140_v35 = vpop.f32.mrf.mxu2 }
 0x53e   :  { %v3907_v32 = vadd.f32 %v3906_v34, %v3838_v22  ;;  %v4141_v48 = vadd.f32 %v4140_v35, %v4072_v26  ;;  %v3839_v14 = vpop.f32.mrf.mxu1  ;;  %v4074_v50 = vpop.f32.mrf.mxu0  ;;  %v3955_v22 = vmax.f32 %v3902_v7, 0.0  ;;  %v19843_v26 = vld [vmem:[#allocation9_spill] sm:$0xff]  ;;  %v19844_v35 = vld [vmem:[#allocation24_spill] sm:$0xff] }
 0x53f   :  { %v3840_v57 = vadd.f32 %v3839_v14, %v19842_v42  ;;  %v4075_v3 = vadd.f32 %v4074_v50, %v19836_v38 }
 0x540   :  { %v4196_v36 = vmax.f32 %v4141_v48, 0.0 }
 0x541   :  { %4113 = vmatmul.bf16.gmra.mxu0 %v19835_v20 }
 0x542   :  { %v16900_v62 = vmax.f32 %v3954_v43, %v4196_v36  ;;  %11997 = vmatmul.msk.bf16.gmra.mxu2 %vm512_vm0, %v19837_v8 }
 0x545   :  { %v3908_v45 = vpop.f32.mrf.mxu3  ;;  %v4143_v33 = vpop.f32.mrf.mxu2 }
 0x546   :  { %v3909_v2 = vadd.f32 %v3908_v45, %v3840_v57  ;;  %v4144_v52 = vadd.f32 %v4143_v33, %v4075_v3  ;;  %v3842_v11 = vpop.f32.mrf.mxu1  ;;  %v4076_v53 = vpop.f32.mrf.mxu0  ;;  %v3956_v45 = vmax.f32 %v3904_v23, 0.0 }
 0x547   :  { %v3843_v29 = vadd.f32 %v3842_v11, %v19844_v35  ;;  %v4077_v48 = vadd.f32 %v4076_v53, %v19838_v59 }
 0x548   :  { %v4197_v47 = vmax.f32 %v4144_v52, 0.0  ;;  %v19846_v52 = vld [vmem:[#allocation25_spill] sm:$0xff] }
 0x549   :  { %4365 = vmatmul.bf16.vlgmr.msrb.gmra.mxu1 %v19843_v26 }
 0x54a   :  { %v16907_v34 = vmax.f32 %v3955_v22, %v4197_v47  ;;  %12039 = vmatmul.msk.bf16.vlgmr.msrb.gmra.mxu3 %vm512_vm0, %v19845_v12 }
 0x54d   :  { %v3911_v14 = vpop.f32.mrf.mxu3  ;;  %v4145_v50 = vpop.f32.mrf.mxu2 }
 0x54e   :  { %v3912_v43 = vadd.f32 %v3911_v14, %v3843_v29  ;;  %v4146_v36 = vadd.f32 %v4145_v50, %v4077_v48  ;;  %v3844_v57 = vpop.f32.mrf.mxu1  ;;  %v4079_v3 = vpop.f32.mrf.mxu0  ;;  %v3957_v50 = vmax.f32 %v3907_v32, 0.0 }
 0x54f   :  { %v3845_v22 = vadd.f32 %v3844_v57, %v19846_v52  ;;  %v4080_v11 = vadd.f32 %v4079_v3, %v19840_v60  ;;  %v19849_v57 = vld [vmem:[#allocation8_spill] sm:$0xff] }
 0x550   :  { %v4198_v7 = vmax.f32 %v4146_v36, 0.0  ;;  %v19847_v36 = vld [vmem:[#allocation11_spill] sm:$0xff] }
 0x551   :  { %4118 = vmatmul.bf16.gmra.mxu0 %v19839_v27 }
 0x552   :  { %v16914_v33 = vmax.f32 %v3956_v45, %v4198_v7  ;;  %11998 = vmatmul.msk.bf16.gmra.mxu2 %vm512_vm0, %v19841_v44  ;;  %v19848_v45 = vld [vmem:[#allocation21_spill] sm:$0xff] }
 0x555   :  { %v3913_v53 = vpop.f32.mrf.mxu3  ;;  %v4148_v47 = vpop.f32.mrf.mxu2 }
 0x556   :  { %v3914_v59 = vadd.f32 %v3913_v53, %v3845_v22  ;;  %v4149_v29 = vadd.f32 %v4148_v47, %v4080_v11  ;;  %v3847_v48 = vpop.f32.mrf.mxu1  ;;  %v4081_v14 = vpop.f32.mrf.mxu0  ;;  %v3958_v47 = vmax.f32 %v3909_v2, 0.0 }
 0x557   :  { %v3848_v7 = vadd.f32 %v3847_v48, %v19848_v45  ;;  %v4082_v3 = vadd.f32 %v4081_v14, %v19842_v42 }
 0x558   :  { %v4199_v23 = vmax.f32 %v4149_v29, 0.0 }
 0x559   :  { %4370 = vmatmul.bf16.gmra.mxu1 %v19847_v36 }
 0x55a   :  { %v16921_v27 = vmax.f32 %v3957_v50, %v4199_v23  ;;  %12040 = vmatmul.msk.bf16.gmra.mxu3 %vm512_vm0, %v19849_v57  ;;  %v19850_v50 = vld [vmem:[#allocation23_spill] sm:$0xff] }
 0x55d   :  { %v3916_v44 = vpop.f32.mrf.mxu3  ;;  %v4150_v60 = vpop.f32.mrf.mxu2 }
 0x55e   :  { %v3917_v8 = vadd.f32 %v3916_v44, %v3848_v7  ;;  %v4151_v22 = vadd.f32 %v4150_v60, %v4082_v3  ;;  %v3849_v11 = vpop.f32.mrf.mxu1  ;;  %v4084_v53 = vpop.f32.mrf.mxu0  ;;  %v3959_v3 = vmax.f32 %v3912_v43, 0.0 }
 0x55f   :  { %v3850_v23 = vadd.f32 %v3849_v11, %v19850_v50  ;;  %v4085_v48 = vadd.f32 %v4084_v53, %v19844_v35 }
 0x560   :  { %v4200_v32 = vmax.f32 %v4151_v22, 0.0  ;;  %v19851_v22 = vld [vmem:[#allocation12_spill] sm:$0xff] }
 0x561   :  { %4607 = vmatmul.bf16.vlgmr.msrb.gmra.mxu0 %v19843_v26 }
 0x562   :  { %v16928_v29 = vmax.f32 %v3958_v47, %v4200_v32  ;;  %12091 = vmatmul.msk.bf16.vlgmr.msrb.gmra.mxu2 %vm512_vm0, %v19845_v12  ;;  %v19852_v47 = vld [vmem:[#allocation10_spill] sm:$0xff] }
 0x565   :  { %v3918_v14 = vpop.f32.mrf.mxu3  ;;  %v4153_v42 = vpop.f32.mrf.mxu2 }
 0x566   :  { %v3919_v38 = vadd.f32 %v3918_v14, %v3850_v23  ;;  %v4154_v44 = vadd.f32 %v4153_v42, %v4085_v48  ;;  %v3852_v60 = vpop.f32.mrf.mxu1  ;;  %v4086_v7 = vpop.f32.mrf.mxu0  ;;  %v3960_v23 = vmax.f32 %v3914_v59, 0.0 }
 0x567   :  { %v4087_v11 = vadd.f32 %v4086_v7, %v19846_v52  ;;  %v3961_v52 = vmax.f32 %v3917_v8, 0.0 }
 0x568   :  { %v4201_v2 = vmax.f32 %v4154_v44, 0.0 }
 0x569   :  { %4375 = vmatmul.bf16.gmra.mxu1 %v19851_v22 }
 0x56a   :  { %v16935_v26 = vmax.f32 %v3959_v3, %v4201_v2  ;;  %12041 = vmatmul.msk.bf16.gmra.mxu3 %vm512_vm0, %v19852_v47 }
 0x56d   :  { %v3921_v53 = vpop.f32.mrf.mxu3  ;;  %v4155_v32 = vpop.f32.mrf.mxu2 }
 0x56e   :  { %v4156_v12 = vadd.f32 %v4155_v32, %v4087_v11  ;;  %v3854_v35 = vpop.f32.mrf.mxu1  ;;  %v4089_v20 = vpop.f32.mrf.mxu0 }
 0x56f   :  { %v4090_v48 = vadd.f32 %v4089_v20, %v19848_v45  ;;  %v3962_v45 = vmax.f32 %v3919_v38, 0.0 }
 0x570   :  { %v4202_v42 = vmax.f32 %v4156_v12, 0.0 }
 0x571   :  { %4612 = vmatmul.bf16.gmra.mxu0 %v19847_v36 }
 0x572   :  { %v16941_v43 = vmax.f32 %v3960_v23, %v4202_v42  ;;  %12092 = vmatmul.msk.bf16.gmra.mxu2 %vm512_vm0, %v19849_v57 }
 0x575   :  { %v3923_v14 = vpop.f32.mrf.mxu3  ;;  %v4158_v44 = vpop.f32.mrf.mxu2 }
 0x576   :  { %v4159_v3 = vadd.f32 %v4158_v44, %v4090_v48  ;;  %v3857_v7 = vpop.f32.mrf.mxu1  ;;  %v4091_v2 = vpop.f32.mrf.mxu0 }
 0x577   :  { %v4092_v12 = vadd.f32 %v4091_v2, %v19850_v50 }
 0x578   :  { %v4203_v11 = vmax.f32 %v4159_v3, 0.0 }
 0x579   :  { %4380 = vmatmul.bf16.gmra.mxu1 %v15100_v63 }
 0x57a   :  { %v16947_v59 = vmax.f32 %v3961_v52, %v4203_v11  ;;  %12042 = vmatmul.msk.bf16.gmra.mxu3 %vm512_vm0, %v15051_v49  ;;  %v19855_v52 = vld [vmem:[#allocation26_spill] sm:$0xff] }
 0x57b   :  { %v3853_v2 = vadd.f32 %v3852_v60, %v19855_v52 }
 0x57c   :  { %19853 = vst [vmem:[#allocation27_spill] sm:$0xff] %v16947_v59 }
 0x57d   :  { %v3926_v20 = vpop.f32.mrf.mxu3  ;;  %v4160_v32 = vpop.f32.mrf.mxu2  ;;  %v3922_v38 = vadd.f32 %v3921_v53, %v3853_v2 }
 0x57e   :  { %v4161_v23 = vadd.f32 %v4160_v32, %v4092_v12  ;;  %v3859_v42 = vpop.f32.mrf.mxu1  ;;  %v4094_v57 = vpop.f32.mrf.mxu0  ;;  %v3855_v12 = vadd.f32 %v3854_v35, %v15434_v55 }
 0x57f   :  { %v4095_v44 = vadd.f32 %v4094_v57, %v19855_v52 }
 0x580   :  { %v4204_v48 = vmax.f32 %v4161_v23, 0.0 }
 0x581   :  { %4617 = vmatmul.bf16.gmra.mxu0 %v19851_v22  ;;  %v3963_v22 = vmax.f32 %v3922_v38, 0.0 }
 0x582   :  { %v16953_v8 = vmax.f32 %v3962_v45, %v4204_v48  ;;  %12093 = vmatmul.msk.bf16.gmra.mxu2 %vm512_vm0, %v19852_v47  ;;  %v3924_v45 = vadd.f32 %v3923_v14, %v3855_v12 }
 0x584   :  { %19854 = vst [vmem:[#allocation28_spill] sm:$0xff] %v16953_v8  ;;  %v3964_v59 = vmax.f32 %v3924_v45, 0.0 }
 0x585   :  { %v3928_v3 = vpop.f32.mrf.mxu3  ;;  %v4163_v11 = vpop.f32.mrf.mxu2 }
 0x586   :  { %v3862_v50 = vpop.f32.mrf.mxu1  ;;  %v4096_v36 = vpop.f32.mrf.mxu0  ;;  %v4164_v32 = vadd.f32 %v4163_v11, %v4095_v44 }
 0x587   :  { %v4097_v48 = vadd.f32 %v4096_v36, %v15434_v55 }
 0x588   :  { %v4205_v23 = vmax.f32 %v4164_v32, 0.0 }
 0x589   :  { %4385 = vmatmul.bf16.gmra.mxu1 %v15134_v9 }
 0x58a   :  { %12043 = vmatmul.msk.bf16.gmra.mxu3 %vm512_vm0, %v15082_v58  ;;  %v4229_v15 = vmax.f32 %v3963_v22, %v4205_v23 }
 0x58c   :  { %v4241_v53 = vmax.f32 %v16859_v10, %v4229_v15 }
 0x58d   :  { %v3931_v57 = vpop.f32.mrf.mxu3  ;;  %v4165_v47 = vpop.f32.mrf.mxu2 }
 0x58e   :  { %v4166_v8 = vadd.f32 %v4165_v47, %v4097_v48  ;;  %v3864_v60 = vpop.f32.mrf.mxu1  ;;  %v4099_v52 = vpop.f32.mrf.mxu0  ;;  %v3858_v47 = vadd.f32 %v3857_v7, %v15358_v28 }
 0x58f   :  { %v4100_v36 = vadd.f32 %v4099_v52, %v15358_v28 }
 0x590   :  { %v4206_v35 = vmax.f32 %v4166_v8, 0.0  ;;  %v3860_v8 = vadd.f32 %v3859_v42, %v15240_v51  ;;  %v3927_v38 = vadd.f32 %v3926_v20, %v3858_v47 }
 0x591   :  { %4622 = vmatmul.bf16.gmra.mxu0 %v15100_v63 }
 0x592   :  { %v4230_v44 = vmax.f32 %v3964_v59, %v4206_v35  ;;  %12094 = vmatmul.msk.bf16.gmra.mxu2 %vm512_vm0, %v15051_v49  ;;  %v3929_v15 = vadd.f32 %v3928_v3, %v3860_v8  ;;  %v3965_v45 = vmax.f32 %v3927_v38, 0.0  ;;  %v3865_v38 = vadd.f32 %v3864_v60, %v15388_v13 }
 0x594   :  { %v4242_v14 = vmax.f32 %v16873_v16, %v4230_v44  ;;  %v3966_v42 = vmax.f32 %v3929_v15, 0.0 }
 0x595   :  { %v3933_v11 = vpop.f32.mrf.mxu3  ;;  %v4168_v2 = vpop.f32.mrf.mxu2 }
 0x596   :  { %v14480_v12 = vpack.c.bf16 %v4242_v14, %v4241_v53  ;;  %v16971_v32 = vpop.f32.mrf.mxu1  ;;  %v4101_v22 = vpop.f32.mrf.mxu0  ;;  %v4169_v59 = vadd.f32 %v4168_v2, %v4100_v36  ;;  %v3934_v60 = vadd.f32 %v3933_v11, %v3865_v38 }
 0x597   :  { %v4102_v16 = vadd.f32 %v4101_v22, %v15240_v51  ;;  %v3868_v38 = vadd.f32 %v16971_v32, %v15198_v30  ;;  %v13965_v32 = vld [vmem:[%s19351_s0 + $0x130] sm:$0xff] }
 0x598   :  { %14772 = vst [vmem:[#allocation2 + $0x198] sm:$0xff] %v14480_v12   ;;  %v4207_v10 = vmax.f32 %v4169_v59, 0.0  ;;  %v3863_v12 = vadd.f32 %v3862_v50, %v15264_v61  ;;  %v13978_v50 = vld [vmem:[%s19351_s0 + $0x158] sm:$0xff] }
 0x599   :  { %4390 = vmatmul.bf16.gmra.mxu1 %v15171_v21  ;;  %5218 = vmatpush.bf16.msra.mxu2 %v13978_v50 }
 0x59a   :  { %12044 = vmatmul.msk.bf16.gmra.mxu3 %vm512_vm0, %v15116_v4  ;;  %v4231_v44 = vmax.f32 %v3965_v45, %v4207_v10  ;;  %v3932_v10 = vadd.f32 %v3931_v57, %v3863_v12  ;;  %v13976_v45 = vld [vmem:[%s19351_s0 + $0x148] sm:$0xff] }
 0x59b   :  { %5143 = vmatpush.bf16.msra.mxu0 %v13976_v45 }
 0x59c   :  { %v4243_v3 = vmax.f32 %v16887_v54, %v4231_v44  ;;  %v13968_v54 = vld [vmem:[%s19351_s0 + $0x148] sm:$0xff] }
 0x59d   :  { %v16978_v52 = vpop.f32.mrf.mxu3  ;;  %v4170_v7 = vpop.f32.mrf.mxu2  ;;  %4976 = vmatpush.bf16.msra.mxu3 %v13968_v54 }
 0x59e   :  { %v4171_v23 = vadd.f32 %v4170_v7, %v4102_v16  ;;  %v3869_v48 = vpop.f32.mrf.mxu1  ;;  %v4104_v35 = vpop.f32.mrf.mxu0 }
 0x59f   :  { %v4105_v36 = vadd.f32 %v4104_v35, %v15264_v61  ;;  %v3870_v50 = vadd.f32 %v3869_v48, %v15217_v39 }
 0x5a0   :  { %v4208_v53 = vmax.f32 %v4171_v23, 0.0 }
 0x5a1   :  { %4627 = vmatmul.bf16.gmra.mxu0 %v15134_v9 }
 0x5a2   :  { %v4232_v20 = vmax.f32 %v3966_v42, %v4208_v53  ;;  %12095 = vmatmul.msk.bf16.gmra.mxu2 %vm512_vm0, %v15082_v58  ;;  %v3967_v42 = vmax.f32 %v3932_v10, 0.0 }
 0x5a4   :  { %v4244_v14 = vmax.f32 %v16900_v62, %v4232_v20  ;;  %v13966_v62 = vld [vmem:[%s19351_s0 + $0x138] sm:$0xff]  ;;  %v3968_v20 = vmax.f32 %v3934_v60, 0.0 }
 0x5a5   :  { %v3938_v2 = vpop.f32.mrf.mxu3  ;;  %v4173_v47 = vpop.f32.mrf.mxu2  ;;  %4901 = vmatpush.bf16.msra.mxu1 %v13966_v62 }
 0x5a6   :  { %v14485_v22 = vpack.c.bf16 %v4244_v14, %v4243_v3  ;;  %v16987_v8 = vpop.f32.mrf.mxu1  ;;  %v4106_v59 = vpop.f32.mrf.mxu0  ;;  %v4174_v15 = vadd.f32 %v4173_v47, %v4105_v36 }
 0x5a7   :  { %v4107_v7 = vadd.f32 %v4106_v59, %v15388_v13 }
 0x5a8   :  { %14773 = vst [vmem:[#allocation2 + $0xe0] sm:$0xff] %v14485_v22   ;;  %v4209_v16 = vmax.f32 %v4174_v15, 0.0 }
 0x5a9   :  { %4395 = vmatmul.bf16.gmra.mxu1 %v15200_v31 }
 0x5aa   :  { %12045 = vmatmul.msk.bf16.gmra.mxu3 %vm512_vm0, %v15156_v17  ;;  %v4233_v3 = vmax.f32 %v3967_v42, %v4209_v16  ;;  %4902 = vmatpush.bf16.msra.mxu1 %v13965_v32 }
 0x5ac   :  { %v4245_v36 = vmax.f32 %v16907_v34, %v4233_v3  ;;  %v3937_v34 = vadd.f32 %v16978_v52, %v3868_v38 }
 0x5ad   :  { %v3941_v23 = vpop.f32.mrf.mxu3  ;;  %v4175_v35 = vpop.f32.mrf.mxu2 }
 0x5ae   :  { %v4176_v44 = vadd.f32 %v4175_v35, %v4107_v7  ;;  %v3874_v53 = vpop.f32.mrf.mxu1  ;;  %v4109_v57 = vpop.f32.mrf.mxu0  ;;  %v3969_v45 = vmax.f32 %v3937_v34, 0.0 }
 0x5af   :  { %v4110_v12 = vadd.f32 %v4109_v57, %v15198_v30 }
 0x5b0   :  { %v4210_v14 = vmax.f32 %v4176_v44, 0.0 }
 0x5b1   :  { %4632 = vmatmul.bf16.gmra.mxu0 %v15171_v21 }
 0x5b2   :  { %v4234_v11 = vmax.f32 %v3968_v20, %v4210_v14  ;;  %12096 = vmatmul.msk.bf16.gmra.mxu2 %vm512_vm0, %v15116_v4 }
 0x5b4   :  { %v4246_v47 = vmax.f32 %v16914_v33, %v4234_v11  ;;  %v3939_v33 = vadd.f32 %v3938_v2, %v3870_v50 }
 0x5b5   :  { %v3943_v22 = vpop.f32.mrf.mxu3  ;;  %v4178_v59 = vpop.f32.mrf.mxu2 }
 0x5b6   :  { %v14490_v15 = vpack.c.bf16 %v4246_v47, %v4245_v36  ;;  %v17014_v54 = vpop.f32.mrf.mxu1  ;;  %v4111_v62 = vpop.f32.mrf.mxu0  ;;  %v4179_v10 = vadd.f32 %v4178_v59, %v4110_v12  ;;  %v3970_v52 = vmax.f32 %v3939_v33, 0.0  ;;  %v3873_v12 = vadd.f32 %v16987_v8, %v15577_v41 }
 0x5b7   :  { %v4112_v16 = vadd.f32 %v4111_v62, %v15217_v39  ;;  %v3875_v62 = vadd.f32 %v3874_v53, %v15584_v40 }
 0x5b8   :  { %14774 = vst [vmem:[#allocation2 + $0x1e0] sm:$0xff] %v14490_v15   ;;  %v4211_v60 = vmax.f32 %v4179_v10, 0.0 }
 0x5b9   :  { %4400 = vmatmul.bf16.gmra.mxu1 %v15231_v46  ;;  %v3944_v8 = vadd.f32 %v3943_v22, %v3875_v62  ;;  %v13964_v22 = vld [vmem:[%s19351_s0 + $0x128] sm:$0xff] }
 0x5ba   :  { %12046 = vmatmul.msk.bf16.gmra.mxu3 %vm512_vm0, %v15181_v24  ;;  %v4235_v57 = vmax.f32 %v3969_v45, %v4211_v60  ;;  %4903 = vmatpush.bf16.msra.mxu1 %v13964_v22 }
 0x5bc   :  { %v4247_v3 = vmax.f32 %v16921_v27, %v4235_v57  ;;  %v13975_v27 = vld [vmem:[%s19351_s0 + $0x140] sm:$0xff] }
 0x5bd   :  { %v17025_v7 = vpop.f32.mrf.mxu3  ;;  %v4180_v48 = vpop.f32.mrf.mxu2  ;;  %5144 = vmatpush.bf16.msra.mxu0 %v13975_v27  ;;  %v13962_v27 = vld [vmem:[%s19351_s0 + $0x118] sm:$0xff] }
 0x5be   :  { %v4181_v35 = vadd.f32 %v4180_v48, %v4112_v16  ;;  %v3879_v42 = vpop.f32.mrf.mxu1  ;;  %v4114_v44 = vpop.f32.mrf.mxu0 }
 0x5bf   :  { %v4115_v11 = vadd.f32 %v4114_v44, %v15577_v41  ;;  %v3972_v44 = vmax.f32 %v3944_v8, 0.0 }
 0x5c0   :  { %v4212_v20 = vmax.f32 %v4181_v35, 0.0 }
 0x5c1   :  { %4637 = vmatmul.bf16.gmra.mxu0 %v15200_v31 }
 0x5c2   :  { %v4236_v2 = vmax.f32 %v3970_v52, %v4212_v20  ;;  %12097 = vmatmul.msk.bf16.gmra.mxu2 %vm512_vm0, %v15156_v17 }
 0x5c4   :  { %v4248_v14 = vmax.f32 %v16928_v29, %v4236_v2  ;;  %v3942_v29 = vadd.f32 %v3941_v23, %v3873_v12  ;;  %v13963_v12 = vld [vmem:[%s19351_s0 + $0x120] sm:$0xff] }
 0x5c5   :  { %v3948_v36 = vpop.f32.mrf.mxu3  ;;  %v4183_v47 = vpop.f32.mrf.mxu2  ;;  %4904 = vmatpush.bf16.msra.mxu1 %v13963_v12 }
 0x5c6   :  { %v14495_v59 = vpack.c.bf16 %v4248_v14, %v4247_v3  ;;  %v4116_v38 = vpop.f32.mrf.mxu0  ;;  %v4366_v15 = vpop.f32.mrf.mxu1  ;;  %v4184_v50 = vadd.f32 %v4183_v47, %v4115_v11  ;;  %v3971_v16 = vmax.f32 %v3942_v29, 0.0 }
 0x5c7   :  { %v4367_v10 = vadd.f32 %v4366_v15, %v15272_v1  ;;  %v4117_v33 = vadd.f32 %v4116_v38, %v15584_v40 }
 0x5c8   :  { %14775 = vst [vmem:[#allocation2 + $0x1f0] sm:$0xff] %v14495_v59   ;;  %v4213_v34 = vmax.f32 %v4184_v50, 0.0  ;;  %v3878_v59 = vadd.f32 %v17014_v54, %v15443_v19 }
 0x5c9   :  { %4405 = vmatmul.bf16.gmra.mxu1 %v15279_v5 }
 0x5ca   :  { %12047 = vmatmul.msk.bf16.gmra.mxu3 %vm512_vm0, %v15215_v37  ;;  %v4237_v23 = vmax.f32 %v3971_v16, %v4213_v34  ;;  %v3947_v29 = vadd.f32 %v17025_v7, %v3878_v59  ;;  %4905 = vmatpush.bf16.msra.mxu1 %v13962_v27  ;;  %v13961_v7 = vld [vmem:[%s19351_s0 + $0x110] sm:$0xff] }
 0x5cc   :  { %v4249_v2 = vmax.f32 %v16935_v26, %v4237_v23  ;;  %v3880_v26 = vadd.f32 %v3879_v42, %v15559_v25 }
 0x5cd   :  { %v4185_v53 = vpop.f32.mrf.mxu2  ;;  %v4435_v60 = vpop.f32.mrf.mxu3 }
 0x5ce   :  { %v4186_v32 = vadd.f32 %v4185_v53, %v4117_v33  ;;  %v17044_v48 = vadd.f32 %v4435_v60, %v4367_v10  ;;  %v4119_v45 = vpop.f32.mrf.mxu0  ;;  %v4368_v35 = vpop.f32.mrf.mxu1  ;;  %v13974_v10 = vld [vmem:[%s19351_s0 + $0x138] sm:$0xff]  ;;  %v3949_v42 = vadd.f32 %v3948_v36, %v3880_v26  ;;  %v3973_v60 = vmax.f32 %v3947_v29, 0.0  ;;  %4906 = vmatpush.bf16.msra.mxu1 %v13961_v7 }
 0x5cf   :  { %v4369_v20 = vadd.f32 %v4368_v35, %v15300_v18  ;;  %v4120_v14 = vadd.f32 %v4119_v45, %v15443_v19  ;;  %5145 = vmatpush.bf16.msra.mxu0 %v13974_v10 }
 0x5d0   :  { %v4214_v52 = vmax.f32 %v4186_v32, 0.0 }
 0x5d1   :  { %4642 = vmatmul.bf16.gmra.mxu0 %v15231_v46 }
 0x5d2   :  { %v4238_v57 = vmax.f32 %v3972_v44, %v4214_v52  ;;  %12098 = vmatmul.msk.bf16.gmra.mxu2 %vm512_vm0, %v15181_v24  ;;  %v3974_v44 = vmax.f32 %v3949_v42, 0.0  ;;  %v13960_v52 = vld [vmem:[%s19351_s0 + $0x108] sm:$0xff] }
 0x5d3   :  { %4907 = vmatpush.bf16.msra.mxu1 %v13960_v52  ;;  %v19859_v42 = vld [vmem:[#allocation20_spill] sm:$0xff] }
 0x5d4   :  { %v4250_v3 = vmax.f32 %v16941_v43, %v4238_v57  ;;  %v19856_v57 = vld [vmem:[#allocation18_spill] sm:$0xff] }
 0x5d5   :  { %v4188_v11 = vpop.f32.mrf.mxu2  ;;  %v4437_v47 = vpop.f32.mrf.mxu3 }
 0x5d6   :  { %v14500_v38 = vpack.c.bf16 %v4250_v3, %v4249_v2  ;;  %v17061_v15 = vadd.f32 %v4437_v47, %v4369_v20  ;;  %v4121_v62 = vpop.f32.mrf.mxu0  ;;  %v4371_v50 = vpop.f32.mrf.mxu1  ;;  %v4189_v43 = vadd.f32 %v4188_v11, %v4120_v14  ;;  %v19857_v3 = vld [vmem:[#allocation27_spill] sm:$0xff]  ;;  %v19858_v11 = vld [vmem:[#allocation28_spill] sm:$0xff] }
 0x5d7   :  { %v4372_v54 = vadd.f32 %v4371_v50, %v15281_v6  ;;  %v4122_v34 = vadd.f32 %v4121_v62, %v15559_v25  ;;  %v13967_v62 = vld [vmem:[%s19351_s0 + $0x140] sm:$0xff] }
 0x5d8   :  { %14776 = vst [vmem:[#allocation2 + $0x48] sm:$0xff] %v14500_v38   ;;  %v4215_v8 = vmax.f32 %v4189_v43, 0.0  ;;  %v13959_v38 = vld [vmem:[%s19351_s0 + $0x100] sm:$0xff]  ;;  %4977 = vmatpush.bf16.msra.mxu3 %v13967_v62 }
 0x5d9   :  { %4410 = vmatmul.bf16.gmra.mxu1 %v15338_v0 }
 0x5da   :  { %12048 = vmatmul.msk.bf16.gmra.mxu3 %vm512_vm0, %v15250_v56  ;;  %v4239_v23 = vmax.f32 %v3973_v60, %v4215_v8  ;;  %4908 = vmatpush.bf16.msra.mxu1 %v13959_v38 }
 0x5dc   :  { %v4251_v14 = vmax.f32 %v19857_v3, %v4239_v23 }
 0x5dd   :  { %v4190_v33 = vpop.f32.mrf.mxu2  ;;  %v4440_v53 = vpop.f32.mrf.mxu3 }
 0x5de   :  { %v4191_v16 = vadd.f32 %v4190_v33, %v4122_v34  ;;  %v17079_v32 = vadd.f32 %v4440_v53, %v4372_v54  ;;  %v4373_v45 = vpop.f32.mrf.mxu1  ;;  %v4608_v35 = vpop.f32.mrf.mxu0  ;;  %v4495_v54 = vmax.f32 %v17044_v48, 0.0  ;;  %v19860_v34 = vld [vmem:[#allocation15_spill] sm:$0xff]  ;;  %v19861_v53 = vld [vmem:[#allocation17_spill] sm:$0xff] }
 0x5df   :  { %v4374_v20 = vadd.f32 %v4373_v45, %v19856_v57  ;;  %v4609_v2 = vadd.f32 %v4608_v35, %v15272_v1  ;;  %v13973_v45 = vld [vmem:[%s19351_s0 + $0x130] sm:$0xff] }
 0x5e0   :  { %v4216_v36 = vmax.f32 %v4191_v16, 0.0  ;;  %5146 = vmatpush.bf16.msra.mxu0 %v13973_v45 }
 0x5e1   :  { %4647 = vmatmul.bf16.gmra.mxu0 %v15279_v5 }
 0x5e2   :  { %v4240_v22 = vmax.f32 %v3974_v44, %v4216_v36  ;;  %12099 = vmatmul.msk.bf16.gmra.mxu2 %vm512_vm0, %v15215_v37  ;;  %v4496_v36 = vmax.f32 %v17061_v15, 0.0  ;;  %v13971_v15 = vld [vmem:[%s19351_s0 + $0x120] sm:$0xff] }
 0x5e4   :  { %v4252_v47 = vmax.f32 %v19858_v11, %v4240_v22  ;;  %v13972_v22 = vld [vmem:[%s19351_s0 + $0x128] sm:$0xff] }
 0x5e5   :  { %v4442_v12 = vpop.f32.mrf.mxu3  ;;  %v4677_v59 = vpop.f32.mrf.mxu2  ;;  %5147 = vmatpush.bf16.msra.mxu0 %v13972_v22 }
 0x5e6   :  { %v14505_v50 = vpack.c.bf16 %v4252_v47, %v4251_v14  ;;  %v4443_v26 = vadd.f32 %v4442_v12, %v4374_v20  ;;  %v4678_v43 = vadd.f32 %v4677_v59, %v4609_v2  ;;  %v4376_v27 = vpop.f32.mrf.mxu1  ;;  %v4610_v29 = vpop.f32.mrf.mxu0  ;;  %v19862_v2 = vld [vmem:[#allocation16_spill] sm:$0xff] }
 0x5e7   :  { %v4377_v33 = vadd.f32 %v4376_v27, %v19860_v34  ;;  %v4611_v7 = vadd.f32 %v4610_v29, %v15300_v18  ;;  %v19863_v27 = vld [vmem:[#allocation22_spill] sm:$0xff] }
 0x5e8   :  { %14777 = vst [vmem:[#allocation2 + $0x98] sm:$0xff] %v14505_v50   ;;  %v4737_v10 = vmax.f32 %v4678_v43, 0.0  ;;  %v4497_v50 = vmax.f32 %v17079_v32, 0.0  ;;  %v13970_v29 = vld [vmem:[%s19351_s0 + $0x118] sm:$0xff]  ;;  %v13969_v32 = vld [vmem:[%s19351_s0 + $0x110] sm:$0xff]  ;;  %v4498_v22 = vmax.f32 %v4443_v26, 0.0 }
 0x5e9   :  { %4415 = vmatmul.bf16.gmra.mxu1 %v19859_v42  ;;  %5148 = vmatpush.bf16.msra.mxu0 %v13971_v15 }
 0x5ea   :  { %v17099_v8 = vmax.f32 %v4495_v54, %v4737_v10  ;;  %12049 = vmatmul.msk.bf16.gmra.mxu3 %vm512_vm0, %v19861_v53  ;;  %v19864_v10 = vld [vmem:[#allocation13_spill] sm:$0xff] }
 0x5ed   :  { %v4445_v60 = vpop.f32.mrf.mxu3  ;;  %v4679_v16 = vpop.f32.mrf.mxu2  ;;  %5149 = vmatpush.bf16.msra.mxu0 %v13970_v29 }
 0x5ee   :  { %v4446_v48 = vadd.f32 %v4445_v60, %v4377_v33  ;;  %v4680_v35 = vadd.f32 %v4679_v16, %v4611_v7  ;;  %v4378_v44 = vpop.f32.mrf.mxu1  ;;  %v4613_v23 = vpop.f32.mrf.mxu0  ;;  %v19865_v7 = vld [vmem:[#allocation19_spill] sm:$0xff] }
 0x5ef   :  { %v4379_v3 = vadd.f32 %v4378_v44, %v19862_v2  ;;  %v4614_v14 = vadd.f32 %v4613_v23, %v15281_v6 }
 0x5f0   :  { %v4738_v52 = vmax.f32 %v4680_v35, 0.0  ;;  %v13977_v35 = vld [vmem:[%s19351_s0 + $0x150] sm:$0xff] }
 0x5f1   :  { %4652 = vmatmul.bf16.gmra.mxu0 %v15338_v0  ;;  %5219 = vmatpush.bf16.msra.mxu2 %v13977_v35  ;;  %v19869_v35 = vld [vmem:[#allocation7_spill] sm:$0xff] }
 0x5f2   :  { %v17113_v20 = vmax.f32 %v4496_v36, %v4738_v52  ;;  %12100 = vmatmul.msk.bf16.gmra.mxu2 %vm512_vm0, %v15250_v56  ;;  %5150 = vmatpush.bf16.msra.mxu0 %v13969_v32 }
 0x5f5   :  { %v4447_v11 = vpop.f32.mrf.mxu3  ;;  %v4682_v47 = vpop.f32.mrf.mxu2 }
 0x5f6   :  { %v4448_v12 = vadd.f32 %v4447_v11, %v4379_v3  ;;  %v4683_v59 = vadd.f32 %v4682_v47, %v4614_v14  ;;  %v4381_v38 = vpop.f32.mrf.mxu1  ;;  %v4615_v62 = vpop.f32.mrf.mxu0  ;;  %v19866_v11 = vld [vmem:[#allocation14_spill] sm:$0xff] }
 0x5f7   :  { %v4382_v33 = vadd.f32 %v4381_v38, %v19864_v10  ;;  %v4616_v60 = vadd.f32 %v4615_v62, %v19856_v57 }
 0x5f8   :  { %v4739_v43 = vmax.f32 %v4683_v59, 0.0 }
 0x5f9   :  { %4420 = vmatmul.bf16.gmra.mxu1 %v19863_v27 }
 0x5fa   :  { %v17127_v54 = vmax.f32 %v4497_v50, %v4739_v43  ;;  %12050 = vmatmul.msk.bf16.gmra.mxu3 %vm512_vm0, %v19865_v7 }
 0x5fd   :  { %v4450_v16 = vpop.f32.mrf.mxu3  ;;  %v4684_v45 = vpop.f32.mrf.mxu2 }
 0x5fe   :  { %v4451_v44 = vadd.f32 %v4450_v16, %v4382_v33  ;;  %v4685_v23 = vadd.f32 %v4684_v45, %v4616_v60  ;;  %v4383_v36 = vpop.f32.mrf.mxu1  ;;  %v4618_v52 = vpop.f32.mrf.mxu0  ;;  %v4499_v33 = vmax.f32 %v4446_v48, 0.0  ;;  %v19867_v60 = vld [vmem:[#allocation9_spill] sm:$0xff]  ;;  %v19868_v45 = vld [vmem:[#allocation24_spill] sm:$0xff] }
 0x5ff   :  { %v4384_v47 = vadd.f32 %v4383_v36, %v19866_v11  ;;  %v4619_v15 = vadd.f32 %v4618_v52, %v19860_v34 }
 0x600   :  { %v4740_v3 = vmax.f32 %v4685_v23, 0.0 }
 0x601   :  { %4657 = vmatmul.bf16.gmra.mxu0 %v19859_v42 }
 0x602   :  { %v17140_v14 = vmax.f32 %v4498_v22, %v4740_v3  ;;  %12101 = vmatmul.msk.bf16.gmra.mxu2 %vm512_vm0, %v19861_v53 }
 0x605   :  { %v4452_v59 = vpop.f32.mrf.mxu3  ;;  %v4687_v38 = vpop.f32.mrf.mxu2 }
 0x606   :  { %v4453_v62 = vadd.f32 %v4452_v59, %v4384_v47  ;;  %v4688_v50 = vadd.f32 %v4687_v38, %v4619_v15  ;;  %v4386_v43 = vpop.f32.mrf.mxu1  ;;  %v4620_v29 = vpop.f32.mrf.mxu0  ;;  %v4500_v59 = vmax.f32 %v4448_v12, 0.0 }
 0x607   :  { %v4387_v32 = vadd.f32 %v4386_v43, %v19868_v45  ;;  %v4621_v23 = vadd.f32 %v4620_v29, %v19862_v2 }
 0x608   :  { %v4741_v26 = vmax.f32 %v4688_v50, 0.0  ;;  %v19870_v50 = vld [vmem:[#allocation25_spill] sm:$0xff] }
 0x609   :  { %4909 = vmatmul.bf16.vlgmr.msra.gmra.mxu1 %v19867_v60 }
 0x60a   :  { %v17147_v16 = vmax.f32 %v4499_v33, %v4741_v26  ;;  %12143 = vmatmul.msk.bf16.vlgmr.msra.gmra.mxu3 %vm512_vm0, %v19869_v35 }
 0x60d   :  { %v4455_v36 = vpop.f32.mrf.mxu3  ;;  %v4689_v52 = vpop.f32.mrf.mxu2 }
 0x60e   :  { %v4456_v22 = vadd.f32 %v4455_v36, %v4387_v32  ;;  %v4690_v3 = vadd.f32 %v4689_v52, %v4621_v23  ;;  %v4388_v47 = vpop.f32.mrf.mxu1  ;;  %v4623_v15 = vpop.f32.mrf.mxu0  ;;  %v4501_v52 = vmax.f32 %v4451_v44, 0.0 }
 0x60f   :  { %v4389_v33 = vadd.f32 %v4388_v47, %v19870_v50  ;;  %v4624_v43 = vadd.f32 %v4623_v15, %v19864_v10  ;;  %v19873_v47 = vld [vmem:[#allocation8_spill] sm:$0xff] }
 0x610   :  { %v4742_v48 = vmax.f32 %v4690_v3, 0.0  ;;  %v19871_v3 = vld [vmem:[#allocation11_spill] sm:$0xff] }
 0x611   :  { %4662 = vmatmul.bf16.gmra.mxu0 %v19863_v27 }
 0x612   :  { %v17154_v38 = vmax.f32 %v4500_v59, %v4742_v48  ;;  %12102 = vmatmul.msk.bf16.gmra.mxu2 %vm512_vm0, %v19865_v7  ;;  %v19872_v59 = vld [vmem:[#allocation21_spill] sm:$0xff] }
 0x615   :  { %v4457_v29 = vpop.f32.mrf.mxu3  ;;  %v4692_v26 = vpop.f32.mrf.mxu2 }
 0x616   :  { %v4458_v2 = vadd.f32 %v4457_v29, %v4389_v33  ;;  %v4693_v32 = vadd.f32 %v4692_v26, %v4624_v43  ;;  %v4391_v23 = vpop.f32.mrf.mxu1  ;;  %v4625_v36 = vpop.f32.mrf.mxu0  ;;  %v4502_v26 = vmax.f32 %v4453_v62, 0.0 }
 0x617   :  { %v4392_v48 = vadd.f32 %v4391_v23, %v19872_v59  ;;  %v4626_v15 = vadd.f32 %v4625_v36, %v19866_v11 }
 0x618   :  { %v4743_v12 = vmax.f32 %v4693_v32, 0.0 }
 0x619   :  { %4914 = vmatmul.bf16.gmra.mxu1 %v19871_v3 }
 0x61a   :  { %v17161_v27 = vmax.f32 %v4501_v52, %v4743_v12  ;;  %12144 = vmatmul.msk.bf16.gmra.mxu3 %vm512_vm0, %v19873_v47  ;;  %v19874_v52 = vld [vmem:[#allocation23_spill] sm:$0xff] }
 0x61d   :  { %v4460_v7 = vpop.f32.mrf.mxu3  ;;  %v4694_v10 = vpop.f32.mrf.mxu2 }
 0x61e   :  { %v4461_v53 = vadd.f32 %v4460_v7, %v4392_v48  ;;  %v4695_v33 = vadd.f32 %v4694_v10, %v4626_v15  ;;  %v4393_v43 = vpop.f32.mrf.mxu1  ;;  %v4628_v29 = vpop.f32.mrf.mxu0  ;;  %v4503_v15 = vmax.f32 %v4456_v22, 0.0 }
 0x61f   :  { %v4394_v12 = vadd.f32 %v4393_v43, %v19874_v52  ;;  %v4629_v23 = vadd.f32 %v4628_v29, %v19868_v45 }
 0x620   :  { %v4744_v44 = vmax.f32 %v4695_v33, 0.0  ;;  %v19875_v33 = vld [vmem:[#allocation12_spill] sm:$0xff] }
 0x621   :  { %5151 = vmatmul.bf16.vlgmr.msra.gmra.mxu0 %v19867_v60 }
 0x622   :  { %v17168_v32 = vmax.f32 %v4502_v26, %v4744_v44  ;;  %12195 = vmatmul.msk.bf16.vlgmr.msra.gmra.mxu2 %vm512_vm0, %v19869_v35  ;;  %v19876_v26 = vld [vmem:[#allocation10_spill] sm:$0xff] }
 0x625   :  { %v4462_v36 = vpop.f32.mrf.mxu3  ;;  %v4697_v11 = vpop.f32.mrf.mxu2 }
 0x626   :  { %v4463_v34 = vadd.f32 %v4462_v36, %v4394_v12  ;;  %v4698_v7 = vadd.f32 %v4697_v11, %v4629_v23  ;;  %v4396_v10 = vpop.f32.mrf.mxu1  ;;  %v4630_v48 = vpop.f32.mrf.mxu0  ;;  %v4504_v12 = vmax.f32 %v4458_v2, 0.0 }
 0x627   :  { %v4631_v43 = vadd.f32 %v4630_v48, %v19870_v50  ;;  %v4505_v50 = vmax.f32 %v4461_v53, 0.0 }
 0x628   :  { %v4745_v62 = vmax.f32 %v4698_v7, 0.0 }
 0x629   :  { %4919 = vmatmul.bf16.gmra.mxu1 %v19875_v33 }
 0x62a   :  { %v17175_v60 = vmax.f32 %v4503_v15, %v4745_v62  ;;  %12145 = vmatmul.msk.bf16.gmra.mxu3 %vm512_vm0, %v19876_v26 }
 0x62d   :  { %v4465_v29 = vpop.f32.mrf.mxu3  ;;  %v4699_v44 = vpop.f32.mrf.mxu2 }
 0x62e   :  { %v4700_v35 = vadd.f32 %v4699_v44, %v4631_v43  ;;  %v4398_v45 = vpop.f32.mrf.mxu1  ;;  %v4633_v42 = vpop.f32.mrf.mxu0 }
 0x62f   :  { %v4634_v23 = vadd.f32 %v4633_v42, %v19872_v59  ;;  %v4506_v59 = vmax.f32 %v4463_v34, 0.0 }
 0x630   :  { %v4746_v11 = vmax.f32 %v4700_v35, 0.0 }
 0x631   :  { %5156 = vmatmul.bf16.gmra.mxu0 %v19871_v3 }
 0x632   :  { %v17181_v22 = vmax.f32 %v4504_v12, %v4746_v11  ;;  %12196 = vmatmul.msk.bf16.gmra.mxu2 %vm512_vm0, %v19873_v47 }
 0x635   :  { %v4467_v36 = vpop.f32.mrf.mxu3  ;;  %v4702_v7 = vpop.f32.mrf.mxu2 }
 0x636   :  { %v4703_v15 = vadd.f32 %v4702_v7, %v4634_v23  ;;  %v4401_v48 = vpop.f32.mrf.mxu1  ;;  %v4635_v62 = vpop.f32.mrf.mxu0 }
 0x637   :  { %v4636_v35 = vadd.f32 %v4635_v62, %v19874_v52 }
 0x638   :  { %v4747_v43 = vmax.f32 %v4703_v15, 0.0 }
 0x639   :  { %4924 = vmatmul.bf16.gmra.mxu1 %v15100_v63 }
 0x63a   :  { %v17187_v2 = vmax.f32 %v4505_v50, %v4747_v43  ;;  %12146 = vmatmul.msk.bf16.gmra.mxu3 %vm512_vm0, %v15051_v49  ;;  %v19879_v50 = vld [vmem:[#allocation26_spill] sm:$0xff] }
 0x63b   :  { %v4397_v62 = vadd.f32 %v4396_v10, %v19879_v50 }
 0x63c   :  { %19877 = vst [vmem:[#allocation27_spill] sm:$0xff] %v17187_v2 }
 0x63d   :  { %v4470_v42 = vpop.f32.mrf.mxu3  ;;  %v4704_v44 = vpop.f32.mrf.mxu2  ;;  %v4466_v34 = vadd.f32 %v4465_v29, %v4397_v62 }
 0x63e   :  { %v4705_v12 = vadd.f32 %v4704_v44, %v4636_v35  ;;  %v4403_v11 = vpop.f32.mrf.mxu1  ;;  %v4638_v47 = vpop.f32.mrf.mxu0  ;;  %v4399_v35 = vadd.f32 %v4398_v45, %v15434_v55 }
 0x63f   :  { %v4639_v7 = vadd.f32 %v4638_v47, %v19879_v50 }
 0x640   :  { %v4748_v23 = vmax.f32 %v4705_v12, 0.0 }
 0x641   :  { %5161 = vmatmul.bf16.gmra.mxu0 %v19875_v33  ;;  %v4507_v33 = vmax.f32 %v4466_v34, 0.0 }
 0x642   :  { %v17193_v53 = vmax.f32 %v4506_v59, %v4748_v23  ;;  %12197 = vmatmul.msk.bf16.gmra.mxu2 %vm512_vm0, %v19876_v26  ;;  %v4468_v59 = vadd.f32 %v4467_v36, %v4399_v35 }
 0x644   :  { %19878 = vst [vmem:[#allocation28_spill] sm:$0xff] %v17193_v53  ;;  %v4508_v2 = vmax.f32 %v4468_v59, 0.0 }
 0x645   :  { %v4472_v15 = vpop.f32.mrf.mxu3  ;;  %v4707_v43 = vpop.f32.mrf.mxu2 }
 0x646   :  { %v4406_v52 = vpop.f32.mrf.mxu1  ;;  %v4640_v3 = vpop.f32.mrf.mxu0  ;;  %v4708_v44 = vadd.f32 %v4707_v43, %v4639_v7 }
 0x647   :  { %v4641_v23 = vadd.f32 %v4640_v3, %v15434_v55 }
 0x648   :  { %v4749_v12 = vmax.f32 %v4708_v44, 0.0 }
 0x649   :  { %4929 = vmatmul.bf16.gmra.mxu1 %v15134_v9 }
 0x64a   :  { %12147 = vmatmul.msk.bf16.gmra.mxu3 %vm512_vm0, %v15082_v58  ;;  %v4773_v57 = vmax.f32 %v4507_v33, %v4749_v12 }
 0x64c   :  { %v4785_v29 = vmax.f32 %v17099_v8, %v4773_v57 }
 0x64d   :  { %v4475_v47 = vpop.f32.mrf.mxu3  ;;  %v4709_v26 = vpop.f32.mrf.mxu2 }
 0x64e   :  { %v4710_v53 = vadd.f32 %v4709_v26, %v4641_v23  ;;  %v4408_v10 = vpop.f32.mrf.mxu1  ;;  %v4643_v50 = vpop.f32.mrf.mxu0  ;;  %v4402_v26 = vadd.f32 %v4401_v48, %v15358_v28 }
 0x64f   :  { %v4644_v3 = vadd.f32 %v4643_v50, %v15358_v28 }
 0x650   :  { %v4750_v45 = vmax.f32 %v4710_v53, 0.0  ;;  %v4404_v53 = vadd.f32 %v4403_v11, %v15240_v51  ;;  %v4471_v34 = vadd.f32 %v4470_v42, %v4402_v26 }
 0x651   :  { %5166 = vmatmul.bf16.gmra.mxu0 %v15100_v63 }
 0x652   :  { %v4774_v7 = vmax.f32 %v4508_v2, %v4750_v45  ;;  %12198 = vmatmul.msk.bf16.gmra.mxu2 %vm512_vm0, %v15051_v49  ;;  %v4473_v57 = vadd.f32 %v4472_v15, %v4404_v53  ;;  %v4509_v59 = vmax.f32 %v4471_v34, 0.0  ;;  %v4409_v34 = vadd.f32 %v4408_v10, %v15388_v13 }
 0x654   :  { %v4786_v36 = vmax.f32 %v17113_v20, %v4774_v7  ;;  %v4510_v11 = vmax.f32 %v4473_v57, 0.0 }
 0x655   :  { %v4477_v43 = vpop.f32.mrf.mxu3  ;;  %v4712_v62 = vpop.f32.mrf.mxu2 }
 0x656   :  { %v14510_v35 = vpack.c.bf16 %v4786_v36, %v4785_v29  ;;  %v17211_v44 = vpop.f32.mrf.mxu1  ;;  %v4645_v33 = vpop.f32.mrf.mxu0  ;;  %v4713_v2 = vadd.f32 %v4712_v62, %v4644_v3  ;;  %v4478_v10 = vadd.f32 %v4477_v43, %v4409_v34 }
 0x657   :  { %v4646_v20 = vadd.f32 %v4645_v33, %v15240_v51  ;;  %v4412_v34 = vadd.f32 %v17211_v44, %v15198_v30  ;;  %v13985_v44 = vld [vmem:[%s19351_s0 + $0x150] sm:$0xff] }
 0x658   :  { %14778 = vst [vmem:[#allocation2 + $0x238] sm:$0xff] %v14510_v35   ;;  %v4751_v8 = vmax.f32 %v4713_v2, 0.0  ;;  %v4407_v35 = vadd.f32 %v4406_v52, %v15264_v61  ;;  %v13998_v52 = vld [vmem:[%s19351_s0 + $0x178] sm:$0xff] }
 0x659   :  { %4934 = vmatmul.bf16.gmra.mxu1 %v15171_v21  ;;  %5762 = vmatpush.bf16.msrb.mxu2 %v13998_v52 }
 0x65a   :  { %12148 = vmatmul.msk.bf16.gmra.mxu3 %vm512_vm0, %v15116_v4  ;;  %v4775_v7 = vmax.f32 %v4509_v59, %v4751_v8  ;;  %v4476_v8 = vadd.f32 %v4475_v47, %v4407_v35  ;;  %v13996_v59 = vld [vmem:[%s19351_s0 + $0x168] sm:$0xff] }
 0x65b   :  { %5687 = vmatpush.bf16.msrb.mxu0 %v13996_v59 }
 0x65c   :  { %v4787_v15 = vmax.f32 %v17127_v54, %v4775_v7  ;;  %v13988_v54 = vld [vmem:[%s19351_s0 + $0x168] sm:$0xff] }
 0x65d   :  { %v17218_v50 = vpop.f32.mrf.mxu3  ;;  %v4714_v48 = vpop.f32.mrf.mxu2  ;;  %5520 = vmatpush.bf16.msrb.mxu3 %v13988_v54 }
 0x65e   :  { %v4715_v12 = vadd.f32 %v4714_v48, %v4646_v20  ;;  %v4413_v23 = vpop.f32.mrf.mxu1  ;;  %v4648_v45 = vpop.f32.mrf.mxu0 }
 0x65f   :  { %v4649_v3 = vadd.f32 %v4648_v45, %v15264_v61  ;;  %v4414_v52 = vadd.f32 %v4413_v23, %v15217_v39 }
 0x660   :  { %v4752_v29 = vmax.f32 %v4715_v12, 0.0 }
 0x661   :  { %5171 = vmatmul.bf16.gmra.mxu0 %v15134_v9 }
 0x662   :  { %v4776_v42 = vmax.f32 %v4510_v11, %v4752_v29  ;;  %12199 = vmatmul.msk.bf16.gmra.mxu2 %vm512_vm0, %v15082_v58  ;;  %v4511_v11 = vmax.f32 %v4476_v8, 0.0 }
 0x664   :  { %v4788_v36 = vmax.f32 %v17140_v14, %v4776_v42  ;;  %v13986_v14 = vld [vmem:[%s19351_s0 + $0x158] sm:$0xff]  ;;  %v4512_v42 = vmax.f32 %v4478_v10, 0.0 }
 0x665   :  { %v4482_v62 = vpop.f32.mrf.mxu3  ;;  %v4717_v26 = vpop.f32.mrf.mxu2  ;;  %5445 = vmatpush.bf16.msrb.mxu1 %v13986_v14 }
 0x666   :  { %v14515_v33 = vpack.c.bf16 %v4788_v36, %v4787_v15  ;;  %v17227_v53 = vpop.f32.mrf.mxu1  ;;  %v4650_v2 = vpop.f32.mrf.mxu0  ;;  %v4718_v57 = vadd.f32 %v4717_v26, %v4649_v3 }
 0x667   :  { %v4651_v48 = vadd.f32 %v4650_v2, %v15388_v13 }
 0x668   :  { %14779 = vst [vmem:[#allocation2 + $0x160] sm:$0xff] %v14515_v33   ;;  %v4753_v20 = vmax.f32 %v4718_v57, 0.0 }
 0x669   :  { %4939 = vmatmul.bf16.gmra.mxu1 %v15200_v31 }
 0x66a   :  { %12149 = vmatmul.msk.bf16.gmra.mxu3 %vm512_vm0, %v15156_v17  ;;  %v4777_v15 = vmax.f32 %v4511_v11, %v4753_v20  ;;  %5446 = vmatpush.bf16.msrb.mxu1 %v13985_v44 }
 0x66c   :  { %v4789_v3 = vmax.f32 %v17147_v16, %v4777_v15  ;;  %v4481_v16 = vadd.f32 %v17218_v50, %v4412_v34 }
 0x66d   :  { %v4485_v12 = vpop.f32.mrf.mxu3  ;;  %v4719_v45 = vpop.f32.mrf.mxu2 }
 0x66e   :  { %v4720_v7 = vadd.f32 %v4719_v45, %v4651_v48  ;;  %v4418_v29 = vpop.f32.mrf.mxu1  ;;  %v4653_v47 = vpop.f32.mrf.mxu0  ;;  %v4513_v59 = vmax.f32 %v4481_v16, 0.0 }
 0x66f   :  { %v4654_v35 = vadd.f32 %v4653_v47, %v15198_v30 }
 0x670   :  { %v4754_v36 = vmax.f32 %v4720_v7, 0.0 }
 0x671   :  { %5176 = vmatmul.bf16.gmra.mxu0 %v15171_v21 }
 0x672   :  { %v4778_v43 = vmax.f32 %v4512_v42, %v4754_v36  ;;  %12200 = vmatmul.msk.bf16.gmra.mxu2 %vm512_vm0, %v15116_v4 }
 0x674   :  { %v4790_v26 = vmax.f32 %v17154_v38, %v4778_v43  ;;  %v4483_v38 = vadd.f32 %v4482_v62, %v4414_v52 }
 0x675   :  { %v4487_v33 = vpop.f32.mrf.mxu3  ;;  %v4722_v2 = vpop.f32.mrf.mxu2 }
 0x676   :  { %v14520_v57 = vpack.c.bf16 %v4790_v26, %v4789_v3  ;;  %v17254_v54 = vpop.f32.mrf.mxu1  ;;  %v4655_v14 = vpop.f32.mrf.mxu0  ;;  %v4723_v8 = vadd.f32 %v4722_v2, %v4654_v35  ;;  %v4514_v50 = vmax.f32 %v4483_v38, 0.0  ;;  %v4417_v35 = vadd.f32 %v17227_v53, %v15577_v41 }
 0x677   :  { %v4656_v20 = vadd.f32 %v4655_v14, %v15217_v39  ;;  %v4419_v14 = vadd.f32 %v4418_v29, %v15584_v40 }
 0x678   :  { %14780 = vst [vmem:[#allocation2 + $0x50] sm:$0xff] %v14520_v57   ;;  %v4755_v10 = vmax.f32 %v4723_v8, 0.0 }
 0x679   :  { %4944 = vmatmul.bf16.gmra.mxu1 %v15231_v46  ;;  %v4488_v53 = vadd.f32 %v4487_v33, %v4419_v14  ;;  %v13984_v33 = vld [vmem:[%s19351_s0 + $0x148] sm:$0xff] }
 0x67a   :  { %12150 = vmatmul.msk.bf16.gmra.mxu3 %vm512_vm0, %v15181_v24  ;;  %v4779_v47 = vmax.f32 %v4513_v59, %v4755_v10  ;;  %5447 = vmatpush.bf16.msrb.mxu1 %v13984_v33 }
 0x67c   :  { %v4791_v15 = vmax.f32 %v17161_v27, %v4779_v47  ;;  %v13995_v27 = vld [vmem:[%s19351_s0 + $0x160] sm:$0xff] }
 0x67d   :  { %v17265_v48 = vpop.f32.mrf.mxu3  ;;  %v4724_v23 = vpop.f32.mrf.mxu2  ;;  %5688 = vmatpush.bf16.msrb.mxu0 %v13995_v27  ;;  %v13982_v27 = vld [vmem:[%s19351_s0 + $0x138] sm:$0xff] }
 0x67e   :  { %v4725_v45 = vadd.f32 %v4724_v23, %v4656_v20  ;;  %v4423_v11 = vpop.f32.mrf.mxu1  ;;  %v4658_v7 = vpop.f32.mrf.mxu0 }
 0x67f   :  { %v4659_v43 = vadd.f32 %v4658_v7, %v15577_v41  ;;  %v4516_v7 = vmax.f32 %v4488_v53, 0.0 }
 0x680   :  { %v4756_v42 = vmax.f32 %v4725_v45, 0.0 }
 0x681   :  { %5181 = vmatmul.bf16.gmra.mxu0 %v15200_v31 }
 0x682   :  { %v4780_v62 = vmax.f32 %v4514_v50, %v4756_v42  ;;  %12201 = vmatmul.msk.bf16.gmra.mxu2 %vm512_vm0, %v15156_v17 }
 0x684   :  { %v4792_v36 = vmax.f32 %v17168_v32, %v4780_v62  ;;  %v4486_v32 = vadd.f32 %v4485_v12, %v4417_v35  ;;  %v13983_v35 = vld [vmem:[%s19351_s0 + $0x140] sm:$0xff] }
 0x685   :  { %v4492_v3 = vpop.f32.mrf.mxu3  ;;  %v4727_v26 = vpop.f32.mrf.mxu2  ;;  %5448 = vmatpush.bf16.msrb.mxu1 %v13983_v35 }
 0x686   :  { %v14525_v2 = vpack.c.bf16 %v4792_v36, %v4791_v15  ;;  %v4660_v34 = vpop.f32.mrf.mxu0  ;;  %v4910_v57 = vpop.f32.mrf.mxu1  ;;  %v4728_v52 = vadd.f32 %v4727_v26, %v4659_v43  ;;  %v4515_v20 = vmax.f32 %v4486_v32, 0.0 }
 0x687   :  { %v4911_v8 = vadd.f32 %v4910_v57, %v15272_v1  ;;  %v4661_v38 = vadd.f32 %v4660_v34, %v15584_v40 }
 0x688   :  { %14781 = vst [vmem:[#allocation2 + $0x100] sm:$0xff] %v14525_v2   ;;  %v4757_v16 = vmax.f32 %v4728_v52, 0.0  ;;  %v4422_v2 = vadd.f32 %v17254_v54, %v15443_v19 }
 0x689   :  { %4949 = vmatmul.bf16.gmra.mxu1 %v15279_v5 }
 0x68a   :  { %12151 = vmatmul.msk.bf16.gmra.mxu3 %vm512_vm0, %v15215_v37  ;;  %v4781_v12 = vmax.f32 %v4515_v20, %v4757_v16  ;;  %v4491_v32 = vadd.f32 %v17265_v48, %v4422_v2  ;;  %5449 = vmatpush.bf16.msrb.mxu1 %v13982_v27  ;;  %v13981_v48 = vld [vmem:[%s19351_s0 + $0x130] sm:$0xff] }
 0x68c   :  { %v4793_v62 = vmax.f32 %v17175_v60, %v4781_v12  ;;  %v4424_v60 = vadd.f32 %v4423_v11, %v15559_v25 }
 0x68d   :  { %v4729_v29 = vpop.f32.mrf.mxu2  ;;  %v4979_v10 = vpop.f32.mrf.mxu3 }
 0x68e   :  { %v4730_v44 = vadd.f32 %v4729_v29, %v4661_v38  ;;  %v17284_v23 = vadd.f32 %v4979_v10, %v4911_v8  ;;  %v4663_v59 = vpop.f32.mrf.mxu0  ;;  %v4912_v45 = vpop.f32.mrf.mxu1  ;;  %v13994_v8 = vld [vmem:[%s19351_s0 + $0x158] sm:$0xff]  ;;  %v4493_v11 = vadd.f32 %v4492_v3, %v4424_v60  ;;  %v4517_v10 = vmax.f32 %v4491_v32, 0.0  ;;  %5450 = vmatpush.bf16.msrb.mxu1 %v13981_v48 }
 0x68f   :  { %v4913_v42 = vadd.f32 %v4912_v45, %v15300_v18  ;;  %v4664_v36 = vadd.f32 %v4663_v59, %v15443_v19  ;;  %5689 = vmatpush.bf16.msrb.mxu0 %v13994_v8 }
 0x690   :  { %v4758_v50 = vmax.f32 %v4730_v44, 0.0 }
 0x691   :  { %5186 = vmatmul.bf16.gmra.mxu0 %v15231_v46 }
 0x692   :  { %v4782_v47 = vmax.f32 %v4516_v7, %v4758_v50  ;;  %12202 = vmatmul.msk.bf16.gmra.mxu2 %vm512_vm0, %v15181_v24  ;;  %v4518_v7 = vmax.f32 %v4493_v11, 0.0  ;;  %v13980_v50 = vld [vmem:[%s19351_s0 + $0x128] sm:$0xff] }
 0x693   :  { %5451 = vmatpush.bf16.msrb.mxu1 %v13980_v50  ;;  %v19883_v11 = vld [vmem:[#allocation20_spill] sm:$0xff] }
 0x694   :  { %v4794_v15 = vmax.f32 %v17181_v22, %v4782_v47  ;;  %v19880_v47 = vld [vmem:[#allocation18_spill] sm:$0xff] }
 0x695   :  { %v4732_v43 = vpop.f32.mrf.mxu2  ;;  %v4981_v26 = vpop.f32.mrf.mxu3 }
 0x696   :  { %v14530_v34 = vpack.c.bf16 %v4794_v15, %v4793_v62  ;;  %v17301_v57 = vadd.f32 %v4981_v26, %v4913_v42  ;;  %v4665_v14 = vpop.f32.mrf.mxu0  ;;  %v4915_v52 = vpop.f32.mrf.mxu1  ;;  %v4733_v22 = vadd.f32 %v4732_v43, %v4664_v36  ;;  %v19881_v15 = vld [vmem:[#allocation27_spill] sm:$0xff]  ;;  %v19882_v43 = vld [vmem:[#allocation28_spill] sm:$0xff] }
 0x697   :  { %v4916_v54 = vadd.f32 %v4915_v52, %v15281_v6  ;;  %v4666_v16 = vadd.f32 %v4665_v14, %v15559_v25  ;;  %v13987_v14 = vld [vmem:[%s19351_s0 + $0x160] sm:$0xff] }
 0x698   :  { %14782 = vst [vmem:[#allocation2 + $0x30] sm:$0xff] %v14530_v34   ;;  %v4759_v53 = vmax.f32 %v4733_v22, 0.0  ;;  %v13979_v34 = vld [vmem:[%s19351_s0 + $0x120] sm:$0xff]  ;;  %5521 = vmatpush.bf16.msrb.mxu3 %v13987_v14 }
 0x699   :  { %4954 = vmatmul.bf16.gmra.mxu1 %v15338_v0 }
 0x69a   :  { %12152 = vmatmul.msk.bf16.gmra.mxu3 %vm512_vm0, %v15250_v56  ;;  %v4783_v12 = vmax.f32 %v4517_v10, %v4759_v53  ;;  %5452 = vmatpush.bf16.msrb.mxu1 %v13979_v34 }
 0x69c   :  { %v4795_v36 = vmax.f32 %v19881_v15, %v4783_v12 }
 0x69d   :  { %v4734_v38 = vpop.f32.mrf.mxu2  ;;  %v4984_v29 = vpop.f32.mrf.mxu3 }
 0x69e   :  { %v4735_v20 = vadd.f32 %v4734_v38, %v4666_v16  ;;  %v17319_v44 = vadd.f32 %v4984_v29, %v4916_v54  ;;  %v4917_v59 = vpop.f32.mrf.mxu1  ;;  %v5152_v45 = vpop.f32.mrf.mxu0  ;;  %v5039_v54 = vmax.f32 %v17284_v23, 0.0  ;;  %v19884_v16 = vld [vmem:[#allocation15_spill] sm:$0xff]  ;;  %v19885_v29 = vld [vmem:[#allocation17_spill] sm:$0xff] }
 0x69f   :  { %v4918_v42 = vadd.f32 %v4917_v59, %v19880_v47  ;;  %v5153_v62 = vadd.f32 %v5152_v45, %v15272_v1  ;;  %v13993_v59 = vld [vmem:[%s19351_s0 + $0x150] sm:$0xff] }
 0x6a0   :  { %v4760_v3 = vmax.f32 %v4735_v20, 0.0  ;;  %5690 = vmatpush.bf16.msrb.mxu0 %v13993_v59 }
 0x6a1   :  { %5191 = vmatmul.bf16.gmra.mxu0 %v15279_v5 }
 0x6a2   :  { %v4784_v33 = vmax.f32 %v4518_v7, %v4760_v3  ;;  %12203 = vmatmul.msk.bf16.gmra.mxu2 %vm512_vm0, %v15215_v37  ;;  %v5040_v3 = vmax.f32 %v17301_v57, 0.0  ;;  %v13991_v57 = vld [vmem:[%s19351_s0 + $0x140] sm:$0xff] }
 0x6a4   :  { %v4796_v26 = vmax.f32 %v19882_v43, %v4784_v33  ;;  %v13992_v33 = vld [vmem:[%s19351_s0 + $0x148] sm:$0xff] }
 0x6a5   :  { %v4986_v35 = vpop.f32.mrf.mxu3  ;;  %v5221_v2 = vpop.f32.mrf.mxu2  ;;  %5691 = vmatpush.bf16.msrb.mxu0 %v13992_v33 }
 0x6a6   :  { %v14535_v52 = vpack.c.bf16 %v4796_v26, %v4795_v36  ;;  %v4987_v60 = vadd.f32 %v4986_v35, %v4918_v42  ;;  %v5222_v22 = vadd.f32 %v5221_v2, %v5153_v62  ;;  %v4920_v27 = vpop.f32.mrf.mxu1  ;;  %v5154_v32 = vpop.f32.mrf.mxu0  ;;  %v19886_v62 = vld [vmem:[#allocation16_spill] sm:$0xff] }
 0x6a7   :  { %v4921_v38 = vadd.f32 %v4920_v27, %v19884_v16  ;;  %v5155_v48 = vadd.f32 %v5154_v32, %v15300_v18  ;;  %v19887_v27 = vld [vmem:[#allocation22_spill] sm:$0xff] }
 0x6a8   :  { %14783 = vst [vmem:[#allocation2 + $0x1b0] sm:$0xff] %v14535_v52   ;;  %v5281_v8 = vmax.f32 %v5222_v22, 0.0  ;;  %v5041_v52 = vmax.f32 %v17319_v44, 0.0  ;;  %v13990_v32 = vld [vmem:[%s19351_s0 + $0x138] sm:$0xff]  ;;  %v13989_v44 = vld [vmem:[%s19351_s0 + $0x130] sm:$0xff]  ;;  %v5042_v33 = vmax.f32 %v4987_v60, 0.0 }
 0x6a9   :  { %4959 = vmatmul.bf16.gmra.mxu1 %v19883_v11  ;;  %5692 = vmatpush.bf16.msrb.mxu0 %v13991_v57 }
 0x6aa   :  { %v17339_v53 = vmax.f32 %v5039_v54, %v5281_v8  ;;  %12153 = vmatmul.msk.bf16.gmra.mxu3 %vm512_vm0, %v19885_v29  ;;  %v19888_v8 = vld [vmem:[#allocation13_spill] sm:$0xff] }
 0x6ad   :  { %v4989_v10 = vpop.f32.mrf.mxu3  ;;  %v5223_v20 = vpop.f32.mrf.mxu2  ;;  %5693 = vmatpush.bf16.msrb.mxu0 %v13990_v32 }
 0x6ae   :  { %v4990_v23 = vadd.f32 %v4989_v10, %v4921_v38  ;;  %v5224_v45 = vadd.f32 %v5223_v20, %v5155_v48  ;;  %v4922_v7 = vpop.f32.mrf.mxu1  ;;  %v5157_v12 = vpop.f32.mrf.mxu0  ;;  %v19889_v48 = vld [vmem:[#allocation19_spill] sm:$0xff] }
 0x6af   :  { %v4923_v15 = vadd.f32 %v4922_v7, %v19886_v62  ;;  %v5158_v36 = vadd.f32 %v5157_v12, %v15281_v6 }
 0x6b0   :  { %v5282_v50 = vmax.f32 %v5224_v45, 0.0  ;;  %v13997_v45 = vld [vmem:[%s19351_s0 + $0x170] sm:$0xff] }
 0x6b1   :  { %5196 = vmatmul.bf16.gmra.mxu0 %v15338_v0  ;;  %5763 = vmatpush.bf16.msrb.mxu2 %v13997_v45  ;;  %v19893_v45 = vld [vmem:[#allocation7_spill] sm:$0xff] }
 0x6b2   :  { %v17353_v42 = vmax.f32 %v5040_v3, %v5282_v50  ;;  %12204 = vmatmul.msk.bf16.gmra.mxu2 %vm512_vm0, %v15250_v56  ;;  %5694 = vmatpush.bf16.msrb.mxu0 %v13989_v44 }
 0x6b5   :  { %v4991_v43 = vpop.f32.mrf.mxu3  ;;  %v5226_v26 = vpop.f32.mrf.mxu2 }
 0x6b6   :  { %v4992_v35 = vadd.f32 %v4991_v43, %v4923_v15  ;;  %v5227_v2 = vadd.f32 %v5226_v26, %v5158_v36  ;;  %v4925_v34 = vpop.f32.mrf.mxu1  ;;  %v5159_v14 = vpop.f32.mrf.mxu0  ;;  %v19890_v43 = vld [vmem:[#allocation14_spill] sm:$0xff] }
 0x6b7   :  { %v4926_v38 = vadd.f32 %v4925_v34, %v19888_v8  ;;  %v5160_v10 = vadd.f32 %v5159_v14, %v19880_v47 }
 0x6b8   :  { %v5283_v22 = vmax.f32 %v5227_v2, 0.0 }
 0x6b9   :  { %4964 = vmatmul.bf16.gmra.mxu1 %v19887_v27 }
 0x6ba   :  { %v17367_v54 = vmax.f32 %v5041_v52, %v5283_v22  ;;  %12154 = vmatmul.msk.bf16.gmra.mxu3 %vm512_vm0, %v19889_v48 }
 0x6bd   :  { %v4994_v20 = vpop.f32.mrf.mxu3  ;;  %v5228_v59 = vpop.f32.mrf.mxu2 }
 0x6be   :  { %v4995_v7 = vadd.f32 %v4994_v20, %v4926_v38  ;;  %v5229_v12 = vadd.f32 %v5228_v59, %v5160_v10  ;;  %v4927_v3 = vpop.f32.mrf.mxu1  ;;  %v5162_v50 = vpop.f32.mrf.mxu0  ;;  %v5043_v38 = vmax.f32 %v4990_v23, 0.0  ;;  %v19891_v10 = vld [vmem:[#allocation9_spill] sm:$0xff]  ;;  %v19892_v59 = vld [vmem:[#allocation24_spill] sm:$0xff] }
 0x6bf   :  { %v4928_v26 = vadd.f32 %v4927_v3, %v19890_v43  ;;  %v5163_v57 = vadd.f32 %v5162_v50, %v19884_v16 }
 0x6c0   :  { %v5284_v15 = vmax.f32 %v5229_v12, 0.0 }
 0x6c1   :  { %5201 = vmatmul.bf16.gmra.mxu0 %v19883_v11 }
 0x6c2   :  { %v17380_v36 = vmax.f32 %v5042_v33, %v5284_v15  ;;  %12205 = vmatmul.msk.bf16.gmra.mxu2 %vm512_vm0, %v19885_v29 }
 0x6c5   :  { %v4996_v2 = vpop.f32.mrf.mxu3  ;;  %v5231_v34 = vpop.f32.mrf.mxu2 }
 0x6c6   :  { %v4997_v14 = vadd.f32 %v4996_v2, %v4928_v26  ;;  %v5232_v52 = vadd.f32 %v5231_v34, %v5163_v57  ;;  %v4930_v22 = vpop.f32.mrf.mxu1  ;;  %v5164_v32 = vpop.f32.mrf.mxu0  ;;  %v5044_v2 = vmax.f32 %v4992_v35, 0.0 }
 0x6c7   :  { %v4931_v44 = vadd.f32 %v4930_v22, %v19892_v59  ;;  %v5165_v12 = vadd.f32 %v5164_v32, %v19886_v62 }
 0x6c8   :  { %v5285_v60 = vmax.f32 %v5232_v52, 0.0  ;;  %v19894_v52 = vld [vmem:[#allocation25_spill] sm:$0xff] }
 0x6c9   :  { %5453 = vmatmul.bf16.vlgmr.msrb.gmra.mxu1 %v19891_v10 }
 0x6ca   :  { %v17387_v20 = vmax.f32 %v5043_v38, %v5285_v60  ;;  %12247 = vmatmul.msk.bf16.vlgmr.msrb.gmra.mxu3 %vm512_vm0, %v19893_v45 }
 0x6cd   :  { %v4999_v3 = vpop.f32.mrf.mxu3  ;;  %v5233_v50 = vpop.f32.mrf.mxu2 }
 0x6ce   :  { %v5000_v33 = vadd.f32 %v4999_v3, %v4931_v44  ;;  %v5234_v15 = vadd.f32 %v5233_v50, %v5165_v12  ;;  %v4932_v26 = vpop.f32.mrf.mxu1  ;;  %v5167_v57 = vpop.f32.mrf.mxu0  ;;  %v5045_v50 = vmax.f32 %v4995_v7, 0.0 }
 0x6cf   :  { %v4933_v38 = vadd.f32 %v4932_v26, %v19894_v52  ;;  %v5168_v22 = vadd.f32 %v5167_v57, %v19888_v8  ;;  %v19897_v26 = vld [vmem:[#allocation8_spill] sm:$0xff] }
 0x6d0   :  { %v5286_v23 = vmax.f32 %v5234_v15, 0.0  ;;  %v19895_v15 = vld [vmem:[#allocation11_spill] sm:$0xff] }
 0x6d1   :  { %5206 = vmatmul.bf16.gmra.mxu0 %v19887_v27 }
 0x6d2   :  { %v17394_v34 = vmax.f32 %v5044_v2, %v5286_v23  ;;  %12206 = vmatmul.msk.bf16.gmra.mxu2 %vm512_vm0, %v19889_v48  ;;  %v19896_v2 = vld [vmem:[#allocation21_spill] sm:$0xff] }
 0x6d5   :  { %v5001_v32 = vpop.f32.mrf.mxu3  ;;  %v5236_v60 = vpop.f32.mrf.mxu2 }
 0x6d6   :  { %v5002_v62 = vadd.f32 %v5001_v32, %v4933_v38  ;;  %v5237_v44 = vadd.f32 %v5236_v60, %v5168_v22  ;;  %v4935_v12 = vpop.f32.mrf.mxu1  ;;  %v5169_v3 = vpop.f32.mrf.mxu0  ;;  %v5046_v60 = vmax.f32 %v4997_v14, 0.0 }
 0x6d7   :  { %v4936_v23 = vadd.f32 %v4935_v12, %v19896_v2  ;;  %v5170_v57 = vadd.f32 %v5169_v3, %v19890_v43 }
 0x6d8   :  { %v5287_v35 = vmax.f32 %v5237_v44, 0.0 }
 0x6d9   :  { %5458 = vmatmul.bf16.gmra.mxu1 %v19895_v15 }
 0x6da   :  { %v17401_v27 = vmax.f32 %v5045_v50, %v5287_v35  ;;  %12248 = vmatmul.msk.bf16.gmra.mxu3 %vm512_vm0, %v19897_v26  ;;  %v19898_v50 = vld [vmem:[#allocation23_spill] sm:$0xff] }
 0x6dd   :  { %v5004_v48 = vpop.f32.mrf.mxu3  ;;  %v5238_v8 = vpop.f32.mrf.mxu2 }
 0x6de   :  { %v5005_v29 = vadd.f32 %v5004_v48, %v4936_v23  ;;  %v5239_v38 = vadd.f32 %v5238_v8, %v5170_v57  ;;  %v4937_v22 = vpop.f32.mrf.mxu1  ;;  %v5172_v32 = vpop.f32.mrf.mxu0  ;;  %v5047_v57 = vmax.f32 %v5000_v33, 0.0 }
 0x6df   :  { %v4938_v35 = vadd.f32 %v4937_v22, %v19898_v50  ;;  %v5173_v12 = vadd.f32 %v5172_v32, %v19892_v59 }
 0x6e0   :  { %v5288_v7 = vmax.f32 %v5239_v38, 0.0  ;;  %v19899_v38 = vld [vmem:[#allocation12_spill] sm:$0xff] }
 0x6e1   :  { %5695 = vmatmul.bf16.vlgmr.msrb.gmra.mxu0 %v19891_v10 }
 0x6e2   :  { %v17408_v44 = vmax.f32 %v5046_v60, %v5288_v7  ;;  %12299 = vmatmul.msk.bf16.vlgmr.msrb.gmra.mxu2 %vm512_vm0, %v19893_v45  ;;  %v19900_v60 = vld [vmem:[#allocation10_spill] sm:$0xff] }
 0x6e5   :  { %v5006_v3 = vpop.f32.mrf.mxu3  ;;  %v5241_v43 = vpop.f32.mrf.mxu2 }
 0x6e6   :  { %v5007_v16 = vadd.f32 %v5006_v3, %v4938_v35  ;;  %v5242_v48 = vadd.f32 %v5241_v43, %v5173_v12  ;;  %v4940_v8 = vpop.f32.mrf.mxu1  ;;  %v5174_v23 = vpop.f32.mrf.mxu0  ;;  %v5048_v35 = vmax.f32 %v5002_v62, 0.0 }
 0x6e7   :  { %v5175_v22 = vadd.f32 %v5174_v23, %v19894_v52  ;;  %v5049_v52 = vmax.f32 %v5005_v29, 0.0 }
 0x6e8   :  { %v5289_v14 = vmax.f32 %v5242_v48, 0.0 }
 0x6e9   :  { %5463 = vmatmul.bf16.gmra.mxu1 %v19899_v38 }
 0x6ea   :  { %v17415_v10 = vmax.f32 %v5047_v57, %v5289_v14  ;;  %12249 = vmatmul.msk.bf16.gmra.mxu3 %vm512_vm0, %v19900_v60 }
 0x6ed   :  { %v5009_v32 = vpop.f32.mrf.mxu3  ;;  %v5243_v7 = vpop.f32.mrf.mxu2 }
 0x6ee   :  { %v5244_v45 = vadd.f32 %v5243_v7, %v5175_v22  ;;  %v4942_v59 = vpop.f32.mrf.mxu1  ;;  %v5177_v11 = vpop.f32.mrf.mxu0 }
 0x6ef   :  { %v5178_v12 = vadd.f32 %v5177_v11, %v19896_v2  ;;  %v5050_v2 = vmax.f32 %v5007_v16, 0.0 }
 0x6f0   :  { %v5290_v43 = vmax.f32 %v5244_v45, 0.0 }
 0x6f1   :  { %5700 = vmatmul.bf16.gmra.mxu0 %v19895_v15 }
 0x6f2   :  { %v17421_v33 = vmax.f32 %v5048_v35, %v5290_v43  ;;  %12300 = vmatmul.msk.bf16.gmra.mxu2 %vm512_vm0, %v19897_v26 }
 0x6f5   :  { %v5011_v3 = vpop.f32.mrf.mxu3  ;;  %v5246_v48 = vpop.f32.mrf.mxu2 }
 0x6f6   :  { %v5247_v57 = vadd.f32 %v5246_v48, %v5178_v12  ;;  %v4945_v23 = vpop.f32.mrf.mxu1  ;;  %v5179_v14 = vpop.f32.mrf.mxu0 }
 0x6f7   :  { %v5180_v45 = vadd.f32 %v5179_v14, %v19898_v50 }
 0x6f8   :  { %v5291_v22 = vmax.f32 %v5247_v57, 0.0 }
 0x6f9   :  { %5468 = vmatmul.bf16.gmra.mxu1 %v15100_v63 }
 0x6fa   :  { %v17427_v62 = vmax.f32 %v5049_v52, %v5291_v22  ;;  %12250 = vmatmul.msk.bf16.gmra.mxu3 %vm512_vm0, %v15051_v49  ;;  %v19903_v52 = vld [vmem:[#allocation26_spill] sm:$0xff] }
 0x6fb   :  { %v4941_v14 = vadd.f32 %v4940_v8, %v19903_v52 }
 0x6fc   :  { %19901 = vst [vmem:[#allocation27_spill] sm:$0xff] %v17427_v62 }
 0x6fd   :  { %v5014_v11 = vpop.f32.mrf.mxu3  ;;  %v5248_v7 = vpop.f32.mrf.mxu2  ;;  %v5010_v16 = vadd.f32 %v5009_v32, %v4941_v14 }
 0x6fe   :  { %v5249_v35 = vadd.f32 %v5248_v7, %v5180_v45  ;;  %v4947_v43 = vpop.f32.mrf.mxu1  ;;  %v5182_v26 = vpop.f32.mrf.mxu0  ;;  %v4943_v45 = vadd.f32 %v4942_v59, %v15434_v55 }
 0x6ff   :  { %v5183_v48 = vadd.f32 %v5182_v26, %v19903_v52 }
 0x700   :  { %v5292_v12 = vmax.f32 %v5249_v35, 0.0 }
 0x701   :  { %5705 = vmatmul.bf16.gmra.mxu0 %v19899_v38  ;;  %v5051_v38 = vmax.f32 %v5010_v16, 0.0 }
 0x702   :  { %v17433_v29 = vmax.f32 %v5050_v2, %v5292_v12  ;;  %12301 = vmatmul.msk.bf16.gmra.mxu2 %vm512_vm0, %v19900_v60  ;;  %v5012_v2 = vadd.f32 %v5011_v3, %v4943_v45 }
 0x704   :  { %19902 = vst [vmem:[#allocation28_spill] sm:$0xff] %v17433_v29  ;;  %v5052_v62 = vmax.f32 %v5012_v2, 0.0 }
 0x705   :  { %v5016_v57 = vpop.f32.mrf.mxu3  ;;  %v5251_v22 = vpop.f32.mrf.mxu2 }
 0x706   :  { %v4950_v50 = vpop.f32.mrf.mxu1  ;;  %v5184_v15 = vpop.f32.mrf.mxu0  ;;  %v5252_v7 = vadd.f32 %v5251_v22, %v5183_v48 }
 0x707   :  { %v5185_v12 = vadd.f32 %v5184_v15, %v15434_v55 }
 0x708   :  { %v5293_v35 = vmax.f32 %v5252_v7, 0.0 }
 0x709   :  { %5473 = vmatmul.bf16.gmra.mxu1 %v15134_v9 }
 0x70a   :  { %12251 = vmatmul.msk.bf16.gmra.mxu3 %vm512_vm0, %v15082_v58  ;;  %v5317_v47 = vmax.f32 %v5051_v38, %v5293_v35 }
 0x70c   :  { %v5329_v32 = vmax.f32 %v17339_v53, %v5317_v47 }
 0x70d   :  { %v5019_v26 = vpop.f32.mrf.mxu3  ;;  %v5253_v60 = vpop.f32.mrf.mxu2 }
 0x70e   :  { %v5254_v29 = vadd.f32 %v5253_v60, %v5185_v12  ;;  %v4952_v8 = vpop.f32.mrf.mxu1  ;;  %v5187_v52 = vpop.f32.mrf.mxu0  ;;  %v4946_v60 = vadd.f32 %v4945_v23, %v15358_v28 }
 0x70f   :  { %v5188_v15 = vadd.f32 %v5187_v52, %v15358_v28 }
 0x710   :  { %v5294_v59 = vmax.f32 %v5254_v29, 0.0  ;;  %v4948_v29 = vadd.f32 %v4947_v43, %v15240_v51  ;;  %v5015_v16 = vadd.f32 %v5014_v11, %v4946_v60 }
 0x711   :  { %5710 = vmatmul.bf16.gmra.mxu0 %v15100_v63 }
 0x712   :  { %v5318_v48 = vmax.f32 %v5052_v62, %v5294_v59  ;;  %12302 = vmatmul.msk.bf16.gmra.mxu2 %vm512_vm0, %v15051_v49  ;;  %v5017_v47 = vadd.f32 %v5016_v57, %v4948_v29  ;;  %v5053_v2 = vmax.f32 %v5015_v16, 0.0  ;;  %v4953_v16 = vadd.f32 %v4952_v8, %v15388_v13 }
 0x714   :  { %v5330_v3 = vmax.f32 %v17353_v42, %v5318_v48  ;;  %v5054_v43 = vmax.f32 %v5017_v47, 0.0 }
 0x715   :  { %v5021_v22 = vpop.f32.mrf.mxu3  ;;  %v5256_v14 = vpop.f32.mrf.mxu2 }
 0x716   :  { %v14540_v45 = vpack.c.bf16 %v5330_v3, %v5329_v32  ;;  %v17451_v7 = vpop.f32.mrf.mxu1  ;;  %v5189_v38 = vpop.f32.mrf.mxu0  ;;  %v5257_v62 = vadd.f32 %v5256_v14, %v5188_v15  ;;  %v5022_v8 = vadd.f32 %v5021_v22, %v4953_v16 }
 0x717   :  { %v5190_v42 = vadd.f32 %v5189_v38, %v15240_v51 }
 0x718   :  { %14784 = vst [vmem:[#allocation2 + $0x90] sm:$0xff] %v14540_v45   ;;  %v5295_v53 = vmax.f32 %v5257_v62, 0.0  ;;  %v4951_v45 = vadd.f32 %v4950_v50, %v15264_v61  ;;  %v14018_v50 = vld [vmem:[%s19351_s0 + $0x198] sm:$0xff] }
 0x719   :  { %5478 = vmatmul.bf16.gmra.mxu1 %v15171_v21  ;;  %6306 = vmatpush.bf16.msra.mxu2 %v14018_v50 }
 0x71a   :  { %12252 = vmatmul.msk.bf16.gmra.mxu3 %vm512_vm0, %v15116_v4  ;;  %v5319_v48 = vmax.f32 %v5053_v2, %v5295_v53  ;;  %v5020_v53 = vadd.f32 %v5019_v26, %v4951_v45  ;;  %v14016_v2 = vld [vmem:[%s19351_s0 + $0x188] sm:$0xff] }
 0x71b   :  { %6231 = vmatpush.bf16.msra.mxu0 %v14016_v2 }
 0x71c   :  { %v5331_v57 = vmax.f32 %v17367_v54, %v5319_v48  ;;  %v14008_v54 = vld [vmem:[%s19351_s0 + $0x188] sm:$0xff] }
 0x71d   :  { %v17458_v52 = vpop.f32.mrf.mxu3  ;;  %v5258_v23 = vpop.f32.mrf.mxu2  ;;  %6064 = vmatpush.bf16.msra.mxu3 %v14008_v54 }
 0x71e   :  { %v5259_v35 = vadd.f32 %v5258_v23, %v5190_v42  ;;  %v4957_v12 = vpop.f32.mrf.mxu1  ;;  %v5192_v59 = vpop.f32.mrf.mxu0 }
 0x71f   :  { %v5193_v15 = vadd.f32 %v5192_v59, %v15264_v61 }
 0x720   :  { %v5296_v32 = vmax.f32 %v5259_v35, 0.0 }
 0x721   :  { %5715 = vmatmul.bf16.gmra.mxu0 %v15134_v9 }
 0x722   :  { %v5320_v11 = vmax.f32 %v5054_v43, %v5296_v32  ;;  %12303 = vmatmul.msk.bf16.gmra.mxu2 %vm512_vm0, %v15082_v58  ;;  %v5055_v43 = vmax.f32 %v5020_v53, 0.0  ;;  %v14004_v53 = vld [vmem:[%s19351_s0 + $0x168] sm:$0xff] }
 0x724   :  { %v5332_v3 = vmax.f32 %v17380_v36, %v5320_v11  ;;  %v14006_v36 = vld [vmem:[%s19351_s0 + $0x178] sm:$0xff]  ;;  %v5056_v11 = vmax.f32 %v5022_v8, 0.0 }
 0x725   :  { %v5026_v14 = vpop.f32.mrf.mxu3  ;;  %v5261_v60 = vpop.f32.mrf.mxu2  ;;  %5989 = vmatpush.bf16.msra.mxu1 %v14006_v36 }
 0x726   :  { %v14545_v38 = vpack.c.bf16 %v5332_v3, %v5331_v57  ;;  %v17467_v29 = vpop.f32.mrf.mxu1  ;;  %v5194_v62 = vpop.f32.mrf.mxu0  ;;  %v5262_v47 = vadd.f32 %v5261_v60, %v5193_v15  ;;  %v14005_v15 = vld [vmem:[%s19351_s0 + $0x170] sm:$0xff] }
 0x727   :  { %v5195_v23 = vadd.f32 %v5194_v62, %v15388_v13 }
 0x728   :  { %14785 = vst [vmem:[#allocation2 + $0x130] sm:$0xff] %v14545_v38   ;;  %v5297_v42 = vmax.f32 %v5262_v47, 0.0  ;;  %v4956_v47 = vadd.f32 %v17451_v7, %v15198_v30  ;;  %v14003_v7 = vld [vmem:[%s19351_s0 + $0x160] sm:$0xff] }
 0x729   :  { %5483 = vmatmul.bf16.gmra.mxu1 %v15200_v31 }
 0x72a   :  { %12253 = vmatmul.msk.bf16.gmra.mxu3 %vm512_vm0, %v15156_v17  ;;  %v5321_v57 = vmax.f32 %v5055_v43, %v5297_v42  ;;  %5990 = vmatpush.bf16.msra.mxu1 %v14005_v15  ;;  %v5025_v8 = vadd.f32 %v17458_v52, %v4956_v47  ;;  %v14001_v15 = vld [vmem:[%s19351_s0 + $0x150] sm:$0xff] }
 0x72c   :  { %v5333_v60 = vmax.f32 %v17387_v20, %v5321_v57  ;;  %v4958_v20 = vadd.f32 %v4957_v12, %v15217_v39  ;;  %v5057_v43 = vmax.f32 %v5025_v8, 0.0  ;;  %v14015_v8 = vld [vmem:[%s19351_s0 + $0x180] sm:$0xff] }
 0x72d   :  { %v17486_v35 = vpop.f32.mrf.mxu3  ;;  %v5263_v59 = vpop.f32.mrf.mxu2  ;;  %6232 = vmatpush.bf16.msra.mxu0 %v14015_v8 }
 0x72e   :  { %v5264_v48 = vadd.f32 %v5263_v59, %v5195_v23  ;;  %v4962_v26 = vpop.f32.mrf.mxu1  ;;  %v5197_v32 = vpop.f32.mrf.mxu0  ;;  %5991 = vmatpush.bf16.msra.mxu1 %v14004_v53  ;;  %v5027_v42 = vadd.f32 %v5026_v14, %v4958_v20 }
 0x72f   :  { %v5198_v38 = vadd.f32 %v5197_v32, %v15198_v30 }
 0x730   :  { %v5298_v3 = vmax.f32 %v5264_v48, 0.0  ;;  %v5058_v57 = vmax.f32 %v5027_v42, 0.0  ;;  %v14026_v42 = vld [vmem:[%s19351_s0 + $0x198] sm:$0xff] }
 0x731   :  { %5720 = vmatmul.bf16.gmra.mxu0 %v15171_v21 }
 0x732   :  { %v5322_v22 = vmax.f32 %v5056_v11, %v5298_v3  ;;  %12304 = vmatmul.msk.bf16.gmra.mxu2 %vm512_vm0, %v15116_v4  ;;  %5992 = vmatpush.bf16.msra.mxu1 %v14003_v7  ;;  %v14002_v11 = vld [vmem:[%s19351_s0 + $0x158] sm:$0xff] }
 0x734   :  { %v5334_v45 = vmax.f32 %v17394_v34, %v5322_v22 }
 0x735   :  { %v5031_v62 = vpop.f32.mrf.mxu3  ;;  %v5266_v16 = vpop.f32.mrf.mxu2 }
 0x736   :  { %v14550_v54 = vpack.c.bf16 %v5334_v45, %v5333_v60  ;;  %v17499_v36 = vpop.f32.mrf.mxu1  ;;  %v5199_v50 = vpop.f32.mrf.mxu0  ;;  %v5267_v34 = vadd.f32 %v5266_v16, %v5198_v38  ;;  %5993 = vmatpush.bf16.msra.mxu1 %v14002_v11 }
 0x737   :  { %v5200_v2 = vadd.f32 %v5199_v50, %v15217_v39 }
 0x738   :  { %14786 = vst [vmem:[#allocation2 + $0x68] sm:$0xff] %v14550_v54   ;;  %v5299_v23 = vmax.f32 %v5267_v34, 0.0  ;;  %v4961_v54 = vadd.f32 %v17467_v29, %v15577_v41  ;;  %v14000_v34 = vld [vmem:[%s19351_s0 + $0x148] sm:$0xff] }
 0x739   :  { %5488 = vmatmul.bf16.gmra.mxu1 %v15231_v46 }
 0x73a   :  { %12254 = vmatmul.msk.bf16.gmra.mxu3 %vm512_vm0, %v15181_v24  ;;  %v5323_v3 = vmax.f32 %v5057_v43, %v5299_v23  ;;  %5994 = vmatpush.bf16.msra.mxu1 %v14001_v15  ;;  %v5030_v29 = vadd.f32 %v17486_v35, %v4961_v54  ;;  %v14024_v54 = vld [vmem:[%s19351_s0 + $0x188] sm:$0xff] }
 0x73c   :  { %v5335_v60 = vmax.f32 %v17401_v27, %v5323_v3  ;;  %v4963_v27 = vadd.f32 %v4962_v26, %v15584_v40  ;;  %v13999_v26 = vld [vmem:[%s19351_s0 + $0x140] sm:$0xff] }
 0x73d   :  { %v17513_v12 = vpop.f32.mrf.mxu3  ;;  %v5268_v59 = vpop.f32.mrf.mxu2 }
 0x73e   :  { %v5269_v48 = vadd.f32 %v5268_v59, %v5200_v2  ;;  %v17515_v32 = vpop.f32.mrf.mxu1  ;;  %v5202_v52 = vpop.f32.mrf.mxu0  ;;  %5995 = vmatpush.bf16.msra.mxu1 %v14000_v34  ;;  %v5032_v23 = vadd.f32 %v5031_v62, %v4963_v27  ;;  %v14025_v62 = vld [vmem:[%s19351_s0 + $0x190] sm:$0xff] }
 0x73f   :  { %v5203_v38 = vadd.f32 %v5202_v52, %v15577_v41 }
 0x740   :  { %v5300_v22 = vmax.f32 %v5269_v48, 0.0  ;;  %v5059_v48 = vmax.f32 %v5030_v29, 0.0 }
 0x741   :  { %5725 = vmatmul.bf16.gmra.mxu0 %v15200_v31 }
 0x742   :  { %v5324_v14 = vmax.f32 %v5058_v57, %v5300_v22  ;;  %12305 = vmatmul.msk.bf16.gmra.mxu2 %vm512_vm0, %v15156_v17  ;;  %5996 = vmatpush.bf16.msra.mxu1 %v13999_v26  ;;  %v14014_v22 = vld [vmem:[%s19351_s0 + $0x178] sm:$0xff] }
 0x743   :  { %6233 = vmatpush.bf16.msra.mxu0 %v14014_v22 }
 0x744   :  { %v5336_v45 = vmax.f32 %v17408_v44, %v5324_v14  ;;  %v5060_v14 = vmax.f32 %v5032_v23, 0.0 }
 0x745   :  { %v17529_v16 = vpop.f32.mrf.mxu3  ;;  %v5271_v47 = vpop.f32.mrf.mxu2 }
 0x746   :  { %v14555_v50 = vpack.c.bf16 %v5336_v45, %v5335_v60  ;;  %v5204_v53 = vpop.f32.mrf.mxu0  ;;  %v5454_v20 = vpop.f32.mrf.mxu1  ;;  %v5272_v44 = vadd.f32 %v5271_v47, %v5203_v38  ;;  %6533 = vmatpush.bf16.msrb.mxu1 %v14026_v42  ;;  %v14013_v47 = vld [vmem:[%s19351_s0 + $0x170] sm:$0xff]  ;;  %v4968_v42 = vadd.f32 %v17515_v32, %v15559_v25  ;;  %v14022_v32 = vld [vmem:[%s19351_s0 + $0x178] sm:$0xff] }
 0x747   :  { %v5455_v7 = vadd.f32 %v5454_v20, %v15272_v1  ;;  %v5205_v59 = vadd.f32 %v5204_v53, %v15584_v40  ;;  %6234 = vmatpush.bf16.msra.mxu0 %v14013_v47 }
 0x748   :  { %14787 = vst [vmem:[#allocation2 + $0x230] sm:$0xff] %v14555_v50   ;;  %v5301_v2 = vmax.f32 %v5272_v44, 0.0  ;;  %v4966_v44 = vadd.f32 %v17499_v36, %v15443_v19 }
 0x749   :  { %5493 = vmatmul.bf16.gmra.mxu1 %v15279_v5 }
 0x74a   :  { %12255 = vmatmul.msk.bf16.gmra.mxu3 %vm512_vm0, %v15215_v37  ;;  %v5325_v15 = vmax.f32 %v5059_v48, %v5301_v2  ;;  %6534 = vmatpush.bf16.msrb.mxu1 %v14025_v62  ;;  %v5035_v36 = vadd.f32 %v17513_v12, %v4966_v44  ;;  %v14028_v44 = vld [vmem:[%s19351_s0 + $0x1a8] sm:$0xff] }
 0x74c   :  { %v5337_v50 = vmax.f32 %v17415_v10, %v5325_v15  ;;  %v14012_v10 = vld [vmem:[%s19351_s0 + $0x168] sm:$0xff]  ;;  %v14010_v15 = vld [vmem:[%s19351_s0 + $0x158] sm:$0xff] }
 0x74d   :  { %v5273_v35 = vpop.f32.mrf.mxu2  ;;  %v5523_v43 = vpop.f32.mrf.mxu3  ;;  %6235 = vmatpush.bf16.msra.mxu0 %v14012_v10  ;;  %v19906_v10 = vld [vmem:[#allocation28_spill] sm:$0xff] }
 0x74e   :  { %v5274_v52 = vadd.f32 %v5273_v35, %v5205_v59  ;;  %v17552_v11 = vadd.f32 %v5523_v43, %v5455_v7  ;;  %v5207_v57 = vpop.f32.mrf.mxu0  ;;  %v5456_v3 = vpop.f32.mrf.mxu1  ;;  %6535 = vmatpush.bf16.msrb.mxu1 %v14024_v54  ;;  %v14011_v59 = vld [vmem:[%s19351_s0 + $0x160] sm:$0xff]  ;;  %v5037_v35 = vadd.f32 %v17529_v16, %v4968_v42  ;;  %v14021_v16 = vld [vmem:[%s19351_s0 + $0x170] sm:$0xff] }
 0x74f   :  { %v5457_v38 = vadd.f32 %v5456_v3, %v15300_v18  ;;  %v5208_v20 = vadd.f32 %v5207_v57, %v15443_v19  ;;  %v5061_v57 = vmax.f32 %v5035_v36, 0.0  ;;  %v19904_v54 = vld [vmem:[#allocation18_spill] sm:$0xff] }
 0x750   :  { %v5302_v60 = vmax.f32 %v5274_v52, 0.0 }
 0x751   :  { %5730 = vmatmul.bf16.gmra.mxu0 %v15231_v46 }
 0x752   :  { %v5326_v45 = vmax.f32 %v5060_v14, %v5302_v60  ;;  %12306 = vmatmul.msk.bf16.gmra.mxu2 %vm512_vm0, %v15181_v24  ;;  %6236 = vmatpush.bf16.msra.mxu0 %v14011_v59  ;;  %v5062_v60 = vmax.f32 %v5037_v35, 0.0 }
 0x754   :  { %v5338_v53 = vmax.f32 %v17421_v33, %v5326_v45  ;;  %v14023_v33 = vld [vmem:[%s19351_s0 + $0x180] sm:$0xff] }
 0x755   :  { %v5276_v34 = vpop.f32.mrf.mxu2  ;;  %v5525_v27 = vpop.f32.mrf.mxu3  ;;  %6536 = vmatpush.bf16.msrb.mxu1 %v14023_v33 }
 0x756   :  { %v14560_v8 = vpack.c.bf16 %v5338_v53, %v5337_v50  ;;  %v17575_v29 = vadd.f32 %v5525_v27, %v5457_v38  ;;  %v5209_v7 = vpop.f32.mrf.mxu0  ;;  %v5459_v26 = vpop.f32.mrf.mxu1  ;;  %v5277_v23 = vadd.f32 %v5276_v34, %v5208_v20  ;;  %6237 = vmatpush.bf16.msra.mxu0 %v14010_v15  ;;  %v14007_v20 = vld [vmem:[%s19351_s0 + $0x180] sm:$0xff]  ;;  %v14009_v34 = vld [vmem:[%s19351_s0 + $0x150] sm:$0xff]  ;;  %v14020_v27 = vld [vmem:[%s19351_s0 + $0x168] sm:$0xff] }
 0x757   :  { %v5460_v2 = vadd.f32 %v5459_v26, %v15281_v6  ;;  %v5210_v48 = vadd.f32 %v5209_v7, %v15559_v25  ;;  %v19905_v7 = vld [vmem:[#allocation27_spill] sm:$0xff]  ;;  %6065 = vmatpush.bf16.msra.mxu3 %v14007_v20 }
 0x758   :  { %14788 = vst [vmem:[#allocation2 + $0x1d8] sm:$0xff] %v14560_v8   ;;  %v5303_v43 = vmax.f32 %v5277_v23, 0.0  ;;  %v14036_v8 = vld [vmem:[%s19351_s0 + $0x1a8] sm:$0xff] }
 0x759   :  { %5498 = vmatmul.bf16.gmra.mxu1 %v15338_v0 }
 0x75a   :  { %12256 = vmatmul.msk.bf16.gmra.mxu3 %vm512_vm0, %v15250_v56  ;;  %6537 = vmatpush.bf16.msrb.mxu1 %v14022_v32  ;;  %v5327_v45 = vmax.f32 %v5061_v57, %v5303_v43  ;;  %v14019_v43 = vld [vmem:[%s19351_s0 + $0x160] sm:$0xff] }
 0x75b   :  { %6238 = vmatpush.bf16.msra.mxu0 %v14009_v34  ;;  %6608 = vmatpush.bf16.msrb.mxu3 %v14028_v44  ;;  %v5584_v34 = vmax.f32 %v17575_v29, 0.0  ;;  %v14033_v44 = vld [vmem:[%s19351_s0 + $0x190] sm:$0xff]  ;;  %v14032_v29 = vld [vmem:[%s19351_s0 + $0x188] sm:$0xff] }
 0x75c   :  { %v5339_v26 = vmax.f32 %v19905_v7, %v5327_v45  ;;  %v19910_v7 = vld [vmem:[#allocation16_spill] sm:$0xff] }
 0x75d   :  { %v5278_v12 = vpop.f32.mrf.mxu2  ;;  %v5528_v52 = vpop.f32.mrf.mxu3 }
 0x75e   :  { %v5279_v3 = vadd.f32 %v5278_v12, %v5210_v48  ;;  %v17598_v22 = vadd.f32 %v5528_v52, %v5460_v2  ;;  %v5461_v62 = vpop.f32.mrf.mxu1  ;;  %v5696_v14 = vpop.f32.mrf.mxu0  ;;  %6538 = vmatpush.bf16.msrb.mxu1 %v14021_v16  ;;  %v14027_v48 = vld [vmem:[%s19351_s0 + $0x1a0] sm:$0xff]  ;;  %v5583_v52 = vmax.f32 %v17552_v11, 0.0  ;;  %v19909_v16 = vld [vmem:[#allocation17_spill] sm:$0xff] }
 0x75f   :  { %v5462_v50 = vadd.f32 %v5461_v62, %v19904_v54  ;;  %v5697_v53 = vadd.f32 %v5696_v14, %v15272_v1  ;;  %6775 = vmatpush.bf16.msrb.mxu0 %v14036_v8  ;;  %v14035_v12 = vld [vmem:[%s19351_s0 + $0x1a0] sm:$0xff]  ;;  %6609 = vmatpush.bf16.msrb.mxu3 %v14027_v48  ;;  %v14034_v11 = vld [vmem:[%s19351_s0 + $0x198] sm:$0xff] }
 0x760   :  { %v5304_v38 = vmax.f32 %v5279_v3, 0.0  ;;  %v19907_v3 = vld [vmem:[#allocation20_spill] sm:$0xff]  ;;  %v19908_v14 = vld [vmem:[#allocation15_spill] sm:$0xff] }
 0x761   :  { %5735 = vmatmul.bf16.gmra.mxu0 %v15279_v5  ;;  %v14031_v48 = vld [vmem:[%s19351_s0 + $0x180] sm:$0xff] }
 0x762   :  { %v5328_v47 = vmax.f32 %v5062_v60, %v5304_v38  ;;  %12307 = vmatmul.msk.bf16.gmra.mxu2 %vm512_vm0, %v15215_v37  ;;  %6539 = vmatpush.bf16.msrb.mxu1 %v14020_v27 }
 0x763   :  { %6776 = vmatpush.bf16.msrb.mxu0 %v14035_v12  ;;  %v19911_v12 = vld [vmem:[#allocation22_spill] sm:$0xff] }
 0x764   :  { %v5340_v33 = vmax.f32 %v19906_v10, %v5328_v47 }
 0x765   :  { %v5530_v42 = vpop.f32.mrf.mxu3  ;;  %v5765_v23 = vpop.f32.mrf.mxu2 }
 0x766   :  { %v14565_v36 = vpack.c.bf16 %v5340_v33, %v5339_v26  ;;  %v17628_v2 = vadd.f32 %v5530_v42, %v5462_v50  ;;  %v5766_v59 = vadd.f32 %v5765_v23, %v5697_v53  ;;  %v5464_v32 = vpop.f32.mrf.mxu1  ;;  %v5698_v35 = vpop.f32.mrf.mxu0  ;;  %6540 = vmatpush.bf16.msrb.mxu1 %v14019_v43 }
 0x767   :  { %v5465_v15 = vadd.f32 %v5464_v32, %v19908_v14  ;;  %v5699_v60 = vadd.f32 %v5698_v35, %v15300_v18  ;;  %6777 = vmatpush.bf16.msrb.mxu0 %v14034_v11  ;;  %v5585_v35 = vmax.f32 %v17598_v22, 0.0  ;;  %v14017_v11 = vld [vmem:[%s19351_s0 + $0x190] sm:$0xff] }
 0x768   :  { %14789 = vst [vmem:[#allocation2 + $0x228] sm:$0xff] %v14565_v36   ;;  %v5825_v57 = vmax.f32 %v5766_v59, 0.0  ;;  %6307 = vmatpush.bf16.msra.mxu2 %v14017_v11 }
 0x769   :  { %5503 = vmatmul.bf16.gmra.mxu1 %v19907_v3 }
 0x76a   :  { %v17641_v62 = vmax.f32 %v5583_v52, %v5825_v57  ;;  %12257 = vmatmul.msk.bf16.gmra.mxu3 %vm512_vm0, %v19909_v16  ;;  %v19912_v57 = vld [vmem:[#allocation13_spill] sm:$0xff] }
 0x76b   :  { %6778 = vmatpush.bf16.msrb.mxu0 %v14033_v44 }
 0x76d   :  { %v5533_v45 = vpop.f32.mrf.mxu3  ;;  %v5767_v38 = vpop.f32.mrf.mxu2 }
 0x76e   :  { %v17650_v47 = vadd.f32 %v5533_v45, %v5465_v15  ;;  %v5768_v50 = vadd.f32 %v5767_v38, %v5699_v60  ;;  %v5466_v53 = vpop.f32.mrf.mxu1  ;;  %v5701_v20 = vpop.f32.mrf.mxu0  ;;  %v19913_v60 = vld [vmem:[#allocation19_spill] sm:$0xff]  ;;  %v14030_v45 = vld [vmem:[%s19351_s0 + $0x178] sm:$0xff] }
 0x76f   :  { %v5467_v26 = vadd.f32 %v5466_v53, %v19910_v7  ;;  %v5702_v10 = vadd.f32 %v5701_v20, %v15281_v6  ;;  %6779 = vmatpush.bf16.msrb.mxu0 %v14032_v29  ;;  %v14038_v38 = vld [vmem:[%s19351_s0 + $0x1b8] sm:$0xff]  ;;  %v14029_v29 = vld [vmem:[%s19351_s0 + $0x170] sm:$0xff] }
 0x770   :  { %v5826_v27 = vmax.f32 %v5768_v50, 0.0  ;;  %6850 = vmatpush.bf16.msrb.mxu2 %v14038_v38  ;;  %v14046_v38 = vld [vmem:[#allocation2 + $0x120] sm:$0xff] }
 0x771   :  { %5740 = vmatmul.bf16.gmra.mxu0 %v15338_v0 }
 0x772   :  { %v17657_v8 = vmax.f32 %v5584_v34, %v5826_v27  ;;  %12308 = vmatmul.msk.bf16.gmra.mxu2 %vm512_vm0, %v15250_v56 }
 0x773   :  { %6780 = vmatpush.bf16.msrb.mxu0 %v14031_v48 }
 0x775   :  { %v5535_v33 = vpop.f32.mrf.mxu3  ;;  %v5770_v42 = vpop.f32.mrf.mxu2 }
 0x776   :  { %v17666_v23 = vadd.f32 %v5535_v33, %v5467_v26  ;;  %v5771_v36 = vadd.f32 %v5770_v42, %v5702_v10  ;;  %v5469_v59 = vpop.f32.mrf.mxu1  ;;  %v5703_v32 = vpop.f32.mrf.mxu0  ;;  %v5586_v26 = vmax.f32 %v17628_v2, 0.0  ;;  %v14037_v33 = vld [vmem:[%s19351_s0 + $0x1b0] sm:$0xff] }
 0x777   :  { %v5470_v15 = vadd.f32 %v5469_v59, %v19912_v57  ;;  %v5704_v22 = vadd.f32 %v5703_v32, %v19904_v54  ;;  %6781 = vmatpush.bf16.msrb.mxu0 %v14030_v45  ;;  %6851 = vmatpush.bf16.msrb.mxu2 %v14037_v33 }
 0x778   :  { %v5827_v43 = vmax.f32 %v5771_v36, 0.0  ;;  %v19914_v36 = vld [vmem:[#allocation14_spill] sm:$0xff] }
 0x779   :  { %5508 = vmatmul.bf16.gmra.mxu1 %v19911_v12 }
 0x77a   :  { %v17673_v52 = vmax.f32 %v5585_v35, %v5827_v43  ;;  %12258 = vmatmul.msk.bf16.gmra.mxu3 %vm512_vm0, %v19913_v60 }
 0x77b   :  { %6782 = vmatpush.bf16.msrb.mxu0 %v14029_v29  ;;  %v14045_v29 = vld [vmem:[#allocation2 + $0x70] sm:$0xff] }
 0x77d   :  { %v5538_v50 = vpop.f32.mrf.mxu3  ;;  %v5772_v53 = vpop.f32.mrf.mxu2 }
 0x77e   :  { %v17688_v20 = vadd.f32 %v5538_v50, %v5470_v15  ;;  %v5773_v34 = vadd.f32 %v5772_v53, %v5704_v22  ;;  %v5471_v27 = vpop.f32.mrf.mxu1  ;;  %v5706_v44 = vpop.f32.mrf.mxu0  ;;  %v5587_v22 = vmax.f32 %v17650_v47, 0.0  ;;  %v19915_v50 = vld [vmem:[#allocation9_spill] sm:$0xff] }
 0x77f   :  { %v5472_v59 = vadd.f32 %v5471_v27, %v19914_v36  ;;  %v5707_v32 = vadd.f32 %v5706_v44, %v19908_v14  ;;  %v14054_v53 = vld [vmem:[#allocation2 + $0xb8] sm:$0xff]  ;;  %v19916_v27 = vld [vmem:[#allocation24_spill] sm:$0xff] }
 0x780   :  { %v5828_v10 = vmax.f32 %v5773_v34, 0.0  ;;  %v14053_v47 = vld [vmem:[#allocation2 + $0x1f8] sm:$0xff]  ;;  %v14040_v14 = vld [vmem:[#allocation2 + $0x8] sm:$0xff] }
 0x781   :  { %5745 = vmatmul.bf16.gmra.mxu0 %v19907_v3 }
 0x782   :  { %v17698_v42 = vmax.f32 %v5586_v26, %v5828_v10  ;;  %12309 = vmatmul.msk.bf16.gmra.mxu2 %vm512_vm0, %v19909_v16  ;;  %v19917_v26 = vld [vmem:[#allocation7_spill] sm:$0xff] }
 0x785   :  { %v5540_v2 = vpop.f32.mrf.mxu3  ;;  %v5775_v35 = vpop.f32.mrf.mxu2 }
 0x786   :  { %v17704_v43 = vadd.f32 %v5540_v2, %v5472_v59  ;;  %v5776_v48 = vadd.f32 %v5775_v35, %v5707_v32  ;;  %v5474_v15 = vpop.f32.mrf.mxu1  ;;  %v5708_v11 = vpop.f32.mrf.mxu0 }
 0x787   :  { %v5475_v44 = vadd.f32 %v5474_v15, %v19916_v27  ;;  %v5709_v10 = vadd.f32 %v5708_v11, %v19910_v7  ;;  %v5588_v15 = vmax.f32 %v17666_v23, 0.0  ;;  %v19918_v11 = vld [vmem:[#allocation25_spill] sm:$0xff]  ;;  %v14051_v23 = vld [vmem:[#allocation2 + $0x108] sm:$0xff] }
 0x788   :  { %v5829_v45 = vmax.f32 %v5776_v48, 0.0 }
 0x789   :  { %5997 = vmatmul.bf16.vlgmr.msra.gmra.mxu1 %v19915_v50 }
 0x78a   :  { %v17708_v34 = vmax.f32 %v5587_v22, %v5829_v45  ;;  %12351 = vmatmul.msk.bf16.vlgmr.msra.gmra.mxu3 %vm512_vm0, %v19917_v26  ;;  %7414 = vmatpush.bf16.msra.mxu1 %v14046_v38  ;;  %v14044_v45 = vld [vmem:[#allocation2 + $0xf0] sm:$0xff] }
 0x78b   :  { %7463 = vmatpush.bf16.msra.mxu3 %v14054_v53  ;;  %v14052_v38 = vld [vmem:[#allocation2 + $0x110] sm:$0xff] }
 0x78d   :  { %v5543_v33 = vpop.f32.mrf.mxu3  ;;  %v5777_v59 = vpop.f32.mrf.mxu2 }
 0x78e   :  { %v17714_v32 = vadd.f32 %v5543_v33, %v5475_v44  ;;  %v5778_v2 = vadd.f32 %v5777_v59, %v5709_v10  ;;  %7415 = vmatpush.bf16.msra.mxu1 %v14045_v29  ;;  %v5476_v35 = vpop.f32.mrf.mxu1  ;;  %v5711_v48 = vpop.f32.mrf.mxu0  ;;  %v14043_v44 = vld [vmem:[#allocation2 + $0xe8] sm:$0xff] }
 0x78f   :  { %7464 = vmatpush.bf16.msra.mxu3 %v14053_v47  ;;  %v5477_v7 = vadd.f32 %v5476_v35, %v19918_v11  ;;  %v5712_v16 = vadd.f32 %v5711_v48, %v19912_v57  ;;  %v5589_v35 = vmax.f32 %v17688_v20, 0.0  ;;  %v14042_v48 = vld [vmem:[#allocation2 + $0x28] sm:$0xff]  ;;  %v14049_v20 = vld [vmem:[#allocation2 + $0xb0] sm:$0xff] }
 0x790   :  { %v5830_v22 = vmax.f32 %v5778_v2, 0.0 }
 0x791   :  { %5750 = vmatmul.bf16.gmra.mxu0 %v19911_v12  ;;  %v19921_v12 = vld [vmem:[#allocation8_spill] sm:$0xff] }
 0x792   :  { %v17718_v53 = vmax.f32 %v5588_v15, %v5830_v22  ;;  %12310 = vmatmul.msk.bf16.gmra.mxu2 %vm512_vm0, %v19913_v60  ;;  %7416 = vmatpush.bf16.msra.mxu1 %v14044_v45  ;;  %v19919_v22 = vld [vmem:[#allocation11_spill] sm:$0xff]  ;;  %v14050_v60 = vld [vmem:[#allocation2 + $0x158] sm:$0xff] }
 0x793   :  { %7465 = vmatpush.bf16.msra.mxu3 %v14052_v38  ;;  %v19920_v38 = vld [vmem:[#allocation21_spill] sm:$0xff] }
 0x795   :  { %v5545_v10 = vpop.f32.mrf.mxu3  ;;  %v5780_v29 = vpop.f32.mrf.mxu2 }
 0x796   :  { %v17724_v33 = vadd.f32 %v5545_v10, %v5477_v7  ;;  %v5781_v59 = vadd.f32 %v5780_v29, %v5712_v16  ;;  %7417 = vmatpush.bf16.msra.mxu1 %v14043_v44  ;;  %v5479_v47 = vpop.f32.mrf.mxu1  ;;  %v5713_v2 = vpop.f32.mrf.mxu0  ;;  %v14041_v7 = vld [vmem:[#allocation2 + $0x40] sm:$0xff] }
 0x797   :  { %7466 = vmatpush.bf16.msra.mxu3 %v14051_v23  ;;  %v5480_v57 = vadd.f32 %v5479_v47, %v19920_v38  ;;  %v5714_v16 = vadd.f32 %v5713_v2, %v19914_v36  ;;  %v5590_v47 = vmax.f32 %v17704_v43, 0.0  ;;  %v19922_v36 = vld [vmem:[#allocation23_spill] sm:$0xff] }
 0x798   :  { %v5831_v15 = vmax.f32 %v5781_v59, 0.0  ;;  %v14039_v43 = vld [vmem:[#allocation2 + $0xc8] sm:$0xff] }
 0x799   :  { %6002 = vmatmul.bf16.gmra.mxu1 %v19919_v22 }
 0x79a   :  { %v17728_v45 = vmax.f32 %v5589_v35, %v5831_v15  ;;  %12352 = vmatmul.msk.bf16.gmra.mxu3 %vm512_vm0, %v19921_v12  ;;  %7418 = vmatpush.bf16.msra.mxu1 %v14042_v48  ;;  %v14062_v48 = vld [vmem:[#allocation2 + $0x1b8] sm:$0xff] }
 0x79b   :  { %7467 = vmatpush.bf16.msra.mxu3 %v14050_v60  ;;  %v14048_v60 = vld [vmem:[#allocation2 + $0x18] sm:$0xff] }
 0x79d   :  { %v5548_v44 = vpop.f32.mrf.mxu3  ;;  %v5782_v10 = vpop.f32.mrf.mxu2 }
 0x79e   :  { %v17734_v29 = vadd.f32 %v5548_v44, %v5480_v57  ;;  %v5783_v23 = vadd.f32 %v5782_v10, %v5714_v16  ;;  %7419 = vmatpush.bf16.msra.mxu1 %v14041_v7  ;;  %v5481_v59 = vpop.f32.mrf.mxu1  ;;  %v5716_v35 = vpop.f32.mrf.mxu0  ;;  %v14068_v16 = vld [vmem:[#allocation2 + $0x220] sm:$0xff]  ;;  %v14047_v10 = vld [vmem:[#allocation2 + $0xd8] sm:$0xff] }
 0x79f   :  { %7468 = vmatpush.bf16.msra.mxu3 %v14049_v20  ;;  %v5482_v3 = vadd.f32 %v5481_v59, %v19922_v36  ;;  %v5717_v57 = vadd.f32 %v5716_v35, %v19916_v27  ;;  %v14061_v20 = vld [vmem:[#allocation2 + $0x60] sm:$0xff]  ;;  %v14067_v59 = vld [vmem:[#allocation2 + $0x1a8] sm:$0xff] }
 0x7a0   :  { %v5832_v15 = vmax.f32 %v5783_v23, 0.0  ;;  %v19924_v27 = vld [vmem:[#allocation10_spill] sm:$0xff] }
 0x7a1   :  { %6239 = vmatmul.bf16.vlgmr.msra.gmra.mxu0 %v19915_v50 }
 0x7a2   :  { %v17738_v2 = vmax.f32 %v5590_v47, %v5832_v15  ;;  %12403 = vmatmul.msk.bf16.vlgmr.msra.gmra.mxu2 %vm512_vm0, %v19917_v26  ;;  %7420 = vmatpush.bf16.msra.mxu1 %v14040_v14  ;;  %v5591_v14 = vmax.f32 %v17714_v32, 0.0  ;;  %v14065_v32 = vld [vmem:[#allocation2 + $0x188] sm:$0xff] }
 0x7a3   :  { %7469 = vmatpush.bf16.msra.mxu3 %v14048_v60  ;;  %7512 = vmatpush.bf16.msra.mxu0 %v14062_v48  ;;  %v19923_v48 = vld [vmem:[#allocation12_spill] sm:$0xff] }
 0x7a4   :  { %7563 = vmatpush.bf16.msra.mxu2 %v14068_v16  ;;  %v14060_v16 = vld [vmem:[#allocation2 + $0x138] sm:$0xff] }
 0x7a5   :  { %v5550_v7 = vpop.f32.mrf.mxu3  ;;  %v5785_v44 = vpop.f32.mrf.mxu2 }
 0x7a6   :  { %v17744_v23 = vadd.f32 %v5550_v7, %v5482_v3  ;;  %v5786_v47 = vadd.f32 %v5785_v44, %v5717_v57  ;;  %7421 = vmatpush.bf16.msra.mxu1 %v14039_v43  ;;  %v17746_v15 = vpop.f32.mrf.mxu1  ;;  %v5718_v35 = vpop.f32.mrf.mxu0  ;;  %v14066_v3 = vld [vmem:[#allocation2 + $0x38] sm:$0xff]  ;;  %v14059_v44 = vld [vmem:[#allocation2 + $0xd0] sm:$0xff] }
 0x7a7   :  { %7470 = vmatpush.bf16.msra.mxu3 %v14047_v10  ;;  %7513 = vmatpush.bf16.msra.mxu0 %v14061_v20  ;;  %v5719_v57 = vadd.f32 %v5718_v35, %v19918_v11 }
 0x7a8   :  { %v5833_v60 = vmax.f32 %v5786_v47, 0.0  ;;  %7564 = vmatpush.bf16.msra.mxu2 %v14067_v59  ;;  %v5592_v59 = vmax.f32 %v17724_v33, 0.0  ;;  %v14063_v33 = vld [vmem:[#allocation2 + $0x88] sm:$0xff] }
 0x7a9   :  { %6007 = vmatmul.bf16.gmra.mxu1 %v19923_v48 }
 0x7aa   :  { %v17750_v26 = vmax.f32 %v5591_v14, %v5833_v60  ;;  %12353 = vmatmul.msk.bf16.gmra.mxu3 %vm512_vm0, %v19924_v27  ;;  %v14058_v60 = vld [vmem:[#allocation2 + $0x1c0] sm:$0xff] }
 0x7ab   :  { %7514 = vmatpush.bf16.msra.mxu0 %v14060_v16  ;;  %v14064_v16 = vld [vmem:[#allocation2] sm:$0xff] }
 0x7ac   :  { %7565 = vmatpush.bf16.msra.mxu2 %v14066_v3 }
 0x7ad   :  { %v5553_v43 = vpop.f32.mrf.mxu3  ;;  %v5787_v7 = vpop.f32.mrf.mxu2 }
 0x7ae   :  { %v5788_v10 = vadd.f32 %v5787_v7, %v5719_v57  ;;  %v5486_v20 = vpop.f32.mrf.mxu1  ;;  %v5721_v47 = vpop.f32.mrf.mxu0  ;;  %v14057_v7 = vld [vmem:[#allocation2 + $0x140] sm:$0xff] }
 0x7af   :  { %7515 = vmatpush.bf16.msra.mxu0 %v14059_v44  ;;  %v5722_v35 = vadd.f32 %v5721_v47, %v19920_v38  ;;  %v14056_v47 = vld [vmem:[#allocation2 + $0x190] sm:$0xff] }
 0x7b0   :  { %v5834_v14 = vmax.f32 %v5788_v10, 0.0  ;;  %7566 = vmatpush.bf16.msra.mxu2 %v14065_v32 }
 0x7b1   :  { %6244 = vmatmul.bf16.gmra.mxu0 %v19919_v22 }
 0x7b2   :  { %v17757_v50 = vmax.f32 %v5592_v59, %v5834_v14  ;;  %12404 = vmatmul.msk.bf16.gmra.mxu2 %vm512_vm0, %v19921_v12  ;;  %v5593_v59 = vmax.f32 %v17734_v29, 0.0  ;;  %v5594_v29 = vmax.f32 %v17744_v23, 0.0  ;;  %v5487_v23 = vadd.f32 %v5486_v20, %v15434_v55 }
 0x7b3   :  { %7516 = vmatpush.bf16.msra.mxu0 %v14058_v60 }
 0x7b4   :  { %7567 = vmatpush.bf16.msra.mxu2 %v14064_v16 }
 0x7b5   :  { %v5555_v3 = vpop.f32.mrf.mxu3  ;;  %v5790_v57 = vpop.f32.mrf.mxu2 }
 0x7b6   :  { %v5791_v44 = vadd.f32 %v5790_v57, %v5722_v35  ;;  %v17762_v10 = vpop.f32.mrf.mxu1  ;;  %v5723_v32 = vpop.f32.mrf.mxu0  ;;  %v14055_v57 = vld [vmem:[#allocation2 + $0x180] sm:$0xff] }
 0x7b7   :  { %7517 = vmatpush.bf16.msra.mxu0 %v14057_v7  ;;  %v5724_v60 = vadd.f32 %v5723_v32, %v19922_v36 }
 0x7b8   :  { %v5835_v14 = vmax.f32 %v5791_v44, 0.0  ;;  %7568 = vmatpush.bf16.msra.mxu2 %v14063_v33 }
 0x7b9   :  { %6012 = vmatmul.bf16.gmra.mxu1 %v15100_v63 }
 0x7ba   :  { %v17766_v12 = vmax.f32 %v5593_v59, %v5835_v14  ;;  %12354 = vmatmul.msk.bf16.gmra.mxu3 %vm512_vm0, %v15051_v49  ;;  %v19925_v59 = vld [vmem:[#allocation26_spill] sm:$0xff] }
 0x7bb   :  { %7518 = vmatpush.bf16.msra.mxu0 %v14056_v47 }
 0x7bd   :  { %v5558_v35 = vpop.f32.mrf.mxu3  ;;  %v5792_v16 = vpop.f32.mrf.mxu2 }
 0x7be   :  { %v5793_v38 = vadd.f32 %v5792_v16, %v5724_v60  ;;  %v5491_v7 = vpop.f32.mrf.mxu1  ;;  %v5726_v22 = vpop.f32.mrf.mxu0  ;;  %v5485_v60 = vadd.f32 %v17746_v15, %v19925_v59  ;;  %v5556_v15 = vadd.f32 %v5555_v3, %v5487_v23 }
 0x7bf   :  { %7519 = vmatpush.bf16.msra.mxu0 %v14055_v57  ;;  %v5727_v14 = vadd.f32 %v5726_v22, %v19925_v59 }
 0x7c0   :  { %v5836_v44 = vmax.f32 %v5793_v38, 0.0  ;;  %v5554_v22 = vadd.f32 %v5553_v43, %v5485_v60  ;;  %v243_v43 = vld [vmem:[%s19355_s4 + $0x78] sm:$0xff]  ;;  %v5596_v60 = vmax.f32 %v5556_v15, 0.0 }
 0x7c1   :  { %6249 = vmatmul.bf16.gmra.mxu0 %v19923_v48 }
 0x7c2   :  { %v17773_v33 = vmax.f32 %v5594_v29, %v5836_v44  ;;  %12405 = vmatmul.msk.bf16.gmra.mxu2 %vm512_vm0, %v19924_v27  ;;  %v235_v29 = vld [vmem:[%s19355_s4 + $0x38] sm:$0xff]  ;;  %v234_v44 = vld [vmem:[%s19355_s4 + $0x30] sm:$0xff]  ;;  %v5595_v27 = vmax.f32 %v5554_v22, 0.0 }
 0x7c3   :  { %281 = vperm.xlu1 %14826, %v235_v29   ;;  %276 = vperm.xlu0 %14825, %v234_v44   ;;  %v232_v29 = vld [vmem:[%s19355_s4 + $0x20] sm:$0xff] }
 0x7c5   :  { %v5560_v32 = vpop.f32.mrf.mxu3  ;;  %v5795_v47 = vpop.f32.mrf.mxu2 }
 0x7c6   :  { %v17780_v16 = vpop.f32.mrf.mxu1  ;;  %v5728_v57 = vpop.f32.mrf.mxu0  ;;  %v5796_v38 = vadd.f32 %v5795_v47, %v5727_v14 }
 0x7c7   :  { %v5729_v20 = vadd.f32 %v5728_v57, %v15434_v55 }
 0x7c8   :  { %v5837_v59 = vmax.f32 %v5796_v38, 0.0 }
 0x7c9   :  { %6017 = vmatmul.bf16.gmra.mxu1 %v15134_v9 }
 0x7ca   :  { %12355 = vmatmul.msk.bf16.gmra.mxu3 %vm512_vm0, %v15082_v58  ;;  %v5861_v3 = vmax.f32 %v5595_v27, %v5837_v59  ;;  %v5490_v27 = vadd.f32 %v17762_v10, %v15358_v28 }
 0x7cb   :  { %266 = vperm.xlu1 %14826, %v232_v29   ;;  %321 = vperm.xlu0 %14825, %v243_v43   ;;  %v5492_v29 = vadd.f32 %v5491_v7, %v15240_v51 }
 0x7cc   :  { %v5873_v38 = vmax.f32 %v17641_v62, %v5861_v3  ;;  %v241_v62 = vld [vmem:[%s19355_s4 + $0x68] sm:$0xff] }
 0x7cd   :  { %v17793_v14 = vpop.f32.mrf.mxu3  ;;  %v5797_v47 = vpop.f32.mrf.mxu2  ;;  %v5561_v10 = vadd.f32 %v5560_v32, %v5492_v29 }
 0x7ce   :  { %v5798_v48 = vadd.f32 %v5797_v47, %v5729_v20  ;;  %v5496_v36 = vpop.f32.mrf.mxu1  ;;  %v5731_v11 = vpop.f32.mrf.mxu0 }
 0x7cf   :  { %v5732_v22 = vadd.f32 %v5731_v11, %v15358_v28  ;;  %v5559_v11 = vadd.f32 %v5558_v35, %v5490_v27  ;;  %v231_v35 = vld [vmem:[%s19355_s4 + $0x18] sm:$0xff]  ;;  %v5598_v27 = vmax.f32 %v5561_v10, 0.0  ;;  %v5495_v10 = vadd.f32 %v17780_v16, %v15264_v61 }
 0x7d0   :  { %v5838_v23 = vmax.f32 %v5798_v48, 0.0 }
 0x7d1   :  { %6254 = vmatmul.bf16.gmra.mxu0 %v15100_v63  ;;  %v5564_v16 = vadd.f32 %v17793_v14, %v5495_v10 }
 0x7d2   :  { %v5862_v57 = vmax.f32 %v5596_v60, %v5838_v23  ;;  %12406 = vmatmul.msk.bf16.gmra.mxu2 %vm512_vm0, %v15051_v49 }
 0x7d3   :  { %311 = vperm.xlu1 %14826, %v241_v62  }
 0x7d4   :  { %v5874_v44 = vmax.f32 %v17657_v8, %v5862_v57  ;;  %v240_v8 = vld [vmem:[%s19355_s4 + $0x60] sm:$0xff]  ;;  %v5597_v57 = vmax.f32 %v5559_v11, 0.0 }
 0x7d5   :  { %v5565_v20 = vpop.f32.mrf.mxu3  ;;  %v5800_v47 = vpop.f32.mrf.mxu2  ;;  %306 = vperm.xlu0 %14825, %v240_v8  }
 0x7d6   :  { %v14570_v48 = vpack.c.bf16 %v5874_v44, %v5873_v38  ;;  %v17809_v59 = vpop.f32.mrf.mxu1  ;;  %v5733_v15 = vpop.f32.mrf.mxu0  ;;  %v5801_v60 = vadd.f32 %v5800_v47, %v5732_v22  ;;  %v238_v47 = vld [vmem:[%s19355_s4 + $0x50] sm:$0xff] }
 0x7d7   :  { %v5734_v43 = vadd.f32 %v5733_v15, %v15240_v51 }
 0x7d8   :  { %14790 = vst [vmem:[#allocation2 + $0x218] sm:$0xff] %v14570_v48   ;;  %v5839_v7 = vmax.f32 %v5801_v60, 0.0 }
 0x7d9   :  { %6022 = vmatmul.bf16.gmra.mxu1 %v15171_v21 }
 0x7da   :  { %12356 = vmatmul.msk.bf16.gmra.mxu3 %vm512_vm0, %v15116_v4  ;;  %v5863_v32 = vmax.f32 %v5597_v57, %v5839_v7  ;;  %v5497_v57 = vadd.f32 %v5496_v36, %v15388_v13 }
 0x7db   :  { %296 = vperm.xlu1 %14826, %v238_v47  }
 0x7dc   :  { %v5875_v29 = vmax.f32 %v17673_v52, %v5863_v32  ;;  %v229_v52 = vld [vmem:[%s19355_s4 + $0x8] sm:$0xff]  ;;  %v5566_v36 = vadd.f32 %v5565_v20, %v5497_v57 }
 0x7dd   :  { %v17822_v3 = vpop.f32.mrf.mxu3  ;;  %v5802_v23 = vpop.f32.mrf.mxu2  ;;  %261 = vperm.xlu0 %14825, %v231_v35   ;;  %v242_v35 = vld [vmem:[%s19355_s4 + $0x70] sm:$0xff]  ;;  %v237_v20 = vld [vmem:[%s19355_s4 + $0x48] sm:$0xff] }
 0x7de   :  { %v5803_v38 = vadd.f32 %v5802_v23, %v5734_v43  ;;  %v5501_v44 = vpop.f32.mrf.mxu1  ;;  %v5736_v22 = vpop.f32.mrf.mxu0  ;;  %316 = vperm.xlu2 %14827, %v242_v35  }
 0x7df   :  { %v5737_v62 = vadd.f32 %v5736_v22, %v15264_v61  ;;  %v5502_v35 = vadd.f32 %v5501_v44, %v15217_v39 }
 0x7e0   :  { %v5840_v48 = vmax.f32 %v5803_v38, 0.0 }
 0x7e1   :  { %6259 = vmatmul.bf16.gmra.mxu0 %v15134_v9 }
 0x7e2   :  { %v5864_v15 = vmax.f32 %v5598_v27, %v5840_v48  ;;  %12407 = vmatmul.msk.bf16.gmra.mxu2 %vm512_vm0, %v15082_v58  ;;  %v5599_v48 = vmax.f32 %v5564_v16, 0.0  ;;  %v5500_v16 = vadd.f32 %v17809_v59, %v15198_v30 }
 0x7e3   :  { %251 = vperm.xlu1 %14826, %v229_v52  }
 0x7e4   :  { %v5876_v60 = vmax.f32 %v17698_v42, %v5864_v15  ;;  %v228_v42 = vld [vmem:[%s19355_s4] sm:$0xff] }
 0x7e5   :  { %v5570_v8 = vpop.f32.mrf.mxu3  ;;  %v5805_v11 = vpop.f32.mrf.mxu2  ;;  %246 = vperm.xlu0 %14825, %v228_v42  }
 0x7e6   :  { %v14575_v7 = vpack.c.bf16 %v5876_v60, %v5875_v29  ;;  %v17838_v43 = vpop.f32.mrf.mxu1  ;;  %v5738_v23 = vpop.f32.mrf.mxu0  ;;  %v5806_v38 = vadd.f32 %v5805_v11, %v5737_v62  ;;  %v10985_v60 = vld [vmem:[%s19357_s6 + $0x8] sm:$0x3]  ;;  %v5600_v62 = vmax.f32 %v5566_v36, 0.0  ;;  %v5571_v59 = vadd.f32 %v5570_v8, %v5502_v35 }
 0x7e7   :  { %v5739_v47 = vadd.f32 %v5738_v23, %v15388_v13 }
 0x7e8   :  { %14791 = vst [vmem:[#allocation2 + $0x200] sm:$0xff] %v14575_v7   ;;  %v5841_v22 = vmax.f32 %v5806_v38, 0.0 }
 0x7e9   :  { %6027 = vmatmul.bf16.gmra.mxu1 %v15200_v31 }
 0x7ea   :  { %12357 = vmatmul.msk.bf16.gmra.mxu3 %vm512_vm0, %v15156_v17  ;;  %v5865_v11 = vmax.f32 %v5599_v48, %v5841_v22 }
 0x7eb   :  { %10993 = vperm.xlu1 %14826, %v10985_v60  }
 0x7ec   :  { %v5877_v23 = vmax.f32 %v17708_v34, %v5865_v11  ;;  %v233_v34 = vld [vmem:[%s19355_s4 + $0x28] sm:$0xff] }
 0x7ed   :  { %v17855_v27 = vpop.f32.mrf.mxu3  ;;  %v5807_v32 = vpop.f32.mrf.mxu2  ;;  %291 = vperm.xlu0 %14825, %v237_v20   ;;  %271 = vperm.xlu2 %14827, %v233_v34  }
 0x7ee   :  { %v5808_v15 = vadd.f32 %v5807_v32, %v5739_v47  ;;  %v5506_v29 = vpop.f32.mrf.mxu1  ;;  %v5741_v14 = vpop.f32.mrf.mxu0 }
 0x7ef   :  { %v5742_v38 = vadd.f32 %v5741_v14, %v15198_v30 }
 0x7f0   :  { %v5842_v10 = vmax.f32 %v5808_v15, 0.0 }
 0x7f1   :  { %6264 = vmatmul.bf16.gmra.mxu0 %v15171_v21 }
 0x7f2   :  { %v5866_v7 = vmax.f32 %v5600_v62, %v5842_v10  ;;  %12408 = vmatmul.msk.bf16.gmra.mxu2 %vm512_vm0, %v15116_v4  ;;  %v230_v10 = vld [vmem:[%s19355_s4 + $0x10] sm:$0xff] }
 0x7f4   :  { %v5878_v57 = vmax.f32 %v17718_v53, %v5866_v7  ;;  %v5569_v53 = vadd.f32 %v17822_v3, %v5500_v16  ;;  %v5602_v7 = vmax.f32 %v5571_v59, 0.0 }
 0x7f5   :  { %v5575_v52 = vpop.f32.mrf.mxu3  ;;  %v5810_v42 = vpop.f32.mrf.mxu2  ;;  %256 = vperm.xlu2 %14827, %v230_v10  }
 0x7f6   :  { %v14580_v36 = vpack.c.bf16 %v5878_v57, %v5877_v23  ;;  %v17871_v22 = vpop.f32.mrf.mxu1  ;;  %v5743_v47 = vpop.f32.mrf.mxu0  ;;  %v5811_v32 = vadd.f32 %v5810_v42, %v5742_v38  ;;  %v5601_v60 = vmax.f32 %v5569_v53, 0.0  ;;  %v5507_v53 = vadd.f32 %v5506_v29, %v15584_v40 }
 0x7f7   :  { %v5744_v15 = vadd.f32 %v5743_v47, %v15217_v39  ;;  %v5505_v47 = vadd.f32 %v17838_v43, %v15577_v41 }
 0x7f8   :  { %14792 = vst [vmem:[#allocation2 + $0x10] sm:$0xff] %v14580_v36   ;;  %v5843_v48 = vmax.f32 %v5811_v32, 0.0  ;;  %v5576_v43 = vadd.f32 %v5575_v52, %v5507_v53 }
 0x7f9   :  { %6032 = vmatmul.bf16.gmra.mxu1 %v15231_v46 }
 0x7fa   :  { %12358 = vmatmul.msk.bf16.gmra.mxu3 %vm512_vm0, %v15181_v24  ;;  %v5867_v3 = vmax.f32 %v5601_v60, %v5843_v48 }
 0x7fc   :  { %v5879_v57 = vmax.f32 %v17728_v45, %v5867_v3  ;;  %v239_v45 = vld [vmem:[%s19355_s4 + $0x58] sm:$0xff] }
 0x7fd   :  { %v17882_v14 = vpop.f32.mrf.mxu3  ;;  %v5812_v44 = vpop.f32.mrf.mxu2  ;;  %301 = vperm.xlu2 %14827, %v239_v45  }
 0x7fe   :  { %v5813_v20 = vadd.f32 %v5812_v44, %v5744_v15  ;;  %v5511_v62 = vpop.f32.mrf.mxu1  ;;  %v5746_v11 = vpop.f32.mrf.mxu0 }
 0x7ff   :  { %v5747_v42 = vadd.f32 %v5746_v11, %v15577_v41 }
 0x800   :  { %v5844_v23 = vmax.f32 %v5813_v20, 0.0 }
 0x801   :  { %6269 = vmatmul.bf16.gmra.mxu0 %v15200_v31 }
 0x802   :  { %v5868_v8 = vmax.f32 %v5602_v7, %v5844_v23  ;;  %12409 = vmatmul.msk.bf16.gmra.mxu2 %vm512_vm0, %v15156_v17  ;;  %v5604_v23 = vmax.f32 %v5576_v43, 0.0  ;;  %v5512_v43 = vadd.f32 %v5511_v62, %v15559_v25 }
 0x804   :  { %v5880_v38 = vmax.f32 %v17738_v2, %v5868_v8  ;;  %v5574_v2 = vadd.f32 %v17855_v27, %v5505_v47  ;;  %v236_v27 = vld [vmem:[%s19355_s4 + $0x40] sm:$0xff]  ;;  %s11166_s4 = sshll.u32 %s19358_s7, 4  ;;  %s11167_s4 = int_to_ptr.hbm [resolvable:$true] %s11166_s4 }
 0x805   :  { %v5580_v16 = vpop.f32.mrf.mxu3  ;;  %v5815_v36 = vpop.f32.mrf.mxu2  ;;  %286 = vperm.xlu2 %14827, %v236_v27  }
 0x806   :  { %v14585_v35 = vpack.c.bf16 %v5880_v38, %v5879_v57  ;;  %v5748_v32 = vpop.f32.mrf.mxu0  ;;  %v5998_v34 = vpop.f32.mrf.mxu1  ;;  %v5816_v59 = vadd.f32 %v5815_v36, %v5747_v42  ;;  %v5603_v20 = vmax.f32 %v5574_v2, 0.0 }
 0x807   :  { %v5999_v48 = vadd.f32 %v5998_v34, %v15272_v1  ;;  %v5749_v29 = vadd.f32 %v5748_v32, %v15584_v40  ;;  %v5510_v34 = vadd.f32 %v17871_v22, %v15443_v19  ;;  %v5581_v22 = vadd.f32 %v5580_v16, %v5512_v43  ;;  %v19926_v43 = vld [vmem:[#allocation20_spill] sm:$0xff] }
 0x808   :  { %14793 = vst [vmem:[#allocation2 + $0x128] sm:$0xff] %v14585_v35   ;;  %v5845_v15 = vmax.f32 %v5816_v59, 0.0 }
 0x809   :  { %6037 = vmatmul.bf16.gmra.mxu1 %v15279_v5 }
 0x80a   :  { %12359 = vmatmul.msk.bf16.gmra.mxu3 %vm512_vm0, %v15215_v37  ;;  %v5869_v8 = vmax.f32 %v5603_v20, %v5845_v15 }
 0x80c   :  { %v5881_v42 = vmax.f32 %v17750_v26, %v5869_v8 }
 0x80d   :  { %v5817_v44 = vpop.f32.mrf.mxu2  ;;  %v6067_v60 = vpop.f32.mrf.mxu3 }
 0x80e   :  { %v5818_v11 = vadd.f32 %v5817_v44, %v5749_v29  ;;  %v17905_v10 = vadd.f32 %v6067_v60, %v5999_v48  ;;  %v5751_v7 = vpop.f32.mrf.mxu0  ;;  %v6000_v3 = vpop.f32.mrf.mxu1  ;;  %v10984_v48 = vld [vmem:[%s19357_s6] sm:$0xff] }
 0x80f   :  { %v6001_v38 = vadd.f32 %v6000_v3, %v15300_v18  ;;  %v5752_v47 = vadd.f32 %v5751_v7, %v15443_v19  ;;  %10988 = vperm.xlu2 %14827, %v10984_v48  }
 0x810   :  { %v5846_v57 = vmax.f32 %v5818_v11, 0.0 }
 0x811   :  { %6274 = vmatmul.bf16.gmra.mxu0 %v15231_v46 }
 0x812   :  { %v5870_v52 = vmax.f32 %v5604_v23, %v5846_v57  ;;  %12410 = vmatmul.msk.bf16.gmra.mxu2 %vm512_vm0, %v15181_v24  ;;  %v5606_v23 = vmax.f32 %v5581_v22, 0.0 }
 0x814   :  { %v5882_v36 = vmax.f32 %v17757_v50, %v5870_v52  ;;  %v5579_v50 = vadd.f32 %v17882_v14, %v5510_v34 }
 0x815   :  { %v5820_v35 = vpop.f32.mrf.mxu2  ;;  %v6069_v32 = vpop.f32.mrf.mxu3 }
 0x816   :  { %v14590_v53 = vpack.c.bf16 %v5882_v36, %v5881_v42  ;;  %v6070_v59 = vadd.f32 %v6069_v32, %v6001_v38  ;;  %v5753_v45 = vpop.f32.mrf.mxu0  ;;  %v6003_v2 = vpop.f32.mrf.mxu1  ;;  %v5821_v26 = vadd.f32 %v5820_v35, %v5752_v47  ;;  %v5605_v11 = vmax.f32 %v5579_v50, 0.0  ;;  %v19927_v50 = vld [vmem:[#allocation15_spill] sm:$0xff] }
 0x817   :  { %v6004_v15 = vadd.f32 %v6003_v2, %v15281_v6  ;;  %v5754_v44 = vadd.f32 %v5753_v45, %v15559_v25  ;;  %v6127_v2 = vmax.f32 %v17905_v10, 0.0 }
 0x818   :  { %14794 = vst [vmem:[#allocation2 + $0x178] sm:$0xff] %v14590_v53   ;;  %v5847_v29 = vmax.f32 %v5821_v26, 0.0  ;;  %v6128_v10 = vmax.f32 %v6070_v59, 0.0 }
 0x819   :  { %6042 = vmatmul.bf16.gmra.mxu1 %v15338_v0 }
 0x81a   :  { %12360 = vmatmul.msk.bf16.gmra.mxu3 %vm512_vm0, %v15250_v56  ;;  %v5871_v8 = vmax.f32 %v5605_v11, %v5847_v29 }
 0x81c   :  { %v5883_v38 = vmax.f32 %v17766_v12, %v5871_v8  ;;  %v19928_v12 = vld [vmem:[#allocation17_spill] sm:$0xff] }
 0x81d   :  { %v5822_v60 = vpop.f32.mrf.mxu2  ;;  %v6072_v20 = vpop.f32.mrf.mxu3 }
 0x81e   :  { %v5823_v62 = vadd.f32 %v5822_v60, %v5754_v44  ;;  %v6073_v7 = vadd.f32 %v6072_v20, %v6004_v15  ;;  %v6005_v3 = vpop.f32.mrf.mxu1  ;;  %v6240_v27 = vpop.f32.mrf.mxu0 }
 0x81f   :  { %v6006_v52 = vadd.f32 %v6005_v3, %v19904_v54  ;;  %v6241_v16 = vadd.f32 %v6240_v27, %v15272_v1  ;;  %v19929_v27 = vld [vmem:[#allocation16_spill] sm:$0xff] }
 0x820   :  { %v5848_v57 = vmax.f32 %v5823_v62, 0.0 }
 0x821   :  { %6279 = vmatmul.bf16.gmra.mxu0 %v15279_v5 }
 0x822   :  { %v5872_v14 = vmax.f32 %v5606_v23, %v5848_v57  ;;  %12411 = vmatmul.msk.bf16.gmra.mxu2 %vm512_vm0, %v15215_v37 }
 0x824   :  { %v5884_v42 = vmax.f32 %v17773_v33, %v5872_v14 }
 0x825   :  { %v6074_v36 = vpop.f32.mrf.mxu3  ;;  %v6309_v47 = vpop.f32.mrf.mxu2 }
 0x826   :  { %v14595_v35 = vpack.c.bf16 %v5884_v42, %v5883_v38  ;;  %v6075_v32 = vadd.f32 %v6074_v36, %v6006_v52  ;;  %v6310_v34 = vadd.f32 %v6309_v47, %v6241_v16  ;;  %v6008_v53 = vpop.f32.mrf.mxu1  ;;  %v6242_v45 = vpop.f32.mrf.mxu0  ;;  %v6129_v36 = vmax.f32 %v6073_v7, 0.0  ;;  %v19930_v47 = vld [vmem:[#allocation22_spill] sm:$0xff] }
 0x827   :  { %v6009_v15 = vadd.f32 %v6008_v53, %v19927_v50  ;;  %v6243_v33 = vadd.f32 %v6242_v45, %v15300_v18  ;;  %v19932_v45 = vld [vmem:[#allocation19_spill] sm:$0xff] }
 0x828   :  { %14795 = vst [vmem:[#allocation2 + $0x208] sm:$0xff] %v14595_v35   ;;  %v6369_v48 = vmax.f32 %v6310_v34, 0.0  ;;  %v19931_v34 = vld [vmem:[#allocation13_spill] sm:$0xff]  ;;  %v6130_v7 = vmax.f32 %v6075_v32, 0.0 }
 0x829   :  { %6047 = vmatmul.bf16.gmra.mxu1 %v19926_v43 }
 0x82a   :  { %v17938_v26 = vmax.f32 %v6127_v2, %v6369_v48  ;;  %12361 = vmatmul.msk.bf16.gmra.mxu3 %vm512_vm0, %v19928_v12 }
 0x82d   :  { %v6077_v22 = vpop.f32.mrf.mxu3  ;;  %v6311_v29 = vpop.f32.mrf.mxu2 }
 0x82e   :  { %v6078_v44 = vadd.f32 %v6077_v22, %v6009_v15  ;;  %v6312_v60 = vadd.f32 %v6311_v29, %v6243_v33  ;;  %v6010_v20 = vpop.f32.mrf.mxu1  ;;  %v6245_v11 = vpop.f32.mrf.mxu0 }
 0x82f   :  { %v6011_v23 = vadd.f32 %v6010_v20, %v19929_v27  ;;  %v6246_v8 = vadd.f32 %v6245_v11, %v15281_v6 }
 0x830   :  { %v6370_v62 = vmax.f32 %v6312_v60, 0.0  ;;  %v6131_v32 = vmax.f32 %v6078_v44, 0.0  ;;  %v14083_v44 = vld [vmem:[#allocation2 + $0xd0] sm:$0xff] }
 0x831   :  { %6284 = vmatmul.bf16.gmra.mxu0 %v15338_v0 }
 0x832   :  { %v17945_v3 = vmax.f32 %v6128_v10, %v6370_v62  ;;  %12412 = vmatmul.msk.bf16.gmra.mxu2 %vm512_vm0, %v15250_v56  ;;  %v19933_v10 = vld [vmem:[#allocation14_spill] sm:$0xff] }
 0x835   :  { %v6079_v57 = vpop.f32.mrf.mxu3  ;;  %v6314_v14 = vpop.f32.mrf.mxu2 }
 0x836   :  { %v6080_v52 = vadd.f32 %v6079_v57, %v6011_v23  ;;  %v6315_v16 = vadd.f32 %v6314_v14, %v6246_v8  ;;  %v6013_v38 = vpop.f32.mrf.mxu1  ;;  %v6247_v42 = vpop.f32.mrf.mxu0 }
 0x837   :  { %v6014_v53 = vadd.f32 %v6013_v38, %v19931_v34  ;;  %v6248_v2 = vadd.f32 %v6247_v42, %v19904_v54 }
 0x838   :  { %v6371_v59 = vmax.f32 %v6315_v16, 0.0 }
 0x839   :  { %6052 = vmatmul.bf16.gmra.mxu1 %v19930_v47 }
 0x83a   :  { %v17952_v35 = vmax.f32 %v6129_v36, %v6371_v59  ;;  %12362 = vmatmul.msk.bf16.gmra.mxu3 %vm512_vm0, %v19932_v45  ;;  %v14076_v59 = vld [vmem:[#allocation2 + $0x110] sm:$0xff] }
 0x83d   :  { %v6082_v48 = vpop.f32.mrf.mxu3  ;;  %v6316_v15 = vpop.f32.mrf.mxu2 }
 0x83e   :  { %v17958_v33 = vadd.f32 %v6082_v48, %v6014_v53  ;;  %v6317_v22 = vadd.f32 %v6316_v15, %v6248_v2  ;;  %v6015_v29 = vpop.f32.mrf.mxu1  ;;  %v6250_v60 = vpop.f32.mrf.mxu0  ;;  %v19934_v53 = vld [vmem:[#allocation9_spill] sm:$0xff]  ;;  %v19935_v15 = vld [vmem:[#allocation24_spill] sm:$0xff] }
 0x83f   :  { %v6016_v62 = vadd.f32 %v6015_v29, %v19933_v10  ;;  %v6251_v23 = vadd.f32 %v6250_v60, %v19927_v50  ;;  %v14084_v2 = vld [vmem:[#allocation2 + $0x138] sm:$0xff]  ;;  %v19936_v29 = vld [vmem:[#allocation7_spill] sm:$0xff] }
 0x840   :  { %v6372_v20 = vmax.f32 %v6317_v22, 0.0 }
 0x841   :  { %6289 = vmatmul.bf16.gmra.mxu0 %v19926_v43 }
 0x842   :  { %v17961_v11 = vmax.f32 %v6130_v7, %v6372_v20  ;;  %12413 = vmatmul.msk.bf16.gmra.mxu2 %vm512_vm0, %v19928_v12  ;;  %v14075_v7 = vld [vmem:[#allocation2 + $0x108] sm:$0xff]  ;;  %v14070_v12 = vld [vmem:[#allocation2 + $0x120] sm:$0xff] }
 0x845   :  { %v6084_v8 = vpop.f32.mrf.mxu3  ;;  %v6319_v57 = vpop.f32.mrf.mxu2 }
 0x846   :  { %v17967_v14 = vadd.f32 %v6084_v8, %v6016_v62  ;;  %v6320_v16 = vadd.f32 %v6319_v57, %v6251_v23  ;;  %v6018_v38 = vpop.f32.mrf.mxu1  ;;  %v6252_v42 = vpop.f32.mrf.mxu0 }
 0x847   :  { %v6019_v22 = vadd.f32 %v6018_v38, %v19935_v15  ;;  %v6253_v60 = vadd.f32 %v6252_v42, %v19929_v27  ;;  %v19937_v42 = vld [vmem:[#allocation25_spill] sm:$0xff] }
 0x848   :  { %v6373_v36 = vmax.f32 %v6320_v16, 0.0 }
 0x849   :  { %6541 = vmatmul.bf16.vlgmr.msrb.gmra.mxu1 %v19934_v53 }
 0x84a   :  { %v17970_v48 = vmax.f32 %v6131_v32, %v6373_v36  ;;  %12455 = vmatmul.msk.bf16.vlgmr.msrb.gmra.mxu3 %vm512_vm0, %v19936_v29  ;;  %7866 = vmatpush.bf16.msrb.mxu1 %v14076_v59  ;;  %v6132_v32 = vmax.f32 %v6080_v52, 0.0  ;;  %v14074_v36 = vld [vmem:[#allocation2 + $0x158] sm:$0xff]  ;;  %v14082_v59 = vld [vmem:[#allocation2 + $0x1c0] sm:$0xff] }
 0x84b   :  { %7915 = vmatpush.bf16.msrb.mxu3 %v14084_v2  ;;  %v14081_v52 = vld [vmem:[#allocation2 + $0x140] sm:$0xff] }
 0x84d   :  { %v6087_v20 = vpop.f32.mrf.mxu3  ;;  %v6321_v62 = vpop.f32.mrf.mxu2 }
 0x84e   :  { %v17976_v23 = vadd.f32 %v6087_v20, %v6019_v22  ;;  %v6322_v8 = vadd.f32 %v6321_v62, %v6253_v60  ;;  %7867 = vmatpush.bf16.msrb.mxu1 %v14075_v7  ;;  %v6020_v57 = vpop.f32.mrf.mxu1  ;;  %v6255_v16 = vpop.f32.mrf.mxu0  ;;  %v14073_v22 = vld [vmem:[#allocation2 + $0xb0] sm:$0xff] }
 0x84f   :  { %7916 = vmatpush.bf16.msrb.mxu3 %v14083_v44  ;;  %v6021_v27 = vadd.f32 %v6020_v57, %v19937_v42  ;;  %v6256_v50 = vadd.f32 %v6255_v16, %v19931_v34  ;;  %v6133_v57 = vmax.f32 %v17958_v33, 0.0  ;;  %v14072_v16 = vld [vmem:[#allocation2 + $0x18] sm:$0xff]  ;;  %v14080_v34 = vld [vmem:[#allocation2 + $0x190] sm:$0xff]  ;;  %v14079_v33 = vld [vmem:[#allocation2 + $0x180] sm:$0xff] }
 0x850   :  { %v6374_v38 = vmax.f32 %v6322_v8, 0.0 }
 0x851   :  { %6294 = vmatmul.bf16.gmra.mxu0 %v19930_v47  ;;  %v19940_v47 = vld [vmem:[#allocation8_spill] sm:$0xff] }
 0x852   :  { %v17979_v2 = vmax.f32 %v6132_v32, %v6374_v38  ;;  %12414 = vmatmul.msk.bf16.gmra.mxu2 %vm512_vm0, %v19932_v45  ;;  %7868 = vmatpush.bf16.msrb.mxu1 %v14074_v36  ;;  %v19938_v38 = vld [vmem:[#allocation11_spill] sm:$0xff] }
 0x853   :  { %7917 = vmatpush.bf16.msrb.mxu3 %v14082_v59  ;;  %v19939_v59 = vld [vmem:[#allocation21_spill] sm:$0xff] }
 0x855   :  { %v6089_v60 = vpop.f32.mrf.mxu3  ;;  %v6324_v7 = vpop.f32.mrf.mxu2 }
 0x856   :  { %v17985_v20 = vadd.f32 %v6089_v60, %v6021_v27  ;;  %v6325_v62 = vadd.f32 %v6324_v7, %v6256_v50  ;;  %7869 = vmatpush.bf16.msrb.mxu1 %v14073_v22  ;;  %v6023_v44 = vpop.f32.mrf.mxu1  ;;  %v6257_v8 = vpop.f32.mrf.mxu0  ;;  %v14071_v27 = vld [vmem:[#allocation2 + $0xd8] sm:$0xff] }
 0x857   :  { %7918 = vmatpush.bf16.msrb.mxu3 %v14081_v52  ;;  %v6024_v45 = vadd.f32 %v6023_v44, %v19939_v59  ;;  %v6258_v50 = vadd.f32 %v6257_v8, %v19933_v10  ;;  %v6134_v44 = vmax.f32 %v17967_v14, 0.0  ;;  %v19941_v10 = vld [vmem:[#allocation23_spill] sm:$0xff]  ;;  %v14069_v14 = vld [vmem:[#allocation2 + $0x70] sm:$0xff] }
 0x858   :  { %v6375_v32 = vmax.f32 %v6325_v62, 0.0 }
 0x859   :  { %6546 = vmatmul.bf16.gmra.mxu1 %v19938_v38 }
 0x85a   :  { %v17989_v36 = vmax.f32 %v6133_v57, %v6375_v32  ;;  %12456 = vmatmul.msk.bf16.gmra.mxu3 %vm512_vm0, %v19940_v47  ;;  %7870 = vmatpush.bf16.msrb.mxu1 %v14072_v16  ;;  %v14092_v16 = vld [vmem:[#allocation2 + $0x220] sm:$0xff] }
 0x85b   :  { %7919 = vmatpush.bf16.msrb.mxu3 %v14080_v34  ;;  %v14078_v34 = vld [vmem:[#allocation2 + $0xb8] sm:$0xff] }
 0x85d   :  { %v6092_v22 = vpop.f32.mrf.mxu3  ;;  %v6326_v60 = vpop.f32.mrf.mxu2 }
 0x85e   :  { %v17995_v7 = vadd.f32 %v6092_v22, %v6024_v45  ;;  %v6327_v52 = vadd.f32 %v6326_v60, %v6258_v50  ;;  %7871 = vmatpush.bf16.msrb.mxu1 %v14071_v27  ;;  %v6025_v62 = vpop.f32.mrf.mxu1  ;;  %v6260_v57 = vpop.f32.mrf.mxu0  ;;  %v14098_v50 = vld [vmem:[#allocation2 + $0x170] sm:$0xff]  ;;  %v14091_v60 = vld [vmem:[#allocation2 + $0x1a8] sm:$0xff] }
 0x85f   :  { %7920 = vmatpush.bf16.msrb.mxu3 %v14079_v33  ;;  %v6026_v43 = vadd.f32 %v6025_v62, %v19941_v10  ;;  %v6261_v45 = vadd.f32 %v6260_v57, %v19935_v15  ;;  %v14097_v62 = vld [vmem:[#allocation2 + $0x78] sm:$0xff] }
 0x860   :  { %v6376_v32 = vmax.f32 %v6327_v52, 0.0 }
 0x861   :  { %6783 = vmatmul.bf16.vlgmr.msrb.gmra.mxu0 %v19934_v53  ;;  %v14077_v53 = vld [vmem:[#allocation2 + $0x1f8] sm:$0xff] }
 0x862   :  { %v17999_v8 = vmax.f32 %v6134_v44, %v6376_v32  ;;  %12507 = vmatmul.msk.bf16.vlgmr.msrb.gmra.mxu2 %vm512_vm0, %v19936_v29  ;;  %7872 = vmatpush.bf16.msrb.mxu1 %v14070_v12  ;;  %v6135_v12 = vmax.f32 %v17976_v23, 0.0  ;;  %v19942_v32 = vld [vmem:[#allocation12_spill] sm:$0xff]  ;;  %v14095_v23 = vld [vmem:[#allocation2 + $0x80] sm:$0xff] }
 0x863   :  { %7921 = vmatpush.bf16.msrb.mxu3 %v14078_v34  ;;  %7964 = vmatpush.bf16.msrb.mxu0 %v14092_v16  ;;  %v14090_v34 = vld [vmem:[#allocation2 + $0x38] sm:$0xff] }
 0x864   :  { %8015 = vmatpush.bf16.msrb.mxu2 %v14098_v50  ;;  %v19943_v50 = vld [vmem:[#allocation10_spill] sm:$0xff] }
 0x865   :  { %v6094_v27 = vpop.f32.mrf.mxu3  ;;  %v6329_v22 = vpop.f32.mrf.mxu2 }
 0x866   :  { %v18005_v33 = vadd.f32 %v6094_v27, %v6026_v43  ;;  %v6330_v52 = vadd.f32 %v6329_v22, %v6261_v45  ;;  %7873 = vmatpush.bf16.msrb.mxu1 %v14069_v14  ;;  %v18007_v44 = vpop.f32.mrf.mxu1  ;;  %v6262_v57 = vpop.f32.mrf.mxu0  ;;  %v14096_v43 = vld [vmem:[#allocation2 + $0xf8] sm:$0xff]  ;;  %v14089_v22 = vld [vmem:[#allocation2 + $0x188] sm:$0xff] }
 0x867   :  { %7922 = vmatpush.bf16.msrb.mxu3 %v14077_v53  ;;  %7965 = vmatpush.bf16.msrb.mxu0 %v14091_v60  ;;  %v6263_v45 = vadd.f32 %v6262_v57, %v19937_v42 }
 0x868   :  { %v6377_v29 = vmax.f32 %v6330_v52, 0.0  ;;  %8016 = vmatpush.bf16.msrb.mxu2 %v14097_v62  ;;  %v6136_v62 = vmax.f32 %v17985_v20, 0.0  ;;  %v14093_v20 = vld [vmem:[#allocation2 + $0x1e8] sm:$0xff] }
 0x869   :  { %6551 = vmatmul.bf16.gmra.mxu1 %v19942_v32 }
 0x86a   :  { %v18011_v16 = vmax.f32 %v6135_v12, %v6377_v29  ;;  %12457 = vmatmul.msk.bf16.gmra.mxu3 %vm512_vm0, %v19943_v50  ;;  %v14088_v29 = vld [vmem:[#allocation2] sm:$0xff] }
 0x86b   :  { %7966 = vmatpush.bf16.msrb.mxu0 %v14090_v34  ;;  %v14094_v34 = vld [vmem:[#allocation2 + $0x1c8] sm:$0xff] }
 0x86c   :  { %8017 = vmatpush.bf16.msrb.mxu2 %v14096_v43 }
 0x86d   :  { %v6097_v14 = vpop.f32.mrf.mxu3  ;;  %v6331_v27 = vpop.f32.mrf.mxu2 }
 0x86e   :  { %v6332_v53 = vadd.f32 %v6331_v27, %v6263_v45  ;;  %v6030_v60 = vpop.f32.mrf.mxu1  ;;  %v6265_v52 = vpop.f32.mrf.mxu0  ;;  %v14087_v27 = vld [vmem:[#allocation2 + $0x88] sm:$0xff] }
 0x86f   :  { %7967 = vmatpush.bf16.msrb.mxu0 %v14089_v22  ;;  %v6266_v57 = vadd.f32 %v6265_v52, %v19939_v59  ;;  %v14086_v52 = vld [vmem:[#allocation2 + $0x1b8] sm:$0xff] }
 0x870   :  { %v6378_v12 = vmax.f32 %v6332_v53, 0.0  ;;  %8018 = vmatpush.bf16.msrb.mxu2 %v14095_v23 }
 0x871   :  { %6788 = vmatmul.bf16.gmra.mxu0 %v19938_v38  ;;  %v6137_v38 = vmax.f32 %v17995_v7, 0.0  ;;  %v6138_v7 = vmax.f32 %v18005_v33, 0.0 }
 0x872   :  { %v18018_v15 = vmax.f32 %v6136_v62, %v6378_v12  ;;  %12508 = vmatmul.msk.bf16.gmra.mxu2 %vm512_vm0, %v19940_v47 }
 0x873   :  { %7968 = vmatpush.bf16.msrb.mxu0 %v14088_v29 }
 0x874   :  { %8019 = vmatpush.bf16.msrb.mxu2 %v14094_v34  ;;  %v14085_v34 = vld [vmem:[#allocation2 + $0x60] sm:$0xff] }
 0x875   :  { %v6099_v43 = vpop.f32.mrf.mxu3  ;;  %v6334_v45 = vpop.f32.mrf.mxu2 }
 0x876   :  { %v6335_v22 = vadd.f32 %v6334_v45, %v6266_v57  ;;  %v6033_v53 = vpop.f32.mrf.mxu1  ;;  %v6267_v23 = vpop.f32.mrf.mxu0 }
 0x877   :  { %7969 = vmatpush.bf16.msrb.mxu0 %v14087_v27  ;;  %v6268_v47 = vadd.f32 %v6267_v23, %v19941_v10 }
 0x878   :  { %v6379_v62 = vmax.f32 %v6335_v22, 0.0  ;;  %8020 = vmatpush.bf16.msrb.mxu2 %v14093_v20 }
 0x879   :  { %6556 = vmatmul.bf16.gmra.mxu1 %v15100_v63 }
 0x87a   :  { %v18025_v12 = vmax.f32 %v6137_v38, %v6379_v62  ;;  %12458 = vmatmul.msk.bf16.gmra.mxu3 %vm512_vm0, %v15051_v49  ;;  %v19946_v38 = vld [vmem:[#allocation26_spill] sm:$0xff] }
 0x87b   :  { %7970 = vmatpush.bf16.msrb.mxu0 %v14086_v52 }
 0x87c   :  { %19944 = vst [vmem:[#allocation27_spill] sm:$0xff] %v18025_v12 }
 0x87d   :  { %v6102_v29 = vpop.f32.mrf.mxu3  ;;  %v6336_v57 = vpop.f32.mrf.mxu2 }
 0x87e   :  { %v6337_v45 = vadd.f32 %v6336_v57, %v6268_v47  ;;  %v6035_v27 = vpop.f32.mrf.mxu1  ;;  %v6270_v59 = vpop.f32.mrf.mxu0  ;;  %v6029_v47 = vadd.f32 %v18007_v44, %v19946_v38 }
 0x87f   :  { %7971 = vmatpush.bf16.msrb.mxu0 %v14085_v34  ;;  %v6271_v62 = vadd.f32 %v6270_v59, %v19946_v38  ;;  %v6031_v34 = vadd.f32 %v6030_v60, %v15434_v55 }
 0x880   :  { %v6380_v22 = vmax.f32 %v6337_v45, 0.0 }
 0x881   :  { %6793 = vmatmul.bf16.gmra.mxu0 %v19942_v32  ;;  %v6098_v32 = vadd.f32 %v6097_v14, %v6029_v47  ;;  %v6100_v45 = vadd.f32 %v6099_v43, %v6031_v34  ;;  %v6034_v34 = vadd.f32 %v6033_v53, %v15358_v28 }
 0x882   :  { %v18032_v20 = vmax.f32 %v6138_v7, %v6380_v22  ;;  %12509 = vmatmul.msk.bf16.gmra.mxu2 %vm512_vm0, %v19943_v50 }
 0x883   :  { %v6139_v42 = vmax.f32 %v6098_v32, 0.0 }
 0x884   :  { %19945 = vst [vmem:[#allocation28_spill] sm:$0xff] %v18032_v20  ;;  %v6140_v20 = vmax.f32 %v6100_v45, 0.0 }
 0x885   :  { %v6104_v23 = vpop.f32.mrf.mxu3  ;;  %v6339_v52 = vpop.f32.mrf.mxu2 }
 0x886   :  { %v6038_v57 = vpop.f32.mrf.mxu1  ;;  %v6272_v10 = vpop.f32.mrf.mxu0  ;;  %v6340_v33 = vadd.f32 %v6339_v52, %v6271_v62 }
 0x887   :  { %v6273_v59 = vadd.f32 %v6272_v10, %v15434_v55 }
 0x888   :  { %v6381_v50 = vmax.f32 %v6340_v33, 0.0 }
 0x889   :  { %6561 = vmatmul.bf16.gmra.mxu1 %v15134_v9 }
 0x88a   :  { %12459 = vmatmul.msk.bf16.gmra.mxu3 %vm512_vm0, %v15082_v58  ;;  %v6405_v12 = vmax.f32 %v6139_v42, %v6381_v50 }
 0x88c   :  { %v6417_v14 = vmax.f32 %v17938_v26, %v6405_v12 }
 0x88d   :  { %v6107_v7 = vpop.f32.mrf.mxu3  ;;  %v6341_v22 = vpop.f32.mrf.mxu2 }
 0x88e   :  { %v6342_v54 = vadd.f32 %v6341_v22, %v6273_v59  ;;  %v6040_v44 = vpop.f32.mrf.mxu1  ;;  %v6275_v38 = vpop.f32.mrf.mxu0 }
 0x88f   :  { %v6276_v10 = vadd.f32 %v6275_v38, %v15358_v28 }
 0x890   :  { %v6382_v60 = vmax.f32 %v6342_v54, 0.0  ;;  %v6036_v54 = vadd.f32 %v6035_v27, %v15240_v51 }
 0x891   :  { %6798 = vmatmul.bf16.gmra.mxu0 %v15100_v63 }
 0x892   :  { %v6406_v62 = vmax.f32 %v6140_v20, %v6382_v60  ;;  %12510 = vmatmul.msk.bf16.gmra.mxu2 %vm512_vm0, %v15051_v49  ;;  %v6103_v49 = vadd.f32 %v6102_v29, %v6034_v34  ;;  %v6105_v26 = vadd.f32 %v6104_v23, %v6036_v54  ;;  %v6041_v54 = vadd.f32 %v6040_v44, %v15388_v13 }
 0x894   :  { %v6418_v43 = vmax.f32 %v17945_v3, %v6406_v62  ;;  %v6141_v53 = vmax.f32 %v6103_v49, 0.0  ;;  %v6142_v22 = vmax.f32 %v6105_v26, 0.0 }
 0x895   :  { %v6109_v52 = vpop.f32.mrf.mxu3  ;;  %v6344_v47 = vpop.f32.mrf.mxu2 }
 0x896   :  { %v14600_v33 = vpack.c.bf16 %v6418_v43, %v6417_v14  ;;  %v6043_v32 = vpop.f32.mrf.mxu1  ;;  %v6277_v42 = vpop.f32.mrf.mxu0  ;;  %v6345_v63 = vadd.f32 %v6344_v47, %v6276_v10  ;;  %v6039_v47 = vadd.f32 %v6038_v57, %v15264_v61 }
 0x897   :  { %v6278_v12 = vadd.f32 %v6277_v42, %v15240_v51 }
 0x898   :  { %14796 = vst [vmem:[#allocation2 + $0x210] sm:$0xff] %v14600_v33   ;;  %v6383_v3 = vmax.f32 %v6345_v63, 0.0 }
 0x899   :  { %6566 = vmatmul.bf16.gmra.mxu1 %v15171_v21 }
 0x89a   :  { %12460 = vmatmul.msk.bf16.gmra.mxu3 %vm512_vm0, %v15116_v4  ;;  %v6407_v27 = vmax.f32 %v6141_v53, %v6383_v3 }
 0x89c   :  { %v6419_v29 = vmax.f32 %v17952_v35, %v6407_v27  ;;  %v6110_v35 = vadd.f32 %v6109_v52, %v6041_v54 }
 0x89d   :  { %v6112_v20 = vpop.f32.mrf.mxu3  ;;  %v6346_v38 = vpop.f32.mrf.mxu2 }
 0x89e   :  { %v6347_v45 = vadd.f32 %v6346_v38, %v6278_v12  ;;  %v6045_v50 = vpop.f32.mrf.mxu1  ;;  %v6280_v59 = vpop.f32.mrf.mxu0  ;;  %v6144_v53 = vmax.f32 %v6110_v35, 0.0 }
 0x89f   :  { %v6281_v14 = vadd.f32 %v6280_v59, %v15264_v61 }
 0x8a0   :  { %v6384_v60 = vmax.f32 %v6347_v45, 0.0 }
 0x8a1   :  { %6803 = vmatmul.bf16.gmra.mxu0 %v15134_v9 }
 0x8a2   :  { %v6408_v62 = vmax.f32 %v6142_v22, %v6384_v60  ;;  %12511 = vmatmul.msk.bf16.gmra.mxu2 %vm512_vm0, %v15082_v58  ;;  %v6108_v58 = vadd.f32 %v6107_v7, %v6039_v47 }
 0x8a4   :  { %v6420_v23 = vmax.f32 %v17961_v11, %v6408_v62  ;;  %v6143_v57 = vmax.f32 %v6108_v58, 0.0  ;;  %v6044_v62 = vadd.f32 %v6043_v32, %v15198_v30 }
 0x8a5   :  { %v6114_v43 = vpop.f32.mrf.mxu3  ;;  %v6349_v10 = vpop.f32.mrf.mxu2 }
 0x8a6   :  { %v14605_v34 = vpack.c.bf16 %v6420_v23, %v6419_v29  ;;  %v6048_v33 = vpop.f32.mrf.mxu1  ;;  %v6282_v42 = vpop.f32.mrf.mxu0  ;;  %v6350_v9 = vadd.f32 %v6349_v10, %v6281_v14  ;;  %v6046_v10 = vadd.f32 %v6045_v50, %v15217_v39 }
 0x8a7   :  { %v6283_v63 = vadd.f32 %v6282_v42, %v15388_v13 }
 0x8a8   :  { %14797 = vst [vmem:[#allocation2 + $0x1d0] sm:$0xff] %v14605_v34   ;;  %v6385_v11 = vmax.f32 %v6350_v9, 0.0 }
 0x8a9   :  { %6571 = vmatmul.bf16.gmra.mxu1 %v15200_v31 }
 0x8aa   :  { %12461 = vmatmul.msk.bf16.gmra.mxu3 %vm512_vm0, %v15156_v17  ;;  %v6409_v44 = vmax.f32 %v6143_v57, %v6385_v11 }
 0x8ac   :  { %v6421_v7 = vmax.f32 %v17970_v48, %v6409_v44  ;;  %v6115_v48 = vadd.f32 %v6114_v43, %v6046_v10 }
 0x8ad   :  { %v6117_v49 = vpop.f32.mrf.mxu3  ;;  %v6351_v26 = vpop.f32.mrf.mxu2 }
 0x8ae   :  { %v6352_v3 = vadd.f32 %v6351_v26, %v6283_v63  ;;  %v6050_v12 = vpop.f32.mrf.mxu1  ;;  %v6285_v38 = vpop.f32.mrf.mxu0  ;;  %v6146_v35 = vmax.f32 %v6115_v48, 0.0 }
 0x8af   :  { %v6286_v22 = vadd.f32 %v6285_v38, %v15198_v30 }
 0x8b0   :  { %v6386_v45 = vmax.f32 %v6352_v3, 0.0  ;;  %v6049_v3 = vadd.f32 %v6048_v33, %v15577_v41 }
 0x8b1   :  { %6808 = vmatmul.bf16.gmra.mxu0 %v15171_v21 }
 0x8b2   :  { %v6410_v59 = vmax.f32 %v6144_v53, %v6386_v45  ;;  %12512 = vmatmul.msk.bf16.gmra.mxu2 %vm512_vm0, %v15116_v4  ;;  %v6113_v4 = vadd.f32 %v6112_v20, %v6044_v62 }
 0x8b4   :  { %v6422_v52 = vmax.f32 %v17979_v2, %v6410_v59  ;;  %v6145_v32 = vmax.f32 %v6113_v4, 0.0  ;;  %v6051_v59 = vadd.f32 %v6050_v12, %v15584_v40 }
 0x8b5   :  { %v6119_v27 = vpop.f32.mrf.mxu3  ;;  %v6354_v60 = vpop.f32.mrf.mxu2 }
 0x8b6   :  { %v14610_v29 = vpack.c.bf16 %v6422_v52, %v6421_v7  ;;  %v6053_v23 = vpop.f32.mrf.mxu1  ;;  %v6287_v14 = vpop.f32.mrf.mxu0  ;;  %v6355_v21 = vadd.f32 %v6354_v60, %v6286_v22 }
 0x8b7   :  { %v6288_v47 = vadd.f32 %v6287_v14, %v15217_v39 }
 0x8b8   :  { %14798 = vst [vmem:[#allocation2 + $0x168] sm:$0xff] %v14610_v29   ;;  %v6387_v2 = vmax.f32 %v6355_v21, 0.0 }
 0x8b9   :  { %6576 = vmatmul.bf16.gmra.mxu1 %v15231_v46 }
 0x8ba   :  { %12462 = vmatmul.msk.bf16.gmra.mxu3 %vm512_vm0, %v15181_v24  ;;  %v6411_v50 = vmax.f32 %v6145_v32, %v6387_v2  ;;  %v6054_v32 = vadd.f32 %v6053_v23, %v15443_v19 }
 0x8bc   :  { %v6423_v20 = vmax.f32 %v17989_v36, %v6411_v50  ;;  %v6120_v36 = vadd.f32 %v6119_v27, %v6051_v59 }
 0x8bd   :  { %v6122_v34 = vpop.f32.mrf.mxu3  ;;  %v6356_v42 = vpop.f32.mrf.mxu2 }
 0x8be   :  { %v6357_v54 = vadd.f32 %v6356_v42, %v6288_v47  ;;  %v6055_v9 = vpop.f32.mrf.mxu1  ;;  %v6290_v58 = vpop.f32.mrf.mxu0  ;;  %v6148_v10 = vmax.f32 %v6120_v36, 0.0  ;;  %v19948_v36 = vld [vmem:[#allocation28_spill] sm:$0xff] }
 0x8bf   :  { %v6291_v53 = vadd.f32 %v6290_v58, %v15577_v41 }
 0x8c0   :  { %v6388_v11 = vmax.f32 %v6357_v54, 0.0 }
 0x8c1   :  { %6813 = vmatmul.bf16.gmra.mxu0 %v15200_v31 }
 0x8c2   :  { %v6412_v63 = vmax.f32 %v6146_v35, %v6388_v11  ;;  %12513 = vmatmul.msk.bf16.gmra.mxu2 %vm512_vm0, %v15156_v17  ;;  %v6118_v17 = vadd.f32 %v6117_v49, %v6049_v3 }
 0x8c4   :  { %v6424_v43 = vmax.f32 %v17999_v8, %v6412_v63  ;;  %v6147_v60 = vmax.f32 %v6118_v17, 0.0 }
 0x8c5   :  { %v6124_v26 = vpop.f32.mrf.mxu3  ;;  %v6359_v57 = vpop.f32.mrf.mxu2 }
 0x8c6   :  { %v14615_v38 = vpack.c.bf16 %v6424_v43, %v6423_v20  ;;  %v6292_v44 = vpop.f32.mrf.mxu0  ;;  %v6542_v45 = vpop.f32.mrf.mxu1  ;;  %v6360_v31 = vadd.f32 %v6359_v57, %v6291_v53 }
 0x8c7   :  { %v6293_v7 = vadd.f32 %v6292_v44, %v15584_v40  ;;  %v6543_v33 = vadd.f32 %v6542_v45, %v15272_v1 }
 0x8c8   :  { %14799 = vst [vmem:[#allocation2 + $0xc0] sm:$0xff] %v14615_v38   ;;  %v6389_v8 = vmax.f32 %v6360_v31, 0.0 }
 0x8c9   :  { %6581 = vmatmul.bf16.gmra.mxu1 %v15279_v5 }
 0x8ca   :  { %12463 = vmatmul.msk.bf16.gmra.mxu3 %vm512_vm0, %v15215_v37  ;;  %v6413_v21 = vmax.f32 %v6147_v60, %v6389_v8 }
 0x8cc   :  { %v6425_v27 = vmax.f32 %v18011_v16, %v6413_v21  ;;  %v6056_v16 = vadd.f32 %v6055_v9, %v15559_v25 }
 0x8cd   :  { %v6361_v52 = vpop.f32.mrf.mxu2  ;;  %v6611_v22 = vpop.f32.mrf.mxu3 }
 0x8ce   :  { %v6362_v62 = vadd.f32 %v6361_v52, %v6293_v7  ;;  %v6612_v29 = vadd.f32 %v6611_v22, %v6543_v33  ;;  %v6295_v12 = vpop.f32.mrf.mxu0  ;;  %v6544_v14 = vpop.f32.mrf.mxu1  ;;  %v19949_v7 = vld [vmem:[#allocation18_spill] sm:$0xff] }
 0x8cf   :  { %v6545_v2 = vadd.f32 %v6544_v14, %v15300_v18  ;;  %v6296_v58 = vadd.f32 %v6295_v12, %v15443_v19 }
 0x8d0   :  { %v6390_v4 = vmax.f32 %v6362_v62, 0.0 }
 0x8d1   :  { %6818 = vmatmul.bf16.gmra.mxu0 %v15231_v46 }
 0x8d2   :  { %v6414_v49 = vmax.f32 %v6148_v10, %v6390_v4  ;;  %12514 = vmatmul.msk.bf16.gmra.mxu2 %vm512_vm0, %v15181_v24  ;;  %v6123_v24 = vadd.f32 %v6122_v34, %v6054_v32 }
 0x8d4   :  { %v6426_v48 = vmax.f32 %v18018_v15, %v6414_v49  ;;  %v6125_v15 = vadd.f32 %v6124_v26, %v6056_v16  ;;  %v6149_v3 = vmax.f32 %v6123_v24, 0.0  ;;  %v19947_v26 = vld [vmem:[#allocation27_spill] sm:$0xff]  ;;  %v19950_v49 = vld [vmem:[#allocation20_spill] sm:$0xff] }
 0x8d5   :  { %v6364_v47 = vpop.f32.mrf.mxu2  ;;  %v6613_v42 = vpop.f32.mrf.mxu3  ;;  %v19953_v24 = vld [vmem:[#allocation16_spill] sm:$0xff] }
 0x8d6   :  { %v14620_v54 = vpack.c.bf16 %v6426_v48, %v6425_v27  ;;  %v6614_v35 = vadd.f32 %v6613_v42, %v6545_v2  ;;  %v6297_v50 = vpop.f32.mrf.mxu0  ;;  %v6547_v46 = vpop.f32.mrf.mxu1  ;;  %v6365_v11 = vadd.f32 %v6364_v47, %v6296_v58  ;;  %v6150_v59 = vmax.f32 %v6125_v15, 0.0  ;;  %v19951_v27 = vld [vmem:[#allocation17_spill] sm:$0xff]  ;;  %v19952_v48 = vld [vmem:[#allocation15_spill] sm:$0xff] }
 0x8d7   :  { %v6298_v23 = vadd.f32 %v6297_v50, %v15559_v25  ;;  %v6548_v20 = vadd.f32 %v6547_v46, %v15281_v6 }
 0x8d8   :  { %14800 = vst [vmem:[#allocation2 + $0x1a0] sm:$0xff] %v14620_v54   ;;  %v6391_v63 = vmax.f32 %v6365_v11, 0.0 }
 0x8d9   :  { %6586 = vmatmul.bf16.gmra.mxu1 %v15338_v0 }
 0x8da   :  { %12464 = vmatmul.msk.bf16.gmra.mxu3 %vm512_vm0, %v15250_v56  ;;  %v6415_v34 = vmax.f32 %v6149_v3, %v6391_v63 }
 0x8dc   :  { %v6427_v17 = vmax.f32 %v19947_v26, %v6415_v34 }
 0x8dd   :  { %v6366_v43 = vpop.f32.mrf.mxu2  ;;  %v6616_v57 = vpop.f32.mrf.mxu3 }
 0x8de   :  { %v6367_v38 = vadd.f32 %v6366_v43, %v6298_v23  ;;  %v6617_v53 = vadd.f32 %v6616_v57, %v6548_v20  ;;  %v6549_v44 = vpop.f32.mrf.mxu1  ;;  %v6784_v45 = vpop.f32.mrf.mxu0 }
 0x8df   :  { %v6550_v33 = vadd.f32 %v6549_v44, %v19949_v7  ;;  %v6785_v52 = vadd.f32 %v6784_v45, %v15272_v1  ;;  %v19955_v44 = vld [vmem:[#allocation19_spill] sm:$0xff] }
 0x8e0   :  { %v6392_v31 = vmax.f32 %v6367_v38, 0.0  ;;  %v19954_v38 = vld [vmem:[#allocation22_spill] sm:$0xff] }
 0x8e1   :  { %6823 = vmatmul.bf16.gmra.mxu0 %v15279_v5  ;;  %v6671_v5 = vmax.f32 %v6612_v29, 0.0  ;;  %v6672_v29 = vmax.f32 %v6614_v35, 0.0  ;;  %v6673_v35 = vmax.f32 %v6617_v53, 0.0 }
 0x8e2   :  { %v6416_v9 = vmax.f32 %v6150_v59, %v6392_v31  ;;  %12515 = vmatmul.msk.bf16.gmra.mxu2 %vm512_vm0, %v15215_v37 }
 0x8e4   :  { %v6428_v8 = vmax.f32 %v19948_v36, %v6416_v9 }
 0x8e5   :  { %v6618_v22 = vpop.f32.mrf.mxu3  ;;  %v6853_v60 = vpop.f32.mrf.mxu2 }
 0x8e6   :  { %v14625_v62 = vpack.c.bf16 %v6428_v8, %v6427_v17  ;;  %v6619_v12 = vadd.f32 %v6618_v22, %v6550_v33  ;;  %v6854_v14 = vadd.f32 %v6853_v60, %v6785_v52  ;;  %v6552_v10 = vpop.f32.mrf.mxu1  ;;  %v6786_v21 = vpop.f32.mrf.mxu0  ;;  %v13769_v33 = vld [vmem:[%s19354_s3 + $0xc] sm:$0xf0]  ;;  %v13767_v52 = vld [vmem:[%s19354_s3 + $0x4] sm:$0xf]  ;;  %v12523_v22 = vld [vmem:[%s19354_s3 + $0x10] sm:$0xf0] }
 0x8e7   :  { %v6553_v2 = vadd.f32 %v6552_v10, %v19952_v48  ;;  %v6787_v1 = vadd.f32 %v6786_v21, %v15300_v18  ;;  %v19957_v60 = vld [vmem:[#allocation14_spill] sm:$0xff] }
 0x8e8   :  { %14801 = vst [vmem:[#allocation2 + $0x58] sm:$0xff] %v14625_v62   ;;  %v6913_v4 = vmax.f32 %v6854_v14, 0.0  ;;  %v6674_v53 = vmax.f32 %v6619_v12, 0.0 }
 0x8e9   :  { %6591 = vmatmul.bf16.gmra.mxu1 %v19950_v49 }
 0x8ea   :  { %v18115_v37 = vmax.f32 %v6671_v5, %v6913_v4  ;;  %12465 = vmatmul.msk.bf16.gmra.mxu3 %vm512_vm0, %v19951_v27 }
 0x8ed   :  { %v6621_v47 = vpop.f32.mrf.mxu3  ;;  %v6855_v42 = vpop.f32.mrf.mxu2 }
 0x8ee   :  { %v6622_v32 = vadd.f32 %v6621_v47, %v6553_v2  ;;  %v6856_v54 = vadd.f32 %v6855_v42, %v6787_v1  ;;  %v6554_v58 = vpop.f32.mrf.mxu1  ;;  %v6789_v50 = vpop.f32.mrf.mxu0  ;;  %v18162_v2 = vor.u32 %v13767_v52, %v12523_v22  ;;  %v14106_v42 = vld [vmem:[#allocation2 + $0x1c0] sm:$0xff] }
 0x8ef   :  { %v6555_v16 = vadd.f32 %v6554_v58, %v19953_v24  ;;  %v6790_v15 = vadd.f32 %v6789_v50, %v15281_v6 }
 0x8f0   :  { %v6914_v46 = vmax.f32 %v6856_v54, 0.0  ;;  %19959 = vst [vmem:[#allocation7_spill] sm:$0xff] %v18162_v2  ;;  %v6675_v1 = vmax.f32 %v6622_v32, 0.0  ;;  %v14114_v54 = vld [vmem:[#allocation2 + $0x38] sm:$0xff] }
 0x8f1   :  { %6828 = vmatmul.bf16.gmra.mxu0 %v15338_v0 }
 0x8f2   :  { %v18122_v11 = vmax.f32 %v6672_v29, %v6914_v46  ;;  %12516 = vmatmul.msk.bf16.gmra.mxu2 %vm512_vm0, %v15250_v56  ;;  %v19956_v56 = vld [vmem:[#allocation13_spill] sm:$0xff]  ;;  %v14105_v46 = vld [vmem:[#allocation2 + $0x140] sm:$0xff] }
 0x8f5   :  { %v6623_v18 = vpop.f32.mrf.mxu3  ;;  %v6858_v63 = vpop.f32.mrf.mxu2 }
 0x8f6   :  { %v18128_v23 = vadd.f32 %v6623_v18, %v6555_v16  ;;  %v6859_v20 = vadd.f32 %v6858_v63, %v6790_v15  ;;  %v6557_v43 = vpop.f32.mrf.mxu1  ;;  %v6791_v57 = vpop.f32.mrf.mxu0  ;;  %v14113_v18 = vld [vmem:[#allocation2 + $0x188] sm:$0xff] }
 0x8f7   :  { %v6558_v45 = vadd.f32 %v6557_v43, %v19956_v56  ;;  %v6792_v6 = vadd.f32 %v6791_v57, %v19949_v7  ;;  %v12521_v7 = vld [vmem:[%s19354_s3] sm:$0xf] }
 0x8f8   :  { %v6915_v3 = vmax.f32 %v6859_v20, 0.0  ;;  %v18158_v21 = vor.u32 %v13769_v33, %v12521_v7  ;;  %v6676_v57 = vmax.f32 %v18128_v23, 0.0  ;;  %v13771_v23 = vld [vmem:[%s19354_s3 + $0x24] sm:$0xf] }
 0x8f9   :  { %6596 = vmatmul.bf16.gmra.mxu1 %v19954_v38 }
 0x8fa   :  { %v18131_v0 = vmax.f32 %v6673_v35, %v6915_v3  ;;  %12466 = vmatmul.msk.bf16.gmra.mxu3 %vm512_vm0, %v19955_v44  ;;  %19958 = vst [vmem:[#allocation9_spill] sm:$0xff] %v18158_v21  ;;  %v14104_v3 = vld [vmem:[#allocation2 + $0x190] sm:$0xff] }
 0x8fd   :  { %v6626_v59 = vpop.f32.mrf.mxu3  ;;  %v6860_v34 = vpop.f32.mrf.mxu2 }
 0x8fe   :  { %v18137_v31 = vadd.f32 %v6626_v59, %v6558_v45  ;;  %v6861_v9 = vadd.f32 %v6860_v34, %v6792_v6  ;;  %v6559_v26 = vpop.f32.mrf.mxu1  ;;  %v6794_v17 = vpop.f32.mrf.mxu0  ;;  %v14112_v45 = vld [vmem:[#allocation2] sm:$0xff]  ;;  %v13773_v59 = vld [vmem:[%s19354_s3 + $0x2c] sm:$0xf0] }
 0x8ff   :  { %v6560_v62 = vadd.f32 %v6559_v26, %v19957_v60  ;;  %v6795_v12 = vadd.f32 %v6794_v17, %v19952_v48  ;;  %v19960_v48 = vld [vmem:[#allocation24_spill] sm:$0xff]  ;;  %v19961_v34 = vld [vmem:[#allocation25_spill] sm:$0xff]  ;;  %v14103_v26 = vld [vmem:[#allocation2 + $0x180] sm:$0xff] }
 0x900   :  { %v6916_v36 = vmax.f32 %v6861_v9, 0.0 }
 0x901   :  { %6833 = vmatmul.bf16.gmra.mxu0 %v19950_v49 }
 0x902   :  { %v18140_v8 = vmax.f32 %v6674_v53, %v6916_v36  ;;  %12517 = vmatmul.msk.bf16.gmra.mxu2 %vm512_vm0, %v19951_v27  ;;  %v14111_v36 = vld [vmem:[#allocation2 + $0x88] sm:$0xff] }
 0x905   :  { %v6628_v14 = vpop.f32.mrf.mxu3  ;;  %v6863_v10 = vpop.f32.mrf.mxu2 }
 0x906   :  { %v18160_v5 = vadd.f32 %v6628_v14, %v6560_v62  ;;  %v6864_v4 = vadd.f32 %v6863_v10, %v6795_v12  ;;  %v6562_v49 = vpop.f32.mrf.mxu1  ;;  %v6796_v27 = vpop.f32.mrf.mxu0  ;;  %v6677_v14 = vmax.f32 %v18137_v31, 0.0  ;;  %v13768_v31 = vld [vmem:[%s19354_s3 + $0xc] sm:$0xf] }
 0x907   :  { %v6563_v50 = vadd.f32 %v6562_v49, %v19960_v48  ;;  %v6797_v29 = vadd.f32 %v6796_v27, %v19953_v24  ;;  %v12537_v24 = vld [vmem:[%s19354_s3 + $0x20] sm:$0xf]  ;;  %v12529_v27 = vld [vmem:[%s19354_s3 + $0x8] sm:$0xf] }
 0x908   :  { %v6917_v47 = vmax.f32 %v6864_v4, 0.0  ;;  %v18192_v7 = vor.u32 %v13773_v59, %v12537_v24  ;;  %v14102_v4 = vld [vmem:[#allocation2 + $0xb8] sm:$0xff]  ;;  %v14122_v59 = vld [vmem:[#allocation2 + $0x170] sm:$0xff] }
 0x909   :  { %7422 = vmatmul.bf16.vlgmr.msra.gmra.mxu1 %v18158_v21  ;;  %v14108_v24 = vld [vmem:[#allocation2 + $0x138] sm:$0xff] }
 0x90a   :  { %v18165_v58 = vmax.f32 %v6675_v1, %v6917_v47  ;;  %7471 = vmatmul.bf16.vlgmr.msra.gmra.mxu3 %v18162_v2  ;;  %8358 = vmatpush.bf16.msra.mxu1 %v14106_v42  ;;  %v13770_v1 = vld [vmem:[%s19354_s3 + $0x14] sm:$0xf0]  ;;  %v12531_v47 = vld [vmem:[%s19354_s3 + $0x18] sm:$0xf0] }
 0x90b   :  { %8407 = vmatpush.bf16.msra.mxu3 %v14114_v54  ;;  %v19963_v42 = vld [vmem:[#allocation21_spill] sm:$0xff] }
 0x90d   :  { %v6631_v16 = vpop.f32.mrf.mxu3  ;;  %v6865_v15 = vpop.f32.mrf.mxu2 }
 0x90e   :  { %v18170_v32 = vadd.f32 %v6631_v16, %v6563_v50  ;;  %v6866_v63 = vadd.f32 %v6865_v15, %v6797_v29  ;;  %8359 = vmatpush.bf16.msra.mxu1 %v14105_v46  ;;  %v6564_v20 = vpop.f32.mrf.mxu1  ;;  %v6799_v43 = vpop.f32.mrf.mxu0  ;;  %v14101_v29 = vld [vmem:[#allocation2 + $0x1f8] sm:$0xff]  ;;  %v14109_v15 = vld [vmem:[#allocation2 + $0x60] sm:$0xff] }
 0x90f   :  { %8408 = vmatpush.bf16.msra.mxu3 %v14113_v18  ;;  %v6800_v9 = vadd.f32 %v6799_v43, %v19956_v56  ;;  %v14110_v56 = vld [vmem:[#allocation2 + $0x1b8] sm:$0xff]  ;;  %v18217_v18 = vor.u32 %v13770_v1, %v12529_v27  ;;  %v14127_v1 = vld [vmem:[#allocation2 + $0x48] sm:$0xff] }
 0x910   :  { %v6918_v35 = vmax.f32 %v6866_v63, 0.0 }
 0x911   :  { %6838 = vmatmul.bf16.gmra.mxu0 %v19954_v38  ;;  %v12539_v38 = vld [vmem:[%s19354_s3 + $0x30] sm:$0xf0]  ;;  %19964 = vst [vmem:[#allocation8_spill] sm:$0xff] %v18217_v18 }
 0x912   :  { %v18174_v6 = vmax.f32 %v6676_v57, %v6918_v35  ;;  %12518 = vmatmul.msk.bf16.gmra.mxu2 %vm512_vm0, %v19955_v44  ;;  %8360 = vmatpush.bf16.msra.mxu1 %v14104_v3  ;;  %v6565_v44 = vadd.f32 %v6564_v20, %v19961_v34  ;;  %v18196_v12 = vor.u32 %v13771_v23, %v12539_v38  ;;  %v6678_v3 = vmax.f32 %v18160_v5, 0.0  ;;  %v14128_v38 = vld [vmem:[#allocation2 + $0x98] sm:$0xff]  ;;  %v13777_v5 = vld [vmem:[%s19354_s3 + $0x4c] sm:$0xf0] }
 0x913   :  { %8409 = vmatpush.bf16.msra.mxu3 %v14112_v45  ;;  %v18221_v35 = vor.u32 %v13768_v31, %v12531_v47 }
 0x914   :  { %19962 = vst [vmem:[#allocation11_spill] sm:$0xff] %v18196_v12 }
 0x915   :  { %v6633_v17 = vpop.f32.mrf.mxu3  ;;  %v6868_v53 = vpop.f32.mrf.mxu2  ;;  %19965 = vst [vmem:[#allocation12_spill] sm:$0xff] %v18221_v35 }
 0x916   :  { %v18194_v33 = vadd.f32 %v6633_v17, %v6565_v44  ;;  %v6869_v52 = vadd.f32 %v6868_v53, %v6800_v9  ;;  %8361 = vmatpush.bf16.msra.mxu1 %v14103_v26  ;;  %v6567_v22 = vpop.f32.mrf.mxu1  ;;  %v6801_v62 = vpop.f32.mrf.mxu0  ;;  %v12553_v44 = vld [vmem:[%s19354_s3 + $0x40] sm:$0xf]  ;;  %v13775_v9 = vld [vmem:[%s19354_s3 + $0x44] sm:$0xf]  ;;  %v12555_v26 = vld [vmem:[%s19354_s3 + $0x50] sm:$0xf0] }
 0x917   :  { %8410 = vmatpush.bf16.msra.mxu3 %v14111_v36  ;;  %v6568_v54 = vadd.f32 %v6567_v22, %v19963_v42  ;;  %v6802_v50 = vadd.f32 %v6801_v62, %v19957_v60  ;;  %v14100_v60 = vld [vmem:[#allocation2 + $0x110] sm:$0xff]  ;;  %v19966_v17 = vld [vmem:[#allocation23_spill] sm:$0xff] }
 0x918   :  { %v6919_v10 = vmax.f32 %v6869_v52, 0.0  ;;  %v14099_v52 = vld [vmem:[#allocation2 + $0x108] sm:$0xff] }
 0x919   :  { %7427 = vmatmul.bf16.gmra.mxu1 %v18192_v7 }
 0x91a   :  { %v18200_v49 = vmax.f32 %v6677_v14, %v6919_v10  ;;  %7476 = vmatmul.bf16.gmra.mxu3 %v18196_v12  ;;  %8362 = vmatpush.bf16.msra.mxu1 %v14102_v4  ;;  %v14107_v14 = vld [vmem:[#allocation2 + $0xd0] sm:$0xff]  ;;  %v14121_v10 = vld [vmem:[#allocation2 + $0x78] sm:$0xff]  ;;  %v18243_v4 = vor.u32 %v13777_v5, %v12553_v44 }
 0x91b   :  { %8411 = vmatpush.bf16.msra.mxu3 %v14110_v56 }
 0x91d   :  { %v6636_v46 = vpop.f32.mrf.mxu3  ;;  %v6870_v16 = vpop.f32.mrf.mxu2 }
 0x91e   :  { %v18219_v63 = vadd.f32 %v6636_v46, %v6568_v54  ;;  %v6871_v20 = vadd.f32 %v6870_v16, %v6802_v50  ;;  %8363 = vmatpush.bf16.msra.mxu1 %v14101_v29  ;;  %v6569_v43 = vpop.f32.mrf.mxu1  ;;  %v6804_v57 = vpop.f32.mrf.mxu0  ;;  %v18249_v54 = vor.u32 %v13775_v9, %v12555_v26  ;;  %v14120_v29 = vld [vmem:[#allocation2 + $0xf8] sm:$0xff]  ;;  %v14126_v16 = vld [vmem:[#allocation2 + $0x1f0] sm:$0xff]  ;;  %v6680_v26 = vmax.f32 %v18194_v33, 0.0  ;;  %v13779_v33 = vld [vmem:[%s19354_s3 + $0x64] sm:$0xf] }
 0x91f   :  { %8412 = vmatpush.bf16.msra.mxu3 %v14109_v15  ;;  %v6570_v53 = vadd.f32 %v6569_v43, %v19966_v17  ;;  %v6805_v36 = vadd.f32 %v6804_v57, %v19960_v48  ;;  %v6679_v48 = vmax.f32 %v18170_v32, 0.0  ;;  %v12545_v15 = vld [vmem:[%s19354_s3 + $0x28] sm:$0xf]  ;;  %v13772_v32 = vld [vmem:[%s19354_s3 + $0x2c] sm:$0xf] }
 0x920   :  { %v6920_v45 = vmax.f32 %v6871_v20, 0.0  ;;  %v13774_v20 = vld [vmem:[%s19354_s3 + $0x34] sm:$0xf0]  ;;  %v12547_v43 = vld [vmem:[%s19354_s3 + $0x38] sm:$0xf0] }
 0x921   :  { %7520 = vmatmul.bf16.vlgmr.msra.gmra.mxu0 %v18217_v18  ;;  %v18275_v9 = vor.u32 %v13772_v32, %v12547_v43  ;;  %v6681_v32 = vmax.f32 %v18219_v63, 0.0  ;;  %v13776_v63 = vld [vmem:[%s19354_s3 + $0x4c] sm:$0xf] }
 0x922   :  { %v18225_v23 = vmax.f32 %v6678_v3, %v6920_v45  ;;  %12767 = vmatmul.msk.bf16.vlgmr.msra.gmra.mxu2 %vm7389_vm1, %v18221_v35  ;;  %8364 = vmatpush.bf16.msra.mxu1 %v14100_v60  ;;  %v14119_v60 = vld [vmem:[#allocation2 + $0x80] sm:$0xff] }
 0x923   :  { %8413 = vmatpush.bf16.msra.mxu3 %v14108_v24  ;;  %8456 = vmatpush.bf16.msra.mxu0 %v14122_v59  ;;  %v18271_v24 = vor.u32 %v13774_v20, %v12545_v15 }
 0x924   :  { %8507 = vmatpush.bf16.msra.mxu2 %v14128_v38  ;;  %v14125_v38 = vld [vmem:[#allocation2 + $0x1e0] sm:$0xff] }
 0x925   :  { %v6638_v22 = vpop.f32.mrf.mxu3  ;;  %v6873_v62 = vpop.f32.mrf.mxu2 }
 0x926   :  { %v18245_v56 = vadd.f32 %v6638_v22, %v6570_v53  ;;  %v6874_v27 = vadd.f32 %v6873_v62, %v6805_v36  ;;  %8365 = vmatpush.bf16.msra.mxu1 %v14099_v52  ;;  %v18247_v31 = vpop.f32.mrf.mxu1  ;;  %v6806_v47 = vpop.f32.mrf.mxu0  ;;  %v14124_v52 = vld [vmem:[#allocation2 + $0xe0] sm:$0xff]  ;;  %v13781_v62 = vld [vmem:[%s19354_s3 + $0x6c] sm:$0xf0] }
 0x927   :  { %8414 = vmatpush.bf16.msra.mxu3 %v14107_v14  ;;  %8457 = vmatpush.bf16.msra.mxu0 %v14121_v10  ;;  %v6807_v57 = vadd.f32 %v6806_v47, %v19961_v34  ;;  %v14118_v34 = vld [vmem:[#allocation2 + $0x1c8] sm:$0xff]  ;;  %v12569_v22 = vld [vmem:[%s19354_s3 + $0x60] sm:$0xf]  ;;  %v12571_v14 = vld [vmem:[%s19354_s3 + $0x70] sm:$0xf0] }
 0x928   :  { %v6921_v50 = vmax.f32 %v6874_v27, 0.0  ;;  %8508 = vmatpush.bf16.msra.mxu2 %v14127_v1  ;;  %v14117_v47 = vld [vmem:[#allocation2 + $0x1e8] sm:$0xff]  ;;  %v18300_v20 = vor.u32 %v13779_v33, %v12571_v14  ;;  %v6682_v14 = vmax.f32 %v18245_v56, 0.0  ;;  %v13783_v56 = vld [vmem:[%s19354_s3 + $0x84] sm:$0xf] }
 0x929   :  { %7432 = vmatmul.bf16.gmra.mxu1 %v18243_v4 }
 0x92a   :  { %v18253_v46 = vmax.f32 %v6679_v48, %v6921_v50  ;;  %7481 = vmatmul.bf16.gmra.mxu3 %v18249_v54  ;;  %v18296_v48 = vor.u32 %v13781_v62, %v12569_v22 }
 0x92b   :  { %8458 = vmatpush.bf16.msra.mxu0 %v14120_v29  ;;  %v14123_v29 = vld [vmem:[#allocation2 + $0x198] sm:$0xff] }
 0x92c   :  { %8509 = vmatpush.bf16.msra.mxu2 %v14126_v16 }
 0x92d   :  { %v18269_v3 = vpop.f32.mrf.mxu3  ;;  %v6875_v45 = vpop.f32.mrf.mxu2 }
 0x92e   :  { %v6876_v59 = vadd.f32 %v6875_v45, %v6807_v57  ;;  %v18273_v44 = vpop.f32.mrf.mxu1  ;;  %v6809_v5 = vpop.f32.mrf.mxu0  ;;  %v12561_v45 = vld [vmem:[%s19354_s3 + $0x48] sm:$0xf] }
 0x92f   :  { %8459 = vmatpush.bf16.msra.mxu0 %v14119_v60  ;;  %v6810_v10 = vadd.f32 %v6809_v5, %v19963_v42  ;;  %v14116_v42 = vld [vmem:[#allocation2 + $0x220] sm:$0xff]  ;;  %v13778_v60 = vld [vmem:[%s19354_s3 + $0x54] sm:$0xf0] }
 0x930   :  { %v6922_v53 = vmax.f32 %v6876_v59, 0.0  ;;  %8510 = vmatpush.bf16.msra.mxu2 %v14125_v38  ;;  %v12563_v59 = vld [vmem:[%s19354_s3 + $0x58] sm:$0xf0] }
 0x931   :  { %7525 = vmatmul.bf16.gmra.mxu0 %v18271_v24  ;;  %v18326_v33 = vor.u32 %v13776_v63, %v12563_v59 }
 0x932   :  { %v18279_v36 = vmax.f32 %v6680_v26, %v6922_v53  ;;  %12768 = vmatmul.msk.bf16.gmra.mxu2 %vm7389_vm1, %v18275_v9  ;;  %v14115_v53 = vld [vmem:[#allocation2 + $0x1a8] sm:$0xff] }
 0x933   :  { %8460 = vmatpush.bf16.msra.mxu0 %v14118_v34  ;;  %v18322_v34 = vor.u32 %v13778_v60, %v12561_v45  ;;  %19968 = vst [vmem:[#allocation27_spill] sm:$0xff] %v18326_v33 }
 0x934   :  { %8511 = vmatpush.bf16.msra.mxu2 %v14124_v52 }
 0x935   :  { %v6643_v27 = vpop.f32.mrf.mxu3  ;;  %v6878_v1 = vpop.f32.mrf.mxu2  ;;  %19967 = vst [vmem:[#allocation10_spill] sm:$0xff] %v18322_v34 }
 0x936   :  { %v6879_v50 = vadd.f32 %v6878_v1, %v6810_v10  ;;  %v18298_v16 = vpop.f32.mrf.mxu1  ;;  %v6811_v15 = vpop.f32.mrf.mxu0 }
 0x937   :  { %8461 = vmatpush.bf16.msra.mxu0 %v14117_v47  ;;  %v6812_v38 = vadd.f32 %v6811_v15, %v19966_v17  ;;  %v12585_v17 = vld [vmem:[%s19354_s3 + $0x80] sm:$0xf]  ;;  %v13785_v47 = vld [vmem:[%s19354_s3 + $0x8c] sm:$0xf0] }
 0x938   :  { %v6923_v43 = vmax.f32 %v6879_v50, 0.0  ;;  %8512 = vmatpush.bf16.msra.mxu2 %v14123_v29  ;;  %v12587_v50 = vld [vmem:[%s19354_s3 + $0x90] sm:$0xf0] }
 0x939   :  { %7437 = vmatmul.bf16.gmra.mxu1 %v18296_v48  ;;  %v18351_v63 = vor.u32 %v13783_v56, %v12587_v50 }
 0x93a   :  { %v18304_v57 = vmax.f32 %v6681_v32, %v6923_v43  ;;  %7486 = vmatmul.bf16.gmra.mxu3 %v18300_v20  ;;  %v18346_v32 = vor.u32 %v13785_v47, %v12585_v17  ;;  %v19970_v43 = vld [vmem:[#allocation26_spill] sm:$0xff] }
 0x93b   :  { %8462 = vmatpush.bf16.msra.mxu0 %v14116_v42  ;;  %19971 = vst [vmem:[#allocation18_spill] sm:$0xff] %v18351_v63  ;;  %v6573_v59 = vadd.f32 %v18247_v31, %v19970_v43  ;;  %v13780_v31 = vld [vmem:[%s19354_s3 + $0x6c] sm:$0xf] }
 0x93c   :  { %19969 = vst [vmem:[#allocation28_spill] sm:$0xff] %v18346_v32 }
 0x93d   :  { %v18320_v5 = vpop.f32.mrf.mxu3  ;;  %v6880_v26 = vpop.f32.mrf.mxu2 }
 0x93e   :  { %v6881_v52 = vadd.f32 %v6880_v26, %v6812_v38  ;;  %v18324_v22 = vpop.f32.mrf.mxu1  ;;  %v6814_v62 = vpop.f32.mrf.mxu0  ;;  %v6642_v26 = vadd.f32 %v18269_v3, %v6573_v59  ;;  %v12579_v3 = vld [vmem:[%s19354_s3 + $0x78] sm:$0xf0] }
 0x93f   :  { %8463 = vmatpush.bf16.msra.mxu0 %v14115_v53  ;;  %v6815_v42 = vadd.f32 %v6814_v62, %v19970_v43  ;;  %v6575_v53 = vadd.f32 %v18273_v44, %v15434_v55  ;;  %v13782_v62 = vld [vmem:[%s19354_s3 + $0x74] sm:$0xf0]  ;;  %v18379_v59 = vor.u32 %v13780_v31, %v12579_v3 }
 0x940   :  { %v6924_v10 = vmax.f32 %v6881_v52, 0.0  ;;  %v12577_v52 = vld [vmem:[%s19354_s3 + $0x68] sm:$0xf]  ;;  %v6683_v50 = vmax.f32 %v6642_v26, 0.0  ;;  %v12603_v26 = vld [vmem:[%s19354_s3 + $0xb0] sm:$0xf0] }
 0x941   :  { %7530 = vmatmul.bf16.gmra.mxu0 %v18322_v34  ;;  %v18375_v56 = vor.u32 %v13782_v62, %v12577_v52  ;;  %19973 = vst [vmem:[#allocation17_spill] sm:$0xff] %v18379_v59 }
 0x942   :  { %v18330_v1 = vmax.f32 %v6682_v14, %v6924_v10  ;;  %12769 = vmatmul.msk.bf16.gmra.mxu2 %vm7389_vm1, %v18326_v33  ;;  %v6644_v14 = vadd.f32 %v6643_v27, %v6575_v53 }
 0x943   :  { %19972 = vst [vmem:[#allocation20_spill] sm:$0xff] %v18375_v56 }
 0x945   :  { %v6648_v29 = vpop.f32.mrf.mxu3  ;;  %v6883_v15 = vpop.f32.mrf.mxu2 }
 0x946   :  { %v18349_v45 = vpop.f32.mrf.mxu1  ;;  %v6816_v60 = vpop.f32.mrf.mxu0  ;;  %v6884_v38 = vadd.f32 %v6883_v15, %v6815_v42 }
 0x947   :  { %v6817_v10 = vadd.f32 %v6816_v60, %v15434_v55  ;;  %v12601_v55 = vld [vmem:[%s19354_s3 + $0xa0] sm:$0xf]  ;;  %v13789_v60 = vld [vmem:[%s19354_s3 + $0xac] sm:$0xf0] }
 0x948   :  { %v6925_v44 = vmax.f32 %v6884_v38, 0.0  ;;  %v13787_v38 = vld [vmem:[%s19354_s3 + $0xa4] sm:$0xf]  ;;  %v18400_v62 = vor.u32 %v13789_v60, %v12601_v55 }
 0x949   :  { %7442 = vmatmul.bf16.gmra.mxu1 %v18346_v32 }
 0x94a   :  { %7491 = vmatmul.bf16.gmra.mxu3 %v18351_v63  ;;  %v6684_v63 = vmax.f32 %v6644_v14, 0.0  ;;  %v6949_v32 = vmax.f32 %v6683_v50, %v6925_v44  ;;  %19974 = vst [vmem:[#allocation15_spill] sm:$0xff] %v18400_v62  ;;  %v12593_v50 = vld [vmem:[%s19354_s3 + $0x88] sm:$0xf] }
 0x94d   :  { %v18373_v17 = vpop.f32.mrf.mxu3  ;;  %v6885_v47 = vpop.f32.mrf.mxu2 }
 0x94e   :  { %v6886_v15 = vadd.f32 %v6885_v47, %v6817_v10  ;;  %v18377_v43 = vpop.f32.mrf.mxu1  ;;  %v6819_v42 = vpop.f32.mrf.mxu0  ;;  %v18405_v10 = vor.u32 %v13787_v38, %v12603_v26  ;;  %v6578_v47 = vadd.f32 %v18298_v16, %v15358_v28  ;;  %v12595_v16 = vld [vmem:[%s19354_s3 + $0x98] sm:$0xf0] }
 0x94f   :  { %v6820_v3 = vadd.f32 %v6819_v42, %v15358_v28  ;;  %v13784_v28 = vld [vmem:[%s19354_s3 + $0x8c] sm:$0xf] }
 0x950   :  { %v6926_v33 = vmax.f32 %v6886_v15, 0.0  ;;  %19975 = vst [vmem:[#allocation16_spill] sm:$0xff] %v18405_v10  ;;  %v13786_v15 = vld [vmem:[%s19354_s3 + $0x94] sm:$0xf0] }
 0x951   :  { %7535 = vmatmul.bf16.gmra.mxu0 %v18375_v56  ;;  %v18429_v60 = vor.u32 %v13786_v15, %v12593_v50 }
 0x952   :  { %v6950_v27 = vmax.f32 %v6684_v63, %v6926_v33  ;;  %12770 = vmatmul.msk.bf16.gmra.mxu2 %vm7389_vm1, %v18379_v59  ;;  %v6961_v33 = vmax.f32 %v18115_v37, %v6949_v32  ;;  %v6580_v32 = vadd.f32 %v18324_v22, %v15240_v51 }
 0x953   :  { %19976 = vst [vmem:[#allocation22_spill] sm:$0xff] %v18429_v60 }
 0x954   :  { %v6962_v63 = vmax.f32 %v18122_v11, %v6950_v27  ;;  %v6647_v11 = vadd.f32 %v18320_v5, %v6578_v47  ;;  %v6649_v5 = vadd.f32 %v6648_v29, %v6580_v32  ;;  %v18436_v29 = vpop.permute.xlu0 %276  ;;  %v12619_v32 = vld [vmem:[%s19354_s3 + $0xd0] sm:$0xf0] }
 0x955   :  { %v18398_v53 = vpop.f32.mrf.mxu3  ;;  %v6888_v52 = vpop.f32.mrf.mxu2  ;;  %19978 = vst [vmem:[#allocation13_spill] sm:$0xff] %v18436_v29 }
 0x956   :  { %v14630_v31 = vpack.c.bf16 %v6962_v63, %v6961_v33  ;;  %v18403_v14 = vpop.f32.mrf.mxu1  ;;  %v6821_v44 = vpop.f32.mrf.mxu0  ;;  %v6889_v37 = vadd.f32 %v6888_v52, %v6820_v3  ;;  %v6685_v38 = vmax.f32 %v6647_v11, 0.0  ;;  %v18433_v52 = vor.u32 %v13784_v28, %v12595_v16  ;;  %v13791_v11 = vld [vmem:[%s19354_s3 + $0xc4] sm:$0xf] }
 0x957   :  { %v6822_v42 = vadd.f32 %v6821_v44, %v15240_v51  ;;  %v12617_v44 = vld [vmem:[%s19354_s3 + $0xc0] sm:$0xf] }
 0x958   :  { %14802 = vst [vmem:[#allocation2 + $0x118] sm:$0xff] %v14630_v31   ;;  %v6927_v22 = vmax.f32 %v6889_v37, 0.0  ;;  %v6686_v31 = vmax.f32 %v6649_v5, 0.0  ;;  %v13793_v37 = vld [vmem:[%s19354_s3 + $0xcc] sm:$0xf0] }
 0x959   :  { %7447 = vmatmul.bf16.gmra.mxu1 %v18400_v62  ;;  %19977 = vst [vmem:[#allocation19_spill] sm:$0xff] %v18433_v52  ;;  %v18456_v5 = vor.u32 %v13793_v37, %v12617_v44 }
 0x95a   :  { %7496 = vmatmul.bf16.gmra.mxu3 %v18405_v10  ;;  %v6951_v3 = vmax.f32 %v6685_v38, %v6927_v22 }
 0x95b   :  { %19979 = vst [vmem:[#allocation14_spill] sm:$0xff] %v18456_v5 }
 0x95c   :  { %v6963_v50 = vmax.f32 %v18131_v0, %v6951_v3 }
 0x95d   :  { %v18427_v27 = vpop.f32.mrf.mxu3  ;;  %v6890_v55 = vpop.f32.mrf.mxu2 }
 0x95e   :  { %v6891_v26 = vadd.f32 %v6890_v55, %v6822_v42  ;;  %v18431_v33 = vpop.f32.mrf.mxu1  ;;  %v6824_v63 = vpop.f32.mrf.mxu0 }
 0x95f   :  { %v6825_v42 = vadd.f32 %v6824_v63, %v15264_v61  ;;  %v12609_v63 = vld [vmem:[%s19354_s3 + $0xa8] sm:$0xf] }
 0x960   :  { %v6928_v47 = vmax.f32 %v6891_v26, 0.0  ;;  %v18461_v26 = vor.u32 %v13791_v11, %v12619_v32 }
 0x961   :  { %7540 = vmatmul.bf16.gmra.mxu0 %v18429_v60 }
 0x962   :  { %v6952_v51 = vmax.f32 %v6686_v31, %v6928_v47  ;;  %12771 = vmatmul.msk.bf16.gmra.mxu2 %vm7389_vm1, %v18433_v52  ;;  %19980 = vst [vmem:[#allocation24_spill] sm:$0xff] %v18461_v26  ;;  %v6583_v31 = vadd.f32 %v18349_v45, %v15264_v61  ;;  %v6585_v47 = vadd.f32 %v18377_v43, %v15388_v13  ;;  %v13790_v61 = vld [vmem:[%s19354_s3 + $0xb4] sm:$0xf0]  ;;  %v13788_v45 = vld [vmem:[%s19354_s3 + $0xac] sm:$0xf] }
 0x964   :  { %v6964_v15 = vmax.f32 %v18140_v8, %v6952_v51  ;;  %v18466_v8 = vpop.permute.xlu1 %281  ;;  %v6652_v3 = vadd.f32 %v18373_v17, %v6583_v31  ;;  %v12611_v17 = vld [vmem:[%s19354_s3 + $0xb8] sm:$0xf0]  ;;  %v18484_v51 = vpop.permute.xlu0 %321  ;;  %v6654_v43 = vadd.f32 %v18398_v53, %v6585_v47 }
 0x965   :  { %v18454_v28 = vpop.f32.mrf.mxu3  ;;  %v6893_v16 = vpop.f32.mrf.mxu2  ;;  %19981 = vst [vmem:[#allocation25_spill] sm:$0xff] %v18466_v8  ;;  %v18494_v31 = vor.u32 %v13788_v45, %v12611_v17 }
 0x966   :  { %v14635_v22 = vpack.c.bf16 %v6964_v15, %v6963_v50  ;;  %v18459_v55 = vpop.f32.mrf.mxu1  ;;  %v6826_v38 = vpop.f32.mrf.mxu0  ;;  %v6894_v0 = vadd.f32 %v6893_v16, %v6825_v42  ;;  %19982 = vst [vmem:[#allocation21_spill] sm:$0xff] %v18484_v51  ;;  %v18490_v50 = vor.u32 %v13790_v61, %v12609_v63  ;;  %v6687_v15 = vmax.f32 %v6652_v3, 0.0  ;;  %v12635_v3 = vld [vmem:[%s19354_s3 + $0xf0] sm:$0xf0] }
 0x967   :  { %v6827_v37 = vadd.f32 %v6826_v38, %v15388_v13  ;;  %19984 = vst [vmem:[#allocation26_spill] sm:$0xff] %v18494_v31  ;;  %v12633_v13 = vld [vmem:[%s19354_s3 + $0xe0] sm:$0xf]  ;;  %v13797_v38 = vld [vmem:[%s19354_s3 + $0xec] sm:$0xf0] }
 0x968   :  { %14803 = vst [vmem:[#allocation2 + $0x20] sm:$0xff] %v14635_v22   ;;  %v6929_v44 = vmax.f32 %v6894_v0, 0.0  ;;  %v13795_v0 = vld [vmem:[%s19354_s3 + $0xe4] sm:$0xf]  ;;  %v18517_v17 = vor.u32 %v13797_v38, %v12633_v13 }
 0x969   :  { %7452 = vmatmul.bf16.gmra.mxu1 %v18456_v5  ;;  %19983 = vst [vmem:[#allocation23_spill] sm:$0xff] %v18490_v50 }
 0x96a   :  { %7501 = vmatmul.bf16.gmra.mxu3 %v18461_v26  ;;  %v6688_v26 = vmax.f32 %v6654_v43, 0.0  ;;  %v6953_v5 = vmax.f32 %v6687_v15, %v6929_v44  ;;  %19985 = vst [vmem:[#allocation29_spill] sm:$0xff] %v18517_v17 }
 0x96c   :  { %v6965_v47 = vmax.f32 %v18165_v58, %v6953_v5  ;;  %v18524_v15 = vpop.permute.xlu0 %306  ;;  %v6588_v58 = vadd.f32 %v18403_v14, %v15198_v30  ;;  %v12627_v14 = vld [vmem:[%s19354_s3 + $0xd8] sm:$0xf0] }
 0x96d   :  { %v18488_v11 = vpop.f32.mrf.mxu3  ;;  %v6895_v32 = vpop.f32.mrf.mxu2  ;;  %19987 = vst [vmem:[#allocation31_spill] sm:$0xff] %v18524_v15 }
 0x96e   :  { %v6896_v16 = vadd.f32 %v6895_v32, %v6827_v37  ;;  %v18492_v22 = vpop.f32.mrf.mxu1  ;;  %v6829_v42 = vpop.f32.mrf.mxu0  ;;  %v18522_v32 = vor.u32 %v13795_v0, %v12635_v3  ;;  %v6657_v5 = vadd.f32 %v18427_v27, %v6588_v58 }
 0x96f   :  { %v6830_v43 = vadd.f32 %v6829_v42, %v15198_v30  ;;  %v12625_v42 = vld [vmem:[%s19354_s3 + $0xc8] sm:$0xf]  ;;  %v13792_v30 = vld [vmem:[%s19354_s3 + $0xcc] sm:$0xf] }
 0x970   :  { %v6930_v51 = vmax.f32 %v6896_v16, 0.0  ;;  %19986 = vst [vmem:[#allocation30_spill] sm:$0xff] %v18522_v32  ;;  %v6590_v16 = vadd.f32 %v18431_v33, %v15217_v39 }
 0x971   :  { %7545 = vmatmul.bf16.gmra.mxu0 %v18490_v50 }
 0x972   :  { %v6954_v53 = vmax.f32 %v6688_v26, %v6930_v51  ;;  %12772 = vmatmul.msk.bf16.gmra.mxu2 %vm7389_vm1, %v18494_v31  ;;  %v18511_v26 = vpop.permute.xlu1 %266  ;;  %v6659_v27 = vadd.f32 %v18454_v28, %v6590_v16 }
 0x974   :  { %v6966_v63 = vmax.f32 %v18174_v6, %v6954_v53  ;;  %v13794_v53 = vld [vmem:[%s19354_s3 + $0xd4] sm:$0xf0] }
 0x975   :  { %v18515_v61 = vpop.f32.mrf.mxu3  ;;  %v6898_v45 = vpop.f32.mrf.mxu2  ;;  %v18549_v3 = vor.u32 %v13794_v53, %v12625_v42 }
 0x976   :  { %v14640_v51 = vpack.c.bf16 %v6966_v63, %v6965_v47  ;;  %v18520_v44 = vpop.f32.mrf.mxu1  ;;  %v6831_v37 = vpop.f32.mrf.mxu0  ;;  %v6899_v6 = vadd.f32 %v6898_v45, %v6830_v43  ;;  %v6689_v47 = vmax.f32 %v6657_v5, 0.0  ;;  %v18553_v43 = vor.u32 %v13792_v30, %v12627_v14 }
 0x977   :  { %v6832_v13 = vadd.f32 %v6831_v37, %v15217_v39  ;;  %19988 = vst [vmem:[#allocation32_spill] sm:$0xff] %v18549_v3 }
 0x978   :  { %14804 = vst [vmem:[#allocation2 + $0x148] sm:$0xff] %v14640_v51   ;;  %v6931_v33 = vmax.f32 %v6899_v6, 0.0  ;;  %v18557_v6 = vpop.permute.xlu0 %261 }
 0x979   :  { %7457 = vmatmul.bf16.gmra.mxu1 %v18517_v17  ;;  %19989 = vst [vmem:[#allocation33_spill] sm:$0xff] %v18553_v43 }
 0x97a   :  { %7506 = vmatmul.bf16.gmra.mxu3 %v18522_v32  ;;  %v18555_v58 = vpop.permute.xlu1 %311  ;;  %v6690_v32 = vmax.f32 %v6659_v27, 0.0  ;;  %v6955_v17 = vmax.f32 %v6689_v47, %v6931_v33  ;;  %19991 = vst [vmem:[#allocation35_spill] sm:$0xff] %v18557_v6  ;;  %v18567_v33 = vpop.permute.xlu2 %316 }
 0x97b   :  { %19990 = vst [vmem:[#allocation34_spill] sm:$0xff] %v18555_v58 }
 0x97c   :  { %v6967_v37 = vmax.f32 %v18200_v49, %v6955_v17  ;;  %19992 = vst [vmem:[#allocation36_spill] sm:$0xff] %v18567_v33  ;;  %v14144_v49 = vld [vmem:[#allocation2 + $0xf8] sm:$0xff]  ;;  %v6595_v17 = vadd.f32 %v18492_v22, %v15584_v40 }
 0x97d   :  { %v18547_v38 = vpop.f32.mrf.mxu3  ;;  %v6900_v0 = vpop.f32.mrf.mxu2  ;;  %v12643_v22 = vld [vmem:[%s19354_s3 + $0xf8] sm:$0xf0] }
 0x97e   :  { %v6901_v63 = vadd.f32 %v6900_v0, %v6832_v13  ;;  %v18551_v45 = vpop.f32.mrf.mxu1  ;;  %v6834_v51 = vpop.f32.mrf.mxu0  ;;  %v14136_v0 = vld [vmem:[#allocation2] sm:$0xff] }
 0x97f   :  { %v6835_v30 = vadd.f32 %v6834_v51, %v15577_v41  ;;  %v6664_v51 = vadd.f32 %v18515_v61, %v6595_v17  ;;  %v14142_v17 = vld [vmem:[#allocation2 + $0x1c8] sm:$0xff] }
 0x980   :  { %v6932_v28 = vmax.f32 %v6901_v63, 0.0  ;;  %v18584_v63 = vpop.permute.xlu0 %246 }
 0x981   :  { %7550 = vmatmul.bf16.gmra.mxu0 %v18549_v3  ;;  %v6692_v61 = vmax.f32 %v6664_v51, 0.0  ;;  %v14133_v51 = vld [vmem:[#allocation2 + $0x60] sm:$0xff] }
 0x982   :  { %v6956_v39 = vmax.f32 %v6690_v32, %v6932_v28  ;;  %12773 = vmatmul.msk.bf16.gmra.mxu2 %vm7389_vm1, %v18553_v43  ;;  %v6593_v32 = vadd.f32 %v18459_v55, %v15577_v41  ;;  %v18571_v47 = vpop.permute.xlu1 %296  ;;  %v12641_v41 = vld [vmem:[%s19354_s3 + $0xe8] sm:$0xf]  ;;  %v13798_v55 = vld [vmem:[%s19354_s3 + $0xf4] sm:$0xf0] }
 0x983   :  { %19993 = vst [vmem:[#allocation37_spill] sm:$0xff] %v18571_v47 }
 0x984   :  { %v6968_v5 = vmax.f32 %v18225_v23, %v6956_v39  ;;  %v6662_v23 = vadd.f32 %v18488_v11, %v6593_v32  ;;  %v13796_v11 = vld [vmem:[%s19354_s3 + $0xec] sm:$0xf]  ;;  %v18595_v32 = vor.u32 %v13798_v55, %v12641_v41 }
 0x985   :  { %v18564_v16 = vpop.f32.mrf.mxu3  ;;  %v6903_v42 = vpop.f32.mrf.mxu2  ;;  %v18597_v3 = vor.u32 %v13796_v11, %v12643_v22 }
 0x986   :  { %v14645_v53 = vpack.c.bf16 %v6968_v5, %v6967_v37  ;;  %v6836_v14 = vpop.f32.mrf.mxu0  ;;  %v7423_v27 = vpop.f32.mrf.mxu1  ;;  %v6904_v13 = vadd.f32 %v6903_v42, %v6835_v30  ;;  %v14135_v5 = vld [vmem:[#allocation2 + $0x88] sm:$0xff]  ;;  %v14143_v30 = vld [vmem:[#allocation2 + $0x80] sm:$0xff] }
 0x987   :  { %v6837_v39 = vadd.f32 %v6836_v14, %v15584_v40  ;;  %v7424_v37 = vadd.f32 %v7423_v27, %v18584_v63  ;;  %19994 = vst [vmem:[#allocation38_spill] sm:$0xff] %v18597_v3  ;;  %v14134_v14 = vld [vmem:[#allocation2 + $0x1b8] sm:$0xff]  ;;  %v18599_v27 = vpop.permute.xlu2 %271 }
 0x988   :  { %14805 = vst [vmem:[#allocation2 + $0xa8] sm:$0xff] %v14645_v53   ;;  %v6933_v28 = vmax.f32 %v6904_v13, 0.0 }
 0x989   :  { %7874 = vmatmul.bf16.vlgmr.msrb.gmra.mxu1 %v18158_v21 }
 0x98a   :  { %7923 = vmatmul.bf16.vlgmr.msrb.gmra.mxu3 %v18162_v2  ;;  %8810 = vmatpush.bf16.msrb.mxu1 %v14136_v0  ;;  %v6691_v0 = vmax.f32 %v6662_v23, 0.0  ;;  %v18604_v23 = vpop.permute.xlu1 %251 }
 0x98b   :  { %8859 = vmatpush.bf16.msrb.mxu3 %v14144_v49  ;;  %19995 = vst [vmem:[#allocation39_spill] sm:$0xff] %v18604_v23 }
 0x98c   :  { %v6957_v13 = vmax.f32 %v6691_v0, %v6933_v28 }
 0x98d   :  { %v6905_v42 = vpop.f32.mrf.mxu2  ;;  %v7472_v53 = vpop.f32.mrf.mxu3 }
 0x98e   :  { %v6906_v49 = vadd.f32 %v6905_v42, %v6837_v39  ;;  %v7473_v2 = vadd.f32 %v7472_v53, %v7424_v37  ;;  %8811 = vmatpush.bf16.msrb.mxu1 %v14135_v5  ;;  %v6839_v21 = vpop.f32.mrf.mxu0  ;;  %v7425_v43 = vpop.f32.mrf.mxu1  ;;  %v6969_v55 = vmax.f32 %v18253_v46, %v6957_v13  ;;  %v14141_v37 = vld [vmem:[#allocation2 + $0x1e8] sm:$0xff]  ;;  %v6598_v46 = vadd.f32 %v18520_v44, %v15443_v19 }
 0x98f   :  { %8860 = vmatpush.bf16.msrb.mxu3 %v14143_v30  ;;  %v7426_v22 = vadd.f32 %v7425_v43, %v18604_v23  ;;  %v6840_v42 = vadd.f32 %v6839_v21, %v15443_v19  ;;  %v14140_v43 = vld [vmem:[#allocation2 + $0x220] sm:$0xff]  ;;  %v6600_v21 = vadd.f32 %v18551_v45, %v15559_v25  ;;  %v18619_v13 = vpop.permute.xlu2 %256 }
 0x990   :  { %v6934_v40 = vmax.f32 %v6906_v49, 0.0  ;;  %v14132_v49 = vld [vmem:[#allocation2 + $0x138] sm:$0xff]  ;;  %19996 = vst [vmem:[#allocation40_spill] sm:$0xff] %v18619_v13 }
 0x991   :  { %7555 = vmatmul.bf16.gmra.mxu0 %v18595_v32 }
 0x992   :  { %v6958_v41 = vmax.f32 %v6692_v61, %v6934_v40  ;;  %12774 = vmatmul.msk.bf16.gmra.mxu2 %vm7389_vm1, %v18597_v3  ;;  %8812 = vmatpush.bf16.msrb.mxu1 %v14134_v14  ;;  %v6667_v61 = vadd.f32 %v18547_v38, %v6598_v46  ;;  %v6669_v40 = vadd.f32 %v18564_v16, %v6600_v21  ;;  %v14139_v38 = vld [vmem:[#allocation2 + $0x1a8] sm:$0xff]  ;;  %v14158_v46 = vld [vmem:[#allocation2 + $0x1b0] sm:$0xff] }
 0x993   :  { %8861 = vmatpush.bf16.msrb.mxu3 %v14142_v17  ;;  %v14131_v17 = vld [vmem:[#allocation2 + $0xd0] sm:$0xff] }
 0x994   :  { %v6970_v11 = vmax.f32 %v18279_v36, %v6958_v41 }
 0x995   :  { %v6908_v28 = vpop.f32.mrf.mxu2  ;;  %v7474_v39 = vpop.f32.mrf.mxu3 }
 0x996   :  { %v14650_v5 = vpack.c.bf16 %v6970_v11, %v6969_v55  ;;  %v18610_v53 = vadd.f32 %v7474_v39, %v7426_v22  ;;  %8813 = vmatpush.bf16.msrb.mxu1 %v14133_v51  ;;  %v6841_v30 = vpop.f32.mrf.mxu0  ;;  %v7428_v0 = vpop.f32.mrf.mxu1  ;;  %v6909_v36 = vadd.f32 %v6908_v28, %v6840_v42  ;;  %v6693_v11 = vmax.f32 %v6667_v61, 0.0  ;;  %v14130_v42 = vld [vmem:[#allocation2 + $0x1c0] sm:$0xff] }
 0x997   :  { %8862 = vmatpush.bf16.msrb.mxu3 %v14141_v37  ;;  %v6842_v44 = vadd.f32 %v6841_v30, %v15559_v25  ;;  %v7429_v14 = vadd.f32 %v7428_v0, %v18619_v13  ;;  %v6694_v37 = vmax.f32 %v6669_v40, 0.0  ;;  %v14138_v25 = vld [vmem:[#allocation2 + $0x38] sm:$0xff]  ;;  %v14137_v40 = vld [vmem:[#allocation2 + $0x188] sm:$0xff] }
 0x998   :  { %14806 = vst [vmem:[#allocation2 + $0x150] sm:$0xff] %v14650_v5   ;;  %v6935_v19 = vmax.f32 %v6909_v36, 0.0  ;;  %v14152_v30 = vld [vmem:[#allocation2 + $0x98] sm:$0xff] }
 0x999   :  { %7879 = vmatmul.bf16.gmra.mxu1 %v18192_v7 }
 0x99a   :  { %7928 = vmatmul.bf16.gmra.mxu3 %v18196_v12  ;;  %8814 = vmatpush.bf16.msrb.mxu1 %v14132_v49  ;;  %v6959_v5 = vmax.f32 %v6693_v11, %v6935_v19  ;;  %v14151_v19 = vld [vmem:[#allocation2 + $0x48] sm:$0xff]  ;;  %v14156_v11 = vld [vmem:[#allocation2 + $0x100] sm:$0xff] }
 0x99b   :  { %8863 = vmatpush.bf16.msrb.mxu3 %v14140_v43  ;;  %v14129_v43 = vld [vmem:[#allocation2 + $0x140] sm:$0xff] }
 0x99c   :  { %v6971_v36 = vmax.f32 %v18304_v57, %v6959_v5 }
 0x99d   :  { %v6910_v41 = vpop.f32.mrf.mxu2  ;;  %v7477_v55 = vpop.f32.mrf.mxu3 }
 0x99e   :  { %v6911_v22 = vadd.f32 %v6910_v41, %v6842_v44  ;;  %v7478_v45 = vadd.f32 %v7477_v55, %v7429_v14  ;;  %8815 = vmatpush.bf16.msrb.mxu1 %v14131_v17  ;;  %v7430_v51 = vpop.f32.mrf.mxu1  ;;  %v7521_v28 = vpop.f32.mrf.mxu0  ;;  %v14157_v41 = vld [vmem:[#allocation2 + $0x30] sm:$0xff] }
 0x99f   :  { %8864 = vmatpush.bf16.msrb.mxu3 %v14139_v38  ;;  %v7522_v39 = vadd.f32 %v7521_v28, %v7473_v2  ;;  %v7431_v49 = vadd.f32 %v7430_v51, %v18557_v6 }
 0x9a0   :  { %v6936_v16 = vmax.f32 %v6911_v22, 0.0 }
 0x9a1   :  { %7972 = vmatmul.bf16.vlgmr.msrb.gmra.mxu0 %v18217_v18 }
 0x9a2   :  { %v6960_v0 = vmax.f32 %v6694_v37, %v6936_v16  ;;  %12895 = vmatmul.msk.bf16.vlgmr.msrb.gmra.mxu2 %vm7389_vm1, %v18221_v35  ;;  %8816 = vmatpush.bf16.msrb.mxu1 %v14130_v42  ;;  %v14155_v16 = vld [vmem:[#allocation2 + $0x50] sm:$0xff] }
 0x9a3   :  { %8865 = vmatpush.bf16.msrb.mxu3 %v14138_v25  ;;  %8908 = vmatpush.bf16.msrb.mxu0 %v14152_v30  ;;  %v14148_v30 = vld [vmem:[#allocation2 + $0xe0] sm:$0xff] }
 0x9a4   :  { %v6972_v2 = vmax.f32 %v18330_v1, %v6960_v0  ;;  %8959 = vmatpush.bf16.msrb.mxu2 %v14158_v46  ;;  %v14150_v1 = vld [vmem:[#allocation2 + $0x1f0] sm:$0xff]  ;;  %v14154_v0 = vld [vmem:[#allocation2 + $0x160] sm:$0xff] }
 0x9a5   :  { %v7479_v61 = vpop.f32.mrf.mxu3  ;;  %v7570_v21 = vpop.f32.mrf.mxu2 }
 0x9a6   :  { %v14655_v44 = vpack.c.bf16 %v6972_v2, %v6971_v36  ;;  %v7480_v14 = vadd.f32 %v7479_v61, %v7431_v49  ;;  %v18630_v17 = vadd.f32 %v7570_v21, %v7522_v39  ;;  %8817 = vmatpush.bf16.msrb.mxu1 %v14129_v43  ;;  %v7433_v55 = vpop.f32.mrf.mxu1  ;;  %v7523_v38 = vpop.f32.mrf.mxu0  ;;  %v14149_v39 = vld [vmem:[#allocation2 + $0x1e0] sm:$0xff]  ;;  %v14147_v49 = vld [vmem:[#allocation2 + $0x198] sm:$0xff] }
 0x9a7   :  { %8866 = vmatpush.bf16.msrb.mxu3 %v14137_v40  ;;  %8909 = vmatpush.bf16.msrb.mxu0 %v14151_v19  ;;  %v7524_v57 = vadd.f32 %v7523_v38, %v18610_v53  ;;  %v7434_v22 = vadd.f32 %v7433_v55, %v18511_v26  ;;  %v14153_v21 = vld [vmem:[#allocation2 + $0x238] sm:$0xff] }
 0x9a8   :  { %14807 = vst [vmem:[#allocation2 + $0xa0] sm:$0xff] %v14655_v44   ;;  %8960 = vmatpush.bf16.msrb.mxu2 %v14157_v41  ;;  %v14146_v44 = vld [vmem:[#allocation2 + $0x170] sm:$0xff] }
 0x9a9   :  { %7884 = vmatmul.bf16.gmra.mxu1 %v18243_v4 }
 0x9aa   :  { %7933 = vmatmul.bf16.gmra.mxu3 %v18249_v54 }
 0x9ab   :  { %8910 = vmatpush.bf16.msrb.mxu0 %v14150_v1 }
 0x9ac   :  { %8961 = vmatpush.bf16.msrb.mxu2 %v14156_v11 }
 0x9ad   :  { %v7482_v51 = vpop.f32.mrf.mxu3  ;;  %v7572_v28 = vpop.f32.mrf.mxu2 }
 0x9ae   :  { %v7483_v37 = vadd.f32 %v7482_v51, %v7434_v22  ;;  %v18636_v5 = vadd.f32 %v7572_v28, %v7524_v57  ;;  %v7435_v53 = vpop.f32.mrf.mxu1  ;;  %v7526_v42 = vpop.f32.mrf.mxu0  ;;  %v14145_v57 = vld [vmem:[#allocation2 + $0x78] sm:$0xff] }
 0x9af   :  { %8911 = vmatpush.bf16.msrb.mxu0 %v14149_v39  ;;  %v7527_v25 = vadd.f32 %v7526_v42, %v7478_v45  ;;  %v7436_v46 = vadd.f32 %v7435_v53, %v18599_v27  ;;  %v19998_v39 = vld [vmem:[#allocation27_spill] sm:$0xff] }
 0x9b0   :  { %8962 = vmatpush.bf16.msrb.mxu2 %v14155_v16 }
 0x9b1   :  { %7977 = vmatmul.bf16.gmra.mxu0 %v18271_v24 }
 0x9b2   :  { %12896 = vmatmul.msk.bf16.gmra.mxu2 %vm7389_vm1, %v18275_v9 }
 0x9b3   :  { %8912 = vmatpush.bf16.msrb.mxu0 %v14148_v30 }
 0x9b4   :  { %8963 = vmatpush.bf16.msrb.mxu2 %v14154_v0 }
 0x9b5   :  { %v7484_v36 = vpop.f32.mrf.mxu3  ;;  %v7575_v2 = vpop.f32.mrf.mxu2 }
 0x9b6   :  { %v7485_v43 = vadd.f32 %v7484_v36, %v7436_v46  ;;  %v18642_v61 = vadd.f32 %v7575_v2, %v7527_v25  ;;  %v7438_v45 = vpop.f32.mrf.mxu1  ;;  %v7528_v40 = vpop.f32.mrf.mxu0  ;;  %v19999_v2 = vld [vmem:[#allocation28_spill] sm:$0xff] }
 0x9b7   :  { %8913 = vmatpush.bf16.msrb.mxu0 %v14147_v49  ;;  %v7529_v19 = vadd.f32 %v7528_v40, %v7480_v14  ;;  %v7439_v41 = vadd.f32 %v7438_v45, %v18436_v29  ;;  %v18649_v14 = vpop.permute.xlu2 %301 }
 0x9b8   :  { %8964 = vmatpush.bf16.msrb.mxu2 %v14153_v21  ;;  %19997 = vst [vmem:[#allocation41_spill] sm:$0xff] %v18649_v14 }
 0x9b9   :  { %7889 = vmatmul.bf16.gmra.mxu1 %v18296_v48 }
 0x9ba   :  { %7938 = vmatmul.bf16.gmra.mxu3 %v18300_v20 }
 0x9bb   :  { %8914 = vmatpush.bf16.msrb.mxu0 %v14146_v44 }
 0x9bd   :  { %v7487_v55 = vpop.f32.mrf.mxu3  ;;  %v7577_v38 = vpop.f32.mrf.mxu2 }
 0x9be   :  { %v7488_v1 = vadd.f32 %v7487_v55, %v7439_v41  ;;  %v18647_v11 = vadd.f32 %v7577_v38, %v7529_v19  ;;  %v7440_v22 = vpop.f32.mrf.mxu1  ;;  %v7531_v51 = vpop.f32.mrf.mxu0 }
 0x9bf   :  { %8915 = vmatpush.bf16.msrb.mxu0 %v14145_v57  ;;  %v7532_v28 = vadd.f32 %v7531_v51, %v7483_v37  ;;  %v7441_v16 = vadd.f32 %v7440_v22, %v18466_v8  ;;  %v20000_v37 = vld [vmem:[#allocation18_spill] sm:$0xff]  ;;  %v18659_v49 = vpop.permute.xlu2 %286 }
 0x9c0   :  { %20001 = vst [vmem:[#allocation42_spill] sm:$0xff] %v18659_v49 }
 0x9c1   :  { %7982 = vmatmul.bf16.gmra.mxu0 %v18322_v34 }
 0x9c2   :  { %12897 = vmatmul.msk.bf16.gmra.mxu2 %vm7389_vm1, %v19998_v39 }
 0x9c5   :  { %v7489_v53 = vpop.f32.mrf.mxu3  ;;  %v7580_v42 = vpop.f32.mrf.mxu2 }
 0x9c6   :  { %v7490_v25 = vadd.f32 %v7489_v53, %v7441_v16  ;;  %v18655_v30 = vadd.f32 %v7580_v42, %v7532_v28  ;;  %v7443_v0 = vpop.f32.mrf.mxu1  ;;  %v7533_v46 = vpop.f32.mrf.mxu0 }
 0x9c7   :  { %v7534_v36 = vadd.f32 %v7533_v46, %v7485_v43  ;;  %v7444_v21 = vadd.f32 %v7443_v0, %v18659_v49  ;;  %v18667_v43 = vpop.permute.xlu0 %291 }
 0x9c8   :  { %20002 = vst [vmem:[#allocation43_spill] sm:$0xff] %v18667_v43 }
 0x9c9   :  { %7894 = vmatmul.bf16.gmra.mxu1 %v19999_v2 }
 0x9ca   :  { %7943 = vmatmul.bf16.gmra.mxu3 %v20000_v37 }
 0x9cd   :  { %v7492_v45 = vpop.f32.mrf.mxu3  ;;  %v7582_v40 = vpop.f32.mrf.mxu2 }
 0x9ce   :  { %v7493_v19 = vadd.f32 %v7492_v45, %v7444_v21  ;;  %v18662_v44 = vadd.f32 %v7582_v40, %v7534_v36  ;;  %v7445_v41 = vpop.f32.mrf.mxu1  ;;  %v7536_v55 = vpop.f32.mrf.mxu0 }
 0x9cf   :  { %v7537_v38 = vadd.f32 %v7536_v55, %v7488_v1  ;;  %v7446_v57 = vadd.f32 %v7445_v41, %v18667_v43 }
 0x9d1   :  { %7987 = vmatmul.bf16.gmra.mxu0 %v18375_v56 }
 0x9d2   :  { %12898 = vmatmul.msk.bf16.gmra.mxu2 %vm7389_vm1, %v18379_v59 }
 0x9d5   :  { %v7494_v22 = vpop.f32.mrf.mxu3  ;;  %v7585_v51 = vpop.f32.mrf.mxu2 }
 0x9d6   :  { %v7495_v28 = vadd.f32 %v7494_v22, %v7446_v57  ;;  %v18670_v16 = vadd.f32 %v7585_v51, %v7537_v38  ;;  %v7448_v53 = vpop.f32.mrf.mxu1  ;;  %v7538_v42 = vpop.f32.mrf.mxu0 }
 0x9d7   :  { %v7539_v0 = vadd.f32 %v7538_v42, %v7490_v25  ;;  %v7449_v1 = vadd.f32 %v7448_v53, %v18571_v47 }
 0x9d9   :  { %7899 = vmatmul.bf16.gmra.mxu1 %v18400_v62 }
 0x9da   :  { %7948 = vmatmul.bf16.gmra.mxu3 %v18405_v10 }
 0x9dd   :  { %v7497_v46 = vpop.f32.mrf.mxu3  ;;  %v7587_v36 = vpop.f32.mrf.mxu2 }
 0x9de   :  { %v7498_v21 = vadd.f32 %v7497_v46, %v7449_v1  ;;  %v18675_v45 = vadd.f32 %v7587_v36, %v7539_v0  ;;  %v7450_v40 = vpop.f32.mrf.mxu1  ;;  %v7541_v41 = vpop.f32.mrf.mxu0  ;;  %v20003_v0 = vld [vmem:[#allocation14_spill] sm:$0xff]  ;;  %v20004_v46 = vld [vmem:[#allocation24_spill] sm:$0xff] }
 0x9df   :  { %v7542_v55 = vadd.f32 %v7541_v41, %v7493_v19  ;;  %v7451_v25 = vadd.f32 %v7450_v40, %v18649_v14 }
 0x9e1   :  { %7992 = vmatmul.bf16.gmra.mxu0 %v18429_v60 }
 0x9e2   :  { %12899 = vmatmul.msk.bf16.gmra.mxu2 %vm7389_vm1, %v18433_v52 }
 0x9e5   :  { %v7499_v38 = vpop.f32.mrf.mxu3  ;;  %v7590_v57 = vpop.f32.mrf.mxu2 }
 0x9e6   :  { %v7500_v22 = vadd.f32 %v7499_v38, %v7451_v25  ;;  %v18681_v51 = vadd.f32 %v7590_v57, %v7542_v55  ;;  %v7453_v53 = vpop.f32.mrf.mxu1  ;;  %v7543_v42 = vpop.f32.mrf.mxu0 }
 0x9e7   :  { %v7544_v1 = vadd.f32 %v7543_v42, %v7495_v28  ;;  %v7454_v19 = vadd.f32 %v7453_v53, %v18524_v15 }
 0x9e9   :  { %7904 = vmatmul.bf16.gmra.mxu1 %v20003_v0 }
 0x9ea   :  { %7953 = vmatmul.bf16.gmra.mxu3 %v20004_v46 }
 0x9ed   :  { %v7502_v36 = vpop.f32.mrf.mxu3  ;;  %v7592_v41 = vpop.f32.mrf.mxu2 }
 0x9ee   :  { %v7503_v47 = vadd.f32 %v7502_v36, %v7454_v19  ;;  %v18686_v43 = vadd.f32 %v7592_v41, %v7544_v1  ;;  %v7455_v40 = vpop.f32.mrf.mxu1  ;;  %v7546_v14 = vpop.f32.mrf.mxu0  ;;  %v20005_v1 = vld [vmem:[#allocation29_spill] sm:$0xff]  ;;  %v20006_v36 = vld [vmem:[#allocation30_spill] sm:$0xff] }
 0x9ef   :  { %v7547_v52 = vadd.f32 %v7546_v14, %v7498_v21  ;;  %v7456_v28 = vadd.f32 %v7455_v40, %v18555_v58 }
 0x9f1   :  { %7997 = vmatmul.bf16.gmra.mxu0 %v18490_v50 }
 0x9f2   :  { %12900 = vmatmul.msk.bf16.gmra.mxu2 %vm7389_vm1, %v18494_v31 }
 0x9f5   :  { %v7504_v55 = vpop.f32.mrf.mxu3  ;;  %v7595_v25 = vpop.f32.mrf.mxu2 }
 0x9f6   :  { %v7505_v38 = vadd.f32 %v7504_v55, %v7456_v28  ;;  %v18692_v57 = vadd.f32 %v7595_v25, %v7547_v52  ;;  %v7458_v53 = vpop.f32.mrf.mxu1  ;;  %v7548_v42 = vpop.f32.mrf.mxu0  ;;  %v20007_v28 = vld [vmem:[#allocation32_spill] sm:$0xff]  ;;  %v20008_v52 = vld [vmem:[#allocation33_spill] sm:$0xff] }
 0x9f7   :  { %v7549_v19 = vadd.f32 %v7548_v42, %v7500_v22  ;;  %v7459_v14 = vadd.f32 %v7458_v53, %v18567_v33  ;;  %v20009_v22 = vld [vmem:[#allocation21_spill] sm:$0xff] }
 0x9f9   :  { %7909 = vmatmul.bf16.gmra.mxu1 %v20005_v1 }
 0x9fa   :  { %7958 = vmatmul.bf16.gmra.mxu3 %v20006_v36 }
 0x9fd   :  { %v7507_v21 = vpop.f32.mrf.mxu3  ;;  %v7597_v41 = vpop.f32.mrf.mxu2 }
 0x9fe   :  { %v7508_v15 = vadd.f32 %v7507_v21, %v7459_v14  ;;  %v18697_v31 = vadd.f32 %v7597_v41, %v7549_v19  ;;  %v7460_v40 = vpop.f32.mrf.mxu1  ;;  %v7551_v58 = vpop.f32.mrf.mxu0  ;;  %v14166_v19 = vld [vmem:[#allocation2 + $0x1c8] sm:$0xff]  ;;  %v20010_v21 = vld [vmem:[#allocation9_spill] sm:$0xff] }
 0x9ff   :  { %v7552_v50 = vadd.f32 %v7551_v58, %v7503_v47  ;;  %v7461_v55 = vadd.f32 %v7460_v40, %v20009_v22  ;;  %v14174_v41 = vld [vmem:[#allocation2 + $0x1f0] sm:$0xff]  ;;  %v20011_v58 = vld [vmem:[#allocation7_spill] sm:$0xff] }
 0xa01   :  { %8002 = vmatmul.bf16.gmra.mxu0 %v20007_v28  ;;  %v14173_v28 = vld [vmem:[#allocation2 + $0x1e0] sm:$0xff] }
 0xa02   :  { %12901 = vmatmul.msk.bf16.gmra.mxu2 %vm7389_vm1, %v20008_v52  ;;  %v14165_v52 = vld [vmem:[#allocation2 + $0x1e8] sm:$0xff] }
 0xa05   :  { %v7509_v25 = vpop.f32.mrf.mxu3  ;;  %v7600_v42 = vpop.f32.mrf.mxu2 }
 0xa06   :  { %v7510_v36 = vadd.f32 %v7509_v25, %v7461_v55  ;;  %v18703_v1 = vadd.f32 %v7600_v42, %v7552_v50  ;;  %v7553_v53 = vpop.f32.mrf.mxu0  ;;  %v7875_v33 = vpop.f32.mrf.mxu1 }
 0xa07   :  { %v7554_v14 = vadd.f32 %v7553_v53, %v7505_v38  ;;  %v7876_v47 = vadd.f32 %v7875_v33, %v18584_v63  ;;  %v14164_v53 = vld [vmem:[#allocation2 + $0x220] sm:$0xff] }
 0xa09   :  { %8366 = vmatmul.bf16.vlgmr.msra.gmra.mxu1 %v20010_v21 }
 0xa0a   :  { %8415 = vmatmul.bf16.vlgmr.msra.gmra.mxu3 %v20011_v58  ;;  %9302 = vmatpush.bf16.msra.mxu1 %v14166_v19  ;;  %v14172_v58 = vld [vmem:[#allocation2 + $0xe0] sm:$0xff]  ;;  %v14163_v19 = vld [vmem:[#allocation2 + $0x1a8] sm:$0xff] }
 0xa0b   :  { %9351 = vmatpush.bf16.msra.mxu3 %v14174_v41 }
 0xa0d   :  { %v7602_v40 = vpop.f32.mrf.mxu2  ;;  %v7924_v22 = vpop.f32.mrf.mxu3 }
 0xa0e   :  { %v18708_v55 = vadd.f32 %v7602_v40, %v7554_v14  ;;  %v7925_v50 = vadd.f32 %v7924_v22, %v7876_v47  ;;  %9303 = vmatpush.bf16.msra.mxu1 %v14165_v52  ;;  %v7556_v25 = vpop.f32.mrf.mxu0  ;;  %v7877_v38 = vpop.f32.mrf.mxu1  ;;  %v14171_v22 = vld [vmem:[#allocation2 + $0x198] sm:$0xff] }
 0xa0f   :  { %9352 = vmatpush.bf16.msra.mxu3 %v14173_v28  ;;  %v7557_v42 = vadd.f32 %v7556_v25, %v7508_v15  ;;  %v7878_v33 = vadd.f32 %v7877_v38, %v18604_v23  ;;  %v14162_v25 = vld [vmem:[#allocation2 + $0x38] sm:$0xff]  ;;  %v14161_v38 = vld [vmem:[#allocation2 + $0x188] sm:$0xff] }
 0xa11   :  { %8007 = vmatmul.bf16.gmra.mxu0 %v18595_v32 }
 0xa12   :  { %12902 = vmatmul.msk.bf16.gmra.mxu2 %vm7389_vm1, %v18597_v3  ;;  %9304 = vmatpush.bf16.msra.mxu1 %v14164_v53  ;;  %v14170_v3 = vld [vmem:[#allocation2 + $0x170] sm:$0xff] }
 0xa13   :  { %9353 = vmatpush.bf16.msra.mxu3 %v14172_v58 }
 0xa15   :  { %v7605_v14 = vpop.f32.mrf.mxu2  ;;  %v7926_v41 = vpop.f32.mrf.mxu3 }
 0xa16   :  { %v18714_v52 = vadd.f32 %v7605_v14, %v7557_v42  ;;  %v7927_v47 = vadd.f32 %v7926_v41, %v7878_v33  ;;  %9305 = vmatpush.bf16.msra.mxu1 %v14163_v19  ;;  %v7558_v15 = vpop.f32.mrf.mxu0  ;;  %v7880_v28 = vpop.f32.mrf.mxu1  ;;  %v14169_v14 = vld [vmem:[#allocation2 + $0x78] sm:$0xff] }
 0xa17   :  { %9354 = vmatpush.bf16.msra.mxu3 %v14171_v22  ;;  %v7559_v40 = vadd.f32 %v7558_v15, %v7510_v36  ;;  %v7881_v58 = vadd.f32 %v7880_v28, %v18619_v13  ;;  %v14160_v15 = vld [vmem:[#allocation2] sm:$0xff] }
 0xa19   :  { %8371 = vmatmul.bf16.gmra.mxu1 %v18192_v7 }
 0xa1a   :  { %8420 = vmatmul.bf16.gmra.mxu3 %v18196_v12  ;;  %9306 = vmatpush.bf16.msra.mxu1 %v14162_v25  ;;  %v14168_v12 = vld [vmem:[#allocation2 + $0xf8] sm:$0xff]  ;;  %v14182_v25 = vld [vmem:[#allocation2 + $0x1b0] sm:$0xff] }
 0xa1b   :  { %9355 = vmatpush.bf16.msra.mxu3 %v14170_v3  ;;  %v14188_v3 = vld [vmem:[#allocation2 + $0x228] sm:$0xff] }
 0xa1d   :  { %v7607_v53 = vpop.f32.mrf.mxu2  ;;  %v7929_v42 = vpop.f32.mrf.mxu3 }
 0xa1e   :  { %v18719_v33 = vadd.f32 %v7607_v53, %v7559_v40  ;;  %v7930_v19 = vadd.f32 %v7929_v42, %v7881_v58  ;;  %9307 = vmatpush.bf16.msra.mxu1 %v14161_v38  ;;  %v7882_v41 = vpop.f32.mrf.mxu1  ;;  %v7973_v36 = vpop.f32.mrf.mxu0  ;;  %v14159_v40 = vld [vmem:[#allocation2 + $0x88] sm:$0xff]  ;;  %v14167_v53 = vld [vmem:[#allocation2 + $0x80] sm:$0xff] }
 0xa1f   :  { %9356 = vmatpush.bf16.msra.mxu3 %v14169_v14  ;;  %v7974_v22 = vadd.f32 %v7973_v36, %v7925_v50  ;;  %v7883_v28 = vadd.f32 %v7882_v41, %v18557_v6  ;;  %v14181_v50 = vld [vmem:[#allocation2 + $0x30] sm:$0xff]  ;;  %v14187_v36 = vld [vmem:[#allocation2 + $0x1d8] sm:$0xff]  ;;  %v14180_v41 = vld [vmem:[#allocation2 + $0x100] sm:$0xff] }
 0xa20   :  { %20012 = vst [vmem:[#allocation24_spill] sm:$0xff] %v18719_v33 }
 0xa21   :  { %8464 = vmatmul.bf16.vlgmr.msra.gmra.mxu0 %v18217_v18 }
 0xa22   :  { %13023 = vmatmul.msk.bf16.vlgmr.msra.gmra.mxu2 %vm7389_vm1, %v18221_v35  ;;  %9308 = vmatpush.bf16.msra.mxu1 %v14160_v15 }
 0xa23   :  { %9357 = vmatpush.bf16.msra.mxu3 %v14168_v12  ;;  %9400 = vmatpush.bf16.msra.mxu0 %v14182_v25  ;;  %v7610_v12 = vmax.f32 %v18630_v17, 0.0  ;;  %v14185_v17 = vld [vmem:[#allocation2 + $0x68] sm:$0xff] }
 0xa24   :  { %9451 = vmatpush.bf16.msra.mxu2 %v14188_v3 }
 0xa25   :  { %v7931_v58 = vpop.f32.mrf.mxu3  ;;  %v8022_v38 = vpop.f32.mrf.mxu2 }
 0xa26   :  { %v7932_v42 = vadd.f32 %v7931_v58, %v7883_v28  ;;  %v8023_v14 = vadd.f32 %v8022_v38, %v7974_v22  ;;  %9309 = vmatpush.bf16.msra.mxu1 %v14159_v40  ;;  %v7885_v18 = vpop.f32.mrf.mxu1  ;;  %v7975_v33 = vpop.f32.mrf.mxu0  ;;  %v14186_v28 = vld [vmem:[#allocation2 + $0x230] sm:$0xff] }
 0xa27   :  { %9358 = vmatpush.bf16.msra.mxu3 %v14167_v53  ;;  %9401 = vmatpush.bf16.msra.mxu0 %v14181_v50  ;;  %v7976_v15 = vadd.f32 %v7975_v33, %v7927_v47  ;;  %v7886_v22 = vadd.f32 %v7885_v18, %v18511_v26  ;;  %v14179_v38 = vld [vmem:[#allocation2 + $0x50] sm:$0xff] }
 0xa28   :  { %v8062_v25 = vmax.f32 %v8023_v14, 0.0  ;;  %9452 = vmatpush.bf16.msra.mxu2 %v14187_v36  ;;  %v7611_v36 = vmax.f32 %v18636_v5, 0.0  ;;  %v14184_v18 = vld [vmem:[#allocation2 + $0x130] sm:$0xff] }
 0xa29   :  { %8376 = vmatmul.bf16.gmra.mxu1 %v18243_v4 }
 0xa2a   :  { %v18727_v3 = vmax.f32 %v7610_v12, %v8062_v25  ;;  %8425 = vmatmul.bf16.gmra.mxu3 %v18249_v54  ;;  %v14178_v25 = vld [vmem:[#allocation2 + $0x160] sm:$0xff] }
 0xa2b   :  { %9402 = vmatpush.bf16.msra.mxu0 %v14180_v41 }
 0xa2c   :  { %9453 = vmatpush.bf16.msra.mxu2 %v14186_v28 }
 0xa2d   :  { %v7934_v40 = vpop.f32.mrf.mxu3  ;;  %v8024_v58 = vpop.f32.mrf.mxu2 }
 0xa2e   :  { %v7935_v47 = vadd.f32 %v7934_v40, %v7886_v22  ;;  %v8025_v33 = vadd.f32 %v8024_v58, %v7976_v15  ;;  %v7887_v53 = vpop.f32.mrf.mxu1  ;;  %v7978_v50 = vpop.f32.mrf.mxu0  ;;  %v14183_v58 = vld [vmem:[#allocation2 + $0x90] sm:$0xff] }
 0xa2f   :  { %9403 = vmatpush.bf16.msra.mxu0 %v14179_v38  ;;  %v7979_v14 = vadd.f32 %v7978_v50, %v7930_v19  ;;  %v7888_v15 = vadd.f32 %v7887_v53, %v18599_v27  ;;  %v14177_v19 = vld [vmem:[#allocation2 + $0x238] sm:$0xff]  ;;  %v7612_v50 = vmax.f32 %v18642_v61, 0.0 }
 0xa30   :  { %v8063_v12 = vmax.f32 %v8025_v33, 0.0  ;;  %9454 = vmatpush.bf16.msra.mxu2 %v14185_v17 }
 0xa31   :  { %8469 = vmatmul.bf16.gmra.mxu0 %v18271_v24 }
 0xa32   :  { %v18733_v41 = vmax.f32 %v7611_v36, %v8063_v12  ;;  %13024 = vmatmul.msk.bf16.gmra.mxu2 %vm7389_vm1, %v18275_v9  ;;  %v14176_v12 = vld [vmem:[#allocation2 + $0x98] sm:$0xff] }
 0xa33   :  { %9404 = vmatpush.bf16.msra.mxu0 %v14178_v25 }
 0xa34   :  { %9455 = vmatpush.bf16.msra.mxu2 %v14184_v18 }
 0xa35   :  { %v7936_v28 = vpop.f32.mrf.mxu3  ;;  %v8027_v22 = vpop.f32.mrf.mxu2 }
 0xa36   :  { %v7937_v40 = vadd.f32 %v7936_v28, %v7888_v15  ;;  %v8028_v5 = vadd.f32 %v8027_v22, %v7979_v14  ;;  %v7890_v38 = vpop.f32.mrf.mxu1  ;;  %v7980_v33 = vpop.f32.mrf.mxu0  ;;  %v14175_v15 = vld [vmem:[#allocation2 + $0x48] sm:$0xff] }
 0xa37   :  { %9405 = vmatpush.bf16.msra.mxu0 %v14177_v19  ;;  %v7981_v17 = vadd.f32 %v7980_v33, %v7932_v42  ;;  %v7891_v53 = vadd.f32 %v7890_v38, %v18436_v29 }
 0xa38   :  { %v8064_v36 = vmax.f32 %v8028_v5, 0.0  ;;  %9456 = vmatpush.bf16.msra.mxu2 %v14183_v58  ;;  %v7613_v5 = vmax.f32 %v18647_v11, 0.0 }
 0xa39   :  { %8381 = vmatmul.bf16.gmra.mxu1 %v18296_v48 }
 0xa3a   :  { %v18740_v25 = vmax.f32 %v7612_v50, %v8064_v36  ;;  %8430 = vmatmul.bf16.gmra.mxu3 %v18300_v20 }
 0xa3b   :  { %9406 = vmatpush.bf16.msra.mxu0 %v14176_v12 }
 0xa3d   :  { %v7939_v14 = vpop.f32.mrf.mxu3  ;;  %v8029_v18 = vpop.f32.mrf.mxu2 }
 0xa3e   :  { %v7940_v28 = vadd.f32 %v7939_v14, %v7891_v53  ;;  %v8030_v22 = vadd.f32 %v8029_v18, %v7981_v17  ;;  %v7892_v42 = vpop.f32.mrf.mxu1  ;;  %v7983_v19 = vpop.f32.mrf.mxu0 }
 0xa3f   :  { %9407 = vmatpush.bf16.msra.mxu0 %v14175_v15  ;;  %v7984_v61 = vadd.f32 %v7983_v19, %v7935_v47  ;;  %v7893_v38 = vadd.f32 %v7892_v42, %v18466_v8  ;;  %v7614_v47 = vmax.f32 %v18655_v30, 0.0 }
 0xa40   :  { %v8065_v58 = vmax.f32 %v8030_v22, 0.0 }
 0xa41   :  { %8474 = vmatmul.bf16.gmra.mxu0 %v18322_v34 }
 0xa42   :  { %v18746_v33 = vmax.f32 %v7613_v5, %v8065_v58  ;;  %13025 = vmatmul.msk.bf16.gmra.mxu2 %vm7389_vm1, %v19998_v39 }
 0xa45   :  { %v7941_v50 = vpop.f32.mrf.mxu3  ;;  %v8032_v36 = vpop.f32.mrf.mxu2 }
 0xa46   :  { %v7942_v12 = vadd.f32 %v7941_v50, %v7893_v38  ;;  %v8033_v17 = vadd.f32 %v8032_v36, %v7984_v61  ;;  %v7895_v53 = vpop.f32.mrf.mxu1  ;;  %v7985_v14 = vpop.f32.mrf.mxu0  ;;  %v7615_v61 = vmax.f32 %v18662_v44, 0.0 }
 0xa47   :  { %v7986_v18 = vadd.f32 %v7985_v14, %v7937_v40 }
 0xa48   :  { %v8066_v11 = vmax.f32 %v8033_v17, 0.0 }
 0xa49   :  { %8386 = vmatmul.bf16.gmra.mxu1 %v19999_v2 }
 0xa4a   :  { %v18753_v15 = vmax.f32 %v7614_v47, %v8066_v11  ;;  %8435 = vmatmul.bf16.gmra.mxu3 %v20000_v37 }
 0xa4d   :  { %v7944_v22 = vpop.f32.mrf.mxu3  ;;  %v8034_v19 = vpop.f32.mrf.mxu2 }
 0xa4e   :  { %v8035_v5 = vadd.f32 %v8034_v19, %v7986_v18  ;;  %v7897_v42 = vpop.f32.mrf.mxu1  ;;  %v7988_v58 = vpop.f32.mrf.mxu0  ;;  %v7616_v18 = vmax.f32 %v18670_v16, 0.0 }
 0xa4f   :  { %v7989_v8 = vadd.f32 %v7988_v58, %v7940_v28 }
 0xa50   :  { %v8067_v38 = vmax.f32 %v8035_v5, 0.0 }
 0xa51   :  { %8479 = vmatmul.bf16.gmra.mxu0 %v18375_v56 }
 0xa52   :  { %v18758_v40 = vmax.f32 %v7615_v61, %v8067_v38  ;;  %13026 = vmatmul.msk.bf16.gmra.mxu2 %vm7389_vm1, %v18379_v59  ;;  %v7617_v38 = vmax.f32 %v18675_v45, 0.0  ;;  %v20014_v45 = vld [vmem:[#allocation43_spill] sm:$0xff] }
 0xa53   :  { %v7898_v59 = vadd.f32 %v7897_v42, %v20014_v45 }
 0xa55   :  { %v7946_v30 = vpop.f32.mrf.mxu3  ;;  %v8037_v50 = vpop.f32.mrf.mxu2 }
 0xa56   :  { %v8038_v36 = vadd.f32 %v8037_v50, %v7989_v8  ;;  %v7900_v17 = vpop.f32.mrf.mxu1  ;;  %v7990_v14 = vpop.f32.mrf.mxu0  ;;  %v7896_v8 = vadd.f32 %v7895_v53, %v18659_v49 }
 0xa57   :  { %v7991_v47 = vadd.f32 %v7990_v14, %v7942_v12 }
 0xa58   :  { %v8068_v11 = vmax.f32 %v8038_v36, 0.0  ;;  %v7945_v16 = vadd.f32 %v7944_v22, %v7896_v8  ;;  %v20013_v36 = vld [vmem:[#allocation19_spill] sm:$0xff] }
 0xa59   :  { %8391 = vmatmul.bf16.gmra.mxu1 %v18400_v62  ;;  %v7618_v62 = vmax.f32 %v18681_v51, 0.0  ;;  %v20015_v51 = vld [vmem:[#allocation37_spill] sm:$0xff] }
 0xa5a   :  { %v18764_v44 = vmax.f32 %v7616_v18, %v8068_v11  ;;  %8440 = vmatmul.bf16.gmra.mxu3 %v18405_v10 }
 0xa5d   :  { %v7949_v28 = vpop.f32.mrf.mxu3  ;;  %v8039_v19 = vpop.f32.mrf.mxu2 }
 0xa5e   :  { %v8040_v5 = vadd.f32 %v8039_v19, %v7991_v47  ;;  %v7902_v58 = vpop.f32.mrf.mxu1  ;;  %v7993_v61 = vpop.f32.mrf.mxu0 }
 0xa5f   :  { %v7994_v14 = vadd.f32 %v7993_v61, %v7945_v16 }
 0xa60   :  { %v8069_v50 = vmax.f32 %v8040_v5, 0.0  ;;  %v7947_v5 = vadd.f32 %v7946_v30, %v7898_v59 }
 0xa61   :  { %8484 = vmatmul.bf16.gmra.mxu0 %v18429_v60  ;;  %v7901_v60 = vadd.f32 %v7900_v17, %v20015_v51  ;;  %v20018_v17 = vld [vmem:[#allocation41_spill] sm:$0xff] }
 0xa62   :  { %v18770_v12 = vmax.f32 %v7617_v38, %v8069_v50  ;;  %13027 = vmatmul.msk.bf16.gmra.mxu2 %vm7389_vm1, %v20013_v36  ;;  %v7619_v36 = vmax.f32 %v18686_v43, 0.0  ;;  %v7620_v43 = vmax.f32 %v18692_v57, 0.0  ;;  %v7621_v57 = vmax.f32 %v18697_v31, 0.0 }
 0xa65   :  { %v7951_v18 = vpop.f32.mrf.mxu3  ;;  %v8042_v11 = vpop.f32.mrf.mxu2 }
 0xa66   :  { %v8043_v10 = vadd.f32 %v8042_v11, %v7994_v14  ;;  %v7905_v47 = vpop.f32.mrf.mxu1  ;;  %v7995_v19 = vpop.f32.mrf.mxu0 }
 0xa67   :  { %v7996_v8 = vadd.f32 %v7995_v19, %v7947_v5 }
 0xa68   :  { %v8070_v53 = vmax.f32 %v8043_v10, 0.0  ;;  %v20016_v10 = vld [vmem:[#allocation23_spill] sm:$0xff] }
 0xa69   :  { %8396 = vmatmul.bf16.gmra.mxu1 %v20003_v0  ;;  %v7950_v0 = vadd.f32 %v7949_v28, %v7901_v60  ;;  %v20019_v60 = vld [vmem:[#allocation29_spill] sm:$0xff] }
 0xa6a   :  { %v8086_v22 = vmax.f32 %v7618_v62, %v8070_v53  ;;  %8445 = vmatmul.bf16.gmra.mxu3 %v20004_v46  ;;  %v20017_v62 = vld [vmem:[#allocation26_spill] sm:$0xff] }
 0xa6c   :  { %v8094_v38 = vmax.f32 %v18727_v3, %v8086_v22 }
 0xa6d   :  { %v7954_v61 = vpop.f32.mrf.mxu3  ;;  %v8044_v50 = vpop.f32.mrf.mxu2 }
 0xa6e   :  { %v8045_v16 = vadd.f32 %v8044_v50, %v7996_v8  ;;  %v7907_v14 = vpop.f32.mrf.mxu1  ;;  %v7998_v11 = vpop.f32.mrf.mxu0 }
 0xa6f   :  { %v7999_v30 = vadd.f32 %v7998_v11, %v7950_v0 }
 0xa70   :  { %v8071_v42 = vmax.f32 %v8045_v16, 0.0  ;;  %v7903_v16 = vadd.f32 %v7902_v58, %v20018_v17  ;;  %v20021_v58 = vld [vmem:[#allocation31_spill] sm:$0xff] }
 0xa71   :  { %8489 = vmatmul.bf16.gmra.mxu0 %v20016_v10 }
 0xa72   :  { %v8087_v59 = vmax.f32 %v7619_v36, %v8071_v42  ;;  %13028 = vmatmul.msk.bf16.gmra.mxu2 %vm7389_vm1, %v20017_v62  ;;  %v7952_v28 = vadd.f32 %v7951_v18, %v7903_v16  ;;  %v20020_v42 = vld [vmem:[#allocation30_spill] sm:$0xff] }
 0xa74   :  { %v8095_v3 = vmax.f32 %v18733_v41, %v8087_v59 }
 0xa75   :  { %v7956_v19 = vpop.f32.mrf.mxu3  ;;  %v8047_v53 = vpop.f32.mrf.mxu2 }
 0xa76   :  { %v14660_v5 = vpack.c.bf16 %v8095_v3, %v8094_v38  ;;  %v8048_v22 = vadd.f32 %v8047_v53, %v7999_v30  ;;  %v7910_v8 = vpop.f32.mrf.mxu1  ;;  %v8000_v50 = vpop.f32.mrf.mxu0  ;;  %v7906_v53 = vadd.f32 %v7905_v47, %v20021_v58  ;;  %v7622_v47 = vmax.f32 %v18703_v1, 0.0  ;;  %v14195_v1 = vld [vmem:[#allocation2 + $0x198] sm:$0xff] }
 0xa77   :  { %v8001_v41 = vadd.f32 %v8000_v50, %v7952_v28 }
 0xa78   :  { %14661 = vst [vmem:[#allocation3 + $0x68] sm:$0xff] %v14660_v5   ;;  %v8072_v10 = vmax.f32 %v8048_v22, 0.0  ;;  %v20022_v22 = vld [vmem:[#allocation32_spill] sm:$0xff]  ;;  %v7955_v18 = vadd.f32 %v7954_v61, %v7906_v53  ;;  %v14204_v53 = vld [vmem:[#allocation2 + $0x100] sm:$0xff] }
 0xa79   :  { %8401 = vmatmul.bf16.gmra.mxu1 %v20019_v60 }
 0xa7a   :  { %v8088_v36 = vmax.f32 %v7620_v43, %v8072_v10  ;;  %8450 = vmatmul.bf16.gmra.mxu3 %v20020_v42  ;;  %v20023_v43 = vld [vmem:[#allocation33_spill] sm:$0xff] }
 0xa7c   :  { %v8096_v0 = vmax.f32 %v18740_v25, %v8088_v36 }
 0xa7d   :  { %v7959_v11 = vpop.f32.mrf.mxu3  ;;  %v8049_v38 = vpop.f32.mrf.mxu2 }
 0xa7e   :  { %v8050_v59 = vadd.f32 %v8049_v38, %v8001_v41  ;;  %v18790_v3 = vpop.f32.mrf.mxu1  ;;  %v8003_v30 = vpop.f32.mrf.mxu0 }
 0xa7f   :  { %v8004_v50 = vadd.f32 %v8003_v30, %v7955_v18  ;;  %v20025_v30 = vld [vmem:[#allocation7_spill] sm:$0xff] }
 0xa80   :  { %v8073_v5 = vmax.f32 %v8050_v59, 0.0  ;;  %v20024_v59 = vld [vmem:[#allocation34_spill] sm:$0xff] }
 0xa81   :  { %8494 = vmatmul.bf16.gmra.mxu0 %v20022_v22  ;;  %v7908_v42 = vadd.f32 %v7907_v14, %v20024_v59 }
 0xa82   :  { %v8089_v10 = vmax.f32 %v7621_v57, %v8073_v5  ;;  %13029 = vmatmul.msk.bf16.gmra.mxu2 %vm7389_vm1, %v20023_v43  ;;  %v14196_v57 = vld [vmem:[#allocation2 + $0xe0] sm:$0xff] }
 0xa83   :  { %v7957_v5 = vadd.f32 %v7956_v19, %v7908_v42  ;;  %v7623_v19 = vmax.f32 %v18708_v55, 0.0  ;;  %v20026_v42 = vld [vmem:[#allocation36_spill] sm:$0xff]  ;;  %v14193_v55 = vld [vmem:[#allocation2 + $0x78] sm:$0xff] }
 0xa84   :  { %v8097_v25 = vmax.f32 %v18746_v33, %v8089_v10 }
 0xa85   :  { %v18798_v16 = vpop.f32.mrf.mxu3  ;;  %v8052_v28 = vpop.f32.mrf.mxu2 }
 0xa86   :  { %v14665_v36 = vpack.c.bf16 %v8097_v25, %v8096_v0  ;;  %v8053_v41 = vadd.f32 %v8052_v28, %v8004_v50  ;;  %v8005_v38 = vpop.f32.mrf.mxu0  ;;  %v8367_v31 = vpop.f32.mrf.mxu1  ;;  %v14203_v50 = vld [vmem:[#allocation2 + $0x50] sm:$0xff] }
 0xa87   :  { %v8006_v18 = vadd.f32 %v8005_v38, %v7957_v5  ;;  %v8368_v10 = vadd.f32 %v8367_v31, %v18584_v63 }
 0xa88   :  { %14808 = vst [vmem:[#allocation3] sm:$0xff] %v14665_v36   ;;  %v8074_v61 = vmax.f32 %v8053_v41, 0.0 }
 0xa89   :  { %8818 = vmatmul.bf16.vlgmr.msrb.gmra.mxu1 %v20010_v21 }
 0xa8a   :  { %v8090_v33 = vmax.f32 %v7622_v47, %v8074_v61  ;;  %8867 = vmatmul.bf16.vlgmr.msrb.gmra.mxu3 %v20025_v30  ;;  %9754 = vmatpush.bf16.msrb.mxu1 %v14196_v57  ;;  %v7911_v47 = vadd.f32 %v7910_v8, %v20026_v42  ;;  %v14194_v57 = vld [vmem:[#allocation2 + $0x170] sm:$0xff] }
 0xa8b   :  { %9803 = vmatpush.bf16.msrb.mxu3 %v14204_v53  ;;  %v20027_v53 = vld [vmem:[#allocation38_spill] sm:$0xff] }
 0xa8c   :  { %v8098_v0 = vmax.f32 %v18753_v15, %v8090_v33  ;;  %v14202_v15 = vld [vmem:[#allocation2 + $0x160] sm:$0xff]  ;;  %v7960_v38 = vadd.f32 %v7959_v11, %v7911_v47  ;;  %v20028_v47 = vld [vmem:[#allocation21_spill] sm:$0xff] }
 0xa8d   :  { %v8054_v25 = vpop.f32.mrf.mxu2  ;;  %v8416_v14 = vpop.f32.mrf.mxu3 }
 0xa8e   :  { %v8055_v28 = vadd.f32 %v8054_v25, %v8006_v18  ;;  %v8417_v36 = vadd.f32 %v8416_v14, %v8368_v10  ;;  %9755 = vmatpush.bf16.msrb.mxu1 %v14195_v1  ;;  %v8008_v41 = vpop.f32.mrf.mxu0  ;;  %v8369_v21 = vpop.f32.mrf.mxu1  ;;  %v14201_v1 = vld [vmem:[#allocation2 + $0x238] sm:$0xff] }
 0xa8f   :  { %9804 = vmatpush.bf16.msrb.mxu3 %v14203_v50  ;;  %v8009_v33 = vadd.f32 %v8008_v41, %v7960_v38  ;;  %v8370_v18 = vadd.f32 %v8369_v21, %v18604_v23  ;;  %v14192_v41 = vld [vmem:[#allocation2 + $0xf8] sm:$0xff] }
 0xa90   :  { %v8075_v61 = vmax.f32 %v8055_v28, 0.0  ;;  %v14200_v21 = vld [vmem:[#allocation2 + $0x98] sm:$0xff] }
 0xa91   :  { %8499 = vmatmul.bf16.gmra.mxu0 %v18595_v32 }
 0xa92   :  { %v8091_v31 = vmax.f32 %v7623_v19, %v8075_v61  ;;  %13030 = vmatmul.msk.bf16.gmra.mxu2 %vm7389_vm1, %v20027_v53  ;;  %9756 = vmatpush.bf16.msrb.mxu1 %v14194_v57  ;;  %v7624_v19 = vmax.f32 %v18714_v52, 0.0  ;;  %v7913_v61 = vadd.f32 %v18790_v3, %v20028_v47 }
 0xa93   :  { %9805 = vmatpush.bf16.msrb.mxu3 %v14202_v15  ;;  %v20029_v15 = vld [vmem:[#allocation11_spill] sm:$0xff] }
 0xa94   :  { %v8099_v5 = vmax.f32 %v18758_v40, %v8091_v31  ;;  %v7962_v57 = vadd.f32 %v18798_v16, %v7913_v61  ;;  %v14190_v61 = vld [vmem:[#allocation2 + $0x1c8] sm:$0xff] }
 0xa95   :  { %v8057_v10 = vpop.f32.mrf.mxu2  ;;  %v8418_v8 = vpop.f32.mrf.mxu3 }
 0xa96   :  { %v14670_v25 = vpack.c.bf16 %v8099_v5, %v8098_v0  ;;  %v8058_v14 = vadd.f32 %v8057_v10, %v8009_v33  ;;  %v8419_v50 = vadd.f32 %v8418_v8, %v8370_v18  ;;  %9757 = vmatpush.bf16.msrb.mxu1 %v14193_v55  ;;  %v8010_v11 = vpop.f32.mrf.mxu0  ;;  %v8372_v28 = vpop.f32.mrf.mxu1  ;;  %v14191_v5 = vld [vmem:[#allocation2 + $0x80] sm:$0xff]  ;;  %v14199_v18 = vld [vmem:[#allocation2 + $0x48] sm:$0xff] }
 0xa97   :  { %9806 = vmatpush.bf16.msrb.mxu3 %v14201_v1  ;;  %v8011_v31 = vadd.f32 %v8010_v11, %v7962_v57  ;;  %v8373_v52 = vadd.f32 %v8372_v28, %v18619_v13  ;;  %v14212_v11 = vld [vmem:[#allocation2 + $0x228] sm:$0xff] }
 0xa98   :  { %14809 = vst [vmem:[#allocation3 + $0x10] sm:$0xff] %v14670_v25   ;;  %v8076_v40 = vmax.f32 %v8058_v14, 0.0  ;;  %v20030_v25 = vld [vmem:[#allocation24_spill] sm:$0xff] }
 0xa99   :  { %8823 = vmatmul.bf16.gmra.mxu1 %v18192_v7  ;;  %v7625_v14 = vmax.f32 %v20030_v25, 0.0  ;;  %v14189_v57 = vld [vmem:[#allocation2 + $0x1e8] sm:$0xff] }
 0xa9a   :  { %v8092_v0 = vmax.f32 %v7624_v19, %v8076_v40  ;;  %8872 = vmatmul.bf16.gmra.mxu3 %v20029_v15  ;;  %9758 = vmatpush.bf16.msrb.mxu1 %v14192_v41  ;;  %v20031_v40 = vld [vmem:[#allocation8_spill] sm:$0xff] }
 0xa9b   :  { %9807 = vmatpush.bf16.msrb.mxu3 %v14200_v21  ;;  %v14218_v41 = vld [vmem:[#allocation2 + $0x208] sm:$0xff] }
 0xa9c   :  { %v8100_v38 = vmax.f32 %v18764_v44, %v8092_v0  ;;  %v14198_v44 = vld [vmem:[#allocation2 + $0x1f0] sm:$0xff] }
 0xa9d   :  { %v8059_v3 = vpop.f32.mrf.mxu2  ;;  %v8421_v33 = vpop.f32.mrf.mxu3 }
 0xa9e   :  { %v8060_v55 = vadd.f32 %v8059_v3, %v8011_v31  ;;  %v8422_v10 = vadd.f32 %v8421_v33, %v8373_v52  ;;  %9759 = vmatpush.bf16.msrb.mxu1 %v14191_v5  ;;  %v8374_v8 = vpop.f32.mrf.mxu1  ;;  %v8465_v1 = vpop.f32.mrf.mxu0  ;;  %v14197_v52 = vld [vmem:[#allocation2 + $0x1e0] sm:$0xff]  ;;  %v14211_v5 = vld [vmem:[#allocation2 + $0x1d8] sm:$0xff] }
 0xa9f   :  { %9808 = vmatpush.bf16.msrb.mxu3 %v14199_v18  ;;  %v8466_v16 = vadd.f32 %v8465_v1, %v8417_v36  ;;  %v8375_v36 = vadd.f32 %v8374_v8, %v18557_v6  ;;  %v14216_v8 = vld [vmem:[#allocation2 + $0x128] sm:$0xff] }
 0xaa0   :  { %v8077_v19 = vmax.f32 %v8060_v55, 0.0  ;;  %v14217_v55 = vld [vmem:[#allocation2 + $0x178] sm:$0xff] }
 0xaa1   :  { %8916 = vmatmul.bf16.vlgmr.msrb.gmra.mxu0 %v20031_v40 }
 0xaa2   :  { %v8093_v28 = vmax.f32 %v7625_v14, %v8077_v19  ;;  %13151 = vmatmul.msk.bf16.vlgmr.msrb.gmra.mxu2 %vm7389_vm1, %v18221_v35  ;;  %9760 = vmatpush.bf16.msrb.mxu1 %v14190_v61  ;;  %v14209_v61 = vld [vmem:[#allocation2 + $0x68] sm:$0xff] }
 0xaa3   :  { %9809 = vmatpush.bf16.msrb.mxu3 %v14198_v44  ;;  %9852 = vmatpush.bf16.msrb.mxu0 %v14212_v11 }
 0xaa4   :  { %v8101_v21 = vmax.f32 %v18770_v12, %v8093_v28  ;;  %9903 = vmatpush.bf16.msrb.mxu2 %v14218_v41  ;;  %v14210_v12 = vld [vmem:[#allocation2 + $0x230] sm:$0xff] }
 0xaa5   :  { %v8423_v0 = vpop.f32.mrf.mxu3  ;;  %v8514_v31 = vpop.f32.mrf.mxu2  ;;  %v14215_v28 = vld [vmem:[#allocation2 + $0x10] sm:$0xff] }
 0xaa6   :  { %v14675_v3 = vpack.c.bf16 %v8101_v21, %v8100_v38  ;;  %v8424_v33 = vadd.f32 %v8423_v0, %v8375_v36  ;;  %v18827_v18 = vadd.f32 %v8514_v31, %v8466_v16  ;;  %9761 = vmatpush.bf16.msrb.mxu1 %v14189_v57  ;;  %v8377_v1 = vpop.f32.mrf.mxu1  ;;  %v8467_v25 = vpop.f32.mrf.mxu0  ;;  %v14208_v36 = vld [vmem:[#allocation2 + $0x130] sm:$0xff]  ;;  %v14214_v57 = vld [vmem:[#allocation2 + $0x200] sm:$0xff] }
 0xaa7   :  { %9810 = vmatpush.bf16.msrb.mxu3 %v14197_v52  ;;  %9853 = vmatpush.bf16.msrb.mxu0 %v14211_v5  ;;  %v8468_v14 = vadd.f32 %v8467_v25, %v8419_v50  ;;  %v8378_v38 = vadd.f32 %v8377_v1, %v18511_v26  ;;  %v14207_v5 = vld [vmem:[#allocation2 + $0x90] sm:$0xff]  ;;  %v14213_v1 = vld [vmem:[#allocation2 + $0x218] sm:$0xff] }
 0xaa8   :  { %14810 = vst [vmem:[#allocation3 + $0x30] sm:$0xff] %v14675_v3   ;;  %9904 = vmatpush.bf16.msrb.mxu2 %v14217_v55 }
 0xaa9   :  { %8828 = vmatmul.bf16.gmra.mxu1 %v18243_v4 }
 0xaaa   :  { %8877 = vmatmul.bf16.gmra.mxu3 %v18249_v54 }
 0xaab   :  { %9854 = vmatpush.bf16.msrb.mxu0 %v14210_v12  ;;  %v14206_v12 = vld [vmem:[#allocation2 + $0x1b0] sm:$0xff] }
 0xaac   :  { %9905 = vmatpush.bf16.msrb.mxu2 %v14216_v8 }
 0xaad   :  { %v8426_v16 = vpop.f32.mrf.mxu3  ;;  %v8516_v19 = vpop.f32.mrf.mxu2 }
 0xaae   :  { %v8427_v44 = vadd.f32 %v8426_v16, %v8378_v38  ;;  %v18832_v11 = vadd.f32 %v8516_v19, %v8468_v14  ;;  %v8379_v50 = vpop.f32.mrf.mxu1  ;;  %v8470_v41 = vpop.f32.mrf.mxu0  ;;  %v14205_v19 = vld [vmem:[#allocation2 + $0x30] sm:$0xff] }
 0xaaf   :  { %9855 = vmatpush.bf16.msrb.mxu0 %v14209_v61  ;;  %v8471_v21 = vadd.f32 %v8470_v41, %v8422_v10  ;;  %v8380_v0 = vadd.f32 %v8379_v50, %v18599_v27 }
 0xab0   :  { %9906 = vmatpush.bf16.msrb.mxu2 %v14215_v28 }
 0xab1   :  { %8921 = vmatmul.bf16.gmra.mxu0 %v18271_v24 }
 0xab2   :  { %13152 = vmatmul.msk.bf16.gmra.mxu2 %vm7389_vm1, %v18275_v9 }
 0xab3   :  { %9856 = vmatpush.bf16.msrb.mxu0 %v14208_v36 }
 0xab4   :  { %9907 = vmatpush.bf16.msrb.mxu2 %v14214_v57 }
 0xab5   :  { %v8428_v31 = vpop.f32.mrf.mxu3  ;;  %v8519_v52 = vpop.f32.mrf.mxu2 }
 0xab6   :  { %v8429_v3 = vadd.f32 %v8428_v31, %v8380_v0  ;;  %v18838_v55 = vadd.f32 %v8519_v52, %v8471_v21  ;;  %v8382_v10 = vpop.f32.mrf.mxu1  ;;  %v8472_v25 = vpop.f32.mrf.mxu0 }
 0xab7   :  { %9857 = vmatpush.bf16.msrb.mxu0 %v14207_v5  ;;  %v8473_v14 = vadd.f32 %v8472_v25, %v8424_v33  ;;  %v8383_v8 = vadd.f32 %v8382_v10, %v18436_v29  ;;  %v20032_v33 = vld [vmem:[#allocation25_spill] sm:$0xff] }
 0xab8   :  { %9908 = vmatpush.bf16.msrb.mxu2 %v14213_v1 }
 0xab9   :  { %8833 = vmatmul.bf16.gmra.mxu1 %v18296_v48 }
 0xaba   :  { %8882 = vmatmul.bf16.gmra.mxu3 %v18300_v20 }
 0xabb   :  { %9858 = vmatpush.bf16.msrb.mxu0 %v14206_v12 }
 0xabd   :  { %v8431_v38 = vpop.f32.mrf.mxu3  ;;  %v8521_v16 = vpop.f32.mrf.mxu2 }
 0xabe   :  { %v8432_v61 = vadd.f32 %v8431_v38, %v8383_v8  ;;  %v18843_v28 = vadd.f32 %v8521_v16, %v8473_v14  ;;  %v8384_v50 = vpop.f32.mrf.mxu1  ;;  %v8475_v41 = vpop.f32.mrf.mxu0 }
 0xabf   :  { %9859 = vmatpush.bf16.msrb.mxu0 %v14205_v19  ;;  %v8476_v21 = vadd.f32 %v8475_v41, %v8427_v44  ;;  %v8385_v36 = vadd.f32 %v8384_v50, %v20032_v33  ;;  %v20033_v50 = vld [vmem:[#allocation17_spill] sm:$0xff] }
 0xac1   :  { %8926 = vmatmul.bf16.gmra.mxu0 %v18322_v34 }
 0xac2   :  { %13153 = vmatmul.msk.bf16.gmra.mxu2 %vm7389_vm1, %v19998_v39 }
 0xac5   :  { %v8433_v57 = vpop.f32.mrf.mxu3  ;;  %v8524_v0 = vpop.f32.mrf.mxu2 }
 0xac6   :  { %v8434_v31 = vadd.f32 %v8433_v57, %v8385_v36  ;;  %v18849_v52 = vadd.f32 %v8524_v0, %v8476_v21  ;;  %v8387_v5 = vpop.f32.mrf.mxu1  ;;  %v8477_v1 = vpop.f32.mrf.mxu0 }
 0xac7   :  { %v8478_v10 = vadd.f32 %v8477_v1, %v8429_v3  ;;  %v8388_v44 = vadd.f32 %v8387_v5, %v18659_v49 }
 0xac9   :  { %8838 = vmatmul.bf16.gmra.mxu1 %v19999_v2 }
 0xaca   :  { %8887 = vmatmul.bf16.gmra.mxu3 %v20000_v37 }
 0xacd   :  { %v8436_v25 = vpop.f32.mrf.mxu3  ;;  %v8526_v14 = vpop.f32.mrf.mxu2 }
 0xace   :  { %v8437_v12 = vadd.f32 %v8436_v25, %v8388_v44  ;;  %v18854_v8 = vadd.f32 %v8526_v14, %v8478_v10  ;;  %v8389_v38 = vpop.f32.mrf.mxu1  ;;  %v8480_v16 = vpop.f32.mrf.mxu0  ;;  %v20034_v10 = vld [vmem:[#allocation15_spill] sm:$0xff]  ;;  %v20035_v44 = vld [vmem:[#allocation16_spill] sm:$0xff] }
 0xacf   :  { %v8481_v19 = vadd.f32 %v8480_v16, %v8432_v61  ;;  %v8390_v3 = vadd.f32 %v8389_v38, %v20014_v45 }
 0xad1   :  { %8931 = vmatmul.bf16.gmra.mxu0 %v18375_v56 }
 0xad2   :  { %13154 = vmatmul.msk.bf16.gmra.mxu2 %vm7389_vm1, %v20033_v50 }
 0xad5   :  { %v8438_v41 = vpop.f32.mrf.mxu3  ;;  %v8529_v21 = vpop.f32.mrf.mxu2 }
 0xad6   :  { %v8439_v36 = vadd.f32 %v8438_v41, %v8390_v3  ;;  %v18860_v57 = vadd.f32 %v8529_v21, %v8481_v19  ;;  %v8392_v0 = vpop.f32.mrf.mxu1  ;;  %v8482_v5 = vpop.f32.mrf.mxu0  ;;  %v20036_v3 = vld [vmem:[#allocation22_spill] sm:$0xff]  ;;  %v20037_v19 = vld [vmem:[#allocation19_spill] sm:$0xff] }
 0xad7   :  { %v8483_v1 = vadd.f32 %v8482_v5, %v8434_v31  ;;  %v8393_v61 = vadd.f32 %v8392_v0, %v20015_v51 }
 0xad9   :  { %8843 = vmatmul.bf16.gmra.mxu1 %v20034_v10 }
 0xada   :  { %8892 = vmatmul.bf16.gmra.mxu3 %v20035_v44 }
 0xadd   :  { %v8441_v25 = vpop.f32.mrf.mxu3  ;;  %v8531_v14 = vpop.f32.mrf.mxu2 }
 0xade   :  { %v8442_v16 = vadd.f32 %v8441_v25, %v8393_v61  ;;  %v18865_v49 = vadd.f32 %v8531_v14, %v8483_v1  ;;  %v8394_v38 = vpop.f32.mrf.mxu1  ;;  %v8485_v45 = vpop.f32.mrf.mxu0  ;;  %v20038_v1 = vld [vmem:[#allocation14_spill] sm:$0xff] }
 0xadf   :  { %v8486_v50 = vadd.f32 %v8485_v45, %v8437_v12  ;;  %v8395_v31 = vadd.f32 %v8394_v38, %v20018_v17 }
 0xae1   :  { %8936 = vmatmul.bf16.gmra.mxu0 %v20036_v3 }
 0xae2   :  { %13155 = vmatmul.msk.bf16.gmra.mxu2 %vm7389_vm1, %v20037_v19 }
 0xae5   :  { %v8443_v41 = vpop.f32.mrf.mxu3  ;;  %v8534_v21 = vpop.f32.mrf.mxu2 }
 0xae6   :  { %v8444_v5 = vadd.f32 %v8443_v41, %v8395_v31  ;;  %v18871_v44 = vadd.f32 %v8534_v21, %v8486_v50  ;;  %v8397_v0 = vpop.f32.mrf.mxu1  ;;  %v8487_v51 = vpop.f32.mrf.mxu0  ;;  %v20039_v31 = vld [vmem:[#allocation23_spill] sm:$0xff] }
 0xae7   :  { %v8488_v61 = vadd.f32 %v8487_v51, %v8439_v36  ;;  %v8398_v45 = vadd.f32 %v8397_v0, %v20021_v58 }
 0xae9   :  { %8848 = vmatmul.bf16.gmra.mxu1 %v20038_v1 }
 0xaea   :  { %8897 = vmatmul.bf16.gmra.mxu3 %v20004_v46 }
 0xaed   :  { %v8446_v12 = vpop.f32.mrf.mxu3  ;;  %v8536_v25 = vpop.f32.mrf.mxu2 }
 0xaee   :  { %v8447_v14 = vadd.f32 %v8446_v12, %v8398_v45  ;;  %v18876_v19 = vadd.f32 %v8536_v25, %v8488_v61  ;;  %v8399_v38 = vpop.f32.mrf.mxu1  ;;  %v8490_v17 = vpop.f32.mrf.mxu0  ;;  %v20040_v61 = vld [vmem:[#allocation30_spill] sm:$0xff] }
 0xaef   :  { %v8491_v3 = vadd.f32 %v8490_v17, %v8442_v16  ;;  %v8400_v51 = vadd.f32 %v8399_v38, %v20024_v59 }
 0xaf1   :  { %8941 = vmatmul.bf16.gmra.mxu0 %v20039_v31 }
 0xaf2   :  { %13156 = vmatmul.msk.bf16.gmra.mxu2 %vm7389_vm1, %v20017_v62 }
 0xaf5   :  { %v8448_v50 = vpop.f32.mrf.mxu3  ;;  %v8539_v36 = vpop.f32.mrf.mxu2 }
 0xaf6   :  { %v8449_v41 = vadd.f32 %v8448_v50, %v8400_v51  ;;  %v18882_v21 = vadd.f32 %v8539_v36, %v8491_v3  ;;  %v8402_v0 = vpop.f32.mrf.mxu1  ;;  %v8492_v58 = vpop.f32.mrf.mxu0 }
 0xaf7   :  { %v8493_v45 = vadd.f32 %v8492_v58, %v8444_v5  ;;  %v8403_v17 = vadd.f32 %v8402_v0, %v20026_v42  ;;  %v14233_v42 = vld [vmem:[#allocation2 + $0x68] sm:$0xff] }
 0xaf9   :  { %8853 = vmatmul.bf16.gmra.mxu1 %v20019_v60 }
 0xafa   :  { %8902 = vmatmul.bf16.gmra.mxu3 %v20040_v61 }
 0xafd   :  { %v8451_v16 = vpop.f32.mrf.mxu3  ;;  %v8541_v12 = vpop.f32.mrf.mxu2 }
 0xafe   :  { %v8452_v25 = vadd.f32 %v8451_v16, %v8403_v17  ;;  %v18887_v62 = vadd.f32 %v8541_v12, %v8493_v45  ;;  %v8404_v38 = vpop.f32.mrf.mxu1  ;;  %v8495_v59 = vpop.f32.mrf.mxu0  ;;  %v14226_v45 = vld [vmem:[#allocation2 + $0x160] sm:$0xff]  ;;  %v20041_v16 = vld [vmem:[#allocation9_spill] sm:$0xff] }
 0xaff   :  { %v8496_v31 = vadd.f32 %v8495_v59, %v8447_v14  ;;  %v8405_v58 = vadd.f32 %v8404_v38, %v20028_v47  ;;  %v14234_v12 = vld [vmem:[#allocation2 + $0x230] sm:$0xff]  ;;  %v14225_v14 = vld [vmem:[#allocation2 + $0x238] sm:$0xff] }
 0xb01   :  { %8946 = vmatmul.bf16.gmra.mxu0 %v20022_v22 }
 0xb02   :  { %13157 = vmatmul.msk.bf16.gmra.mxu2 %vm7389_vm1, %v20023_v43 }
 0xb05   :  { %v8453_v3 = vpop.f32.mrf.mxu3  ;;  %v8544_v5 = vpop.f32.mrf.mxu2 }
 0xb06   :  { %v8454_v51 = vadd.f32 %v8453_v3, %v8405_v58  ;;  %v18893_v50 = vadd.f32 %v8544_v5, %v8496_v31  ;;  %v8497_v36 = vpop.f32.mrf.mxu0  ;;  %v8819_v0 = vpop.f32.mrf.mxu1 }
 0xb07   :  { %v8498_v17 = vadd.f32 %v8497_v36, %v8449_v41  ;;  %v8820_v59 = vadd.f32 %v8819_v0, %v18584_v63  ;;  %v14224_v36 = vld [vmem:[#allocation2 + $0x98] sm:$0xff] }
 0xb09   :  { %9310 = vmatmul.bf16.vlgmr.msra.gmra.mxu1 %v20041_v16 }
 0xb0a   :  { %9359 = vmatmul.bf16.vlgmr.msra.gmra.mxu3 %v20025_v30  ;;  %10246 = vmatpush.bf16.msra.mxu1 %v14226_v45  ;;  %v14232_v30 = vld [vmem:[#allocation2 + $0x130] sm:$0xff]  ;;  %v14223_v45 = vld [vmem:[#allocation2 + $0x48] sm:$0xff] }
 0xb0b   :  { %10295 = vmatpush.bf16.msra.mxu3 %v14234_v12 }
 0xb0d   :  { %v8546_v38 = vpop.f32.mrf.mxu2  ;;  %v8868_v47 = vpop.f32.mrf.mxu3 }
 0xb0e   :  { %v18898_v58 = vadd.f32 %v8546_v38, %v8498_v17  ;;  %v8869_v31 = vadd.f32 %v8868_v47, %v8820_v59  ;;  %10247 = vmatpush.bf16.msra.mxu1 %v14225_v14  ;;  %v8500_v3 = vpop.f32.mrf.mxu0  ;;  %v8821_v41 = vpop.f32.mrf.mxu1  ;;  %v14231_v47 = vld [vmem:[#allocation2 + $0x90] sm:$0xff] }
 0xb0f   :  { %10296 = vmatpush.bf16.msra.mxu3 %v14233_v42  ;;  %v8501_v5 = vadd.f32 %v8500_v3, %v8452_v25  ;;  %v8822_v0 = vadd.f32 %v8821_v41, %v18604_v23  ;;  %v14222_v3 = vld [vmem:[#allocation2 + $0x1f0] sm:$0xff]  ;;  %v14221_v41 = vld [vmem:[#allocation2 + $0x1e0] sm:$0xff] }
 0xb11   :  { %8951 = vmatmul.bf16.gmra.mxu0 %v18595_v32 }
 0xb12   :  { %13158 = vmatmul.msk.bf16.gmra.mxu2 %vm7389_vm1, %v20027_v53  ;;  %10248 = vmatpush.bf16.msra.mxu1 %v14224_v36  ;;  %v14230_v53 = vld [vmem:[#allocation2 + $0x1b0] sm:$0xff] }
 0xb13   :  { %10297 = vmatpush.bf16.msra.mxu3 %v14232_v30 }
 0xb15   :  { %v8549_v17 = vpop.f32.mrf.mxu2  ;;  %v8870_v12 = vpop.f32.mrf.mxu3 }
 0xb16   :  { %v18904_v59 = vadd.f32 %v8549_v17, %v8501_v5  ;;  %v8871_v14 = vadd.f32 %v8870_v12, %v8822_v0  ;;  %10249 = vmatpush.bf16.msra.mxu1 %v14223_v45  ;;  %v8502_v42 = vpop.f32.mrf.mxu0  ;;  %v8824_v25 = vpop.f32.mrf.mxu1  ;;  %v14229_v17 = vld [vmem:[#allocation2 + $0x30] sm:$0xff] }
 0xb17   :  { %10298 = vmatpush.bf16.msra.mxu3 %v14231_v47  ;;  %v8503_v38 = vadd.f32 %v8502_v42, %v8454_v51  ;;  %v8825_v30 = vadd.f32 %v8824_v25, %v18619_v13  ;;  %v14220_v42 = vld [vmem:[#allocation2 + $0xe0] sm:$0xff] }
 0xb19   :  { %9315 = vmatmul.bf16.gmra.mxu1 %v18192_v7 }
 0xb1a   :  { %9364 = vmatmul.bf16.gmra.mxu3 %v20029_v15  ;;  %10250 = vmatpush.bf16.msra.mxu1 %v14222_v3  ;;  %v14228_v15 = vld [vmem:[#allocation2 + $0x100] sm:$0xff]  ;;  %v14242_v3 = vld [vmem:[#allocation2 + $0x208] sm:$0xff] }
 0xb1b   :  { %10299 = vmatpush.bf16.msra.mxu3 %v14230_v53  ;;  %v14248_v53 = vld [vmem:[#allocation2 + $0x58] sm:$0xff] }
 0xb1d   :  { %v8551_v36 = vpop.f32.mrf.mxu2  ;;  %v8873_v5 = vpop.f32.mrf.mxu3 }
 0xb1e   :  { %v18909_v0 = vadd.f32 %v8551_v36, %v8503_v38  ;;  %v8874_v45 = vadd.f32 %v8873_v5, %v8825_v30  ;;  %10251 = vmatpush.bf16.msra.mxu1 %v14221_v41  ;;  %v8826_v12 = vpop.f32.mrf.mxu1  ;;  %v8917_v51 = vpop.f32.mrf.mxu0  ;;  %v14219_v38 = vld [vmem:[#allocation2 + $0x198] sm:$0xff]  ;;  %v14227_v36 = vld [vmem:[#allocation2 + $0x50] sm:$0xff] }
 0xb1f   :  { %10300 = vmatpush.bf16.msra.mxu3 %v14229_v17  ;;  %v8918_v47 = vadd.f32 %v8917_v51, %v8869_v31  ;;  %v8827_v25 = vadd.f32 %v8826_v12, %v18557_v6  ;;  %v14241_v31 = vld [vmem:[#allocation2 + $0x178] sm:$0xff]  ;;  %v14247_v51 = vld [vmem:[#allocation2 + $0x1a0] sm:$0xff]  ;;  %v14240_v12 = vld [vmem:[#allocation2 + $0x128] sm:$0xff] }
 0xb20   :  { %20042 = vst [vmem:[#allocation29_spill] sm:$0xff] %v18909_v0 }
 0xb21   :  { %9408 = vmatmul.bf16.vlgmr.msra.gmra.mxu0 %v20031_v40 }
 0xb22   :  { %13279 = vmatmul.msk.bf16.vlgmr.msra.gmra.mxu2 %vm7389_vm1, %v18221_v35  ;;  %10252 = vmatpush.bf16.msra.mxu1 %v14220_v42 }
 0xb23   :  { %10301 = vmatpush.bf16.msra.mxu3 %v14228_v15  ;;  %10344 = vmatpush.bf16.msra.mxu0 %v14242_v3  ;;  %v8554_v15 = vmax.f32 %v18827_v18, 0.0  ;;  %v14245_v18 = vld [vmem:[#allocation2 + $0x168] sm:$0xff] }
 0xb24   :  { %10395 = vmatpush.bf16.msra.mxu2 %v14248_v53 }
 0xb25   :  { %v8875_v30 = vpop.f32.mrf.mxu3  ;;  %v8966_v41 = vpop.f32.mrf.mxu2 }
 0xb26   :  { %v8876_v5 = vadd.f32 %v8875_v30, %v8827_v25  ;;  %v8967_v17 = vadd.f32 %v8966_v41, %v8918_v47  ;;  %10253 = vmatpush.bf16.msra.mxu1 %v14219_v38  ;;  %v8829_v40 = vpop.f32.mrf.mxu1  ;;  %v8919_v0 = vpop.f32.mrf.mxu0  ;;  %v14246_v25 = vld [vmem:[#allocation2 + $0xc0] sm:$0xff]  ;;  %v14239_v41 = vld [vmem:[#allocation2 + $0x10] sm:$0xff] }
 0xb27   :  { %10302 = vmatpush.bf16.msra.mxu3 %v14227_v36  ;;  %10345 = vmatpush.bf16.msra.mxu0 %v14241_v31  ;;  %v8920_v42 = vadd.f32 %v8919_v0, %v8871_v14  ;;  %v8830_v47 = vadd.f32 %v8829_v40, %v18511_v26  ;;  %v14244_v40 = vld [vmem:[#allocation2 + $0x1d0] sm:$0xff] }
 0xb28   :  { %v9006_v3 = vmax.f32 %v8967_v17, 0.0  ;;  %10396 = vmatpush.bf16.msra.mxu2 %v14247_v51  ;;  %v8555_v51 = vmax.f32 %v18832_v11, 0.0 }
 0xb29   :  { %9320 = vmatmul.bf16.gmra.mxu1 %v18243_v4 }
 0xb2a   :  { %v18917_v53 = vmax.f32 %v8554_v15, %v9006_v3  ;;  %9369 = vmatmul.bf16.gmra.mxu3 %v18249_v54  ;;  %v14238_v3 = vld [vmem:[#allocation2 + $0x200] sm:$0xff] }
 0xb2b   :  { %10346 = vmatpush.bf16.msra.mxu0 %v14240_v12 }
 0xb2c   :  { %10397 = vmatpush.bf16.msra.mxu2 %v14246_v25 }
 0xb2d   :  { %v8878_v38 = vpop.f32.mrf.mxu3  ;;  %v8968_v30 = vpop.f32.mrf.mxu2 }
 0xb2e   :  { %v8879_v14 = vadd.f32 %v8878_v38, %v8830_v47  ;;  %v8969_v0 = vadd.f32 %v8968_v30, %v8920_v42  ;;  %v8831_v36 = vpop.f32.mrf.mxu1  ;;  %v8922_v31 = vpop.f32.mrf.mxu0  ;;  %v14243_v30 = vld [vmem:[#allocation2 + $0x210] sm:$0xff] }
 0xb2f   :  { %10347 = vmatpush.bf16.msra.mxu0 %v14239_v41  ;;  %v8923_v17 = vadd.f32 %v8922_v31, %v8874_v45  ;;  %v8832_v42 = vadd.f32 %v8831_v36, %v18599_v27  ;;  %v14237_v45 = vld [vmem:[#allocation2 + $0x218] sm:$0xff]  ;;  %v8556_v31 = vmax.f32 %v18838_v55, 0.0 }
 0xb30   :  { %v9007_v15 = vmax.f32 %v8969_v0, 0.0  ;;  %10398 = vmatpush.bf16.msra.mxu2 %v14245_v18 }
 0xb31   :  { %9413 = vmatmul.bf16.gmra.mxu0 %v18271_v24 }
 0xb32   :  { %v18923_v12 = vmax.f32 %v8555_v51, %v9007_v15  ;;  %13280 = vmatmul.msk.bf16.gmra.mxu2 %vm7389_vm1, %v18275_v9  ;;  %v14236_v15 = vld [vmem:[#allocation2 + $0x228] sm:$0xff] }
 0xb33   :  { %10348 = vmatpush.bf16.msra.mxu0 %v14238_v3 }
 0xb34   :  { %10399 = vmatpush.bf16.msra.mxu2 %v14244_v40 }
 0xb35   :  { %v8880_v25 = vpop.f32.mrf.mxu3  ;;  %v8971_v47 = vpop.f32.mrf.mxu2 }
 0xb36   :  { %v8881_v38 = vadd.f32 %v8880_v25, %v8832_v42  ;;  %v8972_v11 = vadd.f32 %v8971_v47, %v8923_v17  ;;  %v8834_v41 = vpop.f32.mrf.mxu1  ;;  %v8924_v0 = vpop.f32.mrf.mxu0  ;;  %v14235_v42 = vld [vmem:[#allocation2 + $0x1d8] sm:$0xff] }
 0xb37   :  { %10349 = vmatpush.bf16.msra.mxu0 %v14237_v45  ;;  %v8925_v18 = vadd.f32 %v8924_v0, %v8876_v5  ;;  %v8835_v36 = vadd.f32 %v8834_v41, %v18436_v29 }
 0xb38   :  { %v9008_v51 = vmax.f32 %v8972_v11, 0.0  ;;  %10400 = vmatpush.bf16.msra.mxu2 %v14243_v30  ;;  %v8557_v11 = vmax.f32 %v18843_v28, 0.0 }
 0xb39   :  { %9325 = vmatmul.bf16.gmra.mxu1 %v18296_v48 }
 0xb3a   :  { %v18930_v3 = vmax.f32 %v8556_v31, %v9008_v51  ;;  %9374 = vmatmul.bf16.gmra.mxu3 %v18300_v20 }
 0xb3b   :  { %10350 = vmatpush.bf16.msra.mxu0 %v14236_v15 }
 0xb3d   :  { %v8883_v17 = vpop.f32.mrf.mxu3  ;;  %v8973_v40 = vpop.f32.mrf.mxu2 }
 0xb3e   :  { %v8884_v25 = vadd.f32 %v8883_v17, %v8835_v36  ;;  %v8974_v47 = vadd.f32 %v8973_v40, %v8925_v18  ;;  %v8836_v5 = vpop.f32.mrf.mxu1  ;;  %v8927_v45 = vpop.f32.mrf.mxu0 }
 0xb3f   :  { %10351 = vmatpush.bf16.msra.mxu0 %v14235_v42  ;;  %v8928_v55 = vadd.f32 %v8927_v45, %v8879_v14  ;;  %v8837_v41 = vadd.f32 %v8836_v5, %v20032_v33  ;;  %v8558_v14 = vmax.f32 %v18849_v52, 0.0  ;;  %v20043_v52 = vld [vmem:[#allocation17_spill] sm:$0xff] }
 0xb40   :  { %v9009_v30 = vmax.f32 %v8974_v47, 0.0 }
 0xb41   :  { %9418 = vmatmul.bf16.gmra.mxu0 %v18322_v34 }
 0xb42   :  { %v18936_v0 = vmax.f32 %v8557_v11, %v9009_v30  ;;  %13281 = vmatmul.msk.bf16.gmra.mxu2 %vm7389_vm1, %v19998_v39 }
 0xb45   :  { %v8885_v31 = vpop.f32.mrf.mxu3  ;;  %v8976_v51 = vpop.f32.mrf.mxu2 }
 0xb46   :  { %v8886_v15 = vadd.f32 %v8885_v31, %v8837_v41  ;;  %v8977_v18 = vadd.f32 %v8976_v51, %v8928_v55  ;;  %v8839_v36 = vpop.f32.mrf.mxu1  ;;  %v8929_v17 = vpop.f32.mrf.mxu0  ;;  %v8559_v55 = vmax.f32 %v18854_v8, 0.0 }
 0xb47   :  { %v8930_v40 = vadd.f32 %v8929_v17, %v8881_v38 }
 0xb48   :  { %v9010_v28 = vmax.f32 %v8977_v18, 0.0 }
 0xb49   :  { %9330 = vmatmul.bf16.gmra.mxu1 %v19999_v2  ;;  %v8562_v2 = vmax.f32 %v18871_v44, 0.0  ;;  %v20049_v44 = vld [vmem:[#allocation37_spill] sm:$0xff] }
 0xb4a   :  { %v18943_v42 = vmax.f32 %v8558_v14, %v9010_v28  ;;  %9379 = vmatmul.bf16.gmra.mxu3 %v20000_v37 }
 0xb4d   :  { %v8888_v47 = vpop.f32.mrf.mxu3  ;;  %v8978_v45 = vpop.f32.mrf.mxu2 }
 0xb4e   :  { %v8979_v11 = vadd.f32 %v8978_v45, %v8930_v40  ;;  %v8841_v5 = vpop.f32.mrf.mxu1  ;;  %v8932_v30 = vpop.f32.mrf.mxu0  ;;  %v8560_v40 = vmax.f32 %v18860_v57, 0.0 }
 0xb4f   :  { %v8933_v33 = vadd.f32 %v8932_v30, %v8884_v25  ;;  %v20044_v25 = vld [vmem:[#allocation16_spill] sm:$0xff] }
 0xb50   :  { %v9011_v41 = vmax.f32 %v8979_v11, 0.0 }
 0xb51   :  { %9423 = vmatmul.bf16.gmra.mxu0 %v18375_v56  ;;  %v8561_v56 = vmax.f32 %v18865_v49, 0.0  ;;  %v20048_v49 = vld [vmem:[#allocation43_spill] sm:$0xff] }
 0xb52   :  { %v18948_v38 = vmax.f32 %v8559_v55, %v9011_v41  ;;  %13282 = vmatmul.msk.bf16.gmra.mxu2 %vm7389_vm1, %v20043_v52  ;;  %v8842_v39 = vadd.f32 %v8841_v5, %v20048_v49 }
 0xb55   :  { %v8890_v31 = vpop.f32.mrf.mxu3  ;;  %v8981_v51 = vpop.f32.mrf.mxu2 }
 0xb56   :  { %v8982_v18 = vadd.f32 %v8981_v51, %v8933_v33  ;;  %v8844_v17 = vpop.f32.mrf.mxu1  ;;  %v8934_v14 = vpop.f32.mrf.mxu0  ;;  %v20045_v33 = vld [vmem:[#allocation42_spill] sm:$0xff] }
 0xb57   :  { %v8935_v28 = vadd.f32 %v8934_v14, %v8886_v15  ;;  %v8840_v51 = vadd.f32 %v8839_v36, %v20045_v33  ;;  %v20046_v15 = vld [vmem:[#allocation22_spill] sm:$0xff]  ;;  %v20047_v14 = vld [vmem:[#allocation19_spill] sm:$0xff] }
 0xb58   :  { %v9012_v45 = vmax.f32 %v8982_v18, 0.0 }
 0xb59   :  { %9335 = vmatmul.bf16.gmra.mxu1 %v20034_v10  ;;  %v8889_v57 = vadd.f32 %v8888_v47, %v8840_v51 }
 0xb5a   :  { %v18954_v8 = vmax.f32 %v8560_v40, %v9012_v45  ;;  %9384 = vmatmul.bf16.gmra.mxu3 %v20044_v25 }
 0xb5d   :  { %v8893_v11 = vpop.f32.mrf.mxu3  ;;  %v8983_v30 = vpop.f32.mrf.mxu2 }
 0xb5e   :  { %v8984_v55 = vadd.f32 %v8983_v30, %v8935_v28  ;;  %v8846_v41 = vpop.f32.mrf.mxu1  ;;  %v8937_v52 = vpop.f32.mrf.mxu0 }
 0xb5f   :  { %v8938_v40 = vadd.f32 %v8937_v52, %v8889_v57 }
 0xb60   :  { %v9013_v37 = vmax.f32 %v8984_v55, 0.0  ;;  %v8891_v55 = vadd.f32 %v8890_v31, %v8842_v39 }
 0xb61   :  { %9428 = vmatmul.bf16.gmra.mxu0 %v20046_v15  ;;  %v8845_v15 = vadd.f32 %v8844_v17, %v20049_v44  ;;  %v20052_v17 = vld [vmem:[#allocation41_spill] sm:$0xff] }
 0xb62   :  { %v18960_v18 = vmax.f32 %v8561_v56, %v9013_v37  ;;  %13283 = vmatmul.msk.bf16.gmra.mxu2 %vm7389_vm1, %v20047_v14  ;;  %v8563_v14 = vmax.f32 %v18876_v19, 0.0  ;;  %v8564_v19 = vmax.f32 %v18882_v21, 0.0  ;;  %v8565_v21 = vmax.f32 %v18887_v62, 0.0 }
 0xb65   :  { %v8895_v45 = vpop.f32.mrf.mxu3  ;;  %v8986_v25 = vpop.f32.mrf.mxu2 }
 0xb66   :  { %v8987_v10 = vadd.f32 %v8986_v25, %v8938_v40  ;;  %v8849_v28 = vpop.f32.mrf.mxu1  ;;  %v8939_v30 = vpop.f32.mrf.mxu0 }
 0xb67   :  { %v8940_v37 = vadd.f32 %v8939_v30, %v8891_v55 }
 0xb68   :  { %v9014_v36 = vmax.f32 %v8987_v10, 0.0  ;;  %v20050_v10 = vld [vmem:[#allocation23_spill] sm:$0xff] }
 0xb69   :  { %9340 = vmatmul.bf16.gmra.mxu1 %v20038_v1  ;;  %v8894_v1 = vadd.f32 %v8893_v11, %v8845_v15 }
 0xb6a   :  { %v9030_v47 = vmax.f32 %v8562_v2, %v9014_v36  ;;  %9389 = vmatmul.bf16.gmra.mxu3 %v20004_v46  ;;  %v20051_v2 = vld [vmem:[#allocation26_spill] sm:$0xff] }
 0xb6c   :  { %v9038_v56 = vmax.f32 %v18917_v53, %v9030_v47 }
 0xb6d   :  { %v8898_v52 = vpop.f32.mrf.mxu3  ;;  %v8988_v51 = vpop.f32.mrf.mxu2 }
 0xb6e   :  { %v8989_v57 = vadd.f32 %v8988_v51, %v8940_v37  ;;  %v8851_v25 = vpop.f32.mrf.mxu1  ;;  %v8942_v40 = vpop.f32.mrf.mxu0 }
 0xb6f   :  { %v8943_v31 = vadd.f32 %v8942_v40, %v8894_v1 }
 0xb70   :  { %v9015_v5 = vmax.f32 %v8989_v57, 0.0  ;;  %v8847_v57 = vadd.f32 %v8846_v41, %v20052_v17  ;;  %v20053_v41 = vld [vmem:[#allocation31_spill] sm:$0xff] }
 0xb71   :  { %9433 = vmatmul.bf16.gmra.mxu0 %v20050_v10 }
 0xb72   :  { %v9031_v39 = vmax.f32 %v8563_v14, %v9015_v5  ;;  %13284 = vmatmul.msk.bf16.gmra.mxu2 %vm7389_vm1, %v20051_v2  ;;  %v8896_v11 = vadd.f32 %v8895_v45, %v8847_v57 }
 0xb74   :  { %v9039_v53 = vmax.f32 %v18923_v12, %v9031_v39 }
 0xb75   :  { %v8900_v30 = vpop.f32.mrf.mxu3  ;;  %v8991_v36 = vpop.f32.mrf.mxu2 }
 0xb76   :  { %v14680_v55 = vpack.c.bf16 %v9039_v53, %v9038_v56  ;;  %v8992_v47 = vadd.f32 %v8991_v36, %v8943_v31  ;;  %v8854_v37 = vpop.f32.mrf.mxu1  ;;  %v8944_v51 = vpop.f32.mrf.mxu0  ;;  %v8850_v53 = vadd.f32 %v8849_v28, %v20053_v41  ;;  %v8566_v28 = vmax.f32 %v18893_v50, 0.0  ;;  %v14255_v50 = vld [vmem:[#allocation2 + $0x90] sm:$0xff] }
 0xb77   :  { %v8945_v12 = vadd.f32 %v8944_v51, %v8896_v11  ;;  %v20054_v11 = vld [vmem:[#allocation34_spill] sm:$0xff] }
 0xb78   :  { %14811 = vst [vmem:[#allocation3 + $0x38] sm:$0xff] %v14680_v55   ;;  %v9016_v10 = vmax.f32 %v8992_v47, 0.0  ;;  %v8899_v45 = vadd.f32 %v8898_v52, %v8850_v53 }
 0xb79   :  { %9345 = vmatmul.bf16.gmra.mxu1 %v20019_v60 }
 0xb7a   :  { %v9032_v15 = vmax.f32 %v8564_v19, %v9016_v10  ;;  %9394 = vmatmul.bf16.gmra.mxu3 %v20040_v61 }
 0xb7c   :  { %v9040_v1 = vmax.f32 %v18930_v3, %v9032_v15  ;;  %v8852_v15 = vadd.f32 %v8851_v25, %v20054_v11 }
 0xb7d   :  { %v8903_v14 = vpop.f32.mrf.mxu3  ;;  %v8993_v56 = vpop.f32.mrf.mxu2 }
 0xb7e   :  { %v8994_v40 = vadd.f32 %v8993_v56, %v8945_v12  ;;  %v18980_v5 = vpop.f32.mrf.mxu1  ;;  %v8947_v39 = vpop.f32.mrf.mxu0  ;;  %v14256_v12 = vld [vmem:[#allocation2 + $0x130] sm:$0xff]  ;;  %v14264_v56 = vld [vmem:[#allocation2 + $0x128] sm:$0xff] }
 0xb7f   :  { %v8948_v36 = vadd.f32 %v8947_v39, %v8899_v45  ;;  %v20055_v39 = vld [vmem:[#allocation7_spill] sm:$0xff]  ;;  %v14263_v45 = vld [vmem:[#allocation2 + $0x10] sm:$0xff] }
 0xb80   :  { %v9017_v31 = vmax.f32 %v8994_v40, 0.0  ;;  %v8901_v40 = vadd.f32 %v8900_v30, %v8852_v15  ;;  %v8567_v30 = vmax.f32 %v18898_v58, 0.0  ;;  %v14254_v15 = vld [vmem:[#allocation2 + $0x1b0] sm:$0xff] }
 0xb81   :  { %9438 = vmatmul.bf16.gmra.mxu0 %v20022_v22  ;;  %v14253_v58 = vld [vmem:[#allocation2 + $0x30] sm:$0xff] }
 0xb82   :  { %v9033_v10 = vmax.f32 %v8565_v21, %v9017_v31  ;;  %13285 = vmatmul.msk.bf16.gmra.mxu2 %vm7389_vm1, %v20023_v43 }
 0xb84   :  { %v9041_v3 = vmax.f32 %v18936_v0, %v9033_v10 }
 0xb85   :  { %v18988_v55 = vpop.f32.mrf.mxu3  ;;  %v8996_v47 = vpop.f32.mrf.mxu2 }
 0xb86   :  { %v14685_v51 = vpack.c.bf16 %v9041_v3, %v9040_v1  ;;  %v8997_v19 = vadd.f32 %v8996_v47, %v8948_v36  ;;  %v8949_v57 = vpop.f32.mrf.mxu0  ;;  %v9311_v62 = vpop.f32.mrf.mxu1 }
 0xb87   :  { %v8950_v21 = vadd.f32 %v8949_v57, %v8901_v40  ;;  %v9312_v53 = vadd.f32 %v9311_v62, %v18584_v63 }
 0xb88   :  { %14812 = vst [vmem:[#allocation3 + $0x18] sm:$0xff] %v14685_v51   ;;  %v9018_v52 = vmax.f32 %v8997_v19, 0.0  ;;  %v20056_v51 = vld [vmem:[#allocation36_spill] sm:$0xff] }
 0xb89   :  { %9762 = vmatmul.bf16.vlgmr.msrb.gmra.mxu1 %v20041_v16  ;;  %v8855_v19 = vadd.f32 %v8854_v37, %v20056_v51 }
 0xb8a   :  { %v9034_v0 = vmax.f32 %v8566_v28, %v9018_v52  ;;  %9811 = vmatmul.bf16.vlgmr.msrb.gmra.mxu3 %v20055_v39  ;;  %10698 = vmatpush.bf16.msrb.mxu1 %v14256_v12  ;;  %v20057_v52 = vld [vmem:[#allocation38_spill] sm:$0xff] }
 0xb8b   :  { %10747 = vmatpush.bf16.msrb.mxu3 %v14264_v56  ;;  %v8904_v57 = vadd.f32 %v8903_v14, %v8855_v19 }
 0xb8c   :  { %v9042_v1 = vmax.f32 %v18943_v42, %v9034_v0  ;;  %v14262_v42 = vld [vmem:[#allocation2 + $0x200] sm:$0xff] }
 0xb8d   :  { %v8998_v31 = vpop.f32.mrf.mxu2  ;;  %v9360_v25 = vpop.f32.mrf.mxu3 }
 0xb8e   :  { %v8999_v10 = vadd.f32 %v8998_v31, %v8950_v21  ;;  %v9361_v3 = vadd.f32 %v9360_v25, %v9312_v53  ;;  %10699 = vmatpush.bf16.msrb.mxu1 %v14255_v50  ;;  %v8952_v36 = vpop.f32.mrf.mxu0  ;;  %v9313_v47 = vpop.f32.mrf.mxu1  ;;  %v14261_v21 = vld [vmem:[#allocation2 + $0x218] sm:$0xff] }
 0xb8f   :  { %10748 = vmatpush.bf16.msrb.mxu3 %v14263_v45  ;;  %v8953_v56 = vadd.f32 %v8952_v36, %v8904_v57  ;;  %v9314_v40 = vadd.f32 %v9313_v47, %v18604_v23  ;;  %v8568_v45 = vmax.f32 %v18904_v59, 0.0  ;;  %v14252_v36 = vld [vmem:[#allocation2 + $0x100] sm:$0xff]  ;;  %v14260_v47 = vld [vmem:[#allocation2 + $0x228] sm:$0xff]  ;;  %v14251_v57 = vld [vmem:[#allocation2 + $0x50] sm:$0xff] }
 0xb90   :  { %v9019_v28 = vmax.f32 %v8999_v10, 0.0  ;;  %v20058_v10 = vld [vmem:[#allocation21_spill] sm:$0xff] }
 0xb91   :  { %9443 = vmatmul.bf16.gmra.mxu0 %v18595_v32 }
 0xb92   :  { %v9035_v62 = vmax.f32 %v8567_v30, %v9019_v28  ;;  %13286 = vmatmul.msk.bf16.gmra.mxu2 %vm7389_vm1, %v20057_v52  ;;  %10700 = vmatpush.bf16.msrb.mxu1 %v14254_v15  ;;  %v8857_v30 = vadd.f32 %v18980_v5, %v20058_v10  ;;  %v20059_v28 = vld [vmem:[#allocation11_spill] sm:$0xff] }
 0xb93   :  { %10749 = vmatpush.bf16.msrb.mxu3 %v14262_v42 }
 0xb94   :  { %v9043_v12 = vmax.f32 %v18948_v38, %v9035_v62  ;;  %v8906_v19 = vadd.f32 %v18988_v55, %v8857_v30  ;;  %v14278_v30 = vld [vmem:[#allocation2 + $0xa0] sm:$0xff] }
 0xb95   :  { %v9001_v0 = vpop.f32.mrf.mxu2  ;;  %v9362_v37 = vpop.f32.mrf.mxu3 }
 0xb96   :  { %v14690_v53 = vpack.c.bf16 %v9043_v12, %v9042_v1  ;;  %v9002_v50 = vadd.f32 %v9001_v0, %v8953_v56  ;;  %v9363_v31 = vadd.f32 %v9362_v37, %v9314_v40  ;;  %10701 = vmatpush.bf16.msrb.mxu1 %v14253_v58  ;;  %v8954_v14 = vpop.f32.mrf.mxu0  ;;  %v9316_v25 = vpop.f32.mrf.mxu1  ;;  %v14259_v12 = vld [vmem:[#allocation2 + $0x1d8] sm:$0xff] }
 0xb97   :  { %10750 = vmatpush.bf16.msrb.mxu3 %v14261_v21  ;;  %v8955_v42 = vadd.f32 %v8954_v14, %v8906_v19  ;;  %v9317_v59 = vadd.f32 %v9316_v25, %v18619_v13  ;;  %v20060_v37 = vld [vmem:[#allocation29_spill] sm:$0xff] }
 0xb98   :  { %14813 = vst [vmem:[#allocation3 + $0x50] sm:$0xff] %v14690_v53   ;;  %v9020_v38 = vmax.f32 %v9002_v50, 0.0  ;;  %v8569_v21 = vmax.f32 %v20060_v37, 0.0  ;;  %v14250_v50 = vld [vmem:[#allocation2 + $0x160] sm:$0xff]  ;;  %v14272_v14 = vld [vmem:[#allocation2 + $0x58] sm:$0xff] }
 0xb99   :  { %9767 = vmatmul.bf16.gmra.mxu1 %v18192_v7 }
 0xb9a   :  { %v9036_v1 = vmax.f32 %v8568_v45, %v9020_v38  ;;  %9816 = vmatmul.bf16.gmra.mxu3 %v20059_v28  ;;  %10702 = vmatpush.bf16.msrb.mxu1 %v14252_v36  ;;  %v20061_v45 = vld [vmem:[#allocation8_spill] sm:$0xff]  ;;  %v14249_v36 = vld [vmem:[#allocation2 + $0x238] sm:$0xff] }
 0xb9b   :  { %10751 = vmatpush.bf16.msrb.mxu3 %v14260_v47 }
 0xb9c   :  { %v9044_v15 = vmax.f32 %v18954_v8, %v9036_v1  ;;  %v14258_v8 = vld [vmem:[#allocation2 + $0x230] sm:$0xff]  ;;  %v14257_v1 = vld [vmem:[#allocation2 + $0x68] sm:$0xff] }
 0xb9d   :  { %v9003_v5 = vpop.f32.mrf.mxu2  ;;  %v9365_v62 = vpop.f32.mrf.mxu3 }
 0xb9e   :  { %v9004_v56 = vadd.f32 %v9003_v5, %v8955_v42  ;;  %v9366_v40 = vadd.f32 %v9365_v62, %v9317_v59  ;;  %10703 = vmatpush.bf16.msrb.mxu1 %v14251_v57  ;;  %v9318_v58 = vpop.f32.mrf.mxu1  ;;  %v9409_v0 = vpop.f32.mrf.mxu0  ;;  %v14271_v42 = vld [vmem:[#allocation2 + $0x1a0] sm:$0xff]  ;;  %v14277_v62 = vld [vmem:[#allocation2 + $0x150] sm:$0xff] }
 0xb9f   :  { %10752 = vmatpush.bf16.msrb.mxu3 %v14259_v12  ;;  %v9410_v55 = vadd.f32 %v9409_v0, %v9361_v3  ;;  %v9319_v3 = vadd.f32 %v9318_v58, %v18557_v6  ;;  %v14276_v58 = vld [vmem:[#allocation2 + $0xa8] sm:$0xff] }
 0xba0   :  { %v9021_v53 = vmax.f32 %v9004_v56, 0.0 }
 0xba1   :  { %9860 = vmatmul.bf16.vlgmr.msrb.gmra.mxu0 %v20061_v45 }
 0xba2   :  { %v9037_v25 = vmax.f32 %v8569_v21, %v9021_v53  ;;  %13407 = vmatmul.msk.bf16.vlgmr.msrb.gmra.mxu2 %vm7389_vm1, %v18221_v35  ;;  %10704 = vmatpush.bf16.msrb.mxu1 %v14250_v50  ;;  %v14269_v21 = vld [vmem:[#allocation2 + $0x168] sm:$0xff] }
 0xba3   :  { %10753 = vmatpush.bf16.msrb.mxu3 %v14258_v8  ;;  %10796 = vmatpush.bf16.msrb.mxu0 %v14272_v14  ;;  %v14275_v8 = vld [vmem:[#allocation2 + $0x148] sm:$0xff] }
 0xba4   :  { %v9045_v38 = vmax.f32 %v18960_v18, %v9037_v25  ;;  %10847 = vmatpush.bf16.msrb.mxu2 %v14278_v30  ;;  %v14270_v18 = vld [vmem:[#allocation2 + $0xc0] sm:$0xff]  ;;  %v14268_v30 = vld [vmem:[#allocation2 + $0x1d0] sm:$0xff] }
 0xba5   :  { %v9367_v47 = vpop.f32.mrf.mxu3  ;;  %v9458_v19 = vpop.f32.mrf.mxu2 }
 0xba6   :  { %v14695_v59 = vpack.c.bf16 %v9045_v38, %v9044_v15  ;;  %v9368_v57 = vadd.f32 %v9367_v47, %v9319_v3  ;;  %v19017_v5 = vadd.f32 %v9458_v19, %v9410_v55  ;;  %10705 = vmatpush.bf16.msrb.mxu1 %v14249_v36  ;;  %v9321_v12 = vpop.f32.mrf.mxu1  ;;  %v9411_v56 = vpop.f32.mrf.mxu0  ;;  %v14274_v38 = vld [vmem:[#allocation2 + $0x20] sm:$0xff]  ;;  %v14267_v19 = vld [vmem:[#allocation2 + $0x210] sm:$0xff] }
 0xba7   :  { %10754 = vmatpush.bf16.msrb.mxu3 %v14257_v1  ;;  %10797 = vmatpush.bf16.msrb.mxu0 %v14271_v42  ;;  %v9412_v0 = vadd.f32 %v9411_v56, %v9363_v31  ;;  %v9322_v15 = vadd.f32 %v9321_v12, %v18511_v26  ;;  %v14266_v56 = vld [vmem:[#allocation2 + $0x208] sm:$0xff] }
 0xba8   :  { %14814 = vst [vmem:[#allocation3 + $0x70] sm:$0xff] %v14695_v59   ;;  %10848 = vmatpush.bf16.msrb.mxu2 %v14277_v62  ;;  %v14273_v59 = vld [vmem:[#allocation2 + $0x118] sm:$0xff] }
 0xba9   :  { %9772 = vmatmul.bf16.gmra.mxu1 %v18243_v4 }
 0xbaa   :  { %9821 = vmatmul.bf16.gmra.mxu3 %v18249_v54 }
 0xbab   :  { %10798 = vmatpush.bf16.msrb.mxu0 %v14270_v18 }
 0xbac   :  { %10849 = vmatpush.bf16.msrb.mxu2 %v14276_v58 }
 0xbad   :  { %v9370_v55 = vpop.f32.mrf.mxu3  ;;  %v9460_v37 = vpop.f32.mrf.mxu2 }
 0xbae   :  { %v9371_v53 = vadd.f32 %v9370_v55, %v9322_v15  ;;  %v19022_v50 = vadd.f32 %v9460_v37, %v9412_v0  ;;  %v9323_v31 = vpop.f32.mrf.mxu1  ;;  %v9414_v14 = vpop.f32.mrf.mxu0  ;;  %v14265_v15 = vld [vmem:[#allocation2 + $0x178] sm:$0xff] }
 0xbaf   :  { %10799 = vmatpush.bf16.msrb.mxu0 %v14269_v21  ;;  %v9415_v25 = vadd.f32 %v9414_v14, %v9366_v40  ;;  %v9324_v3 = vadd.f32 %v9323_v31, %v18599_v27  ;;  %v20063_v14 = vld [vmem:[#allocation25_spill] sm:$0xff] }
 0xbb0   :  { %10850 = vmatpush.bf16.msrb.mxu2 %v14275_v8 }
 0xbb1   :  { %9865 = vmatmul.bf16.gmra.mxu0 %v18271_v24 }
 0xbb2   :  { %13408 = vmatmul.msk.bf16.gmra.mxu2 %vm7389_vm1, %v18275_v9 }
 0xbb3   :  { %10800 = vmatpush.bf16.msrb.mxu0 %v14268_v30 }
 0xbb4   :  { %10851 = vmatpush.bf16.msrb.mxu2 %v14274_v38 }
 0xbb5   :  { %v9372_v36 = vpop.f32.mrf.mxu3  ;;  %v9463_v47 = vpop.f32.mrf.mxu2 }
 0xbb6   :  { %v9373_v1 = vadd.f32 %v9372_v36, %v9324_v3  ;;  %v19028_v42 = vadd.f32 %v9463_v47, %v9415_v25  ;;  %v9326_v40 = vpop.f32.mrf.mxu1  ;;  %v9416_v62 = vpop.f32.mrf.mxu0 }
 0xbb7   :  { %10801 = vmatpush.bf16.msrb.mxu0 %v14267_v19  ;;  %v9417_v12 = vadd.f32 %v9416_v62, %v9368_v57  ;;  %v9327_v0 = vadd.f32 %v9326_v40, %v18436_v29  ;;  %v20062_v57 = vld [vmem:[#allocation27_spill] sm:$0xff]  ;;  %v20064_v40 = vld [vmem:[#allocation28_spill] sm:$0xff]  ;;  %v20065_v62 = vld [vmem:[#allocation18_spill] sm:$0xff] }
 0xbb8   :  { %10852 = vmatpush.bf16.msrb.mxu2 %v14273_v59 }
 0xbb9   :  { %9777 = vmatmul.bf16.gmra.mxu1 %v18296_v48 }
 0xbba   :  { %9826 = vmatmul.bf16.gmra.mxu3 %v18300_v20 }
 0xbbb   :  { %10802 = vmatpush.bf16.msrb.mxu0 %v14266_v56 }
 0xbbd   :  { %v9375_v18 = vpop.f32.mrf.mxu3  ;;  %v9465_v58 = vpop.f32.mrf.mxu2 }
 0xbbe   :  { %v9376_v55 = vadd.f32 %v9375_v18, %v9327_v0  ;;  %v19033_v37 = vadd.f32 %v9465_v58, %v9417_v12  ;;  %v9328_v21 = vpop.f32.mrf.mxu1  ;;  %v9419_v8 = vpop.f32.mrf.mxu0 }
 0xbbf   :  { %10803 = vmatpush.bf16.msrb.mxu0 %v14265_v15  ;;  %v9420_v31 = vadd.f32 %v9419_v8, %v9371_v53  ;;  %v9329_v25 = vadd.f32 %v9328_v21, %v20063_v14  ;;  %v20067_v8 = vld [vmem:[#allocation20_spill] sm:$0xff] }
 0xbc1   :  { %9870 = vmatmul.bf16.gmra.mxu0 %v18322_v34 }
 0xbc2   :  { %13409 = vmatmul.msk.bf16.gmra.mxu2 %vm7389_vm1, %v20062_v57 }
 0xbc5   :  { %v9377_v30 = vpop.f32.mrf.mxu3  ;;  %v9468_v38 = vpop.f32.mrf.mxu2 }
 0xbc6   :  { %v9378_v3 = vadd.f32 %v9377_v30, %v9329_v25  ;;  %v19039_v36 = vadd.f32 %v9468_v38, %v9420_v31  ;;  %v9331_v47 = vpop.f32.mrf.mxu1  ;;  %v9421_v19 = vpop.f32.mrf.mxu0  ;;  %v20068_v31 = vld [vmem:[#allocation17_spill] sm:$0xff] }
 0xbc7   :  { %v9422_v59 = vadd.f32 %v9421_v19, %v9373_v1  ;;  %v9332_v53 = vadd.f32 %v9331_v47, %v20045_v33 }
 0xbc9   :  { %9782 = vmatmul.bf16.gmra.mxu1 %v20064_v40 }
 0xbca   :  { %9831 = vmatmul.bf16.gmra.mxu3 %v20065_v62 }
 0xbcd   :  { %v9380_v12 = vpop.f32.mrf.mxu3  ;;  %v9470_v56 = vpop.f32.mrf.mxu2 }
 0xbce   :  { %v9381_v0 = vadd.f32 %v9380_v12, %v9332_v53  ;;  %v19044_v18 = vadd.f32 %v9470_v56, %v9422_v59  ;;  %v9333_v58 = vpop.f32.mrf.mxu1  ;;  %v9424_v15 = vpop.f32.mrf.mxu0  ;;  %v20069_v59 = vld [vmem:[#allocation15_spill] sm:$0xff]  ;;  %v20070_v12 = vld [vmem:[#allocation16_spill] sm:$0xff] }
 0xbcf   :  { %v9425_v21 = vadd.f32 %v9424_v15, %v9376_v55  ;;  %v9334_v1 = vadd.f32 %v9333_v58, %v20048_v49 }
 0xbd0   :  { %20066 = vst [vmem:[#allocation32_spill] sm:$0xff] %v19044_v18 }
 0xbd1   :  { %9875 = vmatmul.bf16.gmra.mxu0 %v20067_v8 }
 0xbd2   :  { %13410 = vmatmul.msk.bf16.gmra.mxu2 %vm7389_vm1, %v20068_v31 }
 0xbd5   :  { %v9382_v25 = vpop.f32.mrf.mxu3  ;;  %v9473_v30 = vpop.f32.mrf.mxu2 }
 0xbd6   :  { %v9383_v38 = vadd.f32 %v9382_v25, %v9334_v1  ;;  %v19050_v19 = vadd.f32 %v9473_v30, %v9425_v21  ;;  %v9336_v47 = vpop.f32.mrf.mxu1  ;;  %v9426_v33 = vpop.f32.mrf.mxu0  ;;  %v20071_v1 = vld [vmem:[#allocation22_spill] sm:$0xff]  ;;  %v20072_v21 = vld [vmem:[#allocation19_spill] sm:$0xff] }
 0xbd7   :  { %v9427_v53 = vadd.f32 %v9426_v33, %v9378_v3  ;;  %v9337_v55 = vadd.f32 %v9336_v47, %v20049_v44 }
 0xbd9   :  { %9787 = vmatmul.bf16.gmra.mxu1 %v20069_v59 }
 0xbda   :  { %9836 = vmatmul.bf16.gmra.mxu3 %v20070_v12 }
 0xbdd   :  { %v9385_v56 = vpop.f32.mrf.mxu3  ;;  %v9475_v15 = vpop.f32.mrf.mxu2 }
 0xbde   :  { %v9386_v8 = vadd.f32 %v9385_v56, %v9337_v55  ;;  %v19055_v31 = vadd.f32 %v9475_v15, %v9427_v53  ;;  %v9338_v58 = vpop.f32.mrf.mxu1  ;;  %v9429_v49 = vpop.f32.mrf.mxu0  ;;  %v20073_v53 = vld [vmem:[#allocation14_spill] sm:$0xff] }
 0xbdf   :  { %v9430_v18 = vadd.f32 %v9429_v49, %v9381_v0  ;;  %v9339_v33 = vadd.f32 %v9338_v58, %v20052_v17 }
 0xbe1   :  { %9880 = vmatmul.bf16.gmra.mxu0 %v20071_v1 }
 0xbe2   :  { %13411 = vmatmul.msk.bf16.gmra.mxu2 %vm7389_vm1, %v20072_v21 }
 0xbe5   :  { %v9387_v3 = vpop.f32.mrf.mxu3  ;;  %v9478_v25 = vpop.f32.mrf.mxu2 }
 0xbe6   :  { %v9388_v30 = vadd.f32 %v9387_v3, %v9339_v33  ;;  %v19061_v12 = vadd.f32 %v9478_v25, %v9430_v18  ;;  %v9341_v47 = vpop.f32.mrf.mxu1  ;;  %v9431_v44 = vpop.f32.mrf.mxu0  ;;  %v20074_v33 = vld [vmem:[#allocation23_spill] sm:$0xff] }
 0xbe7   :  { %v9432_v55 = vadd.f32 %v9431_v44, %v9383_v38  ;;  %v9342_v49 = vadd.f32 %v9341_v47, %v20053_v41 }
 0xbe9   :  { %9792 = vmatmul.bf16.gmra.mxu1 %v20073_v53 }
 0xbea   :  { %9841 = vmatmul.bf16.gmra.mxu3 %v20004_v46 }
 0xbed   :  { %v9390_v0 = vpop.f32.mrf.mxu3  ;;  %v9480_v56 = vpop.f32.mrf.mxu2 }
 0xbee   :  { %v9391_v15 = vadd.f32 %v9390_v0, %v9342_v49  ;;  %v19066_v21 = vadd.f32 %v9480_v56, %v9432_v55  ;;  %v9343_v58 = vpop.f32.mrf.mxu1  ;;  %v9434_v17 = vpop.f32.mrf.mxu0 }
 0xbef   :  { %v9435_v1 = vadd.f32 %v9434_v17, %v9386_v8  ;;  %v9344_v44 = vadd.f32 %v9343_v58, %v20054_v11 }
 0xbf1   :  { %9885 = vmatmul.bf16.gmra.mxu0 %v20074_v33 }
 0xbf2   :  { %13412 = vmatmul.msk.bf16.gmra.mxu2 %vm7389_vm1, %v20051_v2 }
 0xbf5   :  { %v9392_v18 = vpop.f32.mrf.mxu3  ;;  %v9483_v38 = vpop.f32.mrf.mxu2 }
 0xbf6   :  { %v9393_v3 = vadd.f32 %v9392_v18, %v9344_v44  ;;  %v19072_v25 = vadd.f32 %v9483_v38, %v9435_v1  ;;  %v9346_v47 = vpop.f32.mrf.mxu1  ;;  %v9436_v41 = vpop.f32.mrf.mxu0 }
 0xbf7   :  { %v9437_v49 = vadd.f32 %v9436_v41, %v9388_v30  ;;  %v9347_v17 = vadd.f32 %v9346_v47, %v20056_v51 }
 0xbf9   :  { %9797 = vmatmul.bf16.gmra.mxu1 %v20019_v60 }
 0xbfa   :  { %9846 = vmatmul.bf16.gmra.mxu3 %v20040_v61 }
 0xbfd   :  { %v9395_v8 = vpop.f32.mrf.mxu3  ;;  %v9485_v55 = vpop.f32.mrf.mxu2 }
 0xbfe   :  { %v9396_v0 = vadd.f32 %v9395_v8, %v9347_v17  ;;  %v19077_v56 = vadd.f32 %v9485_v55, %v9437_v49  ;;  %v9348_v58 = vpop.f32.mrf.mxu1  ;;  %v9439_v11 = vpop.f32.mrf.mxu0  ;;  %v14288_v49 = vld [vmem:[#allocation3 + $0x70] sm:$0xff] }
 0xbff   :  { %v9440_v2 = vadd.f32 %v9439_v11, %v9391_v15  ;;  %v9349_v41 = vadd.f32 %v9348_v58, %v20058_v10  ;;  %v14287_v15 = vld [vmem:[#allocation3 + $0x50] sm:$0xff] }
 0xc01   :  { %9890 = vmatmul.bf16.gmra.mxu0 %v20022_v22 }
 0xc02   :  { %13413 = vmatmul.msk.bf16.gmra.mxu2 %vm7389_vm1, %v20023_v43 }
 0xc05   :  { %v9397_v1 = vpop.f32.mrf.mxu3  ;;  %v9488_v30 = vpop.f32.mrf.mxu2 }
 0xc06   :  { %v9398_v44 = vadd.f32 %v9397_v1, %v9349_v41  ;;  %v19083_v18 = vadd.f32 %v9488_v30, %v9440_v2  ;;  %v9441_v38 = vpop.f32.mrf.mxu0  ;;  %v9763_v47 = vpop.f32.mrf.mxu1  ;;  %v14286_v30 = vld [vmem:[#allocation3 + $0x18] sm:$0xff] }
 0xc07   :  { %v9442_v17 = vadd.f32 %v9441_v38, %v9393_v3  ;;  %v9764_v11 = vadd.f32 %v9763_v47, %v18584_v63  ;;  %v14285_v38 = vld [vmem:[#allocation3 + $0x38] sm:$0xff] }
 0xc09   :  { %10254 = vmatmul.bf16.vlgmr.msra.gmra.mxu1 %v20041_v16 }
 0xc0a   :  { %10303 = vmatmul.bf16.vlgmr.msra.gmra.mxu3 %v20055_v39  ;;  %11102 = vmatpush.bf16.msra.mxu1 %v14288_v49 }
 0xc0d   :  { %v9490_v8 = vpop.f32.mrf.mxu2  ;;  %v9812_v55 = vpop.f32.mrf.mxu3 }
 0xc0e   :  { %v19088_v58 = vadd.f32 %v9490_v8, %v9442_v17  ;;  %v9813_v10 = vadd.f32 %v9812_v55, %v9764_v11  ;;  %11103 = vmatpush.bf16.msra.mxu1 %v14287_v15  ;;  %v9444_v2 = vpop.f32.mrf.mxu0  ;;  %v9765_v41 = vpop.f32.mrf.mxu1 }
 0xc0f   :  { %v9445_v1 = vadd.f32 %v9444_v2, %v9396_v0  ;;  %v9766_v3 = vadd.f32 %v9765_v41, %v18604_v23  ;;  %v14284_v0 = vld [vmem:[#allocation3 + $0x30] sm:$0xff] }
 0xc10   :  { %v14283_v2 = vld [vmem:[#allocation3 + $0x10] sm:$0xff] }
 0xc11   :  { %9895 = vmatmul.bf16.gmra.mxu0 %v18595_v32 }
 0xc12   :  { %13414 = vmatmul.msk.bf16.gmra.mxu2 %vm7389_vm1, %v20057_v52  ;;  %11104 = vmatpush.bf16.msra.mxu1 %v14286_v30 }
 0xc15   :  { %v9493_v47 = vpop.f32.mrf.mxu2  ;;  %v9814_v49 = vpop.f32.mrf.mxu3 }
 0xc16   :  { %v19094_v51 = vadd.f32 %v9493_v47, %v9445_v1  ;;  %v9815_v17 = vadd.f32 %v9814_v49, %v9766_v3  ;;  %11105 = vmatpush.bf16.msra.mxu1 %v14285_v38  ;;  %v9446_v11 = vpop.f32.mrf.mxu0  ;;  %v9768_v15 = vpop.f32.mrf.mxu1  ;;  %v14282_v49 = vld [vmem:[#allocation3] sm:$0xff] }
 0xc17   :  { %v9447_v8 = vadd.f32 %v9446_v11, %v9398_v44  ;;  %v9769_v55 = vadd.f32 %v9768_v15, %v18619_v13  ;;  %v14281_v11 = vld [vmem:[#allocation3 + $0x68] sm:$0xff] }
 0xc19   :  { %10259 = vmatmul.bf16.gmra.mxu1 %v18192_v7 }
 0xc1a   :  { %10308 = vmatmul.bf16.gmra.mxu3 %v20059_v28  ;;  %11106 = vmatpush.bf16.msra.mxu1 %v14284_v0 }
 0xc1d   :  { %v9495_v41 = vpop.f32.mrf.mxu2  ;;  %v9817_v30 = vpop.f32.mrf.mxu3 }
 0xc1e   :  { %v19099_v23 = vadd.f32 %v9495_v41, %v9447_v8  ;;  %v9818_v1 = vadd.f32 %v9817_v30, %v9769_v55  ;;  %11107 = vmatpush.bf16.msra.mxu1 %v14283_v2  ;;  %v9770_v3 = vpop.f32.mrf.mxu1  ;;  %v9861_v38 = vpop.f32.mrf.mxu0 }
 0xc1f   :  { %v9862_v47 = vadd.f32 %v9861_v38, %v9813_v10  ;;  %v9771_v44 = vadd.f32 %v9770_v3, %v18557_v6  ;;  %v9498_v10 = vmax.f32 %v19017_v5, 0.0 }
 0xc21   :  { %10352 = vmatmul.bf16.vlgmr.msra.gmra.mxu0 %v20061_v45 }
 0xc22   :  { %13535 = vmatmul.msk.bf16.vlgmr.msra.gmra.mxu2 %vm7389_vm1, %v18221_v35  ;;  %11108 = vmatpush.bf16.msra.mxu1 %v14282_v49 }
 0xc25   :  { %v9819_v15 = vpop.f32.mrf.mxu3  ;;  %v9910_v0 = vpop.f32.mrf.mxu2 }
 0xc26   :  { %v9820_v13 = vadd.f32 %v9819_v15, %v9771_v44  ;;  %v9911_v8 = vadd.f32 %v9910_v0, %v9862_v47  ;;  %11109 = vmatpush.bf16.msra.mxu1 %v14281_v11  ;;  %v9773_v55 = vpop.f32.mrf.mxu1  ;;  %v9863_v2 = vpop.f32.mrf.mxu0 }
 0xc27   :  { %v9864_v41 = vadd.f32 %v9863_v2, %v9815_v17  ;;  %v9774_v3 = vadd.f32 %v9773_v55, %v18511_v26  ;;  %v9499_v17 = vmax.f32 %v19022_v50, 0.0 }
 0xc28   :  { %v9950_v30 = vmax.f32 %v9911_v8, 0.0 }
 0xc29   :  { %10264 = vmatmul.bf16.gmra.mxu1 %v18243_v4 }
 0xc2a   :  { %v19107_v38 = vmax.f32 %v9498_v10, %v9950_v30  ;;  %10313 = vmatmul.bf16.gmra.mxu3 %v18249_v54 }
 0xc2d   :  { %v9822_v49 = vpop.f32.mrf.mxu3  ;;  %v9912_v6 = vpop.f32.mrf.mxu2 }
 0xc2e   :  { %v9823_v35 = vadd.f32 %v9822_v49, %v9774_v3  ;;  %v9913_v44 = vadd.f32 %v9912_v6, %v9864_v41  ;;  %v9775_v47 = vpop.f32.mrf.mxu1  ;;  %v9866_v11 = vpop.f32.mrf.mxu0 }
 0xc2f   :  { %v9867_v15 = vadd.f32 %v9866_v11, %v9818_v1  ;;  %v9776_v8 = vadd.f32 %v9775_v47, %v18599_v27  ;;  %v9500_v1 = vmax.f32 %v19028_v42, 0.0 }
 0xc30   :  { %v9951_v0 = vmax.f32 %v9913_v44, 0.0 }
 0xc31   :  { %10357 = vmatmul.bf16.gmra.mxu0 %v18271_v24 }
 0xc32   :  { %v19113_v5 = vmax.f32 %v9499_v17, %v9951_v0  ;;  %13536 = vmatmul.msk.bf16.gmra.mxu2 %vm7389_vm1, %v18275_v9 }
 0xc35   :  { %v9824_v55 = vpop.f32.mrf.mxu3  ;;  %v9915_v2 = vpop.f32.mrf.mxu2 }
 0xc36   :  { %v9825_v10 = vadd.f32 %v9824_v55, %v9776_v8  ;;  %v9916_v30 = vadd.f32 %v9915_v2, %v9867_v15  ;;  %v9778_v6 = vpop.f32.mrf.mxu1  ;;  %v9868_v41 = vpop.f32.mrf.mxu0 }
 0xc37   :  { %v9869_v3 = vadd.f32 %v9868_v41, %v9820_v13  ;;  %v9779_v44 = vadd.f32 %v9778_v6, %v18436_v29  ;;  %v9501_v13 = vmax.f32 %v19033_v37, 0.0 }
 0xc38   :  { %v9952_v50 = vmax.f32 %v9916_v30, 0.0 }
 0xc39   :  { %10269 = vmatmul.bf16.gmra.mxu1 %v18296_v48 }
 0xc3a   :  { %v19120_v49 = vmax.f32 %v9500_v1, %v9952_v50  ;;  %10318 = vmatmul.bf16.gmra.mxu3 %v18300_v20 }
 0xc3d   :  { %v9827_v11 = vpop.f32.mrf.mxu3  ;;  %v9917_v47 = vpop.f32.mrf.mxu2 }
 0xc3e   :  { %v9828_v17 = vadd.f32 %v9827_v11, %v9779_v44  ;;  %v9918_v0 = vadd.f32 %v9917_v47, %v9869_v3  ;;  %v9780_v8 = vpop.f32.mrf.mxu1  ;;  %v9871_v15 = vpop.f32.mrf.mxu0 }
 0xc3f   :  { %v9872_v55 = vadd.f32 %v9871_v15, %v9823_v35  ;;  %v9781_v30 = vadd.f32 %v9780_v8, %v20063_v14  ;;  %v9502_v35 = vmax.f32 %v19039_v36, 0.0  ;;  %v20077_v36 = vld [vmem:[#allocation17_spill] sm:$0xff] }
 0xc40   :  { %v9953_v2 = vmax.f32 %v9918_v0, 0.0 }
 0xc41   :  { %10362 = vmatmul.bf16.gmra.mxu0 %v18322_v34  ;;  %v9506_v34 = vmax.f32 %v19061_v12, 0.0  ;;  %v20083_v12 = vld [vmem:[#allocation37_spill] sm:$0xff] }
 0xc42   :  { %v19126_v42 = vmax.f32 %v9501_v13, %v9953_v2  ;;  %13537 = vmatmul.msk.bf16.gmra.mxu2 %vm7389_vm1, %v20062_v57 }
 0xc45   :  { %v9829_v6 = vpop.f32.mrf.mxu3  ;;  %v9920_v41 = vpop.f32.mrf.mxu2 }
 0xc46   :  { %v9830_v1 = vadd.f32 %v9829_v6, %v9781_v30  ;;  %v9921_v50 = vadd.f32 %v9920_v41, %v9872_v55  ;;  %v9783_v3 = vpop.f32.mrf.mxu1  ;;  %v9873_v44 = vpop.f32.mrf.mxu0  ;;  %v20075_v30 = vld [vmem:[#allocation32_spill] sm:$0xff] }
 0xc47   :  { %v9874_v11 = vadd.f32 %v9873_v44, %v9825_v10  ;;  %v9503_v55 = vmax.f32 %v20075_v30, 0.0  ;;  %v20076_v41 = vld [vmem:[#allocation20_spill] sm:$0xff] }
 0xc48   :  { %v9954_v37 = vmax.f32 %v9921_v50, 0.0 }
 0xc49   :  { %10274 = vmatmul.bf16.gmra.mxu1 %v20064_v40 }
 0xc4a   :  { %v19133_v47 = vmax.f32 %v9502_v35, %v9954_v37  ;;  %10323 = vmatmul.bf16.gmra.mxu3 %v20065_v62 }
 0xc4d   :  { %v9832_v0 = vpop.f32.mrf.mxu3  ;;  %v9922_v15 = vpop.f32.mrf.mxu2 }
 0xc4e   :  { %v9923_v13 = vadd.f32 %v9922_v15, %v9874_v11  ;;  %v9785_v8 = vpop.f32.mrf.mxu1  ;;  %v9876_v2 = vpop.f32.mrf.mxu0  ;;  %v9504_v11 = vmax.f32 %v19050_v19, 0.0 }
 0xc4f   :  { %v9877_v14 = vadd.f32 %v9876_v2, %v9828_v17 }
 0xc50   :  { %v9955_v6 = vmax.f32 %v9923_v13, 0.0  ;;  %v20078_v13 = vld [vmem:[#allocation16_spill] sm:$0xff] }
 0xc51   :  { %10367 = vmatmul.bf16.gmra.mxu0 %v20076_v41  ;;  %v9505_v41 = vmax.f32 %v19055_v31, 0.0  ;;  %v20082_v31 = vld [vmem:[#allocation43_spill] sm:$0xff] }
 0xc52   :  { %v19138_v10 = vmax.f32 %v9503_v55, %v9955_v6  ;;  %13538 = vmatmul.msk.bf16.gmra.mxu2 %vm7389_vm1, %v20077_v36  ;;  %v9786_v29 = vadd.f32 %v9785_v8, %v20082_v31 }
 0xc55   :  { %v9834_v50 = vpop.f32.mrf.mxu3  ;;  %v9925_v44 = vpop.f32.mrf.mxu2 }
 0xc56   :  { %v9926_v35 = vadd.f32 %v9925_v44, %v9877_v14  ;;  %v9788_v37 = vpop.f32.mrf.mxu1  ;;  %v9878_v62 = vpop.f32.mrf.mxu0  ;;  %v20079_v14 = vld [vmem:[#allocation42_spill] sm:$0xff] }
 0xc57   :  { %v9879_v40 = vadd.f32 %v9878_v62, %v9830_v1  ;;  %v9784_v44 = vadd.f32 %v9783_v3, %v20079_v14  ;;  %v20080_v62 = vld [vmem:[#allocation22_spill] sm:$0xff] }
 0xc58   :  { %v9956_v15 = vmax.f32 %v9926_v35, 0.0  ;;  %v20081_v35 = vld [vmem:[#allocation19_spill] sm:$0xff] }
 0xc59   :  { %10279 = vmatmul.bf16.gmra.mxu1 %v20069_v59  ;;  %v9833_v19 = vadd.f32 %v9832_v0, %v9784_v44 }
 0xc5a   :  { %v19144_v17 = vmax.f32 %v9504_v11, %v9956_v15  ;;  %10328 = vmatmul.bf16.gmra.mxu3 %v20078_v13 }
 0xc5d   :  { %v9837_v2 = vpop.f32.mrf.mxu3  ;;  %v9927_v30 = vpop.f32.mrf.mxu2 }
 0xc5e   :  { %v9928_v55 = vadd.f32 %v9927_v30, %v9879_v40  ;;  %v9790_v6 = vpop.f32.mrf.mxu1  ;;  %v9881_v36 = vpop.f32.mrf.mxu0 }
 0xc5f   :  { %v9882_v11 = vadd.f32 %v9881_v36, %v9833_v19 }
 0xc60   :  { %v9957_v57 = vmax.f32 %v9928_v55, 0.0  ;;  %v9835_v55 = vadd.f32 %v9834_v50, %v9786_v29 }
 0xc61   :  { %10372 = vmatmul.bf16.gmra.mxu0 %v20080_v62  ;;  %v9789_v62 = vadd.f32 %v9788_v37, %v20083_v12  ;;  %v20085_v37 = vld [vmem:[#allocation41_spill] sm:$0xff] }
 0xc62   :  { %v19150_v1 = vmax.f32 %v9505_v41, %v9957_v57  ;;  %13539 = vmatmul.msk.bf16.gmra.mxu2 %vm7389_vm1, %v20081_v35  ;;  %v9507_v35 = vmax.f32 %v19066_v21, 0.0  ;;  %v9508_v21 = vmax.f32 %v19072_v25, 0.0  ;;  %v9509_v25 = vmax.f32 %v19077_v56, 0.0 }
 0xc63   :  { %v9510_v56 = vmax.f32 %v19083_v18, 0.0 }
 0xc65   :  { %v9839_v15 = vpop.f32.mrf.mxu3  ;;  %v9930_v13 = vpop.f32.mrf.mxu2 }
 0xc66   :  { %v9931_v59 = vadd.f32 %v9930_v13, %v9882_v11  ;;  %v9793_v40 = vpop.f32.mrf.mxu1  ;;  %v9883_v30 = vpop.f32.mrf.mxu0 }
 0xc67   :  { %v9884_v41 = vadd.f32 %v9883_v30, %v9835_v55 }
 0xc68   :  { %v9958_v3 = vmax.f32 %v9931_v59, 0.0  ;;  %v9838_v59 = vadd.f32 %v9837_v2, %v9789_v62 }
 0xc69   :  { %10284 = vmatmul.bf16.gmra.mxu1 %v20073_v53 }
 0xc6a   :  { %v9974_v0 = vmax.f32 %v9506_v34, %v9958_v3  ;;  %10333 = vmatmul.bf16.gmra.mxu3 %v20004_v46  ;;  %v20084_v34 = vld [vmem:[#allocation26_spill] sm:$0xff] }
 0xc6c   :  { %v9982_v57 = vmax.f32 %v19107_v38, %v9974_v0 }
 0xc6d   :  { %v9842_v36 = vpop.f32.mrf.mxu3  ;;  %v9932_v44 = vpop.f32.mrf.mxu2 }
 0xc6e   :  { %v9933_v19 = vadd.f32 %v9932_v44, %v9884_v41  ;;  %v9795_v13 = vpop.f32.mrf.mxu1  ;;  %v9886_v11 = vpop.f32.mrf.mxu0 }
 0xc6f   :  { %v9887_v50 = vadd.f32 %v9886_v11, %v9838_v59 }
 0xc70   :  { %v9959_v8 = vmax.f32 %v9933_v19, 0.0  ;;  %v9791_v19 = vadd.f32 %v9790_v6, %v20085_v37 }
 0xc71   :  { %10377 = vmatmul.bf16.gmra.mxu0 %v20074_v33 }
 0xc72   :  { %v9975_v29 = vmax.f32 %v9507_v35, %v9959_v8  ;;  %13540 = vmatmul.msk.bf16.gmra.mxu2 %vm7389_vm1, %v20084_v34  ;;  %v9840_v2 = vadd.f32 %v9839_v15, %v9791_v19 }
 0xc74   :  { %v9983_v38 = vmax.f32 %v19113_v5, %v9975_v29 }
 0xc75   :  { %v9844_v30 = vpop.f32.mrf.mxu3  ;;  %v9935_v3 = vpop.f32.mrf.mxu2 }
 0xc76   :  { %v14700_v55 = vpack.c.bf16 %v9983_v38, %v9982_v57  ;;  %v9936_v0 = vadd.f32 %v9935_v3, %v9887_v50  ;;  %v9798_v41 = vpop.f32.mrf.mxu1  ;;  %v9888_v44 = vpop.f32.mrf.mxu0  ;;  %v20086_v38 = vld [vmem:[#allocation31_spill] sm:$0xff] }
 0xc77   :  { %v9889_v35 = vadd.f32 %v9888_v44, %v9840_v2  ;;  %v9794_v6 = vadd.f32 %v9793_v40, %v20086_v38  ;;  %v20087_v40 = vld [vmem:[#allocation34_spill] sm:$0xff] }
 0xc78   :  { %14815 = vst [vmem:[#allocation3 + $0x8] sm:$0xff] %v14700_v55   ;;  %v9960_v33 = vmax.f32 %v9936_v0, 0.0 }
 0xc79   :  { %10289 = vmatmul.bf16.gmra.mxu1 %v20019_v60  ;;  %v9843_v3 = vadd.f32 %v9842_v36, %v9794_v6 }
 0xc7a   :  { %v9976_v62 = vmax.f32 %v9508_v21, %v9960_v33  ;;  %10338 = vmatmul.bf16.gmra.mxu3 %v20040_v61 }
 0xc7c   :  { %v9984_v5 = vmax.f32 %v19120_v49, %v9976_v62  ;;  %v9796_v62 = vadd.f32 %v9795_v13, %v20087_v40  ;;  %v9511_v13 = vmax.f32 %v19088_v58, 0.0 }
 0xc7d   :  { %v9847_v11 = vpop.f32.mrf.mxu3  ;;  %v9937_v57 = vpop.f32.mrf.mxu2 }
 0xc7e   :  { %v9938_v8 = vadd.f32 %v9937_v57, %v9889_v35  ;;  %v9800_v59 = vpop.f32.mrf.mxu1  ;;  %v9891_v29 = vpop.f32.mrf.mxu0  ;;  %v9845_v36 = vadd.f32 %v9844_v30, %v9796_v62 }
 0xc7f   :  { %v9892_v49 = vadd.f32 %v9891_v29, %v9843_v3 }
 0xc80   :  { %v9961_v50 = vmax.f32 %v9938_v8, 0.0 }
 0xc81   :  { %10382 = vmatmul.bf16.gmra.mxu0 %v20022_v22 }
 0xc82   :  { %v9977_v15 = vmax.f32 %v9509_v25, %v9961_v50  ;;  %13541 = vmatmul.msk.bf16.gmra.mxu2 %vm7389_vm1, %v20023_v43 }
 0xc84   :  { %v9985_v33 = vmax.f32 %v19126_v42, %v9977_v15  ;;  %v20088_v15 = vld [vmem:[#allocation36_spill] sm:$0xff] }
 0xc85   :  { %v9849_v55 = vpop.f32.mrf.mxu3  ;;  %v9940_v0 = vpop.f32.mrf.mxu2 }
 0xc86   :  { %v14705_v44 = vpack.c.bf16 %v9985_v33, %v9984_v5  ;;  %v9941_v21 = vadd.f32 %v9940_v0, %v9892_v49  ;;  %v9893_v19 = vpop.f32.mrf.mxu0  ;;  %v10255_v2 = vpop.f32.mrf.mxu1  ;;  %v9799_v33 = vadd.f32 %v9798_v41, %v20088_v15  ;;  %v20089_v0 = vld [vmem:[#allocation39_spill] sm:$0xff] }
 0xc87   :  { %v9894_v8 = vadd.f32 %v9893_v19, %v9845_v36  ;;  %v10256_v5 = vadd.f32 %v10255_v2, %v18584_v63  ;;  %v20090_v36 = vld [vmem:[#allocation21_spill] sm:$0xff] }
 0xc88   :  { %14816 = vst [vmem:[#allocation3 + $0x58] sm:$0xff] %v14705_v44   ;;  %v9962_v35 = vmax.f32 %v9941_v21, 0.0  ;;  %v9848_v30 = vadd.f32 %v9847_v11, %v9799_v33  ;;  %v9801_v11 = vadd.f32 %v9800_v59, %v20090_v36 }
 0xc89   :  { %10706 = vmatmul.bf16.vlgmr.msrb.gmra.mxu1 %v20041_v16 }
 0xc8a   :  { %v9978_v57 = vmax.f32 %v9510_v56, %v9962_v35  ;;  %10755 = vmatmul.bf16.vlgmr.msrb.gmra.mxu3 %v20055_v39  ;;  %v9512_v35 = vmax.f32 %v19094_v51, 0.0 }
 0xc8c   :  { %v9986_v42 = vmax.f32 %v19133_v47, %v9978_v57 }
 0xc8d   :  { %v9942_v29 = vpop.f32.mrf.mxu2  ;;  %v10304_v25 = vpop.f32.mrf.mxu3 }
 0xc8e   :  { %v9943_v6 = vadd.f32 %v9942_v29, %v9894_v8  ;;  %v10305_v50 = vadd.f32 %v10304_v25, %v10256_v5  ;;  %v9896_v18 = vpop.f32.mrf.mxu0  ;;  %v10257_v3 = vpop.f32.mrf.mxu1  ;;  %v9850_v8 = vadd.f32 %v9849_v55, %v9801_v11  ;;  %v20092_v55 = vld [vmem:[#allocation12_spill] sm:$0xff] }
 0xc8f   :  { %v9897_v49 = vadd.f32 %v9896_v18, %v9848_v30  ;;  %v10258_v44 = vadd.f32 %v10257_v3, %v20089_v0 }
 0xc90   :  { %v9963_v16 = vmax.f32 %v9943_v6, 0.0 }
 0xc91   :  { %10387 = vmatmul.bf16.gmra.mxu0 %v18595_v32 }
 0xc92   :  { %v9979_v39 = vmax.f32 %v9511_v13, %v9963_v16  ;;  %13542 = vmatmul.msk.bf16.gmra.mxu2 %vm7389_vm1, %v20057_v52  ;;  %v9513_v16 = vmax.f32 %v19099_v23, 0.0 }
 0xc94   :  { %v9987_v47 = vmax.f32 %v19138_v10, %v9979_v39 }
 0xc95   :  { %v9945_v21 = vpop.f32.mrf.mxu2  ;;  %v10306_v19 = vpop.f32.mrf.mxu3 }
 0xc96   :  { %v14710_v2 = vpack.c.bf16 %v9987_v47, %v9986_v42  ;;  %v9946_v56 = vadd.f32 %v9945_v21, %v9897_v49  ;;  %v10307_v58 = vadd.f32 %v10306_v19, %v10258_v44  ;;  %v9898_v62 = vpop.f32.mrf.mxu0  ;;  %v10260_v41 = vpop.f32.mrf.mxu1  ;;  %v20091_v42 = vld [vmem:[#allocation40_spill] sm:$0xff] }
 0xc97   :  { %v9899_v29 = vadd.f32 %v9898_v62, %v9850_v8  ;;  %v10261_v25 = vadd.f32 %v10260_v41, %v20091_v42 }
 0xc98   :  { %14817 = vst [vmem:[#allocation3 + $0x40] sm:$0xff] %v14710_v2   ;;  %v9964_v57 = vmax.f32 %v9946_v56, 0.0 }
 0xc99   :  { %10711 = vmatmul.bf16.gmra.mxu1 %v18192_v7 }
 0xc9a   :  { %v9980_v10 = vmax.f32 %v9512_v35, %v9964_v57  ;;  %10760 = vmatmul.bf16.gmra.mxu3 %v20059_v28 }
 0xc9c   :  { %v9988_v5 = vmax.f32 %v19144_v17, %v9980_v10  ;;  %v20093_v17 = vld [vmem:[#allocation35_spill] sm:$0xff] }
 0xc9d   :  { %v9947_v6 = vpop.f32.mrf.mxu2  ;;  %v10309_v18 = vpop.f32.mrf.mxu3 }
 0xc9e   :  { %v9948_v3 = vadd.f32 %v9947_v6, %v9899_v29  ;;  %v10310_v13 = vadd.f32 %v10309_v18, %v10261_v25  ;;  %v10262_v51 = vpop.f32.mrf.mxu1  ;;  %v10353_v33 = vpop.f32.mrf.mxu0  ;;  %v20094_v6 = vld [vmem:[#allocation13_spill] sm:$0xff] }
 0xc9f   :  { %v10354_v59 = vadd.f32 %v10353_v33, %v10305_v50  ;;  %v10263_v39 = vadd.f32 %v10262_v51, %v20093_v17 }
 0xca0   :  { %v9965_v30 = vmax.f32 %v9948_v3, 0.0 }
 0xca1   :  { %10804 = vmatmul.bf16.vlgmr.msrb.gmra.mxu0 %v20061_v45 }
 0xca2   :  { %v9981_v7 = vmax.f32 %v9513_v16, %v9965_v30  ;;  %13663 = vmatmul.msk.bf16.vlgmr.msrb.gmra.mxu2 %vm7389_vm1, %v20092_v55  ;;  %v20095_v16 = vld [vmem:[#allocation10_spill] sm:$0xff]  ;;  %v20096_v30 = vld [vmem:[#allocation27_spill] sm:$0xff] }
 0xca4   :  { %v9989_v28 = vmax.f32 %v19150_v1, %v9981_v7  ;;  %v20097_v7 = vld [vmem:[#allocation25_spill] sm:$0xff] }
 0xca5   :  { %v10311_v47 = vpop.f32.mrf.mxu3  ;;  %v10402_v49 = vpop.f32.mrf.mxu2 }
 0xca6   :  { %v14715_v44 = vpack.c.bf16 %v9989_v28, %v9988_v5  ;;  %v10312_v21 = vadd.f32 %v10311_v47, %v10263_v39  ;;  %v19201_v19 = vadd.f32 %v10402_v49, %v10354_v59  ;;  %v10265_v50 = vpop.f32.mrf.mxu1  ;;  %v10355_v2 = vpop.f32.mrf.mxu0 }
 0xca7   :  { %v10356_v23 = vadd.f32 %v10355_v2, %v10307_v58  ;;  %v10266_v45 = vadd.f32 %v10265_v50, %v18511_v26  ;;  %v20099_v50 = vld [vmem:[#allocation18_spill] sm:$0xff] }
 0xca8   :  { %14818 = vst [vmem:[#allocation3 + $0x28] sm:$0xff] %v14715_v44  }
 0xca9   :  { %10716 = vmatmul.bf16.gmra.mxu1 %v18243_v4 }
 0xcaa   :  { %10765 = vmatmul.bf16.gmra.mxu3 %v18249_v54 }
 0xcad   :  { %v10314_v56 = vpop.f32.mrf.mxu3  ;;  %v10404_v1 = vpop.f32.mrf.mxu2 }
 0xcae   :  { %v10315_v62 = vadd.f32 %v10314_v56, %v10266_v45  ;;  %v19206_v41 = vadd.f32 %v10404_v1, %v10356_v23  ;;  %v10267_v35 = vpop.f32.mrf.mxu1  ;;  %v10358_v11 = vpop.f32.mrf.mxu0 }
 0xcaf   :  { %v10359_v57 = vadd.f32 %v10358_v11, %v10310_v13  ;;  %v10268_v58 = vadd.f32 %v10267_v35, %v18599_v27 }
 0xcb1   :  { %10809 = vmatmul.bf16.gmra.mxu0 %v18271_v24 }
 0xcb2   :  { %13664 = vmatmul.msk.bf16.gmra.mxu2 %vm7389_vm1, %v18275_v9 }
 0xcb5   :  { %v10316_v4 = vpop.f32.mrf.mxu3  ;;  %v10407_v8 = vpop.f32.mrf.mxu2 }
 0xcb6   :  { %v10317_v54 = vadd.f32 %v10316_v4, %v10268_v58  ;;  %v19212_v10 = vadd.f32 %v10407_v8, %v10359_v57  ;;  %v10270_v5 = vpop.f32.mrf.mxu1  ;;  %v10360_v29 = vpop.f32.mrf.mxu0  ;;  %v20100_v57 = vld [vmem:[#allocation20_spill] sm:$0xff]  ;;  %v20101_v58 = vld [vmem:[#allocation17_spill] sm:$0xff] }
 0xcb7   :  { %v10361_v25 = vadd.f32 %v10360_v29, %v10312_v21  ;;  %v10271_v18 = vadd.f32 %v10270_v5, %v20094_v6  ;;  %v20098_v21 = vld [vmem:[#allocation28_spill] sm:$0xff] }
 0xcb9   :  { %10721 = vmatmul.bf16.gmra.mxu1 %v18296_v48 }
 0xcba   :  { %10770 = vmatmul.bf16.gmra.mxu3 %v18300_v20 }
 0xcbd   :  { %v10319_v24 = vpop.f32.mrf.mxu3  ;;  %v10409_v3 = vpop.f32.mrf.mxu2 }
 0xcbe   :  { %v10320_v13 = vadd.f32 %v10319_v24, %v10271_v18  ;;  %v19217_v9 = vadd.f32 %v10409_v3, %v10361_v25  ;;  %v10272_v51 = vpop.f32.mrf.mxu1  ;;  %v10363_v33 = vpop.f32.mrf.mxu0  ;;  %v20102_v18 = vld [vmem:[#allocation15_spill] sm:$0xff]  ;;  %v20103_v24 = vld [vmem:[#allocation16_spill] sm:$0xff] }
 0xcbf   :  { %v10364_v59 = vadd.f32 %v10363_v33, %v10315_v62  ;;  %v10273_v55 = vadd.f32 %v10272_v51, %v20097_v7 }
 0xcc1   :  { %10814 = vmatmul.bf16.gmra.mxu0 %v20095_v16 }
 0xcc2   :  { %13665 = vmatmul.msk.bf16.gmra.mxu2 %vm7389_vm1, %v20096_v30 }
 0xcc5   :  { %v10321_v48 = vpop.f32.mrf.mxu3  ;;  %v10412_v28 = vpop.f32.mrf.mxu2 }
 0xcc6   :  { %v10322_v20 = vadd.f32 %v10321_v48, %v10273_v55  ;;  %v19223_v39 = vadd.f32 %v10412_v28, %v10364_v59  ;;  %v10275_v47 = vpop.f32.mrf.mxu1  ;;  %v10365_v49 = vpop.f32.mrf.mxu0  ;;  %v20104_v48 = vld [vmem:[#allocation22_spill] sm:$0xff]  ;;  %v20105_v28 = vld [vmem:[#allocation19_spill] sm:$0xff] }
 0xcc7   :  { %v10366_v44 = vadd.f32 %v10365_v49, %v10317_v54  ;;  %v10276_v2 = vadd.f32 %v10275_v47, %v20079_v14 }
 0xcc9   :  { %10726 = vmatmul.bf16.gmra.mxu1 %v20098_v21 }
 0xcca   :  { %10775 = vmatmul.bf16.gmra.mxu3 %v20099_v50 }
 0xccd   :  { %v10324_v23 = vpop.f32.mrf.mxu3  ;;  %v10414_v45 = vpop.f32.mrf.mxu2 }
 0xcce   :  { %v10325_v56 = vadd.f32 %v10324_v23, %v10276_v2  ;;  %v19228_v1 = vadd.f32 %v10414_v45, %v10366_v44  ;;  %v10277_v62 = vpop.f32.mrf.mxu1  ;;  %v10368_v35 = vpop.f32.mrf.mxu0 }
 0xccf   :  { %v10369_v11 = vadd.f32 %v10368_v35, %v10320_v13 }
 0xcd1   :  { %10819 = vmatmul.bf16.gmra.mxu0 %v20100_v57 }
 0xcd2   :  { %13666 = vmatmul.msk.bf16.gmra.mxu2 %vm7389_vm1, %v20101_v58 }
 0xcd5   :  { %v10326_v4 = vpop.f32.mrf.mxu3  ;;  %v10417_v8 = vpop.f32.mrf.mxu2 }
 0xcd6   :  { %v19233_v54 = vadd.f32 %v10417_v8, %v10369_v11  ;;  %v10280_v5 = vpop.f32.mrf.mxu1  ;;  %v10370_v29 = vpop.f32.mrf.mxu0 }
 0xcd7   :  { %v10371_v25 = vadd.f32 %v10370_v29, %v10322_v20  ;;  %v10281_v3 = vadd.f32 %v10280_v5, %v20083_v12  ;;  %v10278_v20 = vadd.f32 %v10277_v62, %v20082_v31  ;;  %v20106_v29 = vld [vmem:[#allocation23_spill] sm:$0xff] }
 0xcd9   :  { %10731 = vmatmul.bf16.gmra.mxu1 %v20102_v18  ;;  %v10327_v49 = vadd.f32 %v10326_v4, %v10278_v20 }
 0xcda   :  { %10780 = vmatmul.bf16.gmra.mxu3 %v20103_v24 }
 0xcdd   :  { %v10329_v51 = vpop.f32.mrf.mxu3  ;;  %v10419_v13 = vpop.f32.mrf.mxu2 }
 0xcde   :  { %v10330_v33 = vadd.f32 %v10329_v51, %v10281_v3  ;;  %v19238_v59 = vadd.f32 %v10419_v13, %v10371_v25  ;;  %v10282_v16 = vpop.f32.mrf.mxu1  ;;  %v10373_v30 = vpop.f32.mrf.mxu0 }
 0xcdf   :  { %v10374_v55 = vadd.f32 %v10373_v30, %v10325_v56  ;;  %v10283_v47 = vadd.f32 %v10282_v16, %v20085_v37 }
 0xce1   :  { %10824 = vmatmul.bf16.gmra.mxu0 %v20104_v48 }
 0xce2   :  { %13667 = vmatmul.msk.bf16.gmra.mxu2 %vm7389_vm1, %v20105_v28 }
 0xce5   :  { %v10331_v44 = vpop.f32.mrf.mxu3  ;;  %v10422_v21 = vpop.f32.mrf.mxu2 }
 0xce6   :  { %v10332_v50 = vadd.f32 %v10331_v44, %v10283_v47  ;;  %v19245_v2 = vadd.f32 %v10422_v21, %v10374_v55  ;;  %v10285_v23 = vpop.f32.mrf.mxu1  ;;  %v10375_v45 = vpop.f32.mrf.mxu0 }
 0xce7   :  { %v10376_v35 = vadd.f32 %v10375_v45, %v10327_v49  ;;  %v10286_v56 = vadd.f32 %v10285_v23, %v20086_v38 }
 0xce9   :  { %10736 = vmatmul.bf16.gmra.mxu1 %v20073_v53 }
 0xcea   :  { %10785 = vmatmul.bf16.gmra.mxu3 %v20004_v46 }
 0xced   :  { %v10334_v11 = vpop.f32.mrf.mxu3  ;;  %v10424_v57 = vpop.f32.mrf.mxu2 }
 0xcee   :  { %v10335_v62 = vadd.f32 %v10334_v11, %v10286_v56  ;;  %v19250_v58 = vadd.f32 %v10424_v57, %v10376_v35  ;;  %v10287_v4 = vpop.f32.mrf.mxu1  ;;  %v10378_v8 = vpop.f32.mrf.mxu0 }
 0xcef   :  { %v10379_v5 = vadd.f32 %v10378_v8, %v10330_v33  ;;  %v10288_v25 = vadd.f32 %v10287_v4, %v20087_v40 }
 0xcf1   :  { %10829 = vmatmul.bf16.gmra.mxu0 %v20106_v29 }
 0xcf2   :  { %13668 = vmatmul.msk.bf16.gmra.mxu2 %vm7389_vm1, %v20084_v34 }
 0xcf5   :  { %v10336_v53 = vpop.f32.mrf.mxu3  ;;  %v10427_v18 = vpop.f32.mrf.mxu2 }
 0xcf6   :  { %v10337_v46 = vadd.f32 %v10336_v53, %v10288_v25  ;;  %v19256_v24 = vadd.f32 %v10427_v18, %v10379_v5  ;;  %v10290_v3 = vpop.f32.mrf.mxu1  ;;  %v10380_v51 = vpop.f32.mrf.mxu0 }
 0xcf7   :  { %v10381_v13 = vadd.f32 %v10380_v51, %v10332_v50  ;;  %v10291_v33 = vadd.f32 %v10290_v3, %v20088_v15 }
 0xcf9   :  { %10741 = vmatmul.bf16.gmra.mxu1 %v20019_v60  ;;  %v13673_v60 = vld [vmem:[%s19356_s5] sm:$0xf] }
 0xcfa   :  { %10790 = vmatmul.bf16.gmra.mxu3 %v20040_v61  ;;  %v14280_v61 = vld [vmem:[%s19356_s5 + $0x4] sm:$0x10] }
 0xcfb   :  { %v13674_v21 = vor.u32 %v14280_v61, %v13673_v60 }
 0xcfd   :  { %v10339_v16 = vpop.f32.mrf.mxu3  ;;  %v10429_v30 = vpop.f32.mrf.mxu2 }
 0xcfe   :  { %v10340_v55 = vadd.f32 %v10339_v16, %v10291_v33  ;;  %v19261_v34 = vadd.f32 %v10429_v30, %v10381_v13  ;;  %v10292_v48 = vpop.f32.mrf.mxu1  ;;  %v10383_v28 = vpop.f32.mrf.mxu0 }
 0xcff   :  { %v10384_v20 = vadd.f32 %v10383_v28, %v10335_v62  ;;  %v10293_v47 = vadd.f32 %v10292_v48, %v20090_v36 }
 0xd01   :  { %10834 = vmatmul.bf16.gmra.mxu0 %v20022_v22 }
 0xd02   :  { %13669 = vmatmul.msk.bf16.gmra.mxu2 %vm7389_vm1, %v20023_v43 }
 0xd05   :  { %v10341_v49 = vpop.f32.mrf.mxu3  ;;  %v10432_v44 = vpop.f32.mrf.mxu2 }
 0xd06   :  { %v10342_v50 = vadd.f32 %v10341_v49, %v10293_v47  ;;  %v19273_v23 = vadd.f32 %v10432_v44, %v10384_v20  ;;  %v10385_v22 = vpop.f32.mrf.mxu0  ;;  %v10707_v45 = vpop.f32.mrf.mxu1 }
 0xd07   :  { %v10386_v35 = vadd.f32 %v10385_v22, %v10337_v46  ;;  %v10708_v43 = vadd.f32 %v10707_v45, %v18584_v63 }
 0xd09   :  { %11110 = vmatmul.bf16.vlgmr.msra.gmra.mxu1 %v13674_v21  ;;  %v10442_v21 = vmax.f32 %v19201_v19, 0.0 }
 0xd0d   :  { %v10434_v56 = vpop.f32.mrf.mxu2  ;;  %v10756_v11 = vpop.f32.mrf.mxu3 }
 0xd0e   :  { %v19276_v57 = vadd.f32 %v10434_v56, %v10386_v35  ;;  %v10757_v62 = vadd.f32 %v10756_v11, %v10708_v43  ;;  %v10388_v4 = vpop.f32.mrf.mxu0  ;;  %v10709_v8 = vpop.f32.mrf.mxu1 }
 0xd0f   :  { %v10389_v5 = vadd.f32 %v10388_v4, %v10340_v55  ;;  %v10710_v29 = vadd.f32 %v10709_v8, %v20089_v0  ;;  %v10443_v4 = vmax.f32 %v19206_v41, 0.0 }
 0xd11   :  { %10839 = vmatmul.bf16.gmra.mxu0 %v18595_v32 }
 0xd12   :  { %13670 = vmatmul.msk.bf16.gmra.mxu2 %vm7389_vm1, %v20057_v52 }
 0xd15   :  { %v10437_v25 = vpop.f32.mrf.mxu2  ;;  %v10758_v53 = vpop.f32.mrf.mxu3 }
 0xd16   :  { %v19282_v18 = vadd.f32 %v10437_v25, %v10389_v5  ;;  %v10759_v63 = vadd.f32 %v10758_v53, %v10710_v29  ;;  %v10390_v46 = vpop.f32.mrf.mxu0  ;;  %v10712_v3 = vpop.f32.mrf.mxu1 }
 0xd17   :  { %v10391_v51 = vadd.f32 %v10390_v46, %v10342_v50  ;;  %v10713_v13 = vadd.f32 %v10712_v3, %v20091_v42 }
 0xd1d   :  { %v10439_v33 = vpop.f32.mrf.mxu2  ;;  %v10761_v16 = vpop.f32.mrf.mxu3 }
 0xd1e   :  { %v19285_v30 = vadd.f32 %v10439_v33, %v10391_v51  ;;  %v10762_v32 = vadd.f32 %v10761_v16, %v10713_v13  ;;  %v10714_v55 = vpop.f32.mrf.mxu1  ;;  %v10805_v48 = vpop.f32.mrf.mxu0  ;;  %v10444_v51 = vmax.f32 %v19212_v10, 0.0 }
 0xd1f   :  { %v10806_v52 = vadd.f32 %v10805_v48, %v10757_v62  ;;  %v10715_v0 = vadd.f32 %v10714_v55, %v20093_v17 }
 0xd25   :  { %v10763_v28 = vpop.f32.mrf.mxu3  ;;  %v10854_v20 = vpop.f32.mrf.mxu2 }
 0xd26   :  { %v10764_v60 = vadd.f32 %v10763_v28, %v10715_v0  ;;  %v10855_v61 = vadd.f32 %v10854_v20, %v10806_v52  ;;  %v10717_v47 = vpop.f32.mrf.mxu1  ;;  %v10807_v49 = vpop.f32.mrf.mxu0  ;;  %v10445_v0 = vmax.f32 %v19217_v9, 0.0 }
 0xd27   :  { %v10808_v44 = vadd.f32 %v10807_v49, %v10759_v63  ;;  %v10718_v22 = vadd.f32 %v10717_v47, %v18511_v26 }
 0xd28   :  { %v10894_v42 = vmax.f32 %v10855_v61, 0.0 }
 0xd2a   :  { %v19289_v50 = vmax.f32 %v10442_v21, %v10894_v42  ;;  %v10446_v42 = vmax.f32 %v19223_v39, 0.0  ;;  %v10448_v39 = vmax.f32 %v19233_v54, 0.0 }
 0xd2d   :  { %v10766_v45 = vpop.f32.mrf.mxu3  ;;  %v10856_v35 = vpop.f32.mrf.mxu2 }
 0xd2e   :  { %v10767_v43 = vadd.f32 %v10766_v45, %v10718_v22  ;;  %v10857_v56 = vadd.f32 %v10856_v35, %v10808_v44  ;;  %v10719_v11 = vpop.f32.mrf.mxu1  ;;  %v10810_v17 = vpop.f32.mrf.mxu0 }
 0xd2f   :  { %v10811_v62 = vadd.f32 %v10810_v17, %v10762_v32  ;;  %v10720_v29 = vadd.f32 %v10719_v11, %v18599_v27  ;;  %v10447_v17 = vmax.f32 %v19228_v1, 0.0  ;;  %v10449_v1 = vmax.f32 %v19238_v59, 0.0 }
 0xd30   :  { %v10895_v8 = vmax.f32 %v10857_v56, 0.0 }
 0xd32   :  { %v19293_v5 = vmax.f32 %v10443_v4, %v10895_v8 }
 0xd35   :  { %v10768_v19 = vpop.f32.mrf.mxu3  ;;  %v10859_v25 = vpop.f32.mrf.mxu2 }
 0xd36   :  { %v10769_v53 = vadd.f32 %v10768_v19, %v10720_v29  ;;  %v10860_v63 = vadd.f32 %v10859_v25, %v10811_v62  ;;  %v10812_v46 = vpop.f32.mrf.mxu0  ;;  %v10722_v26 = vpop.f32.mrf.mxu1 }
 0xd37   :  { %v10813_v3 = vadd.f32 %v10812_v46, %v10764_v60  ;;  %v10723_v16 = vadd.f32 %v10722_v26, %v20094_v6 }
 0xd38   :  { %v10896_v13 = vmax.f32 %v10860_v63, 0.0 }
 0xd3a   :  { %v19297_v33 = vmax.f32 %v10444_v51, %v10896_v13 }
 0xd3d   :  { %v10771_v41 = vpop.f32.mrf.mxu3  ;;  %v10861_v32 = vpop.f32.mrf.mxu2 }
 0xd3e   :  { %v10772_v55 = vadd.f32 %v10771_v41, %v10723_v16  ;;  %v10862_v48 = vadd.f32 %v10861_v32, %v10813_v3  ;;  %v10815_v52 = vpop.f32.mrf.mxu0  ;;  %v10724_v20 = vpop.f32.mrf.mxu1 }
 0xd3f   :  { %v10816_v27 = vadd.f32 %v10815_v52, %v10767_v43  ;;  %v10725_v60 = vadd.f32 %v10724_v20, %v20097_v7  ;;  %v10450_v20 = vmax.f32 %v19245_v2, 0.0 }
 0xd40   :  { %v10897_v28 = vmax.f32 %v10862_v48, 0.0 }
 0xd42   :  { %v19301_v61 = vmax.f32 %v10445_v0, %v10897_v28 }
 0xd45   :  { %v10773_v10 = vpop.f32.mrf.mxu3  ;;  %v10864_v47 = vpop.f32.mrf.mxu2 }
 0xd46   :  { %v10774_v49 = vadd.f32 %v10773_v10, %v10725_v60  ;;  %v10865_v44 = vadd.f32 %v10864_v47, %v10816_v27  ;;  %v10817_v21 = vpop.f32.mrf.mxu0  ;;  %v10727_v56 = vpop.f32.mrf.mxu1 }
 0xd47   :  { %v10818_v6 = vadd.f32 %v10817_v21, %v10769_v53  ;;  %v10728_v16 = vadd.f32 %v10727_v56, %v20079_v14 }
 0xd48   :  { %v10898_v22 = vmax.f32 %v10865_v44, 0.0 }
 0xd4a   :  { %v19305_v45 = vmax.f32 %v10446_v42, %v10898_v22 }
 0xd4d   :  { %v10866_v35 = vpop.f32.mrf.mxu2  ;;  %v10776_v7 = vpop.f32.mrf.mxu3 }
 0xd4e   :  { %v10867_v43 = vadd.f32 %v10866_v35, %v10818_v6  ;;  %v10820_v9 = vpop.f32.mrf.mxu0  ;;  %v10729_v63 = vpop.f32.mrf.mxu1  ;;  %v10777_v32 = vadd.f32 %v10776_v7, %v10728_v16  ;;  %v10451_v35 = vmax.f32 %v19250_v58, 0.0 }
 0xd4f   :  { %v10821_v11 = vadd.f32 %v10820_v9, %v10772_v55  ;;  %v10730_v60 = vadd.f32 %v10729_v63, %v20082_v31 }
 0xd50   :  { %v10899_v62 = vmax.f32 %v10867_v43, 0.0 }
 0xd52   :  { %v19308_v4 = vmax.f32 %v10447_v17, %v10899_v62 }
 0xd55   :  { %v10869_v8 = vpop.f32.mrf.mxu2  ;;  %v10778_v26 = vpop.f32.mrf.mxu3 }
 0xd56   :  { %v10870_v29 = vadd.f32 %v10869_v8, %v10821_v11  ;;  %v10822_v19 = vpop.f32.mrf.mxu0  ;;  %v10732_v48 = vpop.f32.mrf.mxu1  ;;  %v10779_v47 = vadd.f32 %v10778_v26, %v10730_v60 }
 0xd57   :  { %v10823_v25 = vadd.f32 %v10822_v19, %v10774_v49  ;;  %v10733_v43 = vadd.f32 %v10732_v48, %v20083_v12 }
 0xd58   :  { %v10900_v53 = vmax.f32 %v10870_v29, 0.0  ;;  %v10452_v29 = vmax.f32 %v19256_v24, 0.0 }
 0xd5a   :  { %v19311_v46 = vmax.f32 %v10448_v39, %v10900_v53 }
 0xd5d   :  { %v10871_v3 = vpop.f32.mrf.mxu2  ;;  %v10781_v27 = vpop.f32.mrf.mxu3 }
 0xd5e   :  { %v10872_v51 = vadd.f32 %v10871_v3, %v10823_v25  ;;  %v10825_v13 = vpop.f32.mrf.mxu0  ;;  %v10734_v44 = vpop.f32.mrf.mxu1  ;;  %v10782_v56 = vadd.f32 %v10781_v27, %v10733_v43 }
 0xd5f   :  { %v10826_v52 = vadd.f32 %v10825_v13, %v10777_v32  ;;  %v10735_v19 = vadd.f32 %v10734_v44, %v20085_v37  ;;  %v10455_v44 = vmax.f32 %v19276_v57, 0.0 }
 0xd60   :  { %v10901_v41 = vmax.f32 %v10872_v51, 0.0  ;;  %v10453_v51 = vmax.f32 %v19261_v34, 0.0 }
 0xd62   :  { %v19315_v55 = vmax.f32 %v10449_v1, %v10901_v41 }
 0xd65   :  { %v10874_v54 = vpop.f32.mrf.mxu2  ;;  %v10783_v22 = vpop.f32.mrf.mxu3 }
 0xd66   :  { %v10875_v0 = vadd.f32 %v10874_v54, %v10826_v52  ;;  %v10827_v28 = vpop.f32.mrf.mxu0  ;;  %v10737_v8 = vpop.f32.mrf.mxu1  ;;  %v10784_v39 = vadd.f32 %v10783_v22, %v10735_v19 }
 0xd67   :  { %v10828_v14 = vadd.f32 %v10827_v28, %v10779_v47  ;;  %v10738_v13 = vadd.f32 %v10737_v8, %v20086_v38  ;;  %v10457_v8 = vmax.f32 %v19285_v30, 0.0  ;;  %v14279_v30 = vld [vmem:[%s19356_s5 + $0x4] sm:$0xf] }
 0xd68   :  { %v10902_v10 = vmax.f32 %v10875_v0, 0.0  ;;  %v10454_v0 = vmax.f32 %v19273_v23, 0.0 }
 0xd6a   :  { %v10918_v49 = vmax.f32 %v10450_v20, %v10902_v10 }
 0xd6c   :  { %v10926_v59 = vmax.f32 %v19289_v50, %v10918_v49 }
 0xd6d   :  { %v10876_v21 = vpop.f32.mrf.mxu2  ;;  %v10786_v58 = vpop.f32.mrf.mxu3 }
 0xd6e   :  { %v10877_v6 = vadd.f32 %v10876_v21, %v10828_v14  ;;  %v10830_v42 = vpop.f32.mrf.mxu0  ;;  %v10739_v16 = vpop.f32.mrf.mxu1  ;;  %v10787_v24 = vadd.f32 %v10786_v58, %v10738_v13 }
 0xd6f   :  { %v10831_v11 = vadd.f32 %v10830_v42, %v10782_v56  ;;  %v10740_v28 = vadd.f32 %v10739_v16, %v20087_v40  ;;  %v10989_v16 = vpop.permute.xlu2 %10988 }
 0xd70   :  { %v10903_v9 = vmax.f32 %v10877_v6, 0.0 }
 0xd72   :  { %v10919_v2 = vmax.f32 %v10451_v35, %v10903_v9 }
 0xd74   :  { %v10927_v31 = vmax.f32 %v19293_v5, %v10919_v2  ;;  %v10456_v2 = vmax.f32 %v19282_v18, 0.0 }
 0xd75   :  { %v10879_v17 = vpop.f32.mrf.mxu2  ;;  %v10788_v37 = vpop.f32.mrf.mxu3 }
 0xd76   :  { %v14720_v62 = vpack.c.bf16 %v10927_v31, %v10926_v59  ;;  %v10880_v7 = vadd.f32 %v10879_v17, %v10831_v11  ;;  %v10832_v50 = vpop.f32.mrf.mxu0  ;;  %v10789_v20 = vadd.f32 %v10788_v37, %v10740_v28  ;;  %v10742_v60 = vpop.f32.mrf.mxu1 }
 0xd77   :  { %v10833_v63 = vadd.f32 %v10832_v50, %v10784_v39  ;;  %v10743_v21 = vadd.f32 %v10742_v60, %v20088_v15 }
 0xd78   :  { %14819 = vst [vmem:[#allocation3 + $0x48] sm:$0xff] %v14720_v62   ;;  %v10904_v25 = vmax.f32 %v10880_v7, 0.0 }
 0xd7a   :  { %v10920_v12 = vmax.f32 %v10452_v29, %v10904_v25 }
 0xd7c   :  { %v10928_v53 = vmax.f32 %v19297_v33, %v10920_v12 }
 0xd7d   :  { %v10881_v26 = vpop.f32.mrf.mxu2  ;;  %v10791_v49 = vpop.f32.mrf.mxu3 }
 0xd7e   :  { %v10882_v5 = vadd.f32 %v10881_v26, %v10833_v63  ;;  %v10835_v3 = vpop.f32.mrf.mxu0  ;;  %v10792_v23 = vadd.f32 %v10791_v49, %v10743_v21  ;;  %v10744_v35 = vpop.f32.mrf.mxu1  ;;  %v14290_v63 = vld [vmem:[#allocation3 + $0x58] sm:$0xff]  ;;  %v14289_v26 = vld [vmem:[#allocation3 + $0x8] sm:$0xff] }
 0xd7f   :  { %v10836_v48 = vadd.f32 %v10835_v3, %v10787_v24  ;;  %v10745_v31 = vadd.f32 %v10744_v35, %v20090_v36  ;;  %v14293_v12 = vld [vmem:[#allocation3 + $0x48] sm:$0xff] }
 0xd80   :  { %v10905_v1 = vmax.f32 %v10882_v5, 0.0 }
 0xd82   :  { %v10921_v41 = vmax.f32 %v10453_v51, %v10905_v1  ;;  %v10994_v1 = vpop.permute.xlu1 %10993 }
 0xd84   :  { %v10929_v32 = vmax.f32 %v19301_v61, %v10921_v41 }
 0xd85   :  { %v10884_v52 = vpop.f32.mrf.mxu2 }
 0xd86   :  { %v14725_v27 = vpack.c.bf16 %v10929_v32, %v10928_v53  ;;  %v10885_v54 = vadd.f32 %v10884_v52, %v10836_v48  ;;  %v10837_v33 = vpop.f32.mrf.mxu0  ;;  %v14291_v53 = vld [vmem:[#allocation3 + $0x40] sm:$0xff]  ;;  %v11111_v3 = vpop.f32.mrf.mxu1 }
 0xd87   :  { %v10838_v47 = vadd.f32 %v10837_v33, %v10789_v20  ;;  %v11112_v41 = vadd.f32 %v11111_v3, %v10989_v16  ;;  %v11130_v33 = vlaneseq }
 0xd88   :  { %14820 = vst [vmem:[#allocation3 + $0x20] sm:$0xff] %v14725_v27   ;;  %v10906_v34 = vmax.f32 %v10885_v54, 0.0 }
 0xd8a   :  { %v10922_v38 = vmax.f32 %v10454_v0, %v10906_v34  ;;  %v11131_v34 = vshrl.u32 %v11130_v33, 7 }
 0xd8c   :  { %v10930_v10 = vmax.f32 %v19305_v45, %v10922_v38  ;;  %v10793_v45 = vpop.f32.mrf.mxu3  ;;  %v11132_v60 = vadd.s32 8, %v11131_v34 }
 0xd8d   :  { %v10886_v59 = vpop.f32.mrf.mxu2  ;;  %v10794_v17 = vadd.f32 %v10793_v45, %v10745_v31 }
 0xd8e   :  { %v10887_v61 = vadd.f32 %v10886_v59, %v10838_v47  ;;  %v10840_v14 = vpop.f32.mrf.mxu0  ;;  %v11113_v13 = vpop.f32.mrf.mxu1 }
 0xd8f   :  { %v10841_v22 = vadd.f32 %v10840_v14, %v10792_v23  ;;  %v14294_v39 = vld [vmem:[#allocation3 + $0x20] sm:$0xff]  ;;  %v11114_v24 = vadd.f32 %v11113_v13, %v10994_v1 }
 0xd90   :  { %v10907_v6 = vmax.f32 %v10887_v61, 0.0 }
 0xd92   :  { %v10923_v42 = vmax.f32 %v10455_v44, %v10907_v6 }
 0xd94   :  { %v10931_v40 = vmax.f32 %v19308_v4, %v10923_v42 }
 0xd95   :  { %v10889_v43 = vpop.f32.mrf.mxu2 }
 0xd96   :  { %v14730_v9 = vpack.c.bf16 %v10931_v40, %v10930_v10  ;;  %v10890_v56 = vadd.f32 %v10889_v43, %v10841_v22  ;;  %v10842_v57 = vpop.f32.mrf.mxu0 }
 0xd97   :  { %v10843_v7 = vadd.f32 %v10842_v57, %v10794_v17 }
 0xd98   :  { %14821 = vst [vmem:[#allocation3 + $0x78] sm:$0xff] %v14730_v9   ;;  %v10908_v11 = vmax.f32 %v10890_v56, 0.0 }
 0xd9a   :  { %v10924_v15 = vmax.f32 %v10456_v2, %v10908_v11 }
 0xd9c   :  { %v10932_v62 = vmax.f32 %v19311_v46, %v10924_v15  ;;  %v14292_v46 = vld [vmem:[#allocation3 + $0x28] sm:$0xff] }
 0xd9d   :  { %v10891_v50 = vpop.f32.mrf.mxu2 }
 0xd9e   :  { %v10892_v4 = vadd.f32 %v10891_v50, %v10843_v7 }
 0xd9f   :  { %v14295_v36 = vld [vmem:[#allocation3 + $0x78] sm:$0xff] }
 0xda0   :  { %v10909_v29 = vmax.f32 %v10892_v4, 0.0 }
 0xda2   :  { %v10925_v19 = vmax.f32 %v10457_v8, %v10909_v29 }
 0xda4   :  { %v10933_v25 = vmax.f32 %v19315_v55, %v10925_v19  ;;  %v13675_v55 = vld [vmem:[%s19356_s5 + $0x8] sm:$0x10]  ;;  %s14855_s5 = smov [#allocation4]  }
 0xda5   :  { %v13678_v5 = vor.u32 %v14279_v30, %v13675_v55  ;;  %s11164_s20 = sshll.u32 %s14855_s5, 4  ;;  %s11165_s20 = int_to_ptr.vmem [resolvable:$true] %s11164_s20 }
 0xda6   :  { %v14735_v58 = vpack.c.bf16 %v10933_v25, %v10932_v62 }
 0xda8   :  { %14822 = vst [vmem:[#allocation3 + $0x60] sm:$0xff] %v14735_v58  }
 0xdaf   :  { %v14296_v18 = vld [vmem:[#allocation3 + $0x60] sm:$0xff] }
 0xdb0   :  { %11116 = vmatpush.bf16.msra.mxu3 %v14296_v18 }
 0xdb4   :  { %11117 = vmatpush.bf16.msra.mxu3 %v14295_v36 }
 0xdb8   :  { %11118 = vmatpush.bf16.msra.mxu3 %v14294_v39 }
 0xdbc   :  { %11119 = vmatpush.bf16.msra.mxu3 %v14293_v12 }
 0xdc0   :  { %11120 = vmatpush.bf16.msra.mxu3 %v14292_v46 }
 0xdc4   :  { %11121 = vmatpush.bf16.msra.mxu3 %v14291_v53 }
 0xdc8   :  { %11122 = vmatpush.bf16.msra.mxu3 %v14290_v63 }
 0xdcc   :  { %11123 = vmatpush.bf16.msra.mxu3 %v14289_v26 }
 0xdcf   :  { %11124 = vmatmul.bf16.vlgmr.msra.gmra.mxu3 %v13678_v5 }
 0xe52   :  { %v11125_v51 = vpop.f32.mrf.mxu3 }
 0xe53   :  { %v11126_v48 = vadd.f32 %v11125_v51, %v11112_v41 }
 0xe5a   :  { %v11127_v37 = vpop.f32.mrf.mxu3 }
 0xe5b   :  { %v11128_v32 = vadd.f32 %v11127_v37, %v11114_v24 }
 0xe5d   :  { %v11134_v52 = vsel %vm11133_vm2, %v11128_v32, -inf }
 0xe5e   :  { %v11135_v27 = vmax.f32 %v11126_v48, %v11134_v52 }
 0xe60   :  { %v11136_v54 = vrot.slane %v11135_v27, 4 }
 0xe62   :  { %v11137_v0 = vmax.f32 %v11135_v27, %v11136_v54 }
 0xe64   :  { %v11138_v28 = vrot.slane %v11137_v0, 2 }
 0xe66   :  { %v11139_v20 = vmax.f32 %v11137_v0, %v11138_v28 }
 0xe68   :  { %v11140_v38 = vrot.slane %v11139_v20, 1 }
 0xe6a   :  { %v11141_v10 = vmax.f32 %v11139_v20, %v11140_v38 }
 0xe6c   :  { %vm11142_vm3 = vcmp.eq.f32.partialorder %v11126_v48, %v11141_v10  ;;  %vm11143_vm4 = vcmp.eq.f32.partialorder %v11128_v32, %v11141_v10 }
 0xe6d   :  { %v11144_v47 = vsel %vm11142_vm3, %v11131_v34, 10  ;;  %v11145_v49 = vsel %vm11143_vm4, %v11132_v60, 10 }
 0xe6e   :  { %v11146_v59 = vsel %vm11133_vm2, %v11145_v49, 2147483647 }
 0xe6f   :  { %vm11147_vm5 = vcmp.lt.s32.totalorder %v11144_v47, %v11146_v59 }
 0xe70   :  { %v11148_v61 = vsel %vm11147_vm5, %v11144_v47, %v11146_v59 }
 0xe71   :  { %v11149_v14 = vrot.slane %v11148_v61, 4 }
 0xe73   :  { %vm11150_vm6 = vcmp.lt.s32.totalorder %v11148_v61, %v11149_v14 }
 0xe74   :  { %v11151_v44 = vsel %vm11150_vm6, %v11148_v61, %v11149_v14 }
 0xe75   :  { %v11152_v21 = vrot.slane %v11151_v44, 2 }
 0xe77   :  { %vm11153_vm7 = vcmp.lt.s32.totalorder %v11151_v44, %v11152_v21 }
 0xe78   :  { %v11154_v6 = vsel %vm11153_vm7, %v11151_v44, %v11152_v21 }
 0xe79   :  { %v11155_v23 = vrot.slane %v11154_v6, 1 }
 0xe7b   :  { %vm11156_vm8 = vcmp.lt.s32.totalorder %v11154_v6, %v11155_v23 }
 0xe7c   :  { %v11157_v42 = vsel %vm11156_vm8, %v11154_v6, %v11155_v23 }
 0xe7d   :  { %11158 = vst [vmem:[#allocation4] sm:$0x1] %v11157_v42 }
 0xe7e   :  { %11169 = dma.vmem_to_hbm [thread:$0]  %s11165_s20, 16, %s11167_s4, [#allocation5]  }
 0xe7f   :  { %14852 = dma.done.wait [#allocation5], 16  }
 0xe80   :  { %14853 = vsyncadd [#allocation5], 4294967280 }
 0xe81   :  { %11174 = vsyncpa [#allocation5], 1 }

</bundles_post_ra>
